<compile_context>
chip_gen: v7x
topology: tpu7x:2x2x1
jax: 0.10.0
libtpu: 0.0.40
codegen_flags: <defaults>
</compile_context>

<pallas_src>
import jax
import jax.numpy as jnp
from jax.experimental import pallas as pl
from jax.experimental.pallas import tpu as pltpu

H = 128              # dim_RNN_g == dim_RNN_h == all dense hidden widths (defaults)
ZP = 128             # padded lane width for the z bottleneck (z_dim <= ZP)
TIME_CHUNK_CAP = 16  # max timesteps unrolled per grid step (VMEM/compile friendly)

PREC = jax.lax.Precision.HIGHEST


def _pick_chunk(T, cap=TIME_CHUNK_CAP):
    """Largest divisor of T not exceeding `cap` (static, trace-time)."""
    for c in range(min(T, cap), 0, -1):
        if T % c == 0:
            return c
    return 1


# --------------------------------------------------------------------------- #
# Pallas kernel: the serial recurrence (LSTM_g -> z-path -> LSTM_h per step)   #
# --------------------------------------------------------------------------- #
def storn_recurrent_kernel(gin_g_ref, gin_hx_ref, eps_ref,
                           whh_g_ref, w_gz_ref, b_gz_ref,
                           w_mulv_ref, b_mulv_ref,
                           w_zh_ref, b_zh_ref, w_hstack_ref,
                           g_ref, h_ref,
                           hg, cg, hh, ch):
    chunk = pl.program_id(0)

    @pl.when(chunk == 0)
    def _():
        hg[...] = jnp.zeros_like(hg)
        cg[...] = jnp.zeros_like(cg)
        hh[...] = jnp.zeros_like(hh)
        ch[...] = jnp.zeros_like(ch)

    Tc = gin_g_ref.shape[0]
    B = gin_g_ref.shape[1]
    zp = eps_ref.shape[2]          # padded z width (== ZP)

    # Small biases: broadcast once per chunk, reused by every unrolled step.
    b_gz = jnp.broadcast_to(b_gz_ref[...], (B, H))
    b_zh = jnp.broadcast_to(b_zh_ref[...], (B, H))
    b_mulv = jnp.broadcast_to(b_mulv_ref[...], (B, 2 * zp))

    def dot(a, b):
        return jnp.dot(a, b, preferred_element_type=jnp.float32)

    def lstm_cell(gates, c_prev):
        # PyTorch gate order (i, f, g, o); slices are 128-lane aligned.
        i = jax.nn.sigmoid(gates[:, 0 * H:1 * H])
        f = jax.nn.sigmoid(gates[:, 1 * H:2 * H])
        g = jnp.tanh(gates[:, 2 * H:3 * H])
        o = jax.nn.sigmoid(gates[:, 3 * H:4 * H])
        c_new = f * c_prev + i * g
        return o * jnp.tanh(c_new), c_new

    h_g, c_g = hg[...], cg[...]
    h_h, c_h = hh[...], ch[...]

    # Fully unrolled time loop over the chunk: one straight-line block so the
    # LLO scheduler can overlap MXU / EUP / VPU work of adjacent timesteps
    # (g-recurrence of step t+1 overlaps the z-path / h-recurrence of step t).
    for i in range(Tc):
        # --- inference LSTM (rnn_g): only the recurrent matmul stays in-loop ---
        h_g, c_g = lstm_cell(gin_g_ref[i] + dot(h_g, whh_g_ref[...]), c_g)

        # --- bottleneck + reparameterization (feeds rnn_h, must stay in-loop) --
        # inf_mean / inf_logvar fused into one matmul; halves are 128-aligned.
        gz = jnp.tanh(dot(h_g, w_gz_ref[...]) + b_gz)
        mulv = dot(gz, w_mulv_ref[...]) + b_mulv
        zmu = mulv[:, :zp]
        zlv = mulv[:, zp:2 * zp]
        z = zmu + eps_ref[i] * jnp.exp(0.5 * zlv)     # padded lanes stay 0

        # --- generation LSTM (rnn_h): z-projection + fused [zh,h] matmul ------
        zh = jnp.tanh(dot(z, w_zh_ref[...]) + b_zh)
        gates_h = gin_hx_ref[i] + dot(jnp.concatenate([zh, h_h], axis=-1),
                                      w_hstack_ref[...])
        h_h, c_h = lstm_cell(gates_h, c_h)

        # Lane-dense 128-wide per-step stores; everything downstream of g/h
        # that does not feed back is recomputed batched in the wrapper.
        g_ref[i] = h_g
        h_ref[i] = h_h

    hg[...], cg[...] = h_g, c_g
    hh[...], ch[...] = h_h, c_h


# --------------------------------------------------------------------------- #
# Wrapper: hoisted batched pre/post compute + the recurrent pallas_call        #
# --------------------------------------------------------------------------- #
@jax.jit
def storn_forward(x, eps, params):
    """x: (B, x_dim, T) like the PyTorch module. eps: (T, B, z_dim)."""
    B, x_dim, T = x.shape
    z_dim = params['w_mu'].shape[1]
    assert z_dim <= ZP
    f32 = jnp.float32
    mm = lambda a, b: jnp.dot(a, b, precision=PREC)

    x_tbd = jnp.transpose(x, (2, 0, 1)).astype(f32)            # (T, B, x_dim)
    x_flat = x_tbd.reshape(T * B, x_dim)
    x_tm1_flat = jnp.concatenate(                               # x shifted by one step
        [jnp.zeros((B, x_dim), f32), x_flat[:-B]], axis=0)

    # ---------- hoisted pre-pass: big (T*B, .) matmuls, fully parallel ----------
    xg = jnp.tanh(mm(x_flat, params['w_xg']) + params['b_xg'])
    gin_g = (mm(xg, params['wih_g']) + params['b_g']).reshape(T, B, 4 * H)

    xh = jnp.tanh(mm(x_tm1_flat, params['w_xh']) + params['b_xh'])
    wih_h_x = params['wih_h'][H:2 * H]                          # x_tm1 half of W_ih_h
    gin_hx = (mm(xh, wih_h_x) + params['b_h']).reshape(T, B, 4 * H)

    # Fused in-kernel weights:
    #   [W_ih_h(z half); W_hh_h] -> one (2H,4H) matmul/step
    w_hstack = jnp.concatenate([params['wih_h'][:H], params['whh_h']], axis=0)
    #   [inf_mean | inf_logvar] padded to 128-lane-aligned halves -> one matmul/step
    w_mulv = jnp.zeros((H, 2 * ZP), f32)
    w_mulv = w_mulv.at[:, :z_dim].set(params['w_mu'])
    w_mulv = w_mulv.at[:, ZP:ZP + z_dim].set(params['w_lv'])
    b_mulv = jnp.zeros((1, 2 * ZP), f32)
    b_mulv = b_mulv.at[:, :z_dim].set(params['b_mu'])
    b_mulv = b_mulv.at[:, ZP:ZP + z_dim].set(params['b_lv'])
    #   mlp_z_h weight padded to a full 128-deep contraction (extra rows are zero)
    w_zh_pad = jnp.zeros((ZP, H), f32).at[:z_dim].set(params['w_zh'])
    #   eps zero-padded to 128 lanes so the bottleneck runs on full vregs
    eps_pad = jnp.pad(eps.astype(f32), ((0, 0), (0, 0), (0, ZP - z_dim)))

    weights = [params['whh_g'],
               params['w_gz'], params['b_gz'],
               w_mulv, b_mulv,
               w_zh_pad, params['b_zh'],
               w_hstack]

    # ---------- recurrent Pallas kernel (time chunked, state in VMEM) ----------
    Tc = _pick_chunk(T)
    n_chunks = T // Tc

    seq_spec = lambda d: pl.BlockSpec((Tc, B, d), lambda c: (c, 0, 0))
    w_spec = lambda w: pl.BlockSpec(w.shape, lambda c: (0,) * w.ndim)

    grid_spec = pltpu.PrefetchScalarGridSpec(
        num_scalar_prefetch=0,
        grid=(n_chunks,),
        in_specs=([seq_spec(4 * H), seq_spec(4 * H), seq_spec(ZP)]
                  + [w_spec(w) for w in weights]),
        out_specs=[seq_spec(H), seq_spec(H)],
        scratch_shapes=[pltpu.VMEM((B, H), f32),   # h_g
                        pltpu.VMEM((B, H), f32),   # c_g
                        pltpu.VMEM((B, H), f32),   # h_h
                        pltpu.VMEM((B, H), f32)],  # c_h
    )

    g_seq, h_seq = pl.pallas_call(
        storn_recurrent_kernel,
        out_shape=(jax.ShapeDtypeStruct((T, B, H), f32),
                   jax.ShapeDtypeStruct((T, B, H), f32)),
        grid_spec=grid_spec,
        compiler_params=pltpu.CompilerParams(
            dimension_semantics=("arbitrary",)),   # true recurrence over time
    )(gin_g, gin_hx, eps_pad, *weights)

    # ---------- hoisted post-pass: output heads, fully parallel -----------------
    g_flat = g_seq.reshape(T * B, H)
    gz = jnp.tanh(mm(g_flat, params['w_gz']) + params['b_gz'])
    zmu = mm(gz, params['w_mu']) + params['b_mu']
    zlv = mm(gz, params['w_lv']) + params['b_lv']
    z = zmu + eps.reshape(T * B, z_dim).astype(f32) * jnp.exp(0.5 * zlv)

    h_flat = h_seq.reshape(T * B, H)
    hx = jnp.tanh(mm(h_flat, params['w_hx']) + params['b_hx'])
    y = jnp.exp(mm(hx, params['w_gen']) + params['b_gen'])

    y = y.reshape(T, B, x_dim)
    z = z.reshape(T, B, z_dim)
    zmu = zmu.reshape(T, B, z_dim)
    zlv = zlv.reshape(T, B, z_dim)

    perm = lambda a: jnp.transpose(a, (1, 2, 0))   # == .permute(1, -1, 0)
    return perm(y), perm(z), perm(zmu), perm(zlv)


# --------------------------------------------------------------------------- #
# Synthetic parameters + pure-JAX reference                                    #
# --------------------------------------------------------------------------- #
def init_params(key, x_dim, z_dim):
    """Deterministic synthetic parameters (PyTorch-default-style uniform init)."""
    keys = jax.random.split(key, 16)

    def lin(k, fan_in, fan_out):
        bound = 1.0 / jnp.sqrt(jnp.float32(fan_in))
        kw, kb = jax.random.split(k)
        w = jax.random.uniform(kw, (fan_in, fan_out), jnp.float32, -bound, bound)
        b = jax.random.uniform(kb, (1, fan_out), jnp.float32, -bound, bound)
        return w, b

    bound = 1.0 / jnp.sqrt(jnp.float32(H))
    p = {}
    p['w_xg'], p['b_xg'] = lin(keys[0], x_dim, H)                       # mlp_x_g
    p['wih_g'] = jax.random.uniform(keys[1], (H, 4 * H), jnp.float32, -bound, bound)
    p['whh_g'] = jax.random.uniform(keys[2], (H, 4 * H), jnp.float32, -bound, bound)
    p['b_g'] = jax.random.uniform(keys[3], (1, 4 * H), jnp.float32, -bound, bound)
    p['w_gz'], p['b_gz'] = lin(keys[4], H, H)                           # mlp_g_z
    p['w_mu'], p['b_mu'] = lin(keys[5], H, z_dim)                       # inf_mean
    p['w_lv'], p['b_lv'] = lin(keys[6], H, z_dim)                       # inf_logvar
    p['w_zh'], p['b_zh'] = lin(keys[7], z_dim, H)                       # mlp_z_h
    p['w_xh'], p['b_xh'] = lin(keys[8], x_dim, H)                       # mlp_xtm1_h
    p['wih_h'] = jax.random.uniform(keys[9], (2 * H, 4 * H), jnp.float32, -bound, bound)
    p['whh_h'] = jax.random.uniform(keys[10], (H, 4 * H), jnp.float32, -bound, bound)
    p['b_h'] = jax.random.uniform(keys[11], (1, 4 * H), jnp.float32, -bound, bound)
    p['w_hx'], p['b_hx'] = lin(keys[12], H, H)                          # mlp_h_x
    p['w_gen'], p['b_gen'] = lin(keys[13], H, x_dim)                    # gen_logvar
    return p


def storn_ref(x, eps, p):
    """Pure-JAX reference mirroring the PyTorch forward (dropout p=0)."""
    B, x_dim, T = x.shape
    mm = lambda a, b: jnp.dot(a, b, precision=PREC)
    xt = jnp.transpose(x, (2, 0, 1)).astype(jnp.float32)
    x_tm1 = jnp.concatenate([jnp.zeros((1, B, x_dim), jnp.float32), xt[:-1]], 0)

    def lstm(inp, wih, whh, b):
        def step(carry, u):
            h, c = carry
            gates = mm(u, wih) + mm(h, whh) + b[0]
            i = jax.nn.sigmoid(gates[:, 0 * H:1 * H])
            f = jax.nn.sigmoid(gates[:, 1 * H:2 * H])
            g = jnp.tanh(gates[:, 2 * H:3 * H])
            o = jax.nn.sigmoid(gates[:, 3 * H:4 * H])
            c = f * c + i * g
            h = o * jnp.tanh(c)
            return (h, c), h
        init = (jnp.zeros((B, H), jnp.float32), jnp.zeros((B, H), jnp.float32))
        _, hs = jax.lax.scan(step, init, inp)
        return hs

    xg = jnp.tanh(mm(xt, p['w_xg']) + p['b_xg'][0])
    g = lstm(xg, p['wih_g'], p['whh_g'], p['b_g'])
    gz = jnp.tanh(mm(g, p['w_gz']) + p['b_gz'][0])
    zmu = mm(gz, p['w_mu']) + p['b_mu'][0]
    zlv = mm(gz, p['w_lv']) + p['b_lv'][0]
    z = zmu + eps * jnp.exp(0.5 * zlv)
    zh = jnp.tanh(mm(z, p['w_zh']) + p['b_zh'][0])
    xh = jnp.tanh(mm(x_tm1, p['w_xh']) + p['b_xh'][0])
    zx = jnp.concatenate([zh, xh], -1)
    h = lstm(zx, p['wih_h'], p['whh_h'], p['b_h'])
    hx = jnp.tanh(mm(h, p['w_hx']) + p['b_hx'][0])
    y = jnp.exp(mm(hx, p['w_gen']) + p['b_gen'][0])
    perm = lambda a: jnp.transpose(a, (1, 2, 0))
    return perm(y), perm(z), perm(zmu), perm(zlv)


# TODO(synk): the compute_loss branch of the PyTorch forward (get_loss) is not
# implemented; only the default forward path is translated.

if __name__ == "__main__":
    key = jax.random.PRNGKey(0)
    k_param, k_x, k_eps, k_x2, k_eps2 = jax.random.split(key, 5)

    B, x_dim, z_dim = 8, 16, 16
    params = init_params(k_param, x_dim, z_dim)

    def run_case(T, kx, keps):
        # Positive spectrogram-like input (module targets |STFT|^2 frames).
        x = jax.random.uniform(kx, (B, x_dim, T), jnp.float32, 0.1, 1.0)
        # Deterministic reparameterization noise (stand-in for torch.randn_like).
        eps = jax.random.normal(keps, (T, B, z_dim), jnp.float32)

        outs = storn_forward(x, eps, params)
        jax.block_until_ready(outs)
        refs = storn_ref(x, eps, params)

        for name, a, r in zip(("y", "z", "z_mean", "z_logvar"), outs, refs):
            assert a.shape == r.shape, f"{name} shape mismatch (T={T})"
            assert jnp.allclose(a, r, rtol=1e-4, atol=1e-4), \
                f"{name} mismatch vs JAX reference (T={T})"

    run_case(8, k_x, k_eps)       # single time-chunk (grid=(1,))
    run_case(48, k_x2, k_eps2)    # multi-chunk: LSTM state carried across grid steps

    print("KERNEL_OK")
</pallas_src>

<mosaic_0001>
module attributes {stable_mosaic.version = 11 : i64} {
  func.func @storn_recurrent_kernel(%arg0: i32, %arg1: memref<8x8x512xf32, #tpu.memory_space<vmem>>, %arg2: memref<8x8x512xf32, #tpu.memory_space<vmem>>, %arg3: memref<8x8x128xf32, #tpu.memory_space<vmem>>, %arg4: memref<128x512xf32, #tpu.memory_space<vmem>>, %arg5: memref<128x128xf32, #tpu.memory_space<vmem>>, %arg6: memref<1x128xf32, #tpu.memory_space<vmem>>, %arg7: memref<128x256xf32, #tpu.memory_space<vmem>>, %arg8: memref<1x256xf32, #tpu.memory_space<vmem>>, %arg9: memref<128x128xf32, #tpu.memory_space<vmem>>, %arg10: memref<1x128xf32, #tpu.memory_space<vmem>>, %arg11: memref<256x512xf32, #tpu.memory_space<vmem>>, %arg12: memref<8x8x128xf32, #tpu.memory_space<vmem>>, %arg13: memref<8x8x128xf32, #tpu.memory_space<vmem>>, %arg14: memref<8x128xf32, #tpu.memory_space<vmem>>, %arg15: memref<8x128xf32, #tpu.memory_space<vmem>>, %arg16: memref<8x128xf32, #tpu.memory_space<vmem>>, %arg17: memref<8x128xf32, #tpu.memory_space<vmem>>) attributes {dimension_semantics = [#tpu.dimension_semantics<arbitrary>], iteration_bounds = array<i64: 1>, scalar_prefetch = 0 : i64, scratch_operands = 4 : i64, tpu.core_type = #tpu.core_type<tc>, window_params = [{transform_indices = @transform_0, window_bounds = array<i64: 8, 8, 512>}, {transform_indices = @transform_1, window_bounds = array<i64: 8, 8, 512>}, {transform_indices = @transform_2, window_bounds = array<i64: 8, 8, 128>}, {pipeline_mode = #tpu.pipeline_mode<synchronous>, transform_indices = @transform_3, window_bounds = array<i64: 128, 512>}, {pipeline_mode = #tpu.pipeline_mode<synchronous>, transform_indices = @transform_4, window_bounds = array<i64: 128, 128>}, {pipeline_mode = #tpu.pipeline_mode<synchronous>, transform_indices = @transform_5, window_bounds = array<i64: 1, 128>}, {pipeline_mode = #tpu.pipeline_mode<synchronous>, transform_indices = @transform_6, window_bounds = array<i64: 128, 256>}, {pipeline_mode = #tpu.pipeline_mode<synchronous>, transform_indices = @transform_7, window_bounds = array<i64: 1, 256>}, {pipeline_mode = #tpu.pipeline_mode<synchronous>, transform_indices = @transform_8, window_bounds = array<i64: 128, 128>}, {pipeline_mode = #tpu.pipeline_mode<synchronous>, transform_indices = @transform_9, window_bounds = array<i64: 1, 128>}, {pipeline_mode = #tpu.pipeline_mode<synchronous>, transform_indices = @transform_10, window_bounds = array<i64: 256, 512>}, {transform_indices = @transform_11, window_bounds = array<i64: 8, 8, 128>}, {transform_indices = @transform_12, window_bounds = array<i64: 8, 8, 128>}]} {
    %c0_i32 = arith.constant 0 : i32
    %0 = arith.cmpi eq, %arg0, %c0_i32 : i32
    %1 = arith.extui %0 : i1 to i32
    %c0_i32_0 = arith.constant 0 : i32
    %2 = arith.cmpi ne, %1, %c0_i32_0 : i32
    scf.if %2 {
      %cst_310 = arith.constant 0.000000e+00 : f32
      %716 = vector.broadcast %cst_310 : f32 to vector<8x128xf32>
      %c0_311 = arith.constant 0 : index
      %c0_312 = arith.constant 0 : index
      %717 = vector.load %arg14[%c0_311, %c0_312] : memref<8x128xf32, #tpu.memory_space<vmem>>, vector<8x128xf32>
      tpu.vector_store %arg14[%c0_311, %c0_312], %716 {strides = array<i32>} : memref<8x128xf32, #tpu.memory_space<vmem>>, vector<8x128xf32>,
      %cst_313 = arith.constant 0.000000e+00 : f32
      %718 = vector.broadcast %cst_313 : f32 to vector<8x128xf32>
      %c0_314 = arith.constant 0 : index
      %c0_315 = arith.constant 0 : index
      %719 = vector.load %arg15[%c0_314, %c0_315] : memref<8x128xf32, #tpu.memory_space<vmem>>, vector<8x128xf32>
      tpu.vector_store %arg15[%c0_314, %c0_315], %718 {strides = array<i32>} : memref<8x128xf32, #tpu.memory_space<vmem>>, vector<8x128xf32>,
      %cst_316 = arith.constant 0.000000e+00 : f32
      %720 = vector.broadcast %cst_316 : f32 to vector<8x128xf32>
      %c0_317 = arith.constant 0 : index
      %c0_318 = arith.constant 0 : index
      %721 = vector.load %arg16[%c0_317, %c0_318] : memref<8x128xf32, #tpu.memory_space<vmem>>, vector<8x128xf32>
      tpu.vector_store %arg16[%c0_317, %c0_318], %720 {strides = array<i32>} : memref<8x128xf32, #tpu.memory_space<vmem>>, vector<8x128xf32>,
      %cst_319 = arith.constant 0.000000e+00 : f32
      %722 = vector.broadcast %cst_319 : f32 to vector<8x128xf32>
      %c0_320 = arith.constant 0 : index
      %c0_321 = arith.constant 0 : index
      %723 = vector.load %arg17[%c0_320, %c0_321] : memref<8x128xf32, #tpu.memory_space<vmem>>, vector<8x128xf32>
      tpu.vector_store %arg17[%c0_320, %c0_321], %722 {strides = array<i32>} : memref<8x128xf32, #tpu.memory_space<vmem>>, vector<8x128xf32>,
    } else {
    }
    %c0 = arith.constant 0 : index
    %c0_1 = arith.constant 0 : index
    %3 = vector.load %arg6[%c0, %c0_1] : memref<1x128xf32, #tpu.memory_space<vmem>>, vector<1x128xf32>
    %4 = vector.shape_cast %3 : vector<1x128xf32> to vector<1x128xf32>
    %5 = vector.broadcast %4 : vector<1x128xf32> to vector<8x128xf32>
    %c0_2 = arith.constant 0 : index
    %c0_3 = arith.constant 0 : index
    %6 = vector.load %arg10[%c0_2, %c0_3] : memref<1x128xf32, #tpu.memory_space<vmem>>, vector<1x128xf32>
    %7 = vector.shape_cast %6 : vector<1x128xf32> to vector<1x128xf32>
    %8 = vector.broadcast %7 : vector<1x128xf32> to vector<8x128xf32>
    %c0_4 = arith.constant 0 : index
    %c0_5 = arith.constant 0 : index
    %9 = vector.load %arg8[%c0_4, %c0_5] : memref<1x256xf32, #tpu.memory_space<vmem>>, vector<1x256xf32>
    %10 = vector.shape_cast %9 : vector<1x256xf32> to vector<1x256xf32>
    %11 = vector.broadcast %10 : vector<1x256xf32> to vector<8x256xf32>
    %c0_6 = arith.constant 0 : index
    %c0_7 = arith.constant 0 : index
    %12 = vector.load %arg14[%c0_6, %c0_7] : memref<8x128xf32, #tpu.memory_space<vmem>>, vector<8x128xf32>
    %c0_8 = arith.constant 0 : index
    %c0_9 = arith.constant 0 : index
    %13 = vector.load %arg15[%c0_8, %c0_9] : memref<8x128xf32, #tpu.memory_space<vmem>>, vector<8x128xf32>
    %c0_10 = arith.constant 0 : index
    %c0_11 = arith.constant 0 : index
    %14 = vector.load %arg16[%c0_10, %c0_11] : memref<8x128xf32, #tpu.memory_space<vmem>>, vector<8x128xf32>
    %c0_12 = arith.constant 0 : index
    %c0_13 = arith.constant 0 : index
    %15 = vector.load %arg17[%c0_12, %c0_13] : memref<8x128xf32, #tpu.memory_space<vmem>>, vector<8x128xf32>
    %c0_14 = arith.constant 0 : index
    %c0_15 = arith.constant 0 : index
    %c0_16 = arith.constant 0 : index
    %16 = vector.load %arg1[%c0_14, %c0_15, %c0_16] : memref<8x8x512xf32, #tpu.memory_space<vmem>>, vector<1x8x512xf32>
    %17 = vector.shape_cast %16 : vector<1x8x512xf32> to vector<8x512xf32>
    %c0_17 = arith.constant 0 : index
    %c0_18 = arith.constant 0 : index
    %18 = vector.load %arg4[%c0_17, %c0_18] : memref<128x512xf32, #tpu.memory_space<vmem>>, vector<128x512xf32>
    %cst = arith.constant dense<0.000000e+00> : vector<8x512xf32>
    %19 = tpu.matmul %12, %18, %cst {dimension_numbers = #tpu.dot_dimension_numbers<[1], [0], [0], [1], [0, 0, 1, 1], [], []>} : vector<8x128xf32>, vector<128x512xf32>, vector<8x512xf32> -> vector<8x512xf32>
    %20 = arith.addf %17, %19 : vector<8x512xf32>
    %21 = vector.extract_strided_slice %20 {offsets = [0, 0], sizes = [8, 128], strides = [1, 1]} : vector<8x512xf32> to vector<8x128xf32>
    %22 = arith.negf %21 : vector<8x128xf32>
    %23 = math.exp %22 : vector<8x128xf32>
    %cst_19 = arith.constant 1.000000e+00 : f32
    %24 = vector.broadcast %cst_19 : f32 to vector<8x128xf32>
    %25 = arith.addf %24, %23 : vector<8x128xf32>
    %26 = arith.divf %24, %25 : vector<8x128xf32>
    %27 = vector.extract_strided_slice %20 {offsets = [0, 128], sizes = [8, 128], strides = [1, 1]} : vector<8x512xf32> to vector<8x128xf32>
    %28 = arith.negf %27 : vector<8x128xf32>
    %29 = math.exp %28 : vector<8x128xf32>
    %cst_20 = arith.constant 1.000000e+00 : f32
    %30 = vector.broadcast %cst_20 : f32 to vector<8x128xf32>
    %31 = arith.addf %30, %29 : vector<8x128xf32>
    %32 = arith.divf %30, %31 : vector<8x128xf32>
    %33 = vector.extract_strided_slice %20 {offsets = [0, 256], sizes = [8, 128], strides = [1, 1]} : vector<8x512xf32> to vector<8x128xf32>
    %34 = math.tanh %33 : vector<8x128xf32>
    %35 = vector.extract_strided_slice %20 {offsets = [0, 384], sizes = [8, 128], strides = [1, 1]} : vector<8x512xf32> to vector<8x128xf32>
    %36 = arith.negf %35 : vector<8x128xf32>
    %37 = math.exp %36 : vector<8x128xf32>
    %cst_21 = arith.constant 1.000000e+00 : f32
    %38 = vector.broadcast %cst_21 : f32 to vector<8x128xf32>
    %39 = arith.addf %38, %37 : vector<8x128xf32>
    %40 = arith.divf %38, %39 : vector<8x128xf32>
    %41 = arith.mulf %32, %13 : vector<8x128xf32>
    %42 = arith.mulf %26, %34 : vector<8x128xf32>
    %43 = arith.addf %41, %42 : vector<8x128xf32>
    %44 = math.tanh %43 : vector<8x128xf32>
    %45 = arith.mulf %40, %44 : vector<8x128xf32>
    %c0_22 = arith.constant 0 : index
    %c0_23 = arith.constant 0 : index
    %46 = vector.load %arg5[%c0_22, %c0_23] : memref<128x128xf32, #tpu.memory_space<vmem>>, vector<128x128xf32>
    %cst_24 = arith.constant dense<0.000000e+00> : vector<8x128xf32>
    %47 = tpu.matmul %45, %46, %cst_24 {dimension_numbers = #tpu.dot_dimension_numbers<[1], [0], [0], [1], [0, 0, 1, 1], [], []>} : vector<8x128xf32>, vector<128x128xf32>, vector<8x128xf32> -> vector<8x128xf32>
    %48 = arith.addf %47, %5 : vector<8x128xf32>
    %49 = math.tanh %48 : vector<8x128xf32>
    %c0_25 = arith.constant 0 : index
    %c0_26 = arith.constant 0 : index
    %50 = vector.load %arg7[%c0_25, %c0_26] : memref<128x256xf32, #tpu.memory_space<vmem>>, vector<128x256xf32>
    %cst_27 = arith.constant dense<0.000000e+00> : vector<8x256xf32>
    %51 = tpu.matmul %49, %50, %cst_27 {dimension_numbers = #tpu.dot_dimension_numbers<[1], [0], [0], [1], [0, 0, 1, 1], [], []>} : vector<8x128xf32>, vector<128x256xf32>, vector<8x256xf32> -> vector<8x256xf32>
    %52 = arith.addf %51, %11 : vector<8x256xf32>
    %53 = vector.extract_strided_slice %52 {offsets = [0, 0], sizes = [8, 128], strides = [1, 1]} : vector<8x256xf32> to vector<8x128xf32>
    %54 = vector.extract_strided_slice %52 {offsets = [0, 128], sizes = [8, 128], strides = [1, 1]} : vector<8x256xf32> to vector<8x128xf32>
    %c0_28 = arith.constant 0 : index
    %c0_29 = arith.constant 0 : index
    %c0_30 = arith.constant 0 : index
    %55 = vector.load %arg3[%c0_28, %c0_29, %c0_30] : memref<8x8x128xf32, #tpu.memory_space<vmem>>, vector<1x8x128xf32>
    %56 = vector.shape_cast %55 : vector<1x8x128xf32> to vector<8x128xf32>
    %cst_31 = arith.constant 5.000000e-01 : f32
    %57 = vector.broadcast %cst_31 : f32 to vector<8x128xf32>
    %58 = arith.mulf %57, %54 : vector<8x128xf32>
    %59 = math.exp %58 : vector<8x128xf32>
    %60 = arith.mulf %56, %59 : vector<8x128xf32>
    %61 = arith.addf %53, %60 : vector<8x128xf32>
    %c0_32 = arith.constant 0 : index
    %c0_33 = arith.constant 0 : index
    %62 = vector.load %arg9[%c0_32, %c0_33] : memref<128x128xf32, #tpu.memory_space<vmem>>, vector<128x128xf32>
    %cst_34 = arith.constant dense<0.000000e+00> : vector<8x128xf32>
    %63 = tpu.matmul %61, %62, %cst_34 {dimension_numbers = #tpu.dot_dimension_numbers<[1], [0], [0], [1], [0, 0, 1, 1], [], []>} : vector<8x128xf32>, vector<128x128xf32>, vector<8x128xf32> -> vector<8x128xf32>
    %64 = arith.addf %63, %8 : vector<8x128xf32>
    %65 = math.tanh %64 : vector<8x128xf32>
    %c0_35 = arith.constant 0 : index
    %c0_36 = arith.constant 0 : index
    %c0_37 = arith.constant 0 : index
    %66 = vector.load %arg2[%c0_35, %c0_36, %c0_37] : memref<8x8x512xf32, #tpu.memory_space<vmem>>, vector<1x8x512xf32>
    %67 = vector.shape_cast %66 : vector<1x8x512xf32> to vector<8x512xf32>
    %68 = tpu.concatenate %65, %14 in 1 : vector<8x128xf32>, vector<8x128xf32> -> vector<8x256xf32>
    %c0_38 = arith.constant 0 : index
    %c0_39 = arith.constant 0 : index
    %69 = vector.load %arg11[%c0_38, %c0_39] : memref<256x512xf32, #tpu.memory_space<vmem>>, vector<256x512xf32>
    %cst_40 = arith.constant dense<0.000000e+00> : vector<8x512xf32>
    %70 = tpu.matmul %68, %69, %cst_40 {dimension_numbers = #tpu.dot_dimension_numbers<[1], [0], [0], [1], [0, 0, 1, 1], [], []>} : vector<8x256xf32>, vector<256x512xf32>, vector<8x512xf32> -> vector<8x512xf32>
    %71 = arith.addf %67, %70 : vector<8x512xf32>
    %72 = vector.extract_strided_slice %71 {offsets = [0, 0], sizes = [8, 128], strides = [1, 1]} : vector<8x512xf32> to vector<8x128xf32>
    %73 = arith.negf %72 : vector<8x128xf32>
    %74 = math.exp %73 : vector<8x128xf32>
    %cst_41 = arith.constant 1.000000e+00 : f32
    %75 = vector.broadcast %cst_41 : f32 to vector<8x128xf32>
    %76 = arith.addf %75, %74 : vector<8x128xf32>
    %77 = arith.divf %75, %76 : vector<8x128xf32>
    %78 = vector.extract_strided_slice %71 {offsets = [0, 128], sizes = [8, 128], strides = [1, 1]} : vector<8x512xf32> to vector<8x128xf32>
    %79 = arith.negf %78 : vector<8x128xf32>
    %80 = math.exp %79 : vector<8x128xf32>
    %cst_42 = arith.constant 1.000000e+00 : f32
    %81 = vector.broadcast %cst_42 : f32 to vector<8x128xf32>
    %82 = arith.addf %81, %80 : vector<8x128xf32>
    %83 = arith.divf %81, %82 : vector<8x128xf32>
    %84 = vector.extract_strided_slice %71 {offsets = [0, 256], sizes = [8, 128], strides = [1, 1]} : vector<8x512xf32> to vector<8x128xf32>
    %85 = math.tanh %84 : vector<8x128xf32>
    %86 = vector.extract_strided_slice %71 {offsets = [0, 384], sizes = [8, 128], strides = [1, 1]} : vector<8x512xf32> to vector<8x128xf32>
    %87 = arith.negf %86 : vector<8x128xf32>
    %88 = math.exp %87 : vector<8x128xf32>
    %cst_43 = arith.constant 1.000000e+00 : f32
    %89 = vector.broadcast %cst_43 : f32 to vector<8x128xf32>
    %90 = arith.addf %89, %88 : vector<8x128xf32>
    %91 = arith.divf %89, %90 : vector<8x128xf32>
    %92 = arith.mulf %83, %15 : vector<8x128xf32>
    %93 = arith.mulf %77, %85 : vector<8x128xf32>
    %94 = arith.addf %92, %93 : vector<8x128xf32>
    %95 = math.tanh %94 : vector<8x128xf32>
    %96 = arith.mulf %91, %95 : vector<8x128xf32>
    %c0_44 = arith.constant 0 : index
    %c0_45 = arith.constant 0 : index
    %c0_46 = arith.constant 0 : index
    %97 = vector.load %arg12[%c0_44, %c0_45, %c0_46] : memref<8x8x128xf32, #tpu.memory_space<vmem>>, vector<1x8x128xf32>
    %98 = vector.shape_cast %97 : vector<1x8x128xf32> to vector<8x128xf32>
    %99 = vector.shape_cast %45 : vector<8x128xf32> to vector<1x8x128xf32>
    tpu.vector_store %arg12[%c0_44, %c0_45, %c0_46], %99 {strides = array<i32>} : memref<8x8x128xf32, #tpu.memory_space<vmem>>, vector<1x8x128xf32>,
    %c0_47 = arith.constant 0 : index
    %c0_48 = arith.constant 0 : index
    %c0_49 = arith.constant 0 : index
    %100 = vector.load %arg13[%c0_47, %c0_48, %c0_49] : memref<8x8x128xf32, #tpu.memory_space<vmem>>, vector<1x8x128xf32>
    %101 = vector.shape_cast %100 : vector<1x8x128xf32> to vector<8x128xf32>
    %102 = vector.shape_cast %96 : vector<8x128xf32> to vector<1x8x128xf32>
    tpu.vector_store %arg13[%c0_47, %c0_48, %c0_49], %102 {strides = array<i32>} : memref<8x8x128xf32, #tpu.memory_space<vmem>>, vector<1x8x128xf32>,
    %c1 = arith.constant 1 : index
    %c0_50 = arith.constant 0 : index
    %c0_51 = arith.constant 0 : index
    %103 = vector.load %arg1[%c1, %c0_50, %c0_51] : memref<8x8x512xf32, #tpu.memory_space<vmem>>, vector<1x8x512xf32>
    %104 = vector.shape_cast %103 : vector<1x8x512xf32> to vector<8x512xf32>
    %c0_52 = arith.constant 0 : index
    %c0_53 = arith.constant 0 : index
    %105 = vector.load %arg4[%c0_52, %c0_53] : memref<128x512xf32, #tpu.memory_space<vmem>>, vector<128x512xf32>
    %cst_54 = arith.constant dense<0.000000e+00> : vector<8x512xf32>
    %106 = tpu.matmul %45, %105, %cst_54 {dimension_numbers = #tpu.dot_dimension_numbers<[1], [0], [0], [1], [0, 0, 1, 1], [], []>} : vector<8x128xf32>, vector<128x512xf32>, vector<8x512xf32> -> vector<8x512xf32>
    %107 = arith.addf %104, %106 : vector<8x512xf32>
    %108 = vector.extract_strided_slice %107 {offsets = [0, 0], sizes = [8, 128], strides = [1, 1]} : vector<8x512xf32> to vector<8x128xf32>
    %109 = arith.negf %108 : vector<8x128xf32>
    %110 = math.exp %109 : vector<8x128xf32>
    %cst_55 = arith.constant 1.000000e+00 : f32
    %111 = vector.broadcast %cst_55 : f32 to vector<8x128xf32>
    %112 = arith.addf %111, %110 : vector<8x128xf32>
    %113 = arith.divf %111, %112 : vector<8x128xf32>
    %114 = vector.extract_strided_slice %107 {offsets = [0, 128], sizes = [8, 128], strides = [1, 1]} : vector<8x512xf32> to vector<8x128xf32>
    %115 = arith.negf %114 : vector<8x128xf32>
    %116 = math.exp %115 : vector<8x128xf32>
    %cst_56 = arith.constant 1.000000e+00 : f32
    %117 = vector.broadcast %cst_56 : f32 to vector<8x128xf32>
    %118 = arith.addf %117, %116 : vector<8x128xf32>
    %119 = arith.divf %117, %118 : vector<8x128xf32>
    %120 = vector.extract_strided_slice %107 {offsets = [0, 256], sizes = [8, 128], strides = [1, 1]} : vector<8x512xf32> to vector<8x128xf32>
    %121 = math.tanh %120 : vector<8x128xf32>
    %122 = vector.extract_strided_slice %107 {offsets = [0, 384], sizes = [8, 128], strides = [1, 1]} : vector<8x512xf32> to vector<8x128xf32>
    %123 = arith.negf %122 : vector<8x128xf32>
    %124 = math.exp %123 : vector<8x128xf32>
    %cst_57 = arith.constant 1.000000e+00 : f32
    %125 = vector.broadcast %cst_57 : f32 to vector<8x128xf32>
    %126 = arith.addf %125, %124 : vector<8x128xf32>
    %127 = arith.divf %125, %126 : vector<8x128xf32>
    %128 = arith.mulf %119, %43 : vector<8x128xf32>
    %129 = arith.mulf %113, %121 : vector<8x128xf32>
    %130 = arith.addf %128, %129 : vector<8x128xf32>
    %131 = math.tanh %130 : vector<8x128xf32>
    %132 = arith.mulf %127, %131 : vector<8x128xf32>
    %c0_58 = arith.constant 0 : index
    %c0_59 = arith.constant 0 : index
    %133 = vector.load %arg5[%c0_58, %c0_59] : memref<128x128xf32, #tpu.memory_space<vmem>>, vector<128x128xf32>
    %cst_60 = arith.constant dense<0.000000e+00> : vector<8x128xf32>
    %134 = tpu.matmul %132, %133, %cst_60 {dimension_numbers = #tpu.dot_dimension_numbers<[1], [0], [0], [1], [0, 0, 1, 1], [], []>} : vector<8x128xf32>, vector<128x128xf32>, vector<8x128xf32> -> vector<8x128xf32>
    %135 = arith.addf %134, %5 : vector<8x128xf32>
    %136 = math.tanh %135 : vector<8x128xf32>
    %c0_61 = arith.constant 0 : index
    %c0_62 = arith.constant 0 : index
    %137 = vector.load %arg7[%c0_61, %c0_62] : memref<128x256xf32, #tpu.memory_space<vmem>>, vector<128x256xf32>
    %cst_63 = arith.constant dense<0.000000e+00> : vector<8x256xf32>
    %138 = tpu.matmul %136, %137, %cst_63 {dimension_numbers = #tpu.dot_dimension_numbers<[1], [0], [0], [1], [0, 0, 1, 1], [], []>} : vector<8x128xf32>, vector<128x256xf32>, vector<8x256xf32> -> vector<8x256xf32>
    %139 = arith.addf %138, %11 : vector<8x256xf32>
    %140 = vector.extract_strided_slice %139 {offsets = [0, 0], sizes = [8, 128], strides = [1, 1]} : vector<8x256xf32> to vector<8x128xf32>
    %141 = vector.extract_strided_slice %139 {offsets = [0, 128], sizes = [8, 128], strides = [1, 1]} : vector<8x256xf32> to vector<8x128xf32>
    %c1_64 = arith.constant 1 : index
    %c0_65 = arith.constant 0 : index
    %c0_66 = arith.constant 0 : index
    %142 = vector.load %arg3[%c1_64, %c0_65, %c0_66] : memref<8x8x128xf32, #tpu.memory_space<vmem>>, vector<1x8x128xf32>
    %143 = vector.shape_cast %142 : vector<1x8x128xf32> to vector<8x128xf32>
    %cst_67 = arith.constant 5.000000e-01 : f32
    %144 = vector.broadcast %cst_67 : f32 to vector<8x128xf32>
    %145 = arith.mulf %144, %141 : vector<8x128xf32>
    %146 = math.exp %145 : vector<8x128xf32>
    %147 = arith.mulf %143, %146 : vector<8x128xf32>
    %148 = arith.addf %140, %147 : vector<8x128xf32>
    %c0_68 = arith.constant 0 : index
    %c0_69 = arith.constant 0 : index
    %149 = vector.load %arg9[%c0_68, %c0_69] : memref<128x128xf32, #tpu.memory_space<vmem>>, vector<128x128xf32>
    %cst_70 = arith.constant dense<0.000000e+00> : vector<8x128xf32>
    %150 = tpu.matmul %148, %149, %cst_70 {dimension_numbers = #tpu.dot_dimension_numbers<[1], [0], [0], [1], [0, 0, 1, 1], [], []>} : vector<8x128xf32>, vector<128x128xf32>, vector<8x128xf32> -> vector<8x128xf32>
    %151 = arith.addf %150, %8 : vector<8x128xf32>
    %152 = math.tanh %151 : vector<8x128xf32>
    %c1_71 = arith.constant 1 : index
    %c0_72 = arith.constant 0 : index
    %c0_73 = arith.constant 0 : index
    %153 = vector.load %arg2[%c1_71, %c0_72, %c0_73] : memref<8x8x512xf32, #tpu.memory_space<vmem>>, vector<1x8x512xf32>
    %154 = vector.shape_cast %153 : vector<1x8x512xf32> to vector<8x512xf32>
    %155 = tpu.concatenate %152, %96 in 1 : vector<8x128xf32>, vector<8x128xf32> -> vector<8x256xf32>
    %c0_74 = arith.constant 0 : index
    %c0_75 = arith.constant 0 : index
    %156 = vector.load %arg11[%c0_74, %c0_75] : memref<256x512xf32, #tpu.memory_space<vmem>>, vector<256x512xf32>
    %cst_76 = arith.constant dense<0.000000e+00> : vector<8x512xf32>
    %157 = tpu.matmul %155, %156, %cst_76 {dimension_numbers = #tpu.dot_dimension_numbers<[1], [0], [0], [1], [0, 0, 1, 1], [], []>} : vector<8x256xf32>, vector<256x512xf32>, vector<8x512xf32> -> vector<8x512xf32>
    %158 = arith.addf %154, %157 : vector<8x512xf32>
    %159 = vector.extract_strided_slice %158 {offsets = [0, 0], sizes = [8, 128], strides = [1, 1]} : vector<8x512xf32> to vector<8x128xf32>
    %160 = arith.negf %159 : vector<8x128xf32>
    %161 = math.exp %160 : vector<8x128xf32>
    %cst_77 = arith.constant 1.000000e+00 : f32
    %162 = vector.broadcast %cst_77 : f32 to vector<8x128xf32>
    %163 = arith.addf %162, %161 : vector<8x128xf32>
    %164 = arith.divf %162, %163 : vector<8x128xf32>
    %165 = vector.extract_strided_slice %158 {offsets = [0, 128], sizes = [8, 128], strides = [1, 1]} : vector<8x512xf32> to vector<8x128xf32>
    %166 = arith.negf %165 : vector<8x128xf32>
    %167 = math.exp %166 : vector<8x128xf32>
    %cst_78 = arith.constant 1.000000e+00 : f32
    %168 = vector.broadcast %cst_78 : f32 to vector<8x128xf32>
    %169 = arith.addf %168, %167 : vector<8x128xf32>
    %170 = arith.divf %168, %169 : vector<8x128xf32>
    %171 = vector.extract_strided_slice %158 {offsets = [0, 256], sizes = [8, 128], strides = [1, 1]} : vector<8x512xf32> to vector<8x128xf32>
    %172 = math.tanh %171 : vector<8x128xf32>
    %173 = vector.extract_strided_slice %158 {offsets = [0, 384], sizes = [8, 128], strides = [1, 1]} : vector<8x512xf32> to vector<8x128xf32>
    %174 = arith.negf %173 : vector<8x128xf32>
    %175 = math.exp %174 : vector<8x128xf32>
    %cst_79 = arith.constant 1.000000e+00 : f32
    %176 = vector.broadcast %cst_79 : f32 to vector<8x128xf32>
    %177 = arith.addf %176, %175 : vector<8x128xf32>
    %178 = arith.divf %176, %177 : vector<8x128xf32>
    %179 = arith.mulf %170, %94 : vector<8x128xf32>
    %180 = arith.mulf %164, %172 : vector<8x128xf32>
    %181 = arith.addf %179, %180 : vector<8x128xf32>
    %182 = math.tanh %181 : vector<8x128xf32>
    %183 = arith.mulf %178, %182 : vector<8x128xf32>
    %c1_80 = arith.constant 1 : index
    %c0_81 = arith.constant 0 : index
    %c0_82 = arith.constant 0 : index
    %184 = vector.load %arg12[%c1_80, %c0_81, %c0_82] : memref<8x8x128xf32, #tpu.memory_space<vmem>>, vector<1x8x128xf32>
    %185 = vector.shape_cast %184 : vector<1x8x128xf32> to vector<8x128xf32>
    %186 = vector.shape_cast %132 : vector<8x128xf32> to vector<1x8x128xf32>
    tpu.vector_store %arg12[%c1_80, %c0_81, %c0_82], %186 {strides = array<i32>} : memref<8x8x128xf32, #tpu.memory_space<vmem>>, vector<1x8x128xf32>,
    %c1_83 = arith.constant 1 : index
    %c0_84 = arith.constant 0 : index
    %c0_85 = arith.constant 0 : index
    %187 = vector.load %arg13[%c1_83, %c0_84, %c0_85] : memref<8x8x128xf32, #tpu.memory_space<vmem>>, vector<1x8x128xf32>
    %188 = vector.shape_cast %187 : vector<1x8x128xf32> to vector<8x128xf32>
    %189 = vector.shape_cast %183 : vector<8x128xf32> to vector<1x8x128xf32>
    tpu.vector_store %arg13[%c1_83, %c0_84, %c0_85], %189 {strides = array<i32>} : memref<8x8x128xf32, #tpu.memory_space<vmem>>, vector<1x8x128xf32>,
    %c2 = arith.constant 2 : index
    %c0_86 = arith.constant 0 : index
    %c0_87 = arith.constant 0 : index
    %190 = vector.load %arg1[%c2, %c0_86, %c0_87] : memref<8x8x512xf32, #tpu.memory_space<vmem>>, vector<1x8x512xf32>
    %191 = vector.shape_cast %190 : vector<1x8x512xf32> to vector<8x512xf32>
    %c0_88 = arith.constant 0 : index
    %c0_89 = arith.constant 0 : index
    %192 = vector.load %arg4[%c0_88, %c0_89] : memref<128x512xf32, #tpu.memory_space<vmem>>, vector<128x512xf32>
    %cst_90 = arith.constant dense<0.000000e+00> : vector<8x512xf32>
    %193 = tpu.matmul %132, %192, %cst_90 {dimension_numbers = #tpu.dot_dimension_numbers<[1], [0], [0], [1], [0, 0, 1, 1], [], []>} : vector<8x128xf32>, vector<128x512xf32>, vector<8x512xf32> -> vector<8x512xf32>
    %194 = arith.addf %191, %193 : vector<8x512xf32>
    %195 = vector.extract_strided_slice %194 {offsets = [0, 0], sizes = [8, 128], strides = [1, 1]} : vector<8x512xf32> to vector<8x128xf32>
    %196 = arith.negf %195 : vector<8x128xf32>
    %197 = math.exp %196 : vector<8x128xf32>
    %cst_91 = arith.constant 1.000000e+00 : f32
    %198 = vector.broadcast %cst_91 : f32 to vector<8x128xf32>
    %199 = arith.addf %198, %197 : vector<8x128xf32>
    %200 = arith.divf %198, %199 : vector<8x128xf32>
    %201 = vector.extract_strided_slice %194 {offsets = [0, 128], sizes = [8, 128], strides = [1, 1]} : vector<8x512xf32> to vector<8x128xf32>
    %202 = arith.negf %201 : vector<8x128xf32>
    %203 = math.exp %202 : vector<8x128xf32>
    %cst_92 = arith.constant 1.000000e+00 : f32
    %204 = vector.broadcast %cst_92 : f32 to vector<8x128xf32>
    %205 = arith.addf %204, %203 : vector<8x128xf32>
    %206 = arith.divf %204, %205 : vector<8x128xf32>
    %207 = vector.extract_strided_slice %194 {offsets = [0, 256], sizes = [8, 128], strides = [1, 1]} : vector<8x512xf32> to vector<8x128xf32>
    %208 = math.tanh %207 : vector<8x128xf32>
    %209 = vector.extract_strided_slice %194 {offsets = [0, 384], sizes = [8, 128], strides = [1, 1]} : vector<8x512xf32> to vector<8x128xf32>
    %210 = arith.negf %209 : vector<8x128xf32>
    %211 = math.exp %210 : vector<8x128xf32>
    %cst_93 = arith.constant 1.000000e+00 : f32
    %212 = vector.broadcast %cst_93 : f32 to vector<8x128xf32>
    %213 = arith.addf %212, %211 : vector<8x128xf32>
    %214 = arith.divf %212, %213 : vector<8x128xf32>
    %215 = arith.mulf %206, %130 : vector<8x128xf32>
    %216 = arith.mulf %200, %208 : vector<8x128xf32>
    %217 = arith.addf %215, %216 : vector<8x128xf32>
    %218 = math.tanh %217 : vector<8x128xf32>
    %219 = arith.mulf %214, %218 : vector<8x128xf32>
    %c0_94 = arith.constant 0 : index
    %c0_95 = arith.constant 0 : index
    %220 = vector.load %arg5[%c0_94, %c0_95] : memref<128x128xf32, #tpu.memory_space<vmem>>, vector<128x128xf32>
    %cst_96 = arith.constant dense<0.000000e+00> : vector<8x128xf32>
    %221 = tpu.matmul %219, %220, %cst_96 {dimension_numbers = #tpu.dot_dimension_numbers<[1], [0], [0], [1], [0, 0, 1, 1], [], []>} : vector<8x128xf32>, vector<128x128xf32>, vector<8x128xf32> -> vector<8x128xf32>
    %222 = arith.addf %221, %5 : vector<8x128xf32>
    %223 = math.tanh %222 : vector<8x128xf32>
    %c0_97 = arith.constant 0 : index
    %c0_98 = arith.constant 0 : index
    %224 = vector.load %arg7[%c0_97, %c0_98] : memref<128x256xf32, #tpu.memory_space<vmem>>, vector<128x256xf32>
    %cst_99 = arith.constant dense<0.000000e+00> : vector<8x256xf32>
    %225 = tpu.matmul %223, %224, %cst_99 {dimension_numbers = #tpu.dot_dimension_numbers<[1], [0], [0], [1], [0, 0, 1, 1], [], []>} : vector<8x128xf32>, vector<128x256xf32>, vector<8x256xf32> -> vector<8x256xf32>
    %226 = arith.addf %225, %11 : vector<8x256xf32>
    %227 = vector.extract_strided_slice %226 {offsets = [0, 0], sizes = [8, 128], strides = [1, 1]} : vector<8x256xf32> to vector<8x128xf32>
    %228 = vector.extract_strided_slice %226 {offsets = [0, 128], sizes = [8, 128], strides = [1, 1]} : vector<8x256xf32> to vector<8x128xf32>
    %c2_100 = arith.constant 2 : index
    %c0_101 = arith.constant 0 : index
    %c0_102 = arith.constant 0 : index
    %229 = vector.load %arg3[%c2_100, %c0_101, %c0_102] : memref<8x8x128xf32, #tpu.memory_space<vmem>>, vector<1x8x128xf32>
    %230 = vector.shape_cast %229 : vector<1x8x128xf32> to vector<8x128xf32>
    %cst_103 = arith.constant 5.000000e-01 : f32
    %231 = vector.broadcast %cst_103 : f32 to vector<8x128xf32>
    %232 = arith.mulf %231, %228 : vector<8x128xf32>
    %233 = math.exp %232 : vector<8x128xf32>
    %234 = arith.mulf %230, %233 : vector<8x128xf32>
    %235 = arith.addf %227, %234 : vector<8x128xf32>
    %c0_104 = arith.constant 0 : index
    %c0_105 = arith.constant 0 : index
    %236 = vector.load %arg9[%c0_104, %c0_105] : memref<128x128xf32, #tpu.memory_space<vmem>>, vector<128x128xf32>
    %cst_106 = arith.constant dense<0.000000e+00> : vector<8x128xf32>
    %237 = tpu.matmul %235, %236, %cst_106 {dimension_numbers = #tpu.dot_dimension_numbers<[1], [0], [0], [1], [0, 0, 1, 1], [], []>} : vector<8x128xf32>, vector<128x128xf32>, vector<8x128xf32> -> vector<8x128xf32>
    %238 = arith.addf %237, %8 : vector<8x128xf32>
    %239 = math.tanh %238 : vector<8x128xf32>
    %c2_107 = arith.constant 2 : index
    %c0_108 = arith.constant 0 : index
    %c0_109 = arith.constant 0 : index
    %240 = vector.load %arg2[%c2_107, %c0_108, %c0_109] : memref<8x8x512xf32, #tpu.memory_space<vmem>>, vector<1x8x512xf32>
    %241 = vector.shape_cast %240 : vector<1x8x512xf32> to vector<8x512xf32>
    %242 = tpu.concatenate %239, %183 in 1 : vector<8x128xf32>, vector<8x128xf32> -> vector<8x256xf32>
    %c0_110 = arith.constant 0 : index
    %c0_111 = arith.constant 0 : index
    %243 = vector.load %arg11[%c0_110, %c0_111] : memref<256x512xf32, #tpu.memory_space<vmem>>, vector<256x512xf32>
    %cst_112 = arith.constant dense<0.000000e+00> : vector<8x512xf32>
    %244 = tpu.matmul %242, %243, %cst_112 {dimension_numbers = #tpu.dot_dimension_numbers<[1], [0], [0], [1], [0, 0, 1, 1], [], []>} : vector<8x256xf32>, vector<256x512xf32>, vector<8x512xf32> -> vector<8x512xf32>
    %245 = arith.addf %241, %244 : vector<8x512xf32>
    %246 = vector.extract_strided_slice %245 {offsets = [0, 0], sizes = [8, 128], strides = [1, 1]} : vector<8x512xf32> to vector<8x128xf32>
    %247 = arith.negf %246 : vector<8x128xf32>
    %248 = math.exp %247 : vector<8x128xf32>
    %cst_113 = arith.constant 1.000000e+00 : f32
    %249 = vector.broadcast %cst_113 : f32 to vector<8x128xf32>
    %250 = arith.addf %249, %248 : vector<8x128xf32>
    %251 = arith.divf %249, %250 : vector<8x128xf32>
    %252 = vector.extract_strided_slice %245 {offsets = [0, 128], sizes = [8, 128], strides = [1, 1]} : vector<8x512xf32> to vector<8x128xf32>
    %253 = arith.negf %252 : vector<8x128xf32>
    %254 = math.exp %253 : vector<8x128xf32>
    %cst_114 = arith.constant 1.000000e+00 : f32
    %255 = vector.broadcast %cst_114 : f32 to vector<8x128xf32>
    %256 = arith.addf %255, %254 : vector<8x128xf32>
    %257 = arith.divf %255, %256 : vector<8x128xf32>
    %258 = vector.extract_strided_slice %245 {offsets = [0, 256], sizes = [8, 128], strides = [1, 1]} : vector<8x512xf32> to vector<8x128xf32>
    %259 = math.tanh %258 : vector<8x128xf32>
    %260 = vector.extract_strided_slice %245 {offsets = [0, 384], sizes = [8, 128], strides = [1, 1]} : vector<8x512xf32> to vector<8x128xf32>
    %261 = arith.negf %260 : vector<8x128xf32>
    %262 = math.exp %261 : vector<8x128xf32>
    %cst_115 = arith.constant 1.000000e+00 : f32
    %263 = vector.broadcast %cst_115 : f32 to vector<8x128xf32>
    %264 = arith.addf %263, %262 : vector<8x128xf32>
    %265 = arith.divf %263, %264 : vector<8x128xf32>
    %266 = arith.mulf %257, %181 : vector<8x128xf32>
    %267 = arith.mulf %251, %259 : vector<8x128xf32>
    %268 = arith.addf %266, %267 : vector<8x128xf32>
    %269 = math.tanh %268 : vector<8x128xf32>
    %270 = arith.mulf %265, %269 : vector<8x128xf32>
    %c2_116 = arith.constant 2 : index
    %c0_117 = arith.constant 0 : index
    %c0_118 = arith.constant 0 : index
    %271 = vector.load %arg12[%c2_116, %c0_117, %c0_118] : memref<8x8x128xf32, #tpu.memory_space<vmem>>, vector<1x8x128xf32>
    %272 = vector.shape_cast %271 : vector<1x8x128xf32> to vector<8x128xf32>
    %273 = vector.shape_cast %219 : vector<8x128xf32> to vector<1x8x128xf32>
    tpu.vector_store %arg12[%c2_116, %c0_117, %c0_118], %273 {strides = array<i32>} : memref<8x8x128xf32, #tpu.memory_space<vmem>>, vector<1x8x128xf32>,
    %c2_119 = arith.constant 2 : index
    %c0_120 = arith.constant 0 : index
    %c0_121 = arith.constant 0 : index
    %274 = vector.load %arg13[%c2_119, %c0_120, %c0_121] : memref<8x8x128xf32, #tpu.memory_space<vmem>>, vector<1x8x128xf32>
    %275 = vector.shape_cast %274 : vector<1x8x128xf32> to vector<8x128xf32>
    %276 = vector.shape_cast %270 : vector<8x128xf32> to vector<1x8x128xf32>
    tpu.vector_store %arg13[%c2_119, %c0_120, %c0_121], %276 {strides = array<i32>} : memref<8x8x128xf32, #tpu.memory_space<vmem>>, vector<1x8x128xf32>,
    %c3 = arith.constant 3 : index
    %c0_122 = arith.constant 0 : index
    %c0_123 = arith.constant 0 : index
    %277 = vector.load %arg1[%c3, %c0_122, %c0_123] : memref<8x8x512xf32, #tpu.memory_space<vmem>>, vector<1x8x512xf32>
    %278 = vector.shape_cast %277 : vector<1x8x512xf32> to vector<8x512xf32>
    %c0_124 = arith.constant 0 : index
    %c0_125 = arith.constant 0 : index
    %279 = vector.load %arg4[%c0_124, %c0_125] : memref<128x512xf32, #tpu.memory_space<vmem>>, vector<128x512xf32>
    %cst_126 = arith.constant dense<0.000000e+00> : vector<8x512xf32>
    %280 = tpu.matmul %219, %279, %cst_126 {dimension_numbers = #tpu.dot_dimension_numbers<[1], [0], [0], [1], [0, 0, 1, 1], [], []>} : vector<8x128xf32>, vector<128x512xf32>, vector<8x512xf32> -> vector<8x512xf32>
    %281 = arith.addf %278, %280 : vector<8x512xf32>
    %282 = vector.extract_strided_slice %281 {offsets = [0, 0], sizes = [8, 128], strides = [1, 1]} : vector<8x512xf32> to vector<8x128xf32>
    %283 = arith.negf %282 : vector<8x128xf32>
    %284 = math.exp %283 : vector<8x128xf32>
    %cst_127 = arith.constant 1.000000e+00 : f32
    %285 = vector.broadcast %cst_127 : f32 to vector<8x128xf32>
    %286 = arith.addf %285, %284 : vector<8x128xf32>
    %287 = arith.divf %285, %286 : vector<8x128xf32>
    %288 = vector.extract_strided_slice %281 {offsets = [0, 128], sizes = [8, 128], strides = [1, 1]} : vector<8x512xf32> to vector<8x128xf32>
    %289 = arith.negf %288 : vector<8x128xf32>
    %290 = math.exp %289 : vector<8x128xf32>
    %cst_128 = arith.constant 1.000000e+00 : f32
    %291 = vector.broadcast %cst_128 : f32 to vector<8x128xf32>
    %292 = arith.addf %291, %290 : vector<8x128xf32>
    %293 = arith.divf %291, %292 : vector<8x128xf32>
    %294 = vector.extract_strided_slice %281 {offsets = [0, 256], sizes = [8, 128], strides = [1, 1]} : vector<8x512xf32> to vector<8x128xf32>
    %295 = math.tanh %294 : vector<8x128xf32>
    %296 = vector.extract_strided_slice %281 {offsets = [0, 384], sizes = [8, 128], strides = [1, 1]} : vector<8x512xf32> to vector<8x128xf32>
    %297 = arith.negf %296 : vector<8x128xf32>
    %298 = math.exp %297 : vector<8x128xf32>
    %cst_129 = arith.constant 1.000000e+00 : f32
    %299 = vector.broadcast %cst_129 : f32 to vector<8x128xf32>
    %300 = arith.addf %299, %298 : vector<8x128xf32>
    %301 = arith.divf %299, %300 : vector<8x128xf32>
    %302 = arith.mulf %293, %217 : vector<8x128xf32>
    %303 = arith.mulf %287, %295 : vector<8x128xf32>
    %304 = arith.addf %302, %303 : vector<8x128xf32>
    %305 = math.tanh %304 : vector<8x128xf32>
    %306 = arith.mulf %301, %305 : vector<8x128xf32>
    %c0_130 = arith.constant 0 : index
    %c0_131 = arith.constant 0 : index
    %307 = vector.load %arg5[%c0_130, %c0_131] : memref<128x128xf32, #tpu.memory_space<vmem>>, vector<128x128xf32>
    %cst_132 = arith.constant dense<0.000000e+00> : vector<8x128xf32>
    %308 = tpu.matmul %306, %307, %cst_132 {dimension_numbers = #tpu.dot_dimension_numbers<[1], [0], [0], [1], [0, 0, 1, 1], [], []>} : vector<8x128xf32>, vector<128x128xf32>, vector<8x128xf32> -> vector<8x128xf32>
    %309 = arith.addf %308, %5 : vector<8x128xf32>
    %310 = math.tanh %309 : vector<8x128xf32>
    %c0_133 = arith.constant 0 : index
    %c0_134 = arith.constant 0 : index
    %311 = vector.load %arg7[%c0_133, %c0_134] : memref<128x256xf32, #tpu.memory_space<vmem>>, vector<128x256xf32>
    %cst_135 = arith.constant dense<0.000000e+00> : vector<8x256xf32>
    %312 = tpu.matmul %310, %311, %cst_135 {dimension_numbers = #tpu.dot_dimension_numbers<[1], [0], [0], [1], [0, 0, 1, 1], [], []>} : vector<8x128xf32>, vector<128x256xf32>, vector<8x256xf32> -> vector<8x256xf32>
    %313 = arith.addf %312, %11 : vector<8x256xf32>
    %314 = vector.extract_strided_slice %313 {offsets = [0, 0], sizes = [8, 128], strides = [1, 1]} : vector<8x256xf32> to vector<8x128xf32>
    %315 = vector.extract_strided_slice %313 {offsets = [0, 128], sizes = [8, 128], strides = [1, 1]} : vector<8x256xf32> to vector<8x128xf32>
    %c3_136 = arith.constant 3 : index
    %c0_137 = arith.constant 0 : index
    %c0_138 = arith.constant 0 : index
    %316 = vector.load %arg3[%c3_136, %c0_137, %c0_138] : memref<8x8x128xf32, #tpu.memory_space<vmem>>, vector<1x8x128xf32>
    %317 = vector.shape_cast %316 : vector<1x8x128xf32> to vector<8x128xf32>
    %cst_139 = arith.constant 5.000000e-01 : f32
    %318 = vector.broadcast %cst_139 : f32 to vector<8x128xf32>
    %319 = arith.mulf %318, %315 : vector<8x128xf32>
    %320 = math.exp %319 : vector<8x128xf32>
    %321 = arith.mulf %317, %320 : vector<8x128xf32>
    %322 = arith.addf %314, %321 : vector<8x128xf32>
    %c0_140 = arith.constant 0 : index
    %c0_141 = arith.constant 0 : index
    %323 = vector.load %arg9[%c0_140, %c0_141] : memref<128x128xf32, #tpu.memory_space<vmem>>, vector<128x128xf32>
    %cst_142 = arith.constant dense<0.000000e+00> : vector<8x128xf32>
    %324 = tpu.matmul %322, %323, %cst_142 {dimension_numbers = #tpu.dot_dimension_numbers<[1], [0], [0], [1], [0, 0, 1, 1], [], []>} : vector<8x128xf32>, vector<128x128xf32>, vector<8x128xf32> -> vector<8x128xf32>
    %325 = arith.addf %324, %8 : vector<8x128xf32>
    %326 = math.tanh %325 : vector<8x128xf32>
    %c3_143 = arith.constant 3 : index
    %c0_144 = arith.constant 0 : index
    %c0_145 = arith.constant 0 : index
    %327 = vector.load %arg2[%c3_143, %c0_144, %c0_145] : memref<8x8x512xf32, #tpu.memory_space<vmem>>, vector<1x8x512xf32>
    %328 = vector.shape_cast %327 : vector<1x8x512xf32> to vector<8x512xf32>
    %329 = tpu.concatenate %326, %270 in 1 : vector<8x128xf32>, vector<8x128xf32> -> vector<8x256xf32>
    %c0_146 = arith.constant 0 : index
    %c0_147 = arith.constant 0 : index
    %330 = vector.load %arg11[%c0_146, %c0_147] : memref<256x512xf32, #tpu.memory_space<vmem>>, vector<256x512xf32>
    %cst_148 = arith.constant dense<0.000000e+00> : vector<8x512xf32>
    %331 = tpu.matmul %329, %330, %cst_148 {dimension_numbers = #tpu.dot_dimension_numbers<[1], [0], [0], [1], [0, 0, 1, 1], [], []>} : vector<8x256xf32>, vector<256x512xf32>, vector<8x512xf32> -> vector<8x512xf32>
    %332 = arith.addf %328, %331 : vector<8x512xf32>
    %333 = vector.extract_strided_slice %332 {offsets = [0, 0], sizes = [8, 128], strides = [1, 1]} : vector<8x512xf32> to vector<8x128xf32>
    %334 = arith.negf %333 : vector<8x128xf32>
    %335 = math.exp %334 : vector<8x128xf32>
    %cst_149 = arith.constant 1.000000e+00 : f32
    %336 = vector.broadcast %cst_149 : f32 to vector<8x128xf32>
    %337 = arith.addf %336, %335 : vector<8x128xf32>
    %338 = arith.divf %336, %337 : vector<8x128xf32>
    %339 = vector.extract_strided_slice %332 {offsets = [0, 128], sizes = [8, 128], strides = [1, 1]} : vector<8x512xf32> to vector<8x128xf32>
    %340 = arith.negf %339 : vector<8x128xf32>
    %341 = math.exp %340 : vector<8x128xf32>
    %cst_150 = arith.constant 1.000000e+00 : f32
    %342 = vector.broadcast %cst_150 : f32 to vector<8x128xf32>
    %343 = arith.addf %342, %341 : vector<8x128xf32>
    %344 = arith.divf %342, %343 : vector<8x128xf32>
    %345 = vector.extract_strided_slice %332 {offsets = [0, 256], sizes = [8, 128], strides = [1, 1]} : vector<8x512xf32> to vector<8x128xf32>
    %346 = math.tanh %345 : vector<8x128xf32>
    %347 = vector.extract_strided_slice %332 {offsets = [0, 384], sizes = [8, 128], strides = [1, 1]} : vector<8x512xf32> to vector<8x128xf32>
    %348 = arith.negf %347 : vector<8x128xf32>
    %349 = math.exp %348 : vector<8x128xf32>
    %cst_151 = arith.constant 1.000000e+00 : f32
    %350 = vector.broadcast %cst_151 : f32 to vector<8x128xf32>
    %351 = arith.addf %350, %349 : vector<8x128xf32>
    %352 = arith.divf %350, %351 : vector<8x128xf32>
    %353 = arith.mulf %344, %268 : vector<8x128xf32>
    %354 = arith.mulf %338, %346 : vector<8x128xf32>
    %355 = arith.addf %353, %354 : vector<8x128xf32>
    %356 = math.tanh %355 : vector<8x128xf32>
    %357 = arith.mulf %352, %356 : vector<8x128xf32>
    %c3_152 = arith.constant 3 : index
    %c0_153 = arith.constant 0 : index
    %c0_154 = arith.constant 0 : index
    %358 = vector.load %arg12[%c3_152, %c0_153, %c0_154] : memref<8x8x128xf32, #tpu.memory_space<vmem>>, vector<1x8x128xf32>
    %359 = vector.shape_cast %358 : vector<1x8x128xf32> to vector<8x128xf32>
    %360 = vector.shape_cast %306 : vector<8x128xf32> to vector<1x8x128xf32>
    tpu.vector_store %arg12[%c3_152, %c0_153, %c0_154], %360 {strides = array<i32>} : memref<8x8x128xf32, #tpu.memory_space<vmem>>, vector<1x8x128xf32>,
    %c3_155 = arith.constant 3 : index
    %c0_156 = arith.constant 0 : index
    %c0_157 = arith.constant 0 : index
    %361 = vector.load %arg13[%c3_155, %c0_156, %c0_157] : memref<8x8x128xf32, #tpu.memory_space<vmem>>, vector<1x8x128xf32>
    %362 = vector.shape_cast %361 : vector<1x8x128xf32> to vector<8x128xf32>
    %363 = vector.shape_cast %357 : vector<8x128xf32> to vector<1x8x128xf32>
    tpu.vector_store %arg13[%c3_155, %c0_156, %c0_157], %363 {strides = array<i32>} : memref<8x8x128xf32, #tpu.memory_space<vmem>>, vector<1x8x128xf32>,
    %c4 = arith.constant 4 : index
    %c0_158 = arith.constant 0 : index
    %c0_159 = arith.constant 0 : index
    %364 = vector.load %arg1[%c4, %c0_158, %c0_159] : memref<8x8x512xf32, #tpu.memory_space<vmem>>, vector<1x8x512xf32>
    %365 = vector.shape_cast %364 : vector<1x8x512xf32> to vector<8x512xf32>
    %c0_160 = arith.constant 0 : index
    %c0_161 = arith.constant 0 : index
    %366 = vector.load %arg4[%c0_160, %c0_161] : memref<128x512xf32, #tpu.memory_space<vmem>>, vector<128x512xf32>
    %cst_162 = arith.constant dense<0.000000e+00> : vector<8x512xf32>
    %367 = tpu.matmul %306, %366, %cst_162 {dimension_numbers = #tpu.dot_dimension_numbers<[1], [0], [0], [1], [0, 0, 1, 1], [], []>} : vector<8x128xf32>, vector<128x512xf32>, vector<8x512xf32> -> vector<8x512xf32>
    %368 = arith.addf %365, %367 : vector<8x512xf32>
    %369 = vector.extract_strided_slice %368 {offsets = [0, 0], sizes = [8, 128], strides = [1, 1]} : vector<8x512xf32> to vector<8x128xf32>
    %370 = arith.negf %369 : vector<8x128xf32>
    %371 = math.exp %370 : vector<8x128xf32>
    %cst_163 = arith.constant 1.000000e+00 : f32
    %372 = vector.broadcast %cst_163 : f32 to vector<8x128xf32>
    %373 = arith.addf %372, %371 : vector<8x128xf32>
    %374 = arith.divf %372, %373 : vector<8x128xf32>
    %375 = vector.extract_strided_slice %368 {offsets = [0, 128], sizes = [8, 128], strides = [1, 1]} : vector<8x512xf32> to vector<8x128xf32>
    %376 = arith.negf %375 : vector<8x128xf32>
    %377 = math.exp %376 : vector<8x128xf32>
    %cst_164 = arith.constant 1.000000e+00 : f32
    %378 = vector.broadcast %cst_164 : f32 to vector<8x128xf32>
    %379 = arith.addf %378, %377 : vector<8x128xf32>
    %380 = arith.divf %378, %379 : vector<8x128xf32>
    %381 = vector.extract_strided_slice %368 {offsets = [0, 256], sizes = [8, 128], strides = [1, 1]} : vector<8x512xf32> to vector<8x128xf32>
    %382 = math.tanh %381 : vector<8x128xf32>
    %383 = vector.extract_strided_slice %368 {offsets = [0, 384], sizes = [8, 128], strides = [1, 1]} : vector<8x512xf32> to vector<8x128xf32>
    %384 = arith.negf %383 : vector<8x128xf32>
    %385 = math.exp %384 : vector<8x128xf32>
    %cst_165 = arith.constant 1.000000e+00 : f32
    %386 = vector.broadcast %cst_165 : f32 to vector<8x128xf32>
    %387 = arith.addf %386, %385 : vector<8x128xf32>
    %388 = arith.divf %386, %387 : vector<8x128xf32>
    %389 = arith.mulf %380, %304 : vector<8x128xf32>
    %390 = arith.mulf %374, %382 : vector<8x128xf32>
    %391 = arith.addf %389, %390 : vector<8x128xf32>
    %392 = math.tanh %391 : vector<8x128xf32>
    %393 = arith.mulf %388, %392 : vector<8x128xf32>
    %c0_166 = arith.constant 0 : index
    %c0_167 = arith.constant 0 : index
    %394 = vector.load %arg5[%c0_166, %c0_167] : memref<128x128xf32, #tpu.memory_space<vmem>>, vector<128x128xf32>
    %cst_168 = arith.constant dense<0.000000e+00> : vector<8x128xf32>
    %395 = tpu.matmul %393, %394, %cst_168 {dimension_numbers = #tpu.dot_dimension_numbers<[1], [0], [0], [1], [0, 0, 1, 1], [], []>} : vector<8x128xf32>, vector<128x128xf32>, vector<8x128xf32> -> vector<8x128xf32>
    %396 = arith.addf %395, %5 : vector<8x128xf32>
    %397 = math.tanh %396 : vector<8x128xf32>
    %c0_169 = arith.constant 0 : index
    %c0_170 = arith.constant 0 : index
    %398 = vector.load %arg7[%c0_169, %c0_170] : memref<128x256xf32, #tpu.memory_space<vmem>>, vector<128x256xf32>
    %cst_171 = arith.constant dense<0.000000e+00> : vector<8x256xf32>
    %399 = tpu.matmul %397, %398, %cst_171 {dimension_numbers = #tpu.dot_dimension_numbers<[1], [0], [0], [1], [0, 0, 1, 1], [], []>} : vector<8x128xf32>, vector<128x256xf32>, vector<8x256xf32> -> vector<8x256xf32>
    %400 = arith.addf %399, %11 : vector<8x256xf32>
    %401 = vector.extract_strided_slice %400 {offsets = [0, 0], sizes = [8, 128], strides = [1, 1]} : vector<8x256xf32> to vector<8x128xf32>
    %402 = vector.extract_strided_slice %400 {offsets = [0, 128], sizes = [8, 128], strides = [1, 1]} : vector<8x256xf32> to vector<8x128xf32>
    %c4_172 = arith.constant 4 : index
    %c0_173 = arith.constant 0 : index
    %c0_174 = arith.constant 0 : index
    %403 = vector.load %arg3[%c4_172, %c0_173, %c0_174] : memref<8x8x128xf32, #tpu.memory_space<vmem>>, vector<1x8x128xf32>
    %404 = vector.shape_cast %403 : vector<1x8x128xf32> to vector<8x128xf32>
    %cst_175 = arith.constant 5.000000e-01 : f32
    %405 = vector.broadcast %cst_175 : f32 to vector<8x128xf32>
    %406 = arith.mulf %405, %402 : vector<8x128xf32>
    %407 = math.exp %406 : vector<8x128xf32>
    %408 = arith.mulf %404, %407 : vector<8x128xf32>
    %409 = arith.addf %401, %408 : vector<8x128xf32>
    %c0_176 = arith.constant 0 : index
    %c0_177 = arith.constant 0 : index
    %410 = vector.load %arg9[%c0_176, %c0_177] : memref<128x128xf32, #tpu.memory_space<vmem>>, vector<128x128xf32>
    %cst_178 = arith.constant dense<0.000000e+00> : vector<8x128xf32>
    %411 = tpu.matmul %409, %410, %cst_178 {dimension_numbers = #tpu.dot_dimension_numbers<[1], [0], [0], [1], [0, 0, 1, 1], [], []>} : vector<8x128xf32>, vector<128x128xf32>, vector<8x128xf32> -> vector<8x128xf32>
    %412 = arith.addf %411, %8 : vector<8x128xf32>
    %413 = math.tanh %412 : vector<8x128xf32>
    %c4_179 = arith.constant 4 : index
    %c0_180 = arith.constant 0 : index
    %c0_181 = arith.constant 0 : index
    %414 = vector.load %arg2[%c4_179, %c0_180, %c0_181] : memref<8x8x512xf32, #tpu.memory_space<vmem>>, vector<1x8x512xf32>
    %415 = vector.shape_cast %414 : vector<1x8x512xf32> to vector<8x512xf32>
    %416 = tpu.concatenate %413, %357 in 1 : vector<8x128xf32>, vector<8x128xf32> -> vector<8x256xf32>
    %c0_182 = arith.constant 0 : index
    %c0_183 = arith.constant 0 : index
    %417 = vector.load %arg11[%c0_182, %c0_183] : memref<256x512xf32, #tpu.memory_space<vmem>>, vector<256x512xf32>
    %cst_184 = arith.constant dense<0.000000e+00> : vector<8x512xf32>
    %418 = tpu.matmul %416, %417, %cst_184 {dimension_numbers = #tpu.dot_dimension_numbers<[1], [0], [0], [1], [0, 0, 1, 1], [], []>} : vector<8x256xf32>, vector<256x512xf32>, vector<8x512xf32> -> vector<8x512xf32>
    %419 = arith.addf %415, %418 : vector<8x512xf32>
    %420 = vector.extract_strided_slice %419 {offsets = [0, 0], sizes = [8, 128], strides = [1, 1]} : vector<8x512xf32> to vector<8x128xf32>
    %421 = arith.negf %420 : vector<8x128xf32>
    %422 = math.exp %421 : vector<8x128xf32>
    %cst_185 = arith.constant 1.000000e+00 : f32
    %423 = vector.broadcast %cst_185 : f32 to vector<8x128xf32>
    %424 = arith.addf %423, %422 : vector<8x128xf32>
    %425 = arith.divf %423, %424 : vector<8x128xf32>
    %426 = vector.extract_strided_slice %419 {offsets = [0, 128], sizes = [8, 128], strides = [1, 1]} : vector<8x512xf32> to vector<8x128xf32>
    %427 = arith.negf %426 : vector<8x128xf32>
    %428 = math.exp %427 : vector<8x128xf32>
    %cst_186 = arith.constant 1.000000e+00 : f32
    %429 = vector.broadcast %cst_186 : f32 to vector<8x128xf32>
    %430 = arith.addf %429, %428 : vector<8x128xf32>
    %431 = arith.divf %429, %430 : vector<8x128xf32>
    %432 = vector.extract_strided_slice %419 {offsets = [0, 256], sizes = [8, 128], strides = [1, 1]} : vector<8x512xf32> to vector<8x128xf32>
    %433 = math.tanh %432 : vector<8x128xf32>
    %434 = vector.extract_strided_slice %419 {offsets = [0, 384], sizes = [8, 128], strides = [1, 1]} : vector<8x512xf32> to vector<8x128xf32>
    %435 = arith.negf %434 : vector<8x128xf32>
    %436 = math.exp %435 : vector<8x128xf32>
    %cst_187 = arith.constant 1.000000e+00 : f32
    %437 = vector.broadcast %cst_187 : f32 to vector<8x128xf32>
    %438 = arith.addf %437, %436 : vector<8x128xf32>
    %439 = arith.divf %437, %438 : vector<8x128xf32>
    %440 = arith.mulf %431, %355 : vector<8x128xf32>
    %441 = arith.mulf %425, %433 : vector<8x128xf32>
    %442 = arith.addf %440, %441 : vector<8x128xf32>
    %443 = math.tanh %442 : vector<8x128xf32>
    %444 = arith.mulf %439, %443 : vector<8x128xf32>
    %c4_188 = arith.constant 4 : index
    %c0_189 = arith.constant 0 : index
    %c0_190 = arith.constant 0 : index
    %445 = vector.load %arg12[%c4_188, %c0_189, %c0_190] : memref<8x8x128xf32, #tpu.memory_space<vmem>>, vector<1x8x128xf32>
    %446 = vector.shape_cast %445 : vector<1x8x128xf32> to vector<8x128xf32>
    %447 = vector.shape_cast %393 : vector<8x128xf32> to vector<1x8x128xf32>
    tpu.vector_store %arg12[%c4_188, %c0_189, %c0_190], %447 {strides = array<i32>} : memref<8x8x128xf32, #tpu.memory_space<vmem>>, vector<1x8x128xf32>,
    %c4_191 = arith.constant 4 : index
    %c0_192 = arith.constant 0 : index
    %c0_193 = arith.constant 0 : index
    %448 = vector.load %arg13[%c4_191, %c0_192, %c0_193] : memref<8x8x128xf32, #tpu.memory_space<vmem>>, vector<1x8x128xf32>
    %449 = vector.shape_cast %448 : vector<1x8x128xf32> to vector<8x128xf32>
    %450 = vector.shape_cast %444 : vector<8x128xf32> to vector<1x8x128xf32>
    tpu.vector_store %arg13[%c4_191, %c0_192, %c0_193], %450 {strides = array<i32>} : memref<8x8x128xf32, #tpu.memory_space<vmem>>, vector<1x8x128xf32>,
    %c5 = arith.constant 5 : index
    %c0_194 = arith.constant 0 : index
    %c0_195 = arith.constant 0 : index
    %451 = vector.load %arg1[%c5, %c0_194, %c0_195] : memref<8x8x512xf32, #tpu.memory_space<vmem>>, vector<1x8x512xf32>
    %452 = vector.shape_cast %451 : vector<1x8x512xf32> to vector<8x512xf32>
    %c0_196 = arith.constant 0 : index
    %c0_197 = arith.constant 0 : index
    %453 = vector.load %arg4[%c0_196, %c0_197] : memref<128x512xf32, #tpu.memory_space<vmem>>, vector<128x512xf32>
    %cst_198 = arith.constant dense<0.000000e+00> : vector<8x512xf32>
    %454 = tpu.matmul %393, %453, %cst_198 {dimension_numbers = #tpu.dot_dimension_numbers<[1], [0], [0], [1], [0, 0, 1, 1], [], []>} : vector<8x128xf32>, vector<128x512xf32>, vector<8x512xf32> -> vector<8x512xf32>
    %455 = arith.addf %452, %454 : vector<8x512xf32>
    %456 = vector.extract_strided_slice %455 {offsets = [0, 0], sizes = [8, 128], strides = [1, 1]} : vector<8x512xf32> to vector<8x128xf32>
    %457 = arith.negf %456 : vector<8x128xf32>
    %458 = math.exp %457 : vector<8x128xf32>
    %cst_199 = arith.constant 1.000000e+00 : f32
    %459 = vector.broadcast %cst_199 : f32 to vector<8x128xf32>
    %460 = arith.addf %459, %458 : vector<8x128xf32>
    %461 = arith.divf %459, %460 : vector<8x128xf32>
    %462 = vector.extract_strided_slice %455 {offsets = [0, 128], sizes = [8, 128], strides = [1, 1]} : vector<8x512xf32> to vector<8x128xf32>
    %463 = arith.negf %462 : vector<8x128xf32>
    %464 = math.exp %463 : vector<8x128xf32>
    %cst_200 = arith.constant 1.000000e+00 : f32
    %465 = vector.broadcast %cst_200 : f32 to vector<8x128xf32>
    %466 = arith.addf %465, %464 : vector<8x128xf32>
    %467 = arith.divf %465, %466 : vector<8x128xf32>
    %468 = vector.extract_strided_slice %455 {offsets = [0, 256], sizes = [8, 128], strides = [1, 1]} : vector<8x512xf32> to vector<8x128xf32>
    %469 = math.tanh %468 : vector<8x128xf32>
    %470 = vector.extract_strided_slice %455 {offsets = [0, 384], sizes = [8, 128], strides = [1, 1]} : vector<8x512xf32> to vector<8x128xf32>
    %471 = arith.negf %470 : vector<8x128xf32>
    %472 = math.exp %471 : vector<8x128xf32>
    %cst_201 = arith.constant 1.000000e+00 : f32
    %473 = vector.broadcast %cst_201 : f32 to vector<8x128xf32>
    %474 = arith.addf %473, %472 : vector<8x128xf32>
    %475 = arith.divf %473, %474 : vector<8x128xf32>
    %476 = arith.mulf %467, %391 : vector<8x128xf32>
    %477 = arith.mulf %461, %469 : vector<8x128xf32>
    %478 = arith.addf %476, %477 : vector<8x128xf32>
    %479 = math.tanh %478 : vector<8x128xf32>
    %480 = arith.mulf %475, %479 : vector<8x128xf32>
    %c0_202 = arith.constant 0 : index
    %c0_203 = arith.constant 0 : index
    %481 = vector.load %arg5[%c0_202, %c0_203] : memref<128x128xf32, #tpu.memory_space<vmem>>, vector<128x128xf32>
    %cst_204 = arith.constant dense<0.000000e+00> : vector<8x128xf32>
    %482 = tpu.matmul %480, %481, %cst_204 {dimension_numbers = #tpu.dot_dimension_numbers<[1], [0], [0], [1], [0, 0, 1, 1], [], []>} : vector<8x128xf32>, vector<128x128xf32>, vector<8x128xf32> -> vector<8x128xf32>
    %483 = arith.addf %482, %5 : vector<8x128xf32>
    %484 = math.tanh %483 : vector<8x128xf32>
    %c0_205 = arith.constant 0 : index
    %c0_206 = arith.constant 0 : index
    %485 = vector.load %arg7[%c0_205, %c0_206] : memref<128x256xf32, #tpu.memory_space<vmem>>, vector<128x256xf32>
    %cst_207 = arith.constant dense<0.000000e+00> : vector<8x256xf32>
    %486 = tpu.matmul %484, %485, %cst_207 {dimension_numbers = #tpu.dot_dimension_numbers<[1], [0], [0], [1], [0, 0, 1, 1], [], []>} : vector<8x128xf32>, vector<128x256xf32>, vector<8x256xf32> -> vector<8x256xf32>
    %487 = arith.addf %486, %11 : vector<8x256xf32>
    %488 = vector.extract_strided_slice %487 {offsets = [0, 0], sizes = [8, 128], strides = [1, 1]} : vector<8x256xf32> to vector<8x128xf32>
    %489 = vector.extract_strided_slice %487 {offsets = [0, 128], sizes = [8, 128], strides = [1, 1]} : vector<8x256xf32> to vector<8x128xf32>
    %c5_208 = arith.constant 5 : index
    %c0_209 = arith.constant 0 : index
    %c0_210 = arith.constant 0 : index
    %490 = vector.load %arg3[%c5_208, %c0_209, %c0_210] : memref<8x8x128xf32, #tpu.memory_space<vmem>>, vector<1x8x128xf32>
    %491 = vector.shape_cast %490 : vector<1x8x128xf32> to vector<8x128xf32>
    %cst_211 = arith.constant 5.000000e-01 : f32
    %492 = vector.broadcast %cst_211 : f32 to vector<8x128xf32>
    %493 = arith.mulf %492, %489 : vector<8x128xf32>
    %494 = math.exp %493 : vector<8x128xf32>
    %495 = arith.mulf %491, %494 : vector<8x128xf32>
    %496 = arith.addf %488, %495 : vector<8x128xf32>
    %c0_212 = arith.constant 0 : index
    %c0_213 = arith.constant 0 : index
    %497 = vector.load %arg9[%c0_212, %c0_213] : memref<128x128xf32, #tpu.memory_space<vmem>>, vector<128x128xf32>
    %cst_214 = arith.constant dense<0.000000e+00> : vector<8x128xf32>
    %498 = tpu.matmul %496, %497, %cst_214 {dimension_numbers = #tpu.dot_dimension_numbers<[1], [0], [0], [1], [0, 0, 1, 1], [], []>} : vector<8x128xf32>, vector<128x128xf32>, vector<8x128xf32> -> vector<8x128xf32>
    %499 = arith.addf %498, %8 : vector<8x128xf32>
    %500 = math.tanh %499 : vector<8x128xf32>
    %c5_215 = arith.constant 5 : index
    %c0_216 = arith.constant 0 : index
    %c0_217 = arith.constant 0 : index
    %501 = vector.load %arg2[%c5_215, %c0_216, %c0_217] : memref<8x8x512xf32, #tpu.memory_space<vmem>>, vector<1x8x512xf32>
    %502 = vector.shape_cast %501 : vector<1x8x512xf32> to vector<8x512xf32>
    %503 = tpu.concatenate %500, %444 in 1 : vector<8x128xf32>, vector<8x128xf32> -> vector<8x256xf32>
    %c0_218 = arith.constant 0 : index
    %c0_219 = arith.constant 0 : index
    %504 = vector.load %arg11[%c0_218, %c0_219] : memref<256x512xf32, #tpu.memory_space<vmem>>, vector<256x512xf32>
    %cst_220 = arith.constant dense<0.000000e+00> : vector<8x512xf32>
    %505 = tpu.matmul %503, %504, %cst_220 {dimension_numbers = #tpu.dot_dimension_numbers<[1], [0], [0], [1], [0, 0, 1, 1], [], []>} : vector<8x256xf32>, vector<256x512xf32>, vector<8x512xf32> -> vector<8x512xf32>
    %506 = arith.addf %502, %505 : vector<8x512xf32>
    %507 = vector.extract_strided_slice %506 {offsets = [0, 0], sizes = [8, 128], strides = [1, 1]} : vector<8x512xf32> to vector<8x128xf32>
    %508 = arith.negf %507 : vector<8x128xf32>
    %509 = math.exp %508 : vector<8x128xf32>
    %cst_221 = arith.constant 1.000000e+00 : f32
    %510 = vector.broadcast %cst_221 : f32 to vector<8x128xf32>
    %511 = arith.addf %510, %509 : vector<8x128xf32>
    %512 = arith.divf %510, %511 : vector<8x128xf32>
    %513 = vector.extract_strided_slice %506 {offsets = [0, 128], sizes = [8, 128], strides = [1, 1]} : vector<8x512xf32> to vector<8x128xf32>
    %514 = arith.negf %513 : vector<8x128xf32>
    %515 = math.exp %514 : vector<8x128xf32>
    %cst_222 = arith.constant 1.000000e+00 : f32
    %516 = vector.broadcast %cst_222 : f32 to vector<8x128xf32>
    %517 = arith.addf %516, %515 : vector<8x128xf32>
    %518 = arith.divf %516, %517 : vector<8x128xf32>
    %519 = vector.extract_strided_slice %506 {offsets = [0, 256], sizes = [8, 128], strides = [1, 1]} : vector<8x512xf32> to vector<8x128xf32>
    %520 = math.tanh %519 : vector<8x128xf32>
    %521 = vector.extract_strided_slice %506 {offsets = [0, 384], sizes = [8, 128], strides = [1, 1]} : vector<8x512xf32> to vector<8x128xf32>
    %522 = arith.negf %521 : vector<8x128xf32>
    %523 = math.exp %522 : vector<8x128xf32>
    %cst_223 = arith.constant 1.000000e+00 : f32
    %524 = vector.broadcast %cst_223 : f32 to vector<8x128xf32>
    %525 = arith.addf %524, %523 : vector<8x128xf32>
    %526 = arith.divf %524, %525 : vector<8x128xf32>
    %527 = arith.mulf %518, %442 : vector<8x128xf32>
    %528 = arith.mulf %512, %520 : vector<8x128xf32>
    %529 = arith.addf %527, %528 : vector<8x128xf32>
    %530 = math.tanh %529 : vector<8x128xf32>
    %531 = arith.mulf %526, %530 : vector<8x128xf32>
    %c5_224 = arith.constant 5 : index
    %c0_225 = arith.constant 0 : index
    %c0_226 = arith.constant 0 : index
    %532 = vector.load %arg12[%c5_224, %c0_225, %c0_226] : memref<8x8x128xf32, #tpu.memory_space<vmem>>, vector<1x8x128xf32>
    %533 = vector.shape_cast %532 : vector<1x8x128xf32> to vector<8x128xf32>
    %534 = vector.shape_cast %480 : vector<8x128xf32> to vector<1x8x128xf32>
    tpu.vector_store %arg12[%c5_224, %c0_225, %c0_226], %534 {strides = array<i32>} : memref<8x8x128xf32, #tpu.memory_space<vmem>>, vector<1x8x128xf32>,
    %c5_227 = arith.constant 5 : index
    %c0_228 = arith.constant 0 : index
    %c0_229 = arith.constant 0 : index
    %535 = vector.load %arg13[%c5_227, %c0_228, %c0_229] : memref<8x8x128xf32, #tpu.memory_space<vmem>>, vector<1x8x128xf32>
    %536 = vector.shape_cast %535 : vector<1x8x128xf32> to vector<8x128xf32>
    %537 = vector.shape_cast %531 : vector<8x128xf32> to vector<1x8x128xf32>
    tpu.vector_store %arg13[%c5_227, %c0_228, %c0_229], %537 {strides = array<i32>} : memref<8x8x128xf32, #tpu.memory_space<vmem>>, vector<1x8x128xf32>,
    %c6 = arith.constant 6 : index
    %c0_230 = arith.constant 0 : index
    %c0_231 = arith.constant 0 : index
    %538 = vector.load %arg1[%c6, %c0_230, %c0_231] : memref<8x8x512xf32, #tpu.memory_space<vmem>>, vector<1x8x512xf32>
    %539 = vector.shape_cast %538 : vector<1x8x512xf32> to vector<8x512xf32>
    %c0_232 = arith.constant 0 : index
    %c0_233 = arith.constant 0 : index
    %540 = vector.load %arg4[%c0_232, %c0_233] : memref<128x512xf32, #tpu.memory_space<vmem>>, vector<128x512xf32>
    %cst_234 = arith.constant dense<0.000000e+00> : vector<8x512xf32>
    %541 = tpu.matmul %480, %540, %cst_234 {dimension_numbers = #tpu.dot_dimension_numbers<[1], [0], [0], [1], [0, 0, 1, 1], [], []>} : vector<8x128xf32>, vector<128x512xf32>, vector<8x512xf32> -> vector<8x512xf32>
    %542 = arith.addf %539, %541 : vector<8x512xf32>
    %543 = vector.extract_strided_slice %542 {offsets = [0, 0], sizes = [8, 128], strides = [1, 1]} : vector<8x512xf32> to vector<8x128xf32>
    %544 = arith.negf %543 : vector<8x128xf32>
    %545 = math.exp %544 : vector<8x128xf32>
    %cst_235 = arith.constant 1.000000e+00 : f32
    %546 = vector.broadcast %cst_235 : f32 to vector<8x128xf32>
    %547 = arith.addf %546, %545 : vector<8x128xf32>
    %548 = arith.divf %546, %547 : vector<8x128xf32>
    %549 = vector.extract_strided_slice %542 {offsets = [0, 128], sizes = [8, 128], strides = [1, 1]} : vector<8x512xf32> to vector<8x128xf32>
    %550 = arith.negf %549 : vector<8x128xf32>
    %551 = math.exp %550 : vector<8x128xf32>
    %cst_236 = arith.constant 1.000000e+00 : f32
    %552 = vector.broadcast %cst_236 : f32 to vector<8x128xf32>
    %553 = arith.addf %552, %551 : vector<8x128xf32>
    %554 = arith.divf %552, %553 : vector<8x128xf32>
    %555 = vector.extract_strided_slice %542 {offsets = [0, 256], sizes = [8, 128], strides = [1, 1]} : vector<8x512xf32> to vector<8x128xf32>
    %556 = math.tanh %555 : vector<8x128xf32>
    %557 = vector.extract_strided_slice %542 {offsets = [0, 384], sizes = [8, 128], strides = [1, 1]} : vector<8x512xf32> to vector<8x128xf32>
    %558 = arith.negf %557 : vector<8x128xf32>
    %559 = math.exp %558 : vector<8x128xf32>
    %cst_237 = arith.constant 1.000000e+00 : f32
    %560 = vector.broadcast %cst_237 : f32 to vector<8x128xf32>
    %561 = arith.addf %560, %559 : vector<8x128xf32>
    %562 = arith.divf %560, %561 : vector<8x128xf32>
    %563 = arith.mulf %554, %478 : vector<8x128xf32>
    %564 = arith.mulf %548, %556 : vector<8x128xf32>
    %565 = arith.addf %563, %564 : vector<8x128xf32>
    %566 = math.tanh %565 : vector<8x128xf32>
    %567 = arith.mulf %562, %566 : vector<8x128xf32>
    %c0_238 = arith.constant 0 : index
    %c0_239 = arith.constant 0 : index
    %568 = vector.load %arg5[%c0_238, %c0_239] : memref<128x128xf32, #tpu.memory_space<vmem>>, vector<128x128xf32>
    %cst_240 = arith.constant dense<0.000000e+00> : vector<8x128xf32>
    %569 = tpu.matmul %567, %568, %cst_240 {dimension_numbers = #tpu.dot_dimension_numbers<[1], [0], [0], [1], [0, 0, 1, 1], [], []>} : vector<8x128xf32>, vector<128x128xf32>, vector<8x128xf32> -> vector<8x128xf32>
    %570 = arith.addf %569, %5 : vector<8x128xf32>
    %571 = math.tanh %570 : vector<8x128xf32>
    %c0_241 = arith.constant 0 : index
    %c0_242 = arith.constant 0 : index
    %572 = vector.load %arg7[%c0_241, %c0_242] : memref<128x256xf32, #tpu.memory_space<vmem>>, vector<128x256xf32>
    %cst_243 = arith.constant dense<0.000000e+00> : vector<8x256xf32>
    %573 = tpu.matmul %571, %572, %cst_243 {dimension_numbers = #tpu.dot_dimension_numbers<[1], [0], [0], [1], [0, 0, 1, 1], [], []>} : vector<8x128xf32>, vector<128x256xf32>, vector<8x256xf32> -> vector<8x256xf32>
    %574 = arith.addf %573, %11 : vector<8x256xf32>
    %575 = vector.extract_strided_slice %574 {offsets = [0, 0], sizes = [8, 128], strides = [1, 1]} : vector<8x256xf32> to vector<8x128xf32>
    %576 = vector.extract_strided_slice %574 {offsets = [0, 128], sizes = [8, 128], strides = [1, 1]} : vector<8x256xf32> to vector<8x128xf32>
    %c6_244 = arith.constant 6 : index
    %c0_245 = arith.constant 0 : index
    %c0_246 = arith.constant 0 : index
    %577 = vector.load %arg3[%c6_244, %c0_245, %c0_246] : memref<8x8x128xf32, #tpu.memory_space<vmem>>, vector<1x8x128xf32>
    %578 = vector.shape_cast %577 : vector<1x8x128xf32> to vector<8x128xf32>
    %cst_247 = arith.constant 5.000000e-01 : f32
    %579 = vector.broadcast %cst_247 : f32 to vector<8x128xf32>
    %580 = arith.mulf %579, %576 : vector<8x128xf32>
    %581 = math.exp %580 : vector<8x128xf32>
    %582 = arith.mulf %578, %581 : vector<8x128xf32>
    %583 = arith.addf %575, %582 : vector<8x128xf32>
    %c0_248 = arith.constant 0 : index
    %c0_249 = arith.constant 0 : index
    %584 = vector.load %arg9[%c0_248, %c0_249] : memref<128x128xf32, #tpu.memory_space<vmem>>, vector<128x128xf32>
    %cst_250 = arith.constant dense<0.000000e+00> : vector<8x128xf32>
    %585 = tpu.matmul %583, %584, %cst_250 {dimension_numbers = #tpu.dot_dimension_numbers<[1], [0], [0], [1], [0, 0, 1, 1], [], []>} : vector<8x128xf32>, vector<128x128xf32>, vector<8x128xf32> -> vector<8x128xf32>
    %586 = arith.addf %585, %8 : vector<8x128xf32>
    %587 = math.tanh %586 : vector<8x128xf32>
    %c6_251 = arith.constant 6 : index
    %c0_252 = arith.constant 0 : index
    %c0_253 = arith.constant 0 : index
    %588 = vector.load %arg2[%c6_251, %c0_252, %c0_253] : memref<8x8x512xf32, #tpu.memory_space<vmem>>, vector<1x8x512xf32>
    %589 = vector.shape_cast %588 : vector<1x8x512xf32> to vector<8x512xf32>
    %590 = tpu.concatenate %587, %531 in 1 : vector<8x128xf32>, vector<8x128xf32> -> vector<8x256xf32>
    %c0_254 = arith.constant 0 : index
    %c0_255 = arith.constant 0 : index
    %591 = vector.load %arg11[%c0_254, %c0_255] : memref<256x512xf32, #tpu.memory_space<vmem>>, vector<256x512xf32>
    %cst_256 = arith.constant dense<0.000000e+00> : vector<8x512xf32>
    %592 = tpu.matmul %590, %591, %cst_256 {dimension_numbers = #tpu.dot_dimension_numbers<[1], [0], [0], [1], [0, 0, 1, 1], [], []>} : vector<8x256xf32>, vector<256x512xf32>, vector<8x512xf32> -> vector<8x512xf32>
    %593 = arith.addf %589, %592 : vector<8x512xf32>
    %594 = vector.extract_strided_slice %593 {offsets = [0, 0], sizes = [8, 128], strides = [1, 1]} : vector<8x512xf32> to vector<8x128xf32>
    %595 = arith.negf %594 : vector<8x128xf32>
    %596 = math.exp %595 : vector<8x128xf32>
    %cst_257 = arith.constant 1.000000e+00 : f32
    %597 = vector.broadcast %cst_257 : f32 to vector<8x128xf32>
    %598 = arith.addf %597, %596 : vector<8x128xf32>
    %599 = arith.divf %597, %598 : vector<8x128xf32>
    %600 = vector.extract_strided_slice %593 {offsets = [0, 128], sizes = [8, 128], strides = [1, 1]} : vector<8x512xf32> to vector<8x128xf32>
    %601 = arith.negf %600 : vector<8x128xf32>
    %602 = math.exp %601 : vector<8x128xf32>
    %cst_258 = arith.constant 1.000000e+00 : f32
    %603 = vector.broadcast %cst_258 : f32 to vector<8x128xf32>
    %604 = arith.addf %603, %602 : vector<8x128xf32>
    %605 = arith.divf %603, %604 : vector<8x128xf32>
    %606 = vector.extract_strided_slice %593 {offsets = [0, 256], sizes = [8, 128], strides = [1, 1]} : vector<8x512xf32> to vector<8x128xf32>
    %607 = math.tanh %606 : vector<8x128xf32>
    %608 = vector.extract_strided_slice %593 {offsets = [0, 384], sizes = [8, 128], strides = [1, 1]} : vector<8x512xf32> to vector<8x128xf32>
    %609 = arith.negf %608 : vector<8x128xf32>
    %610 = math.exp %609 : vector<8x128xf32>
    %cst_259 = arith.constant 1.000000e+00 : f32
    %611 = vector.broadcast %cst_259 : f32 to vector<8x128xf32>
    %612 = arith.addf %611, %610 : vector<8x128xf32>
    %613 = arith.divf %611, %612 : vector<8x128xf32>
    %614 = arith.mulf %605, %529 : vector<8x128xf32>
    %615 = arith.mulf %599, %607 : vector<8x128xf32>
    %616 = arith.addf %614, %615 : vector<8x128xf32>
    %617 = math.tanh %616 : vector<8x128xf32>
    %618 = arith.mulf %613, %617 : vector<8x128xf32>
    %c6_260 = arith.constant 6 : index
    %c0_261 = arith.constant 0 : index
    %c0_262 = arith.constant 0 : index
    %619 = vector.load %arg12[%c6_260, %c0_261, %c0_262] : memref<8x8x128xf32, #tpu.memory_space<vmem>>, vector<1x8x128xf32>
    %620 = vector.shape_cast %619 : vector<1x8x128xf32> to vector<8x128xf32>
    %621 = vector.shape_cast %567 : vector<8x128xf32> to vector<1x8x128xf32>
    tpu.vector_store %arg12[%c6_260, %c0_261, %c0_262], %621 {strides = array<i32>} : memref<8x8x128xf32, #tpu.memory_space<vmem>>, vector<1x8x128xf32>,
    %c6_263 = arith.constant 6 : index
    %c0_264 = arith.constant 0 : index
    %c0_265 = arith.constant 0 : index
    %622 = vector.load %arg13[%c6_263, %c0_264, %c0_265] : memref<8x8x128xf32, #tpu.memory_space<vmem>>, vector<1x8x128xf32>
    %623 = vector.shape_cast %622 : vector<1x8x128xf32> to vector<8x128xf32>
    %624 = vector.shape_cast %618 : vector<8x128xf32> to vector<1x8x128xf32>
    tpu.vector_store %arg13[%c6_263, %c0_264, %c0_265], %624 {strides = array<i32>} : memref<8x8x128xf32, #tpu.memory_space<vmem>>, vector<1x8x128xf32>,
    %c7 = arith.constant 7 : index
    %c0_266 = arith.constant 0 : index
    %c0_267 = arith.constant 0 : index
    %625 = vector.load %arg1[%c7, %c0_266, %c0_267] : memref<8x8x512xf32, #tpu.memory_space<vmem>>, vector<1x8x512xf32>
    %626 = vector.shape_cast %625 : vector<1x8x512xf32> to vector<8x512xf32>
    %c0_268 = arith.constant 0 : index
    %c0_269 = arith.constant 0 : index
    %627 = vector.load %arg4[%c0_268, %c0_269] : memref<128x512xf32, #tpu.memory_space<vmem>>, vector<128x512xf32>
    %cst_270 = arith.constant dense<0.000000e+00> : vector<8x512xf32>
    %628 = tpu.matmul %567, %627, %cst_270 {dimension_numbers = #tpu.dot_dimension_numbers<[1], [0], [0], [1], [0, 0, 1, 1], [], []>} : vector<8x128xf32>, vector<128x512xf32>, vector<8x512xf32> -> vector<8x512xf32>
    %629 = arith.addf %626, %628 : vector<8x512xf32>
    %630 = vector.extract_strided_slice %629 {offsets = [0, 0], sizes = [8, 128], strides = [1, 1]} : vector<8x512xf32> to vector<8x128xf32>
    %631 = arith.negf %630 : vector<8x128xf32>
    %632 = math.exp %631 : vector<8x128xf32>
    %cst_271 = arith.constant 1.000000e+00 : f32
    %633 = vector.broadcast %cst_271 : f32 to vector<8x128xf32>
    %634 = arith.addf %633, %632 : vector<8x128xf32>
    %635 = arith.divf %633, %634 : vector<8x128xf32>
    %636 = vector.extract_strided_slice %629 {offsets = [0, 128], sizes = [8, 128], strides = [1, 1]} : vector<8x512xf32> to vector<8x128xf32>
    %637 = arith.negf %636 : vector<8x128xf32>
    %638 = math.exp %637 : vector<8x128xf32>
    %cst_272 = arith.constant 1.000000e+00 : f32
    %639 = vector.broadcast %cst_272 : f32 to vector<8x128xf32>
    %640 = arith.addf %639, %638 : vector<8x128xf32>
    %641 = arith.divf %639, %640 : vector<8x128xf32>
    %642 = vector.extract_strided_slice %629 {offsets = [0, 256], sizes = [8, 128], strides = [1, 1]} : vector<8x512xf32> to vector<8x128xf32>
    %643 = math.tanh %642 : vector<8x128xf32>
    %644 = vector.extract_strided_slice %629 {offsets = [0, 384], sizes = [8, 128], strides = [1, 1]} : vector<8x512xf32> to vector<8x128xf32>
    %645 = arith.negf %644 : vector<8x128xf32>
    %646 = math.exp %645 : vector<8x128xf32>
    %cst_273 = arith.constant 1.000000e+00 : f32
    %647 = vector.broadcast %cst_273 : f32 to vector<8x128xf32>
    %648 = arith.addf %647, %646 : vector<8x128xf32>
    %649 = arith.divf %647, %648 : vector<8x128xf32>
    %650 = arith.mulf %641, %565 : vector<8x128xf32>
    %651 = arith.mulf %635, %643 : vector<8x128xf32>
    %652 = arith.addf %650, %651 : vector<8x128xf32>
    %653 = math.tanh %652 : vector<8x128xf32>
    %654 = arith.mulf %649, %653 : vector<8x128xf32>
    %c0_274 = arith.constant 0 : index
    %c0_275 = arith.constant 0 : index
    %655 = vector.load %arg5[%c0_274, %c0_275] : memref<128x128xf32, #tpu.memory_space<vmem>>, vector<128x128xf32>
    %cst_276 = arith.constant dense<0.000000e+00> : vector<8x128xf32>
    %656 = tpu.matmul %654, %655, %cst_276 {dimension_numbers = #tpu.dot_dimension_numbers<[1], [0], [0], [1], [0, 0, 1, 1], [], []>} : vector<8x128xf32>, vector<128x128xf32>, vector<8x128xf32> -> vector<8x128xf32>
    %657 = arith.addf %656, %5 : vector<8x128xf32>
    %658 = math.tanh %657 : vector<8x128xf32>
    %c0_277 = arith.constant 0 : index
    %c0_278 = arith.constant 0 : index
    %659 = vector.load %arg7[%c0_277, %c0_278] : memref<128x256xf32, #tpu.memory_space<vmem>>, vector<128x256xf32>
    %cst_279 = arith.constant dense<0.000000e+00> : vector<8x256xf32>
    %660 = tpu.matmul %658, %659, %cst_279 {dimension_numbers = #tpu.dot_dimension_numbers<[1], [0], [0], [1], [0, 0, 1, 1], [], []>} : vector<8x128xf32>, vector<128x256xf32>, vector<8x256xf32> -> vector<8x256xf32>
    %661 = arith.addf %660, %11 : vector<8x256xf32>
    %662 = vector.extract_strided_slice %661 {offsets = [0, 0], sizes = [8, 128], strides = [1, 1]} : vector<8x256xf32> to vector<8x128xf32>
    %663 = vector.extract_strided_slice %661 {offsets = [0, 128], sizes = [8, 128], strides = [1, 1]} : vector<8x256xf32> to vector<8x128xf32>
    %c7_280 = arith.constant 7 : index
    %c0_281 = arith.constant 0 : index
    %c0_282 = arith.constant 0 : index
    %664 = vector.load %arg3[%c7_280, %c0_281, %c0_282] : memref<8x8x128xf32, #tpu.memory_space<vmem>>, vector<1x8x128xf32>
    %665 = vector.shape_cast %664 : vector<1x8x128xf32> to vector<8x128xf32>
    %cst_283 = arith.constant 5.000000e-01 : f32
    %666 = vector.broadcast %cst_283 : f32 to vector<8x128xf32>
    %667 = arith.mulf %666, %663 : vector<8x128xf32>
    %668 = math.exp %667 : vector<8x128xf32>
    %669 = arith.mulf %665, %668 : vector<8x128xf32>
    %670 = arith.addf %662, %669 : vector<8x128xf32>
    %c0_284 = arith.constant 0 : index
    %c0_285 = arith.constant 0 : index
    %671 = vector.load %arg9[%c0_284, %c0_285] : memref<128x128xf32, #tpu.memory_space<vmem>>, vector<128x128xf32>
    %cst_286 = arith.constant dense<0.000000e+00> : vector<8x128xf32>
    %672 = tpu.matmul %670, %671, %cst_286 {dimension_numbers = #tpu.dot_dimension_numbers<[1], [0], [0], [1], [0, 0, 1, 1], [], []>} : vector<8x128xf32>, vector<128x128xf32>, vector<8x128xf32> -> vector<8x128xf32>
    %673 = arith.addf %672, %8 : vector<8x128xf32>
    %674 = math.tanh %673 : vector<8x128xf32>
    %c7_287 = arith.constant 7 : index
    %c0_288 = arith.constant 0 : index
    %c0_289 = arith.constant 0 : index
    %675 = vector.load %arg2[%c7_287, %c0_288, %c0_289] : memref<8x8x512xf32, #tpu.memory_space<vmem>>, vector<1x8x512xf32>
    %676 = vector.shape_cast %675 : vector<1x8x512xf32> to vector<8x512xf32>
    %677 = tpu.concatenate %674, %618 in 1 : vector<8x128xf32>, vector<8x128xf32> -> vector<8x256xf32>
    %c0_290 = arith.constant 0 : index
    %c0_291 = arith.constant 0 : index
    %678 = vector.load %arg11[%c0_290, %c0_291] : memref<256x512xf32, #tpu.memory_space<vmem>>, vector<256x512xf32>
    %cst_292 = arith.constant dense<0.000000e+00> : vector<8x512xf32>
    %679 = tpu.matmul %677, %678, %cst_292 {dimension_numbers = #tpu.dot_dimension_numbers<[1], [0], [0], [1], [0, 0, 1, 1], [], []>} : vector<8x256xf32>, vector<256x512xf32>, vector<8x512xf32> -> vector<8x512xf32>
    %680 = arith.addf %676, %679 : vector<8x512xf32>
    %681 = vector.extract_strided_slice %680 {offsets = [0, 0], sizes = [8, 128], strides = [1, 1]} : vector<8x512xf32> to vector<8x128xf32>
    %682 = arith.negf %681 : vector<8x128xf32>
    %683 = math.exp %682 : vector<8x128xf32>
    %cst_293 = arith.constant 1.000000e+00 : f32
    %684 = vector.broadcast %cst_293 : f32 to vector<8x128xf32>
    %685 = arith.addf %684, %683 : vector<8x128xf32>
    %686 = arith.divf %684, %685 : vector<8x128xf32>
    %687 = vector.extract_strided_slice %680 {offsets = [0, 128], sizes = [8, 128], strides = [1, 1]} : vector<8x512xf32> to vector<8x128xf32>
    %688 = arith.negf %687 : vector<8x128xf32>
    %689 = math.exp %688 : vector<8x128xf32>
    %cst_294 = arith.constant 1.000000e+00 : f32
    %690 = vector.broadcast %cst_294 : f32 to vector<8x128xf32>
    %691 = arith.addf %690, %689 : vector<8x128xf32>
    %692 = arith.divf %690, %691 : vector<8x128xf32>
    %693 = vector.extract_strided_slice %680 {offsets = [0, 256], sizes = [8, 128], strides = [1, 1]} : vector<8x512xf32> to vector<8x128xf32>
    %694 = math.tanh %693 : vector<8x128xf32>
    %695 = vector.extract_strided_slice %680 {offsets = [0, 384], sizes = [8, 128], strides = [1, 1]} : vector<8x512xf32> to vector<8x128xf32>
    %696 = arith.negf %695 : vector<8x128xf32>
    %697 = math.exp %696 : vector<8x128xf32>
    %cst_295 = arith.constant 1.000000e+00 : f32
    %698 = vector.broadcast %cst_295 : f32 to vector<8x128xf32>
    %699 = arith.addf %698, %697 : vector<8x128xf32>
    %700 = arith.divf %698, %699 : vector<8x128xf32>
    %701 = arith.mulf %692, %616 : vector<8x128xf32>
    %702 = arith.mulf %686, %694 : vector<8x128xf32>
    %703 = arith.addf %701, %702 : vector<8x128xf32>
    %704 = math.tanh %703 : vector<8x128xf32>
    %705 = arith.mulf %700, %704 : vector<8x128xf32>
    %c7_296 = arith.constant 7 : index
    %c0_297 = arith.constant 0 : index
    %c0_298 = arith.constant 0 : index
    %706 = vector.load %arg12[%c7_296, %c0_297, %c0_298] : memref<8x8x128xf32, #tpu.memory_space<vmem>>, vector<1x8x128xf32>
    %707 = vector.shape_cast %706 : vector<1x8x128xf32> to vector<8x128xf32>
    %708 = vector.shape_cast %654 : vector<8x128xf32> to vector<1x8x128xf32>
    tpu.vector_store %arg12[%c7_296, %c0_297, %c0_298], %708 {strides = array<i32>} : memref<8x8x128xf32, #tpu.memory_space<vmem>>, vector<1x8x128xf32>,
    %c7_299 = arith.constant 7 : index
    %c0_300 = arith.constant 0 : index
    %c0_301 = arith.constant 0 : index
    %709 = vector.load %arg13[%c7_299, %c0_300, %c0_301] : memref<8x8x128xf32, #tpu.memory_space<vmem>>, vector<1x8x128xf32>
    %710 = vector.shape_cast %709 : vector<1x8x128xf32> to vector<8x128xf32>
    %711 = vector.shape_cast %705 : vector<8x128xf32> to vector<1x8x128xf32>
    tpu.vector_store %arg13[%c7_299, %c0_300, %c0_301], %711 {strides = array<i32>} : memref<8x8x128xf32, #tpu.memory_space<vmem>>, vector<1x8x128xf32>,
    %c0_302 = arith.constant 0 : index
    %c0_303 = arith.constant 0 : index
    %712 = vector.load %arg14[%c0_302, %c0_303] : memref<8x128xf32, #tpu.memory_space<vmem>>, vector<8x128xf32>
    tpu.vector_store %arg14[%c0_302, %c0_303], %654 {strides = array<i32>} : memref<8x128xf32, #tpu.memory_space<vmem>>, vector<8x128xf32>,
    %c0_304 = arith.constant 0 : index
    %c0_305 = arith.constant 0 : index
    %713 = vector.load %arg15[%c0_304, %c0_305] : memref<8x128xf32, #tpu.memory_space<vmem>>, vector<8x128xf32>
    tpu.vector_store %arg15[%c0_304, %c0_305], %652 {strides = array<i32>} : memref<8x128xf32, #tpu.memory_space<vmem>>, vector<8x128xf32>,
    %c0_306 = arith.constant 0 : index
    %c0_307 = arith.constant 0 : index
    %714 = vector.load %arg16[%c0_306, %c0_307] : memref<8x128xf32, #tpu.memory_space<vmem>>, vector<8x128xf32>
    tpu.vector_store %arg16[%c0_306, %c0_307], %705 {strides = array<i32>} : memref<8x128xf32, #tpu.memory_space<vmem>>, vector<8x128xf32>,
    %c0_308 = arith.constant 0 : index
    %c0_309 = arith.constant 0 : index
    %715 = vector.load %arg17[%c0_308, %c0_309] : memref<8x128xf32, #tpu.memory_space<vmem>>, vector<8x128xf32>
    tpu.vector_store %arg17[%c0_308, %c0_309], %703 {strides = array<i32>} : memref<8x128xf32, #tpu.memory_space<vmem>>, vector<8x128xf32>,
    return
  }
  func.func @transform_0(%arg0: i32) -> (i32, i32, i32) {
    %c0_i32 = arith.constant 0 : i32
    %c0_i32_0 = arith.constant 0 : i32
    %c0_i32_1 = arith.constant 0 : i32
    return %arg0, %c0_i32, %c0_i32_0 : i32, i32, i32
  }
  func.func @transform_1(%arg0: i32) -> (i32, i32, i32) {
    %c0_i32 = arith.constant 0 : i32
    %c0_i32_0 = arith.constant 0 : i32
    %c0_i32_1 = arith.constant 0 : i32
    return %arg0, %c0_i32, %c0_i32_0 : i32, i32, i32
  }
  func.func @transform_2(%arg0: i32) -> (i32, i32, i32) {
    %c0_i32 = arith.constant 0 : i32
    %c0_i32_0 = arith.constant 0 : i32
    %c0_i32_1 = arith.constant 0 : i32
    return %arg0, %c0_i32, %c0_i32_0 : i32, i32, i32
  }
  func.func @transform_3(%arg0: i32) -> (i32, i32) {
    %c0_i32 = arith.constant 0 : i32
    %c0_i32_0 = arith.constant 0 : i32
    %c0_i32_1 = arith.constant 0 : i32
    return %c0_i32, %c0_i32_0 : i32, i32
  }
  func.func @transform_4(%arg0: i32) -> (i32, i32) {
    %c0_i32 = arith.constant 0 : i32
    %c0_i32_0 = arith.constant 0 : i32
    %c0_i32_1 = arith.constant 0 : i32
    return %c0_i32, %c0_i32_0 : i32, i32
  }
  func.func @transform_5(%arg0: i32) -> (i32, i32) {
    %c0_i32 = arith.constant 0 : i32
    %c0_i32_0 = arith.constant 0 : i32
    %c0_i32_1 = arith.constant 0 : i32
    return %c0_i32, %c0_i32_0 : i32, i32
  }
  func.func @transform_6(%arg0: i32) -> (i32, i32) {
    %c0_i32 = arith.constant 0 : i32
    %c0_i32_0 = arith.constant 0 : i32
    %c0_i32_1 = arith.constant 0 : i32
    return %c0_i32, %c0_i32_0 : i32, i32
  }
  func.func @transform_7(%arg0: i32) -> (i32, i32) {
    %c0_i32 = arith.constant 0 : i32
    %c0_i32_0 = arith.constant 0 : i32
    %c0_i32_1 = arith.constant 0 : i32
    return %c0_i32, %c0_i32_0 : i32, i32
  }
  func.func @transform_8(%arg0: i32) -> (i32, i32) {
    %c0_i32 = arith.constant 0 : i32
    %c0_i32_0 = arith.constant 0 : i32
    %c0_i32_1 = arith.constant 0 : i32
    return %c0_i32, %c0_i32_0 : i32, i32
  }
  func.func @transform_9(%arg0: i32) -> (i32, i32) {
    %c0_i32 = arith.constant 0 : i32
    %c0_i32_0 = arith.constant 0 : i32
    %c0_i32_1 = arith.constant 0 : i32
    return %c0_i32, %c0_i32_0 : i32, i32
  }
  func.func @transform_10(%arg0: i32) -> (i32, i32) {
    %c0_i32 = arith.constant 0 : i32
    %c0_i32_0 = arith.constant 0 : i32
    %c0_i32_1 = arith.constant 0 : i32
    return %c0_i32, %c0_i32_0 : i32, i32
  }
  func.func @transform_11(%arg0: i32) -> (i32, i32, i32) {
    %c0_i32 = arith.constant 0 : i32
    %c0_i32_0 = arith.constant 0 : i32
    %c0_i32_1 = arith.constant 0 : i32
    return %arg0, %c0_i32, %c0_i32_0 : i32, i32, i32
  }
  func.func @transform_12(%arg0: i32) -> (i32, i32, i32) {
    %c0_i32 = arith.constant 0 : i32
    %c0_i32_0 = arith.constant 0 : i32
    %c0_i32_1 = arith.constant 0 : i32
    return %arg0, %c0_i32, %c0_i32_0 : i32, i32, i32
  }
}

</mosaic_0001>

<bundles_post_ra>
// kernel: storn_forward.1
= control target key start
LH: loop header
LB: loop body
LE: loop exit
PB: predicated region body
PF: predicated region fallthrough
CT: control target
= control target key end

     0   :  { %v10181_v3 = vmov 0.0   ;;  %vm10183_vm0 = vmmov 0   ;;  %s17049_s3 = inlined_call_operand.vmem [shape: f32[128,512], index: 3, kind: input, shape index: {}]   ;;  %s17050_s4 = inlined_call_operand.vmem [shape: f32[128,128], index: 4, kind: input, shape index: {}]   ;;  %s17051_s6 = inlined_call_operand.vmem [shape: f32[128,256], index: 6, kind: input, shape index: {}]   ;;  %s17052_s0 = inlined_call_operand.vmem [shape: f32[8,8,512], index: 0, kind: input, shape index: {}]   ;;  %s17053_s11 = inlined_call_operand.vmem [shape: f32[8,8,128], index: 11, kind: output, shape index: {0}]   ;;  %s17054_s8 = inlined_call_operand.vmem [shape: f32[128,128], index: 8, kind: input, shape index: {}]   ;;  %s17055_s5 = inlined_call_operand.vmem [shape: f32[1,128], index: 5, kind: input, shape index: {}]   ;;  %s17056_s10 = inlined_call_operand.vmem [shape: f32[256,512], index: 10, kind: input, shape index: {}]   ;;  %s17057_s7 = inlined_call_operand.vmem [shape: f32[1,256], index: 7, kind: input, shape index: {}]   ;;  %s17058_s2 = inlined_call_operand.vmem [shape: f32[8,8,128], index: 2, kind: input, shape index: {}]   ;;  %s17059_s9 = inlined_call_operand.vmem [shape: f32[1,128], index: 9, kind: input, shape index: {}]   ;;  %s17060_s1 = inlined_call_operand.vmem [shape: f32[8,8,512], index: 1, kind: input, shape index: {}]   ;;  %s17061_s12 = inlined_call_operand.vmem [shape: f32[8,8,128], index: 12, kind: output, shape index: {1}]  }
   0x1   :  { %v83_v0 = vld [vmem:[%s17049_s3 + $0x8] sm:$0xff]  ;;  %v82_v2 = vld [vmem:[%s17049_s3] sm:$0xff]  ;;  %210 = vmatprep.mubr.f32.mxu0 %v10181_v3  ;;  %281 = vmatprep.mubr.f32.mxu1 %v10181_v3  ;;  %v85_v19 = vld [vmem:[%s17049_s3 + $0x18] sm:$0xff] }
   0x2   :  { %v87_v1 = vld [vmem:[%s17049_s3 + $0x28] sm:$0xff]  ;;  %v86_v5 = vld [vmem:[%s17049_s3 + $0x20] sm:$0xff]  ;;  %v89_v20 = vld [vmem:[%s17049_s3 + $0x38] sm:$0xff] }
   0x3   :  { %v7684_v4 = vpack.c.bf16 %v87_v1, %v83_v0  ;;  %v91_v6 = vld [vmem:[%s17049_s3 + $0x48] sm:$0xff]  ;;  %v7686_v8 = vpack.c.bf16 %v86_v5, %v82_v2  ;;  %v90_v10 = vld [vmem:[%s17049_s3 + $0x40] sm:$0xff]  ;;  %v7716_v22 = vpack.c.bf16 %v89_v20, %v85_v19  ;;  %v84_v23 = vld [vmem:[%s17049_s3 + $0x10] sm:$0xff] }
   0x4   :  { %v95_v7 = vld [vmem:[%s17049_s3 + $0x68] sm:$0xff]  ;;  %v94_v11 = vld [vmem:[%s17049_s3 + $0x60] sm:$0xff]  ;;  %v88_v24 = vld [vmem:[%s17049_s3 + $0x30] sm:$0xff] }
   0x5   :  { %v7688_v9 = vpack.c.bf16 %v95_v7, %v91_v6  ;;  %v99_v12 = vld [vmem:[%s17049_s3 + $0x88] sm:$0xff]  ;;  %7685 = vmatprep.subr.bf16.mxu0 %v7684_v4  ;;  %v7690_v14 = vpack.c.bf16 %v94_v11, %v90_v10  ;;  %v98_v15 = vld [vmem:[%s17049_s3 + $0x80] sm:$0xff]  ;;  %v7718_v25 = vpack.c.bf16 %v88_v24, %v84_v23  ;;  %7717 = vmatprep.subr.bf16.mxu1 %v7716_v22  ;;  %v93_v27 = vld [vmem:[%s17049_s3 + $0x58] sm:$0xff] }
   0x6   :  { %v103_v13 = vld [vmem:[%s17049_s3 + $0xa8] sm:$0xff]  ;;  %7687 = vmatpush1.bf16.msra.mxu0 %v7686_v8  ;;  %v102_v16 = vld [vmem:[%s17049_s3 + $0xa0] sm:$0xff]  ;;  %v97_v28 = vld [vmem:[%s17049_s3 + $0x78] sm:$0xff] }
   0x7   :  { %7689 = vmatprep.subr.bf16.mxu0 %v7688_v9  ;;  %v7692_v17 = vpack.c.bf16 %v103_v13, %v99_v12  ;;  %v107_v18 = vld [vmem:[%s17049_s3 + $0xc8] sm:$0xff]  ;;  %v7694_v26 = vpack.c.bf16 %v102_v16, %v98_v15  ;;  %v92_v29 = vld [vmem:[%s17049_s3 + $0x50] sm:$0xff]  ;;  %v106_v31 = vld [vmem:[%s17049_s3 + $0xc0] sm:$0xff]  ;;  %7719 = vmatpush1.bf16.msra.mxu1 %v7718_v25  ;;  %v7720_v33 = vpack.c.bf16 %v97_v28, %v93_v27 }
   0x8   :  { %v111_v21 = vld [vmem:[%s17049_s3 + $0xe8] sm:$0xff]  ;;  %v110_v32 = vld [vmem:[%s17049_s3 + $0xe0] sm:$0xff]  ;;  %v96_v34 = vld [vmem:[%s17049_s3 + $0x70] sm:$0xff] }
   0x9   :  { %v7696_v30 = vpack.c.bf16 %v111_v21, %v107_v18  ;;  %v115_v35 = vld [vmem:[%s17049_s3 + $0x108] sm:$0xff]  ;;  %v7722_v37 = vpack.c.bf16 %v96_v34, %v92_v29  ;;  %v101_v38 = vld [vmem:[%s17049_s3 + $0x98] sm:$0xff]  ;;  %7721 = vmatprep.subr.bf16.mxu1 %v7720_v33  ;;  %v100_v40 = vld [vmem:[%s17049_s3 + $0x90] sm:$0xff]  ;;  %v7698_v42 = vpack.c.bf16 %v110_v32, %v106_v31 }
   0xa   :  { %7691 = vmatpush1.bf16.msra.mxu0 %v7690_v14  ;;  %v119_v36 = vld [vmem:[%s17049_s3 + $0x128] sm:$0xff]  ;;  %v105_v39 = vld [vmem:[%s17049_s3 + $0xb8] sm:$0xff]  ;;  %v104_v41 = vld [vmem:[%s17049_s3 + $0xb0] sm:$0xff] }
   0xb   :  { %7693 = vmatprep.subr.bf16.mxu0 %v7692_v17  ;;  %v114_v43 = vld [vmem:[%s17049_s3 + $0x100] sm:$0xff]  ;;  %v7724_v45 = vpack.c.bf16 %v105_v39, %v101_v38  ;;  %v7700_v46 = vpack.c.bf16 %v119_v36, %v115_v35  ;;  %7723 = vmatpush1.bf16.msra.mxu1 %v7722_v37  ;;  %v123_v47 = vld [vmem:[%s17049_s3 + $0x148] sm:$0xff]  ;;  %v7726_v48 = vpack.c.bf16 %v104_v41, %v100_v40  ;;  %v109_v49 = vld [vmem:[%s17049_s3 + $0xd8] sm:$0xff]  ;;  %v10182_v37 = vmov 0.0|0.0  }
   0xc   :  { %v118_v44 = vld [vmem:[%s17049_s3 + $0x120] sm:$0xff]  ;;  %v113_v50 = vld [vmem:[%s17049_s3 + $0xf8] sm:$0xff]  ;;  %v127_v51 = vld [vmem:[%s17049_s3 + $0x168] sm:$0xff] }
   0xd   :  { %7725 = vmatprep.subr.bf16.mxu1 %v7724_v45  ;;  %v7728_v52 = vpack.c.bf16 %v113_v50, %v109_v49  ;;  %v108_v53 = vld [vmem:[%s17049_s3 + $0xd0] sm:$0xff]  ;;  %v7702_v55 = vpack.c.bf16 %v118_v44, %v114_v43  ;;  %v117_v56 = vld [vmem:[%s17049_s3 + $0x118] sm:$0xff]  ;;  %v7704_v58 = vpack.c.bf16 %v127_v51, %v123_v47  ;;  %v122_v59 = vld [vmem:[%s17049_s3 + $0x140] sm:$0xff] }
   0xe   :  { %7695 = vmatpush1.bf16.msra.mxu0 %v7694_v26  ;;  %v112_v54 = vld [vmem:[%s17049_s3 + $0xf0] sm:$0xff]  ;;  %v121_v57 = vld [vmem:[%s17049_s3 + $0x138] sm:$0xff]  ;;  %v126_v60 = vld [vmem:[%s17049_s3 + $0x160] sm:$0xff] }
   0xf   :  { %7697 = vmatprep.subr.bf16.mxu0 %v7696_v30  ;;  %7727 = vmatpush1.bf16.msra.mxu1 %v7726_v48  ;;  %v131_v61 = vld [vmem:[%s17049_s3 + $0x188] sm:$0xff]  ;;  %v7730_v62 = vpack.c.bf16 %v112_v54, %v108_v53  ;;  %v7732_v0 = vpack.c.bf16 %v121_v57, %v117_v56  ;;  %v116_v1 = vld [vmem:[%s17049_s3 + $0x110] sm:$0xff]  ;;  %v125_v4 = vld [vmem:[%s17049_s3 + $0x158] sm:$0xff]  ;;  %v7706_v6 = vpack.c.bf16 %v126_v60, %v122_v59 }
  0x10   :  { %v135_v63 = vld [vmem:[%s17049_s3 + $0x1a8] sm:$0xff]  ;;  %7729 = vmatprep.subr.bf16.mxu1 %v7728_v52  ;;  %v120_v2 = vld [vmem:[%s17049_s3 + $0x130] sm:$0xff]  ;;  %v129_v5 = vld [vmem:[%s17049_s3 + $0x178] sm:$0xff] }
  0x11   :  { %v7708_v7 = vpack.c.bf16 %v135_v63, %v131_v61  ;;  %v130_v8 = vld [vmem:[%s17049_s3 + $0x180] sm:$0xff]  ;;  %v139_v10 = vld [vmem:[%s17049_s3 + $0x1c8] sm:$0xff]  ;;  %v7734_v11 = vpack.c.bf16 %v120_v2, %v116_v1  ;;  %v7736_v13 = vpack.c.bf16 %v129_v5, %v125_v4  ;;  %v124_v14 = vld [vmem:[%s17049_s3 + $0x150] sm:$0xff] }
  0x12   :  { %7699 = vmatpush1.bf16.msra.mxu0 %v7698_v42  ;;  %v134_v9 = vld [vmem:[%s17049_s3 + $0x1a0] sm:$0xff]  ;;  %v143_v12 = vld [vmem:[%s17049_s3 + $0x1e8] sm:$0xff]  ;;  %v128_v15 = vld [vmem:[%s17049_s3 + $0x170] sm:$0xff] }
  0x13   :  { %7701 = vmatprep.subr.bf16.mxu0 %v7700_v46  ;;  %7731 = vmatpush1.bf16.msra.mxu1 %v7730_v62  ;;  %v133_v16 = vld [vmem:[%s17049_s3 + $0x198] sm:$0xff]  ;;  %v7710_v18 = vpack.c.bf16 %v134_v9, %v130_v8  ;;  %v7712_v19 = vpack.c.bf16 %v143_v12, %v139_v10  ;;  %v138_v20 = vld [vmem:[%s17049_s3 + $0x1c0] sm:$0xff]  ;;  %v7738_v22 = vpack.c.bf16 %v128_v15, %v124_v14  ;;  %v132_v24 = vld [vmem:[%s17049_s3 + $0x190] sm:$0xff] }
  0x14   :  { %7733 = vmatprep.subr.bf16.mxu1 %v7732_v0  ;;  %v137_v17 = vld [vmem:[%s17049_s3 + $0x1b8] sm:$0xff]  ;;  %v142_v21 = vld [vmem:[%s17049_s3 + $0x1e0] sm:$0xff]  ;;  %v136_v25 = vld [vmem:[%s17049_s3 + $0x1b0] sm:$0xff] }
  0x15   :  { %v7740_v23 = vpack.c.bf16 %v137_v17, %v133_v16  ;;  %v141_v26 = vld [vmem:[%s17049_s3 + $0x1d8] sm:$0xff]  ;;  %v7714_v28 = vpack.c.bf16 %v142_v21, %v138_v20  ;;  %v7742_v29 = vpack.c.bf16 %v136_v25, %v132_v24  ;;  %v140_v31 = vld [vmem:[%s17049_s3 + $0x1d0] sm:$0xff]  ;;  %v316_v34 = vld [vmem:[%s17050_s4] sm:$0xff] }
  0x16   :  { %7703 = vmatpush1.bf16.msra.mxu0 %v7702_v55  ;;  %v145_v27 = vld [vmem:[%s17049_s3 + $0x1f8] sm:$0xff]  ;;  %v144_v32 = vld [vmem:[%s17049_s3 + $0x1f0] sm:$0xff]  ;;  %v317_v35 = vld [vmem:[%s17050_s4 + $0x8] sm:$0xff] }
  0x17   :  { %7705 = vmatprep.subr.bf16.mxu0 %v7704_v58  ;;  %7735 = vmatpush1.bf16.msra.mxu1 %v7734_v11  ;;  %v7744_v30 = vpack.c.bf16 %v145_v27, %v141_v26  ;;  %v7746_v33 = vpack.c.bf16 %v144_v32, %v140_v31  ;;  %v7749_v36 = vpack.c.bf16 %v317_v35, %v316_v34  ;;  %v318_v38 = vld [vmem:[%s17050_s4 + $0x10] sm:$0xff]  ;;  %v319_v39 = vld [vmem:[%s17050_s4 + $0x18] sm:$0xff]  ;;  %v320_v41 = vld [vmem:[%s17050_s4 + $0x20] sm:$0xff] }
  0x18   :  { %7737 = vmatprep.subr.bf16.mxu1 %v7736_v13  ;;  %v7752_v40 = vpack.c.bf16 %v319_v39, %v318_v38  ;;  %v321_v42 = vld [vmem:[%s17050_s4 + $0x28] sm:$0xff]  ;;  %v322_v44 = vld [vmem:[%s17050_s4 + $0x30] sm:$0xff]  ;;  %v323_v45 = vld [vmem:[%s17050_s4 + $0x38] sm:$0xff] }
  0x19   :  { %v7755_v43 = vpack.c.bf16 %v321_v42, %v320_v41  ;;  %v7758_v46 = vpack.c.bf16 %v323_v45, %v322_v44  ;;  %v324_v47 = vld [vmem:[%s17050_s4 + $0x40] sm:$0xff]  ;;  %v325_v48 = vld [vmem:[%s17050_s4 + $0x48] sm:$0xff]  ;;  %v326_v50 = vld [vmem:[%s17050_s4 + $0x50] sm:$0xff] }
  0x1a   :  { %7707 = vmatpush1.bf16.msra.mxu0 %v7706_v6  ;;  %v7761_v49 = vpack.c.bf16 %v325_v48, %v324_v47  ;;  %v327_v51 = vld [vmem:[%s17050_s4 + $0x58] sm:$0xff]  ;;  %v328_v53 = vld [vmem:[%s17050_s4 + $0x60] sm:$0xff]  ;;  %v329_v54 = vld [vmem:[%s17050_s4 + $0x68] sm:$0xff] }
  0x1b   :  { %7709 = vmatprep.subr.bf16.mxu0 %v7708_v7  ;;  %7739 = vmatpush1.bf16.msra.mxu1 %v7738_v22  ;;  %v7764_v52 = vpack.c.bf16 %v327_v51, %v326_v50  ;;  %v7767_v55 = vpack.c.bf16 %v329_v54, %v328_v53  ;;  %v330_v56 = vld [vmem:[%s17050_s4 + $0x70] sm:$0xff]  ;;  %v331_v57 = vld [vmem:[%s17050_s4 + $0x78] sm:$0xff]  ;;  %v404_v59 = vld [vmem:[%s17051_s6 + $0x8] sm:$0xff] }
  0x1c   :  { %7741 = vmatprep.subr.bf16.mxu1 %v7740_v23  ;;  %v7770_v58 = vpack.c.bf16 %v331_v57, %v330_v56  ;;  %v406_v60 = vld [vmem:[%s17051_s6 + $0x18] sm:$0xff]  ;;  %v403_v61 = vld [vmem:[%s17051_s6] sm:$0xff]  ;;  %v405_v63 = vld [vmem:[%s17051_s6 + $0x10] sm:$0xff] }
  0x1d   :  { %v7772_v62 = vpack.c.bf16 %v406_v60, %v404_v59  ;;  %v408_v0 = vld [vmem:[%s17051_s6 + $0x28] sm:$0xff]  ;;  %v410_v1 = vld [vmem:[%s17051_s6 + $0x38] sm:$0xff]  ;;  %v7774_v2 = vpack.c.bf16 %v405_v63, %v403_v61  ;;  %v407_v5 = vld [vmem:[%s17051_s6 + $0x20] sm:$0xff] }
  0x1e   :  { %7711 = vmatpush1.bf16.msra.mxu0 %v7710_v18  ;;  %v7776_v4 = vpack.c.bf16 %v410_v1, %v408_v0  ;;  %v409_v6 = vld [vmem:[%s17051_s6 + $0x30] sm:$0xff]  ;;  %v412_v7 = vld [vmem:[%s17051_s6 + $0x48] sm:$0xff]  ;;  %v414_v8 = vld [vmem:[%s17051_s6 + $0x58] sm:$0xff] }
  0x1f   :  { %7713 = vmatprep.subr.bf16.mxu0 %v7712_v19  ;;  %7743 = vmatpush1.bf16.msra.mxu1 %v7742_v29  ;;  %v7778_v9 = vpack.c.bf16 %v409_v6, %v407_v5  ;;  %v7780_v10 = vpack.c.bf16 %v414_v8, %v412_v7  ;;  %v411_v11 = vld [vmem:[%s17051_s6 + $0x40] sm:$0xff]  ;;  %v413_v12 = vld [vmem:[%s17051_s6 + $0x50] sm:$0xff]  ;;  %v416_v13 = vld [vmem:[%s17051_s6 + $0x68] sm:$0xff] }
  0x20   :  { %7745 = vmatprep.subr.bf16.mxu1 %v7744_v30  ;;  %v418_v14 = vld [vmem:[%s17051_s6 + $0x78] sm:$0xff]  ;;  %v7782_v15 = vpack.c.bf16 %v413_v12, %v411_v11  ;;  %v415_v17 = vld [vmem:[%s17051_s6 + $0x60] sm:$0xff]  ;;  %v417_v18 = vld [vmem:[%s17051_s6 + $0x70] sm:$0xff] }
  0x21   :  { %v7784_v16 = vpack.c.bf16 %v418_v14, %v416_v13  ;;  %v420_v19 = vld [vmem:[%s17051_s6 + $0x88] sm:$0xff]  ;;  %v422_v20 = vld [vmem:[%s17051_s6 + $0x98] sm:$0xff]  ;;  %v7786_v21 = vpack.c.bf16 %v417_v18, %v415_v17  ;;  %v419_v23 = vld [vmem:[%s17051_s6 + $0x80] sm:$0xff] }
  0x22   :  { %7715 = vmatpush1.bf16.msra.mxu0 %v7714_v28  ;;  %v7788_v22 = vpack.c.bf16 %v422_v20, %v420_v19  ;;  %v421_v24 = vld [vmem:[%s17051_s6 + $0x90] sm:$0xff]  ;;  %v78_v26 = vld [vmem:[%s17052_s0] sm:$0xff]  ;;  %v79_v27 = vld [vmem:[%s17052_s0 + $0x8] sm:$0xff] }
  0x23   :  { %7747 = vmatpush1.bf16.msra.mxu1 %v7746_v33  ;;  %7748 = vmatprep.subr.bf16.mxu0 %v10182_v37  ;;  %v7790_v25 = vpack.c.bf16 %v421_v24, %v419_v23  ;;  %v81_v34 = vld [vmem:[%s17052_s0 + $0x18] sm:$0xff]  ;;  %v80_v39 = vld [vmem:[%s17052_s0 + $0x10] sm:$0xff]  ;;  %v424_v57 = vld [vmem:[%s17051_s6 + $0xa8] sm:$0xff] }
  0x24   :  { %7773 = vmatprep.subr.bf16.mxu1 %v7772_v62  ;;  %v423_v60 = vld [vmem:[%s17051_s6 + $0xa0] sm:$0xff]  ;;  %v425_v61 = vld [vmem:[%s17051_s6 + $0xb0] sm:$0xff]  ;;  %v428_v63 = vld [vmem:[%s17051_s6 + $0xc8] sm:$0xff] }
  0x25   :  { %211 = vmatmul.mubr.f32.vlgmr.msra.gmra.mrb[0].mxu0 %v10181_v3  ;;  %v7794_v62 = vpack.c.bf16 %v425_v61, %v423_v60  ;;  %v430_v0 = vld [vmem:[%s17051_s6 + $0xd8] sm:$0xff]  ;;  %v427_v1 = vld [vmem:[%s17051_s6 + $0xc0] sm:$0xff]  ;;  %v432_v5 = vld [vmem:[%s17051_s6 + $0xe8] sm:$0xff] }
  0x26   :  { %282 = vmatmul.mubr.f32.vlgmr.msra.gmra.mrb[0].mxu1 %v10181_v3  ;;  %7750 = vmatpush3.bf16.msra.mxu0 %v7749_v36  ;;  %v434_v6 = vld [vmem:[%s17051_s6 + $0xf8] sm:$0xff]  ;;  %v512_v12 = vld [vmem:[%s17054_s8] sm:$0xff]  ;;  %v513_v13 = vld [vmem:[%s17054_s8 + $0x8] sm:$0xff] }
  0x27   :  { %499 = vmatprep.mubr.f32.mxu1 %v10181_v3  ;;  %7751 = vmatprep.subr.bf16.mxu0 %v10182_v37  ;;  %v7800_v8 = vpack.c.bf16 %v434_v6, %v432_v5  ;;  %v514_v14 = vld [vmem:[%s17054_s8 + $0x10] sm:$0xff]  ;;  %v6725_v18 = vld [vmem:[%s17055_s5] ss:$0 sm:$0xff]  ;;  %v517_v24 = vld [vmem:[%s17054_s8 + $0x28] sm:$0xff] }
  0x28   :  { %7156 = vmatprep.mubr.msk.f32.mxu0 %vm10183_vm0, %v10181_v3  ;;  %7775 = vmatpush1.bf16.msra.mxu1 %v7774_v2  ;;  %v7796_v2 = vpack.c.bf16 %v430_v0, %v428_v63  ;;  %v516_v23 = vld [vmem:[%s17054_s8 + $0x20] sm:$0xff]  ;;  %v624_v60 = vld [vmem:[%s17056_s10 + $0xa8] sm:$0xff] }
  0x29   :  { %7777 = vmatprep.subr.bf16.mxu1 %v7776_v4  ;;  %v429_v4 = vld [vmem:[%s17051_s6 + $0xd0] sm:$0xff]  ;;  %v623_v63 = vld [vmem:[%s17056_s10 + $0xa0] sm:$0xff] }
  0x2a   :  { %7753 = vmatpush3.bf16.msra.mxu0 %v7752_v40  ;;  %v7798_v7 = vpack.c.bf16 %v429_v4, %v427_v1  ;;  %v628_v1 = vld [vmem:[%s17056_s10 + $0xc8] sm:$0xff]  ;;  %v627_v5 = vld [vmem:[%s17056_s10 + $0xc0] sm:$0xff] }
  0x2b   :  { %7754 = vmatprep.subr.bf16.mxu0 %v10182_v37  ;;  %v631_v6 = vld [vmem:[%s17056_s10 + $0xe0] sm:$0xff] }
  0x2c   :  { %7779 = vmatpush1.bf16.msra.mxu1 %v7778_v9  ;;  %v431_v9 = vld [vmem:[%s17051_s6 + $0xe0] sm:$0xff] }
  0x2d   :  { %7781 = vmatprep.subr.bf16.mxu1 %v7780_v10  ;;  %v433_v10 = vld [vmem:[%s17051_s6 + $0xf0] sm:$0xff] }
  0x2e   :  { %7756 = vmatpush3.bf16.msra.mxu0 %v7755_v43  ;;  %v7802_v11 = vpack.c.bf16 %v433_v10, %v431_v9  ;;  %v640_v9 = vld [vmem:[%s17056_s10 + $0x128] sm:$0xff] }
  0x2f   :  { %7757 = vmatprep.subr.bf16.mxu0 %v10182_v37 }
  0x30   :  { %7783 = vmatpush1.bf16.msra.mxu1 %v7782_v15  ;;  %v7805_v15 = vpack.c.bf16 %v513_v13, %v512_v12  ;;  %v639_v12 = vld [vmem:[%s17056_s10 + $0x120] sm:$0xff] }
  0x31   :  { %7785 = vmatprep.subr.bf16.mxu1 %v7784_v16  ;;  %v515_v16 = vld [vmem:[%s17054_s8 + $0x18] sm:$0xff] }
  0x32   :  { %7759 = vmatpush3.bf16.msra.mxu0 %v7758_v46  ;;  %v7808_v17 = vpack.c.bf16 %v515_v16, %v514_v14  ;;  %v644_v14 = vld [vmem:[%s17056_s10 + $0x148] sm:$0xff] }
  0x33   :  { %7760 = vmatprep.subr.bf16.mxu0 %v10182_v37 }
  0x34   :  { %7787 = vmatpush1.bf16.msra.mxu1 %v7786_v21 }
  0x35   :  { %7789 = vmatprep.subr.bf16.mxu1 %v7788_v22 }
  0x36   :  { %7762 = vmatpush3.bf16.msra.mxu0 %v7761_v49 }
  0x37   :  { %7763 = vmatprep.subr.bf16.mxu0 %v10182_v37 }
  0x38   :  { %7791 = vmatpush1.bf16.msra.mxu1 %v7790_v25  ;;  %v7811_v25 = vpack.c.bf16 %v517_v24, %v516_v23  ;;  %v651_v23 = vld [vmem:[%s17056_s10 + $0x180] sm:$0xff] }
  0x39   :  { %v655_v24 = vld [vmem:[%s17056_s10 + $0x1a0] sm:$0xff] }
  0x3a   :  { %7765 = vmatpush3.bf16.msra.mxu0 %v7764_v52 }
  0x3b   :  { %7766 = vmatprep.subr.bf16.mxu0 %v10182_v37 }
  0x3e   :  { %7768 = vmatpush3.bf16.msra.mxu0 %v7767_v55 }
  0x3f   :  { %7769 = vmatprep.subr.bf16.mxu0 %v10182_v37 }
  0x42   :  { %7771 = vmatpush3.bf16.msra.mxu0 %v7770_v58  ;;  %v426_v58 = vld [vmem:[%s17051_s6 + $0xb8] sm:$0xff] }
  0x43   :  { %7804 = vmatprep.subr.bf16.mxu0 %v10182_v37  ;;  %v7792_v59 = vpack.c.bf16 %v426_v58, %v424_v57  ;;  %v615_v57 = vld [vmem:[%s17056_s10 + $0x60] sm:$0xff] }
  0x45   :  { %7793 = vmatprep.subr.bf16.mxu1 %v7792_v59  ;;  %v620_v59 = vld [vmem:[%s17056_s10 + $0x88] sm:$0xff] }
  0x46   :  { %7795 = vmatpush1.bf16.msra.mxu1 %v7794_v62  ;;  %v7836_v61 = vpack.c.bf16 %v624_v60, %v620_v59  ;;  %v619_v62 = vld [vmem:[%s17056_s10 + $0x80] sm:$0xff]  ;;  %v700_v59 = vld [vmem:[%s17056_s10 + $0x308] sm:$0xff] }
  0x47   :  { %7797 = vmatprep.subr.bf16.mxu1 %v7796_v2  ;;  %v7838_v0 = vpack.c.bf16 %v623_v63, %v619_v62  ;;  %v632_v2 = vld [vmem:[%s17056_s10 + $0xe8] sm:$0xff]  ;;  %v699_v62 = vld [vmem:[%s17056_s10 + $0x300] sm:$0xff] }
  0x48   :  { %v7840_v4 = vpack.c.bf16 %v632_v2, %v628_v1  ;;  %v704_v60 = vld [vmem:[%s17056_s10 + $0x328] sm:$0xff]  ;;  %v703_v63 = vld [vmem:[%s17056_s10 + $0x320] sm:$0xff]  ;;  %v64_v1 = vlaneseq }
  0x4a   :  { %7799 = vmatpush1.bf16.msra.mxu1 %v7798_v7  ;;  %v7842_v7 = vpack.c.bf16 %v631_v6, %v627_v5  ;;  %v65_v2 = vshrl.u32 %v64_v1, 7  ;;  %v62_v5 = vld [vmem:[%s17057_s7] sm:$0x3]  ;;  %v665_v1 = vld [vmem:[%s17056_s10 + $0x1f0] sm:$0xff] }
  0x4b   :  { %7801 = vmatprep.subr.bf16.mxu1 %v7800_v8  ;;  %v636_v8 = vld [vmem:[%s17056_s10 + $0x108] sm:$0xff] }
  0x4c   :  { %v7844_v10 = vpack.c.bf16 %v640_v9, %v636_v8 }
  0x4e   :  { %7803 = vmatpush1.bf16.msra.mxu1 %v7802_v11  ;;  %v635_v11 = vld [vmem:[%s17056_s10 + $0x100] sm:$0xff] }
  0x4f   :  { %v7846_v13 = vpack.c.bf16 %v639_v12, %v635_v11  ;;  %v66_v12 = vsub.s32 0, %v65_v2 }
  0xf8   :  { %v212_v28 = vpop.f32.mrb[0].mxu0 }
  0xf9   :  { %v288_v29 = vadd.f32 %v212_v28, %v78_v26  ;;  %v214_v30 = vpop.f32.mrb[1].mxu0  ;;  %v283_v35 = vpop.f32.mrb[0].mxu1  ;;  %v518_v26 = vld [vmem:[%s17054_s8 + $0x30] sm:$0xff] }
  0xfa   :  { %v289_v31 = vadd.f32 %v214_v30, %v79_v27  ;;  %v285_v36 = vpop.f32.mrb[1].mxu1  ;;  %v290_v41 = vadd.f32 %v283_v35, %v80_v39  ;;  %v519_v27 = vld [vmem:[%s17054_s8 + $0x38] sm:$0xff]  ;;  %v521_v30 = vld [vmem:[%s17054_s8 + $0x48] sm:$0xff]  ;;  %v524_v35 = vld [vmem:[%s17054_s8 + $0x60] sm:$0xff] }
  0xfb   :  { %v6727_v32 = vmul.f32 -1.442695, %v288_v29  ;;  %v291_v38 = vadd.f32 %v285_v36, %v81_v34  ;;  %v7814_v28 = vpack.c.bf16 %v519_v27, %v518_v26  ;;  %v520_v29 = vld [vmem:[%s17054_s8 + $0x40] sm:$0xff]  ;;  %v525_v36 = vld [vmem:[%s17054_s8 + $0x68] sm:$0xff]  ;;  %v526_v39 = vld [vmem:[%s17054_s8 + $0x70] sm:$0xff] }
  0xfc   :  { %v6728_v33 = vmul.f32 -1.442695, %v289_v31  ;;  %v7817_v31 = vpack.c.bf16 %v521_v30, %v520_v29  ;;  %v660_v26 = vld [vmem:[%s17056_s10 + $0x1c8] sm:$0xff]  ;;  %v659_v29 = vld [vmem:[%s17056_s10 + $0x1c0] sm:$0xff] }
  0xfd   :  { %9863 = vpow2.f32 %v6727_v32  ;;  %v6729_v40 = vmul.f32 -1.442695, %v291_v38  ;;  %v522_v32 = vld [vmem:[%s17054_s8 + $0x50] sm:$0xff]  ;;  %v7823_v38 = vpack.c.bf16 %v525_v36, %v524_v35  ;;  %v664_v27 = vld [vmem:[%s17056_s10 + $0x1e8] sm:$0xff]  ;;  %v663_v30 = vld [vmem:[%s17056_s10 + $0x1e0] sm:$0xff] }
  0xfe   :  { %9865 = vpow2.f32 %v6728_v33  ;;  %v523_v33 = vld [vmem:[%s17054_s8 + $0x58] sm:$0xff]  ;;  %v667_v35 = vld [vmem:[%s17056_s10 + $0x200] sm:$0xff] }
  0xff   :  { %9867 = vpow2.f32 %v6729_v40  ;;  %v7820_v34 = vpack.c.bf16 %v523_v33, %v522_v32  ;;  %v527_v40 = vld [vmem:[%s17054_s8 + $0x78] sm:$0xff]  ;;  %v668_v32 = vld [vmem:[%s17056_s10 + $0x208] sm:$0xff]  ;;  %v671_v36 = vld [vmem:[%s17056_s10 + $0x220] sm:$0xff] }
 0x100   :  { %9869 = vtanh.f32 %v290_v41  ;;  %v7826_v41 = vpack.c.bf16 %v527_v40, %v526_v39  ;;  %v672_v33 = vld [vmem:[%s17056_s10 + $0x228] sm:$0xff] }
 0x101   :  { %v676_v39 = vld [vmem:[%s17056_s10 + $0x248] sm:$0xff] }
 0x102   :  { %v680_v40 = vld [vmem:[%s17056_s10 + $0x268] sm:$0xff] }
 0x107   :  { %v9864_v42 = vpop.eup %9863 }
 0x108   :  { %v9866_v43 = vpop.eup %9865  ;;  %v295_v44 = vadd.f32 1.0, %v9864_v42  ;;  %v604_v42 = vld [vmem:[%s17056_s10 + $0x8] sm:$0xff] }
 0x109   :  { %v301_v45 = vadd.f32 1.0, %v9866_v43  ;;  %v9868_v46 = vpop.eup %9867  ;;  %v608_v43 = vld [vmem:[%s17056_s10 + $0x28] sm:$0xff] }
 0x10a   :  { %9871 = vrcp.f32 %v295_v44  ;;  %v9870_v47 = vpop.eup %9869  ;;  %v308_v49 = vadd.f32 1.0, %v9868_v46  ;;  %v606_v44 = vld [vmem:[%s17056_s10 + $0x18] sm:$0xff] }
 0x10b   :  { %9873 = vrcp.f32 %v301_v45  ;;  %v7828_v45 = vpack.c.bf16 %v608_v43, %v604_v42  ;;  %v610_v46 = vld [vmem:[%s17056_s10 + $0x38] sm:$0xff]  ;;  %v675_v42 = vld [vmem:[%s17056_s10 + $0x240] sm:$0xff] }
 0x10c   :  { %9875 = vrcp.f32 %v308_v49  ;;  %v7892_v49 = vpack.c.bf16 %v610_v46, %v606_v44  ;;  %v679_v43 = vld [vmem:[%s17056_s10 + $0x260] sm:$0xff]  ;;  %v688_v46 = vld [vmem:[%s17056_s10 + $0x2a8] sm:$0xff] }
 0x10d   :  { %7829 = vmatprep.subr.bf16.mxu1 %v7828_v45  ;;  %v7866_v44 = vpack.c.bf16 %v679_v43, %v675_v42  ;;  %v684_v45 = vld [vmem:[%s17056_s10 + $0x288] sm:$0xff] }
 0x114   :  { %v9872_v48 = vpop.eup %9871 }
 0x115   :  { %v9874_v50 = vpop.eup %9873  ;;  %v312_v51 = vmul.f32 %v9872_v48, %v9870_v47  ;;  %v603_v47 = vld [vmem:[%s17056_s10] sm:$0xff] }
 0x116   :  { %v311_v52 = vmul.f32 0.0, %v9874_v50  ;;  %v9876_v54 = vpop.eup %9875  ;;  %v607_v48 = vld [vmem:[%s17056_s10 + $0x20] sm:$0xff] }
 0x117   :  { %v7830_v50 = vpack.c.bf16 %v607_v48, %v603_v47  ;;  %v7868_v47 = vpack.c.bf16 %v688_v46, %v684_v45  ;;  %v683_v48 = vld [vmem:[%s17056_s10 + $0x280] sm:$0xff]  ;;  %v641_v45 = vld [vmem:[%s17056_s10 + $0x130] sm:$0xff]  ;;  %v646_v46 = vld [vmem:[%s17056_s10 + $0x158] sm:$0xff] }
 0x118   :  { %v10577_v53 = vadd.f32 %v312_v51, %v311_v52  ;;  %v612_v51 = vld [vmem:[%s17056_s10 + $0x48] sm:$0xff] }
 0x119   :  { %v616_v52 = vld [vmem:[%s17056_s10 + $0x68] sm:$0xff] }
 0x11a   :  { %9877 = vtanh.f32 %v10577_v53 }
 0x124   :  { %v9878_v55 = vpop.eup %9877 }
 0x125   :  { %v10580_v56 = vmul.f32 %v9878_v55, %v9876_v54  ;;  %v7832_v54 = vpack.c.bf16 %v616_v52, %v612_v51  ;;  %v611_v55 = vld [vmem:[%s17056_s10 + $0x40] sm:$0xff]  ;;  %v692_v51 = vld [vmem:[%s17056_s10 + $0x2c8] sm:$0xff] }
 0x126   :  { %v7834_v58 = vpack.c.bf16 %v615_v57, %v611_v55  ;;  %v696_v52 = vld [vmem:[%s17056_s10 + $0x2e8] sm:$0xff]  ;;  %v691_v55 = vld [vmem:[%s17056_s10 + $0x2c0] sm:$0xff] }
 0x127   :  { %7157 = vmatmul.mubr.f32.vlgmr.msra.gmra.mrb[2].mxu0 %v10580_v56  ;;  %901 = vst [vmem:[%s17053_s11] sm:$0xff] %v10580_v56  ;;  %v695_v57 = vld [vmem:[%s17056_s10 + $0x2e0] sm:$0xff] }
 0x128   :  { %7191 = vmatprep.mubr.msk.f32.mxu0 %vm10183_vm0, %v10181_v3  ;;  %7806 = vmatpush3.bf16.msra.mxu0 %v7805_v15  ;;  %v648_v15 = vld [vmem:[%s17056_s10 + $0x168] sm:$0xff] }
 0x129   :  { %7807 = vmatprep.subr.bf16.mxu0 %v10182_v37  ;;  %v7848_v16 = vpack.c.bf16 %v648_v15, %v644_v14  ;;  %v506_v14 = vld [vmem:[%s17058_s2] sm:$0xff]  ;;  %v605_v15 = vld [vmem:[%s17056_s10 + $0x10] sm:$0xff] }
 0x12c   :  { %7809 = vmatpush3.bf16.msra.mxu0 %v7808_v17  ;;  %v643_v17 = vld [vmem:[%s17056_s10 + $0x140] sm:$0xff] }
 0x12d   :  { %7810 = vmatprep.subr.bf16.mxu0 %v10182_v37 }
 0x130   :  { %7812 = vmatpush3.bf16.msra.mxu0 %v7811_v25  ;;  %v7854_v25 = vpack.c.bf16 %v655_v24, %v651_v23 }
 0x131   :  { %7813 = vmatprep.subr.bf16.mxu0 %v10182_v37 }
 0x134   :  { %7815 = vmatpush3.bf16.msra.mxu0 %v7814_v28  ;;  %v7856_v28 = vpack.c.bf16 %v664_v27, %v660_v26  ;;  %v617_v26 = vld [vmem:[%s17056_s10 + $0x70] sm:$0xff]  ;;  %v622_v27 = vld [vmem:[%s17056_s10 + $0x98] sm:$0xff] }
 0x135   :  { %7816 = vmatprep.subr.bf16.mxu0 %v10182_v37 }
 0x138   :  { %7818 = vmatpush3.bf16.msra.mxu0 %v7817_v31  ;;  %v7858_v31 = vpack.c.bf16 %v663_v30, %v659_v29 }
 0x139   :  { %7819 = vmatprep.subr.bf16.mxu0 %v10182_v37 }
 0x13c   :  { %7821 = vmatpush3.bf16.msra.mxu0 %v7820_v34  ;;  %v7860_v34 = vpack.c.bf16 %v672_v33, %v668_v32  ;;  %v625_v32 = vld [vmem:[%s17056_s10 + $0xb0] sm:$0xff]  ;;  %v630_v33 = vld [vmem:[%s17056_s10 + $0xd8] sm:$0xff] }
 0x13d   :  { %7822 = vmatprep.subr.bf16.mxu0 %v10182_v37 }
 0x140   :  { %7824 = vmatpush3.bf16.msra.mxu0 %v7823_v38  ;;  %v7862_v38 = vpack.c.bf16 %v671_v36, %v667_v35 }
 0x141   :  { %7825 = vmatprep.subr.bf16.mxu0 %v10182_v37 }
 0x144   :  { %7827 = vmatpush3.bf16.msra.mxu0 %v7826_v41  ;;  %v7864_v41 = vpack.c.bf16 %v680_v40, %v676_v39  ;;  %v633_v39 = vld [vmem:[%s17056_s10 + $0xf0] sm:$0xff]  ;;  %v638_v40 = vld [vmem:[%s17056_s10 + $0x118] sm:$0xff] }
 0x145   :  { %7893 = vmatprep.subr.bf16.mxu0 %v7892_v49  ;;  %v687_v49 = vld [vmem:[%s17056_s10 + $0x2a0] sm:$0xff] }
 0x1fa   :  { %v398_v19 = vpop.f32.mrb[2].mxu0 }
 0x1fb   :  { %v399_v20 = vadd.f32 %v6725_v18, %v398_v19  ;;  %v7158_v21 = vpop.f32.mrb[3].mxu0  ;;  %v647_v18 = vld [vmem:[%s17056_s10 + $0x160] sm:$0xff] }
 0x1fc   :  { %v7850_v19 = vpack.c.bf16 %v647_v18, %v643_v17  ;;  %v656_v21 = vld [vmem:[%s17056_s10 + $0x1a8] sm:$0xff]  ;;  %v614_v18 = vld [vmem:[%s17056_s10 + $0x58] sm:$0xff] }
 0x1fd   :  { %9879 = vtanh.f32 %v399_v20  ;;  %v652_v20 = vld [vmem:[%s17056_s10 + $0x188] sm:$0xff] }
 0x207   :  { %v9880_v22 = vpop.eup %9879 }
 0x208   :  { %500 = vmatmul.mubr.f32.vlgmr.msra.gmra.mrb[2].mxu1 %v9880_v22  ;;  %v7852_v22 = vpack.c.bf16 %v656_v21, %v652_v20 }
 0x209   :  { %795 = vmatprep.mubr.f32.mxu1 %v10181_v3  ;;  %7831 = vmatpush1.bf16.msra.mxu1 %v7830_v50  ;;  %v7870_v50 = vpack.c.bf16 %v687_v49, %v683_v48 }
 0x20a   :  { %7833 = vmatprep.subr.bf16.mxu1 %v7832_v54  ;;  %v7872_v54 = vpack.c.bf16 %v696_v52, %v692_v51  ;;  %v649_v51 = vld [vmem:[%s17056_s10 + $0x170] sm:$0xff]  ;;  %v654_v52 = vld [vmem:[%s17056_s10 + $0x198] sm:$0xff] }
 0x20d   :  { %7835 = vmatpush1.bf16.msra.mxu1 %v7834_v58  ;;  %v7874_v58 = vpack.c.bf16 %v695_v57, %v691_v55 }
 0x20e   :  { %7837 = vmatprep.subr.bf16.mxu1 %v7836_v61  ;;  %v7876_v61 = vpack.c.bf16 %v704_v60, %v700_v59  ;;  %v657_v59 = vld [vmem:[%s17056_s10 + $0x1b0] sm:$0xff]  ;;  %v662_v60 = vld [vmem:[%s17056_s10 + $0x1d8] sm:$0xff] }
 0x211   :  { %7839 = vmatpush1.bf16.msra.mxu1 %v7838_v0  ;;  %v7878_v0 = vpack.c.bf16 %v703_v63, %v699_v62 }
 0x212   :  { %7841 = vmatprep.subr.bf16.mxu1 %v7840_v4  ;;  %v70_v4 = vsub.s32 1, %v65_v2  ;;  %v670_v2 = vld [vmem:[%s17056_s10 + $0x218] sm:$0xff] }
 0x214   :  { %v10849_v6 = vrot.slane %v62_v5, %v70_v4  ;;  %v674_v4 = vld [vmem:[%s17056_s10 + $0x238] sm:$0xff] }
 0x215   :  { %7843 = vmatpush1.bf16.msra.mxu1 %v7842_v7 }
 0x216   :  { %7845 = vmatprep.subr.bf16.mxu1 %v7844_v10 }
 0x219   :  { %7847 = vmatpush1.bf16.msra.mxu1 %v7846_v13  ;;  %v10852_v13 = vrot.slane %v62_v5, %v66_v12 }
 0x21a   :  { %7849 = vmatprep.subr.bf16.mxu1 %v7848_v16  ;;  %v609_v16 = vld [vmem:[%s17056_s10 + $0x30] sm:$0xff] }
 0x21d   :  { %7851 = vmatpush1.bf16.msra.mxu1 %v7850_v19  ;;  %v618_v19 = vld [vmem:[%s17056_s10 + $0x78] sm:$0xff] }
 0x21e   :  { %7853 = vmatprep.subr.bf16.mxu1 %v7852_v22  ;;  %v7894_v22 = vpack.c.bf16 %v609_v16, %v605_v15  ;;  %v7896_v24 = vpack.c.bf16 %v618_v19, %v614_v18  ;;  %v677_v15 = vld [vmem:[%s17056_s10 + $0x250] sm:$0xff]  ;;  %v690_v18 = vld [vmem:[%s17056_s10 + $0x2b8] sm:$0xff] }
 0x21f   :  { %v681_v16 = vld [vmem:[%s17056_s10 + $0x270] sm:$0xff] }
 0x220   :  { %v7930_v19 = vpack.c.bf16 %v681_v16, %v677_v15 }
 0x221   :  { %7855 = vmatpush1.bf16.msra.mxu1 %v7854_v25  ;;  %v613_v25 = vld [vmem:[%s17056_s10 + $0x50] sm:$0xff] }
 0x222   :  { %7857 = vmatprep.subr.bf16.mxu1 %v7856_v28  ;;  %v626_v28 = vld [vmem:[%s17056_s10 + $0xb8] sm:$0xff]  ;;  %v7898_v29 = vpack.c.bf16 %v617_v26, %v613_v25 }
 0x223   :  { %v7900_v30 = vpack.c.bf16 %v626_v28, %v622_v27  ;;  %v693_v27 = vld [vmem:[%s17056_s10 + $0x2d0] sm:$0xff] }
 0x224   :  { %v697_v28 = vld [vmem:[%s17056_s10 + $0x2f0] sm:$0xff] }
 0x225   :  { %7859 = vmatpush1.bf16.msra.mxu1 %v7858_v31  ;;  %v621_v31 = vld [vmem:[%s17056_s10 + $0x90] sm:$0xff] }
 0x226   :  { %7861 = vmatprep.subr.bf16.mxu1 %v7860_v34  ;;  %v634_v34 = vld [vmem:[%s17056_s10 + $0xf8] sm:$0xff]  ;;  %v7902_v35 = vpack.c.bf16 %v625_v32, %v621_v31  ;;  %v7938_v31 = vpack.c.bf16 %v697_v28, %v693_v27  ;;  %v914_v27 = vld [vmem:[%s17049_s3 + $0x30] sm:$0xff]  ;;  %v917_v28 = vld [vmem:[%s17049_s3 + $0x48] sm:$0xff] }
 0x227   :  { %v7904_v36 = vpack.c.bf16 %v634_v34, %v630_v33  ;;  %v701_v33 = vld [vmem:[%s17056_s10 + $0x310] sm:$0xff] }
 0x228   :  { %v705_v34 = vld [vmem:[%s17056_s10 + $0x330] sm:$0xff] }
 0x229   :  { %7863 = vmatpush1.bf16.msra.mxu1 %v7862_v38  ;;  %v629_v38 = vld [vmem:[%s17056_s10 + $0xd0] sm:$0xff] }
 0x22a   :  { %7865 = vmatprep.subr.bf16.mxu1 %v7864_v41  ;;  %v642_v41 = vld [vmem:[%s17056_s10 + $0x138] sm:$0xff]  ;;  %v7906_v42 = vpack.c.bf16 %v633_v39, %v629_v38  ;;  %v712_v38 = vld [vmem:[%s17056_s10 + $0x368] sm:$0xff] }
 0x22b   :  { %v7908_v43 = vpack.c.bf16 %v642_v41, %v638_v40  ;;  %v710_v39 = vld [vmem:[%s17056_s10 + $0x358] sm:$0xff] }
 0x22c   :  { %v714_v41 = vld [vmem:[%s17056_s10 + $0x378] sm:$0xff] }
 0x22d   :  { %7867 = vmatpush1.bf16.msra.mxu1 %v7866_v44  ;;  %v637_v44 = vld [vmem:[%s17056_s10 + $0x110] sm:$0xff] }
 0x22e   :  { %7869 = vmatprep.subr.bf16.mxu1 %v7868_v47  ;;  %v650_v47 = vld [vmem:[%s17056_s10 + $0x178] sm:$0xff]  ;;  %v7910_v48 = vpack.c.bf16 %v641_v45, %v637_v44  ;;  %v7944_v44 = vpack.c.bf16 %v714_v41, %v710_v39  ;;  %v918_v39 = vld [vmem:[%s17049_s3 + $0x50] sm:$0xff]  ;;  %v925_v41 = vld [vmem:[%s17049_s3 + $0x88] sm:$0xff] }
 0x22f   :  { %v7912_v49 = vpack.c.bf16 %v650_v47, %v646_v46  ;;  %v709_v46 = vld [vmem:[%s17056_s10 + $0x350] sm:$0xff] }
 0x230   :  { %v713_v47 = vld [vmem:[%s17056_s10 + $0x370] sm:$0xff] }
 0x231   :  { %7871 = vmatpush1.bf16.msra.mxu1 %v7870_v50  ;;  %v645_v50 = vld [vmem:[%s17056_s10 + $0x150] sm:$0xff] }
 0x232   :  { %7873 = vmatprep.subr.bf16.mxu1 %v7872_v54  ;;  %v658_v54 = vld [vmem:[%s17056_s10 + $0x1b8] sm:$0xff]  ;;  %v7914_v55 = vpack.c.bf16 %v649_v51, %v645_v50  ;;  %v720_v50 = vld [vmem:[%s17056_s10 + $0x3a8] sm:$0xff] }
 0x233   :  { %v7916_v57 = vpack.c.bf16 %v658_v54, %v654_v52  ;;  %v718_v51 = vld [vmem:[%s17056_s10 + $0x398] sm:$0xff] }
 0x234   :  { %v722_v54 = vld [vmem:[%s17056_s10 + $0x3b8] sm:$0xff] }
 0x235   :  { %7875 = vmatpush1.bf16.msra.mxu1 %v7874_v58  ;;  %v653_v58 = vld [vmem:[%s17056_s10 + $0x190] sm:$0xff] }
 0x236   :  { %7877 = vmatprep.subr.bf16.mxu1 %v7876_v61  ;;  %v666_v61 = vld [vmem:[%s17056_s10 + $0x1f8] sm:$0xff]  ;;  %v7918_v62 = vpack.c.bf16 %v657_v59, %v653_v58  ;;  %v7948_v58 = vpack.c.bf16 %v722_v54, %v718_v51  ;;  %v930_v54 = vld [vmem:[%s17049_s3 + $0xb0] sm:$0xff] }
 0x237   :  { %v7920_v63 = vpack.c.bf16 %v666_v61, %v662_v60  ;;  %v717_v60 = vld [vmem:[%s17056_s10 + $0x390] sm:$0xff] }
 0x238   :  { %v721_v61 = vld [vmem:[%s17056_s10 + $0x3b0] sm:$0xff] }
 0x239   :  { %7879 = vmatpush1.bf16.msra.mxu1 %v7878_v0  ;;  %v661_v0 = vld [vmem:[%s17056_s10 + $0x1d0] sm:$0xff] }
 0x23a   :  { %v7922_v5 = vpack.c.bf16 %v665_v1, %v661_v0  ;;  %v728_v0 = vld [vmem:[%s17056_s10 + $0x3e8] sm:$0xff]  ;;  %v726_v1 = vld [vmem:[%s17056_s10 + $0x3d8] sm:$0xff] }
 0x2db   :  { %v501_v7 = vpop.f32.mrb[2].mxu1 }
 0x2dc   :  { %v503_v8 = vpop.f32.mrb[3].mxu1  ;;  %v502_v20 = vadd.f32 %v501_v7, %v10852_v13  ;;  %v7924_v7 = vpack.c.bf16 %v674_v4, %v670_v2  ;;  %v730_v2 = vld [vmem:[%s17056_s10 + $0x3f8] sm:$0xff] }
 0x2dd   :  { %v504_v9 = vadd.f32 %v503_v8, %v10849_v6  ;;  %v669_v8 = vld [vmem:[%s17056_s10 + $0x210] sm:$0xff] }
 0x2df   :  { %v507_v10 = vmul.f32 0.5, %v504_v9  ;;  %v673_v9 = vld [vmem:[%s17056_s10 + $0x230] sm:$0xff] }
 0x2e0   :  { %v7926_v12 = vpack.c.bf16 %v673_v9, %v669_v8  ;;  %v727_v8 = vld [vmem:[%s17056_s10 + $0x3e0] sm:$0xff]  ;;  %v725_v9 = vld [vmem:[%s17056_s10 + $0x3d0] sm:$0xff] }
 0x2e1   :  { %v508_v11 = vmul.f32 1.442695, %v507_v10  ;;  %v678_v10 = vld [vmem:[%s17056_s10 + $0x258] sm:$0xff] }
 0x2e3   :  { %9881 = vpow2.f32 %v508_v11  ;;  %v682_v11 = vld [vmem:[%s17056_s10 + $0x278] sm:$0xff] }
 0x2ed   :  { %v9882_v17 = vpop.eup %9881 }
 0x2ee   :  { %v510_v21 = vmul.f32 %v9882_v17, %v506_v14  ;;  %v7928_v14 = vpack.c.bf16 %v682_v11, %v678_v10  ;;  %v686_v17 = vld [vmem:[%s17056_s10 + $0x298] sm:$0xff]  ;;  %v729_v11 = vld [vmem:[%s17056_s10 + $0x3f0] sm:$0xff] }
 0x2ef   :  { %v7954_v15 = vpack.c.bf16 %v729_v11, %v725_v9  ;;  %v947_v9 = vld [vmem:[%s17049_s3 + $0x138] sm:$0xff] }
 0x2f0   :  { %v511_v23 = vadd.f32 %v510_v21, %v502_v20  ;;  %v7932_v20 = vpack.c.bf16 %v690_v18, %v686_v17  ;;  %v685_v21 = vld [vmem:[%s17056_s10 + $0x290] sm:$0xff]  ;;  %v911_v17 = vld [vmem:[%s17049_s3 + $0x18] sm:$0xff] }
 0x2f1   :  { %v915_v18 = vld [vmem:[%s17049_s3 + $0x38] sm:$0xff] }
 0x2f2   :  { %7192 = vmatmul.mubr.f32.vlgmr.msra.gmra.mrb[4].mxu0 %v511_v23  ;;  %v694_v23 = vld [vmem:[%s17056_s10 + $0x2d8] sm:$0xff] }
 0x2f3   :  { %7895 = vmatpush1.bf16.msra.mxu0 %v7894_v22  ;;  %866 = vmatprep.mubr.f32.mxu0 %v10181_v3  ;;  %v689_v22 = vld [vmem:[%s17056_s10 + $0x2b0] sm:$0xff] }
 0x2f4   :  { %7897 = vmatprep.subr.bf16.mxu0 %v7896_v24  ;;  %v698_v24 = vld [vmem:[%s17056_s10 + $0x2f8] sm:$0xff]  ;;  %v7934_v25 = vpack.c.bf16 %v689_v22, %v685_v21 }
 0x2f5   :  { %v7936_v26 = vpack.c.bf16 %v698_v24, %v694_v23  ;;  %v908_v24 = vld [vmem:[%s17049_s3] sm:$0xff] }
 0x2f7   :  { %7899 = vmatpush1.bf16.msra.mxu0 %v7898_v29  ;;  %v702_v29 = vld [vmem:[%s17056_s10 + $0x318] sm:$0xff] }
 0x2f8   :  { %7901 = vmatprep.subr.bf16.mxu0 %v7900_v30  ;;  %v706_v30 = vld [vmem:[%s17056_s10 + $0x338] sm:$0xff] }
 0x2f9   :  { %v7940_v32 = vpack.c.bf16 %v706_v30, %v702_v29  ;;  %v921_v29 = vld [vmem:[%s17049_s3 + $0x68] sm:$0xff]  ;;  %v919_v30 = vld [vmem:[%s17049_s3 + $0x58] sm:$0xff] }
 0x2fb   :  { %7903 = vmatpush1.bf16.msra.mxu0 %v7902_v35  ;;  %v7942_v35 = vpack.c.bf16 %v705_v34, %v701_v33  ;;  %v916_v34 = vld [vmem:[%s17049_s3 + $0x40] sm:$0xff] }
 0x2fc   :  { %7905 = vmatprep.subr.bf16.mxu0 %v7904_v36  ;;  %v708_v36 = vld [vmem:[%s17056_s10 + $0x348] sm:$0xff] }
 0x2fd   :  { %v7880_v40 = vpack.c.bf16 %v712_v38, %v708_v36  ;;  %v7960_v36 = vpack.c.bf16 %v921_v29, %v917_v28  ;;  %v950_v29 = vld [vmem:[%s17049_s3 + $0x150] sm:$0xff] }
 0x2ff   :  { %7907 = vmatpush1.bf16.msra.mxu0 %v7906_v42  ;;  %v707_v42 = vld [vmem:[%s17056_s10 + $0x340] sm:$0xff]  ;;  %7881 = vmatprep.subr.bf16.mxu1 %v7880_v40  ;;  %v922_v40 = vld [vmem:[%s17049_s3 + $0x70] sm:$0xff] }
 0x300   :  { %7909 = vmatprep.subr.bf16.mxu0 %v7908_v43  ;;  %v711_v43 = vld [vmem:[%s17056_s10 + $0x360] sm:$0xff] }
 0x301   :  { %v7882_v45 = vpack.c.bf16 %v711_v43, %v707_v42  ;;  %v929_v43 = vld [vmem:[%s17049_s3 + $0xa8] sm:$0xff] }
 0x303   :  { %7911 = vmatpush1.bf16.msra.mxu0 %v7910_v48  ;;  %v7946_v48 = vpack.c.bf16 %v713_v47, %v709_v46  ;;  %7883 = vmatpush1.bf16.msra.mxu1 %v7882_v45  ;;  %v931_v45 = vld [vmem:[%s17049_s3 + $0xb8] sm:$0xff]  ;;  %v7994_v47 = vpack.c.bf16 %v922_v40, %v918_v39  ;;  %v960_v39 = vld [vmem:[%s17049_s3 + $0x1a0] sm:$0xff] }
 0x304   :  { %7913 = vmatprep.subr.bf16.mxu0 %v7912_v49  ;;  %v716_v49 = vld [vmem:[%s17056_s10 + $0x388] sm:$0xff] }
 0x305   :  { %v7884_v52 = vpack.c.bf16 %v720_v50, %v716_v49  ;;  %v928_v49 = vld [vmem:[%s17049_s3 + $0xa0] sm:$0xff]  ;;  %v7964_v50 = vpack.c.bf16 %v929_v43, %v925_v41  ;;  %v962_v43 = vld [vmem:[%s17049_s3 + $0x1b0] sm:$0xff] }
 0x307   :  { %7915 = vmatpush1.bf16.msra.mxu0 %v7914_v55  ;;  %v715_v55 = vld [vmem:[%s17056_s10 + $0x380] sm:$0xff]  ;;  %7885 = vmatprep.subr.bf16.mxu1 %v7884_v52  ;;  %v926_v52 = vld [vmem:[%s17049_s3 + $0x90] sm:$0xff] }
 0x308   :  { %7917 = vmatprep.subr.bf16.mxu0 %v7916_v57  ;;  %v719_v57 = vld [vmem:[%s17056_s10 + $0x3a0] sm:$0xff] }
 0x309   :  { %v7886_v59 = vpack.c.bf16 %v719_v57, %v715_v55  ;;  %v933_v55 = vld [vmem:[%s17049_s3 + $0xc8] sm:$0xff] }
 0x30a   :  { %v937_v57 = vld [vmem:[%s17049_s3 + $0xe8] sm:$0xff] }
 0x30b   :  { %7919 = vmatpush1.bf16.msra.mxu0 %v7918_v62  ;;  %v724_v62 = vld [vmem:[%s17056_s10 + $0x3c8] sm:$0xff]  ;;  %7887 = vmatpush1.bf16.msra.mxu1 %v7886_v59  ;;  %v939_v59 = vld [vmem:[%s17049_s3 + $0xf8] sm:$0xff] }
 0x30c   :  { %7921 = vmatprep.subr.bf16.mxu0 %v7920_v63  ;;  %v7950_v63 = vpack.c.bf16 %v721_v61, %v717_v60  ;;  %v7888_v4 = vpack.c.bf16 %v728_v0, %v724_v62  ;;  %v7998_v61 = vpack.c.bf16 %v930_v54, %v926_v52  ;;  %v932_v62 = vld [vmem:[%s17049_s3 + $0xc0] sm:$0xff]  ;;  %v7968_v0 = vpack.c.bf16 %v937_v57, %v933_v55  ;;  %v966_v55 = vld [vmem:[%s17049_s3 + $0x1d0] sm:$0xff] }
 0x30d   :  { %v968_v54 = vld [vmem:[%s17049_s3 + $0x1e0] sm:$0xff]  ;;  %v970_v57 = vld [vmem:[%s17049_s3 + $0x1f0] sm:$0xff] }
 0x30e   :  { %7889 = vmatprep.subr.bf16.mxu1 %v7888_v4  ;;  %v938_v4 = vld [vmem:[%s17049_s3 + $0xf0] sm:$0xff] }
 0x30f   :  { %7923 = vmatpush1.bf16.msra.mxu0 %v7922_v5  ;;  %v7952_v5 = vpack.c.bf16 %v730_v2, %v726_v1  ;;  %v934_v2 = vld [vmem:[%s17049_s3 + $0xd0] sm:$0xff] }
 0x310   :  { %7925 = vmatprep.subr.bf16.mxu0 %v7924_v7  ;;  %v723_v7 = vld [vmem:[%s17056_s10 + $0x3c0] sm:$0xff]  ;;  %v8002_v11 = vpack.c.bf16 %v938_v4, %v934_v2  ;;  %v1147_v2 = vld [vmem:[%s17050_s4 + $0x28] sm:$0xff] }
 0x311   :  { %v7890_v10 = vpack.c.bf16 %v727_v8, %v723_v7  ;;  %v945_v7 = vld [vmem:[%s17049_s3 + $0x128] sm:$0xff]  ;;  %v943_v8 = vld [vmem:[%s17049_s3 + $0x118] sm:$0xff] }
 0x313   :  { %7927 = vmatpush1.bf16.msra.mxu0 %v7926_v12  ;;  %v909_v12 = vld [vmem:[%s17049_s3 + $0x8] sm:$0xff]  ;;  %7891 = vmatpush1.bf16.msra.mxu1 %v7890_v10 }
 0x314   :  { %7929 = vmatprep.subr.bf16.mxu0 %v7928_v14  ;;  %v913_v14 = vld [vmem:[%s17049_s3 + $0x28] sm:$0xff] }
 0x315   :  { %v7956_v16 = vpack.c.bf16 %v913_v14, %v909_v12  ;;  %v940_v12 = vld [vmem:[%s17049_s3 + $0x100] sm:$0xff] }
 0x316   :  { %v944_v14 = vld [vmem:[%s17049_s3 + $0x120] sm:$0xff] }
 0x317   :  { %7931 = vmatpush1.bf16.msra.mxu0 %v7930_v19  ;;  %v7988_v19 = vpack.c.bf16 %v915_v18, %v911_v17  ;;  %7957 = vmatprep.subr.bf16.mxu1 %v7956_v16  ;;  %v8004_v16 = vpack.c.bf16 %v947_v9, %v943_v8  ;;  %v942_v17 = vld [vmem:[%s17049_s3 + $0x110] sm:$0xff]  ;;  %v1150_v9 = vld [vmem:[%s17050_s4 + $0x40] sm:$0xff] }
 0x318   :  { %7933 = vmatprep.subr.bf16.mxu0 %v7932_v20  ;;  %v6726_v20 = vld [vmem:[%s17059_s9] ss:$0 sm:$0xff]  ;;  %v946_v18 = vld [vmem:[%s17049_s3 + $0x130] sm:$0xff] }
 0x31b   :  { %7935 = vmatpush1.bf16.msra.mxu0 %v7934_v25  ;;  %v912_v25 = vld [vmem:[%s17049_s3 + $0x20] sm:$0xff] }
 0x31c   :  { %7937 = vmatprep.subr.bf16.mxu0 %v7936_v26  ;;  %v910_v26 = vld [vmem:[%s17049_s3 + $0x10] sm:$0xff] }
 0x31d   :  { %v7990_v33 = vpack.c.bf16 %v914_v27, %v910_v26  ;;  %v952_v26 = vld [vmem:[%s17049_s3 + $0x160] sm:$0xff] }
 0x31f   :  { %7939 = vmatpush1.bf16.msra.mxu0 %v7938_v31  ;;  %v923_v31 = vld [vmem:[%s17049_s3 + $0x78] sm:$0xff] }
 0x320   :  { %7941 = vmatprep.subr.bf16.mxu0 %v7940_v32  ;;  %v7958_v32 = vpack.c.bf16 %v912_v25, %v908_v24  ;;  %v7992_v38 = vpack.c.bf16 %v923_v31, %v919_v30  ;;  %v8006_v24 = vpack.c.bf16 %v946_v18, %v942_v17  ;;  %v948_v25 = vld [vmem:[%s17049_s3 + $0x140] sm:$0xff]  ;;  %v954_v30 = vld [vmem:[%s17049_s3 + $0x170] sm:$0xff]  ;;  %v957_v31 = vld [vmem:[%s17049_s3 + $0x188] sm:$0xff] }
 0x321   :  { %v1155_v17 = vld [vmem:[%s17050_s4 + $0x68] sm:$0xff] }
 0x323   :  { %7943 = vmatpush1.bf16.msra.mxu0 %v7942_v35  ;;  %v920_v35 = vld [vmem:[%s17049_s3 + $0x60] sm:$0xff] }
 0x324   :  { %7945 = vmatprep.subr.bf16.mxu0 %v7944_v44  ;;  %v927_v44 = vld [vmem:[%s17049_s3 + $0x98] sm:$0xff]  ;;  %v7962_v46 = vpack.c.bf16 %v920_v35, %v916_v34  ;;  %v7978_v35 = vpack.c.bf16 %v952_v26, %v948_v25  ;;  %v1231_v26 = vld [vmem:[%s17051_s6 + $0x10] sm:$0xff] }
 0x325   :  { %v7996_v51 = vpack.c.bf16 %v931_v45, %v927_v44  ;;  %v963_v34 = vld [vmem:[%s17049_s3 + $0x1b8] sm:$0xff]  ;;  %v965_v44 = vld [vmem:[%s17049_s3 + $0x1c8] sm:$0xff] }
 0x326   :  { %v969_v45 = vld [vmem:[%s17049_s3 + $0x1e8] sm:$0xff] }
 0x327   :  { %7947 = vmatpush1.bf16.msra.mxu0 %v7946_v48  ;;  %v924_v48 = vld [vmem:[%s17049_s3 + $0x80] sm:$0xff] }
 0x328   :  { %7949 = vmatprep.subr.bf16.mxu0 %v7948_v58  ;;  %v935_v58 = vld [vmem:[%s17049_s3 + $0xd8] sm:$0xff]  ;;  %v7966_v60 = vpack.c.bf16 %v928_v49, %v924_v48 }
 0x329   :  { %v8000_v1 = vpack.c.bf16 %v939_v59, %v935_v58  ;;  %v8018_v59 = vpack.c.bf16 %v970_v57, %v966_v55  ;;  %v600_v55 = vld [vmem:[%s17060_s1 + $0x8] sm:$0xff] }
 0x32b   :  { %7951 = vmatpush1.bf16.msra.mxu0 %v7950_v63  ;;  %v936_v63 = vld [vmem:[%s17049_s3 + $0xe0] sm:$0xff] }
 0x32c   :  { %7953 = vmatprep.subr.bf16.mxu0 %v7952_v5  ;;  %v941_v5 = vld [vmem:[%s17049_s3 + $0x108] sm:$0xff]  ;;  %v7970_v10 = vpack.c.bf16 %v936_v63, %v932_v62  ;;  %v1145_v63 = vld [vmem:[%s17050_s4 + $0x18] sm:$0xff] }
 0x32f   :  { %7955 = vmatpush1.bf16.msra.mxu0 %v7954_v15  ;;  %v7972_v15 = vpack.c.bf16 %v945_v7, %v941_v5  ;;  %v1148_v5 = vld [vmem:[%s17050_s4 + $0x30] sm:$0xff]  ;;  %v1149_v7 = vld [vmem:[%s17050_s4 + $0x38] sm:$0xff] }
 0x330   :  { %7989 = vmatprep.subr.bf16.mxu0 %v7988_v19  ;;  %v949_v19 = vld [vmem:[%s17049_s3 + $0x148] sm:$0xff]  ;;  %v8030_v8 = vpack.c.bf16 %v1149_v7, %v1148_v5 }
 0x3c5   :  { %v594_v21 = vpop.f32.mrb[4].mxu0 }
 0x3c6   :  { %v595_v22 = vadd.f32 %v6726_v20, %v594_v21  ;;  %v7193_v23 = vpop.f32.mrb[5].mxu0  ;;  %v953_v20 = vld [vmem:[%s17049_s3 + $0x168] sm:$0xff]  ;;  %v951_v21 = vld [vmem:[%s17049_s3 + $0x158] sm:$0xff] }
 0x3c7   :  { %v7974_v23 = vpack.c.bf16 %v944_v14, %v940_v12  ;;  %v7976_v27 = vpack.c.bf16 %v953_v20, %v949_v19  ;;  %v1152_v12 = vld [vmem:[%s17050_s4 + $0x50] sm:$0xff]  ;;  %v1153_v14 = vld [vmem:[%s17050_s4 + $0x58] sm:$0xff] }
 0x3c8   :  { %9883 = vtanh.f32 %v595_v22  ;;  %v955_v22 = vld [vmem:[%s17049_s3 + $0x178] sm:$0xff]  ;;  %v1156_v19 = vld [vmem:[%s17050_s4 + $0x70] sm:$0xff] }
 0x3c9   :  { %v8008_v28 = vpack.c.bf16 %v955_v22, %v951_v21  ;;  %v1157_v20 = vld [vmem:[%s17050_s4 + $0x78] sm:$0xff]  ;;  %v1230_v22 = vld [vmem:[%s17051_s6 + $0x8] sm:$0xff] }
 0x3ca   :  { %v8042_v21 = vpack.c.bf16 %v1157_v20, %v1156_v19  ;;  %v6733_v19 = vld [vmem:[%s17052_s0 + $0x20] sm:$0xff]  ;;  %v6734_v20 = vld [vmem:[%s17052_s0 + $0x28] sm:$0xff] }
 0x3d2   :  { %v9884_v42 = vpop.eup %9883 }
 0x3d3   :  { %796 = vmatmul.mubr.f32.vlgmr.msra.gmra.mrb[4].mxu1 %v9884_v42  ;;  %867 = vmatmul.mubr.f32.vlgmr.msra.gmra.mrb[6].mxu0 %v9884_v42  ;;  %v958_v42 = vld [vmem:[%s17049_s3 + $0x190] sm:$0xff] }
 0x3d4   :  { %7959 = vmatpush1.bf16.msra.mxu1 %v7958_v32  ;;  %7991 = vmatpush1.bf16.msra.mxu0 %v7990_v33  ;;  %v961_v32 = vld [vmem:[%s17049_s3 + $0x1a8] sm:$0xff]  ;;  %v959_v33 = vld [vmem:[%s17049_s3 + $0x198] sm:$0xff]  ;;  %v8014_v49 = vpack.c.bf16 %v962_v43, %v958_v42 }
 0x3d5   :  { %7961 = vmatprep.subr.bf16.mxu1 %v7960_v36  ;;  %7993 = vmatprep.subr.bf16.mxu0 %v7992_v38  ;;  %v8010_v36 = vpack.c.bf16 %v954_v30, %v950_v29  ;;  %v956_v38 = vld [vmem:[%s17049_s3 + $0x180] sm:$0xff]  ;;  %v7980_v40 = vpack.c.bf16 %v961_v32, %v957_v31  ;;  %v8012_v41 = vpack.c.bf16 %v963_v34, %v959_v33  ;;  %v1235_v32 = vld [vmem:[%s17051_s6 + $0x30] sm:$0xff]  ;;  %v1238_v33 = vld [vmem:[%s17051_s6 + $0x48] sm:$0xff] }
 0x3d6   :  { %1036 = vmatprep.mubr.f32.mxu1 %v10181_v3  ;;  %1107 = vmatprep.mubr.f32.mxu0 %v10181_v3  ;;  %v7982_v48 = vpack.c.bf16 %v960_v39, %v956_v38  ;;  %v1233_v31 = vld [vmem:[%s17051_s6 + $0x20] sm:$0xff]  ;;  %v1240_v34 = vld [vmem:[%s17051_s6 + $0x58] sm:$0xff]  ;;  %v1239_v39 = vld [vmem:[%s17051_s6 + $0x50] sm:$0xff] }
 0x3d7   :  { %v1237_v38 = vld [vmem:[%s17051_s6 + $0x40] sm:$0xff] }
 0x3d8   :  { %7963 = vmatpush1.bf16.msra.mxu1 %v7962_v46  ;;  %7995 = vmatpush1.bf16.msra.mxu0 %v7994_v47  ;;  %v967_v46 = vld [vmem:[%s17049_s3 + $0x1d8] sm:$0xff]  ;;  %v8054_v42 = vpack.c.bf16 %v1239_v39, %v1237_v38 }
 0x3d9   :  { %7965 = vmatprep.subr.bf16.mxu1 %v7964_v50  ;;  %7997 = vmatprep.subr.bf16.mxu0 %v7996_v51  ;;  %v971_v47 = vld [vmem:[%s17049_s3 + $0x1f8] sm:$0xff]  ;;  %v964_v50 = vld [vmem:[%s17049_s3 + $0x1c0] sm:$0xff]  ;;  %v7984_v51 = vpack.c.bf16 %v969_v45, %v965_v44  ;;  %v1243_v45 = vld [vmem:[%s17051_s6 + $0x70] sm:$0xff] }
 0x3da   :  { %v8016_v52 = vpack.c.bf16 %v971_v47, %v967_v46  ;;  %v7986_v58 = vpack.c.bf16 %v968_v54, %v964_v50  ;;  %v1241_v44 = vld [vmem:[%s17051_s6 + $0x60] sm:$0xff]  ;;  %v1246_v46 = vld [vmem:[%s17051_s6 + $0x88] sm:$0xff]  ;;  %v1248_v47 = vld [vmem:[%s17051_s6 + $0x98] sm:$0xff] }
 0x3db   :  { %v1245_v50 = vld [vmem:[%s17051_s6 + $0x80] sm:$0xff] }
 0x3dc   :  { %7967 = vmatpush1.bf16.msra.mxu1 %v7966_v60  ;;  %7999 = vmatpush1.bf16.msra.mxu0 %v7998_v61  ;;  %v1142_v60 = vld [vmem:[%s17050_s4] sm:$0xff]  ;;  %v1143_v61 = vld [vmem:[%s17050_s4 + $0x8] sm:$0xff] }
 0x3dd   :  { %7969 = vmatprep.subr.bf16.mxu1 %v7968_v0  ;;  %8001 = vmatprep.subr.bf16.mxu0 %v8000_v1  ;;  %v8021_v62 = vpack.c.bf16 %v1143_v61, %v1142_v60  ;;  %v1146_v1 = vld [vmem:[%s17050_s4 + $0x20] sm:$0xff] }
 0x3de   :  { %v8027_v4 = vpack.c.bf16 %v1147_v2, %v1146_v1  ;;  %v599_v54 = vld [vmem:[%s17060_s1] sm:$0xff]  ;;  %v601_v2 = vld [vmem:[%s17060_s1 + $0x10] sm:$0xff] }
 0x3e0   :  { %7971 = vmatpush1.bf16.msra.mxu1 %v7970_v10  ;;  %8003 = vmatpush1.bf16.msra.mxu0 %v8002_v11  ;;  %v1151_v10 = vld [vmem:[%s17050_s4 + $0x48] sm:$0xff] }
 0x3e1   :  { %7973 = vmatprep.subr.bf16.mxu1 %v7972_v15  ;;  %8005 = vmatprep.subr.bf16.mxu0 %v8004_v16  ;;  %v8033_v11 = vpack.c.bf16 %v1151_v10, %v1150_v9  ;;  %v8036_v15 = vpack.c.bf16 %v1153_v14, %v1152_v12  ;;  %v1154_v16 = vld [vmem:[%s17050_s4 + $0x60] sm:$0xff] }
 0x3e2   :  { %v8039_v18 = vpack.c.bf16 %v1155_v17, %v1154_v16 }
 0x3e4   :  { %7975 = vmatpush1.bf16.msra.mxu1 %v7974_v23  ;;  %8007 = vmatpush1.bf16.msra.mxu0 %v8006_v24  ;;  %v1232_v23 = vld [vmem:[%s17051_s6 + $0x18] sm:$0xff]  ;;  %v1229_v24 = vld [vmem:[%s17051_s6] sm:$0xff] }
 0x3e5   :  { %7977 = vmatprep.subr.bf16.mxu1 %v7976_v27  ;;  %8009 = vmatprep.subr.bf16.mxu0 %v8008_v28  ;;  %v8044_v25 = vpack.c.bf16 %v1232_v23, %v1230_v22  ;;  %v1234_v27 = vld [vmem:[%s17051_s6 + $0x28] sm:$0xff]  ;;  %v1236_v28 = vld [vmem:[%s17051_s6 + $0x38] sm:$0xff]  ;;  %v8046_v29 = vpack.c.bf16 %v1231_v26, %v1229_v24 }
 0x3e6   :  { %v8048_v30 = vpack.c.bf16 %v1236_v28, %v1234_v27 }
 0x3e8   :  { %7979 = vmatpush1.bf16.msra.mxu1 %v7978_v35  ;;  %8011 = vmatpush1.bf16.msra.mxu0 %v8010_v36  ;;  %v8050_v35 = vpack.c.bf16 %v1235_v32, %v1233_v31  ;;  %v8052_v36 = vpack.c.bf16 %v1240_v34, %v1238_v33  ;;  %v6735_v32 = vld [vmem:[%s17052_s0 + $0x30] sm:$0xff] }
 0x3e9   :  { %7981 = vmatprep.subr.bf16.mxu1 %v7980_v40  ;;  %8013 = vmatprep.subr.bf16.mxu0 %v8012_v41  ;;  %v1242_v40 = vld [vmem:[%s17051_s6 + $0x68] sm:$0xff]  ;;  %v1244_v41 = vld [vmem:[%s17051_s6 + $0x78] sm:$0xff] }
 0x3ea   :  { %v8056_v43 = vpack.c.bf16 %v1244_v41, %v1242_v40 }
 0x3ec   :  { %7983 = vmatpush1.bf16.msra.mxu1 %v7982_v48  ;;  %8015 = vmatpush1.bf16.msra.mxu0 %v8014_v49  ;;  %v8058_v48 = vpack.c.bf16 %v1243_v45, %v1241_v44  ;;  %v8060_v49 = vpack.c.bf16 %v1248_v47, %v1246_v46 }
 0x3ed   :  { %7985 = vmatprep.subr.bf16.mxu1 %v7984_v51  ;;  %8017 = vmatprep.subr.bf16.mxu0 %v8016_v52  ;;  %v1247_v51 = vld [vmem:[%s17051_s6 + $0x90] sm:$0xff] }
 0x3ee   :  { %v8062_v52 = vpack.c.bf16 %v1247_v51, %v1245_v50 }
 0x3f0   :  { %7987 = vmatpush1.bf16.msra.mxu1 %v7986_v58  ;;  %8019 = vmatpush1.bf16.msra.mxu0 %v8018_v59 }
 0x3f1   :  { %8020 = vmatprep.subr.bf16.mxu1 %v10182_v37  ;;  %8045 = vmatprep.subr.bf16.mxu0 %v8044_v25 }
 0x3f3   :  { %1037 = vmatmul.mubr.f32.vlgmr.msra.gmra.mrb[6].mxu1 %v10580_v56  ;;  %1108 = vmatmul.mubr.f32.vlgmr.msra.gmra.mrb[8].mxu0 %v10580_v56  ;;  %v1144_v56 = vld [vmem:[%s17050_s4 + $0x10] sm:$0xff] }
 0x3f4   :  { %7226 = vmatprep.mubr.msk.f32.mxu1 %vm10183_vm0, %v10181_v3  ;;  %1325 = vmatprep.mubr.f32.mxu0 %v10181_v3  ;;  %v8024_v0 = vpack.c.bf16 %v1145_v63, %v1144_v56 }
 0x3f5   :  { %8022 = vmatpush3.bf16.msra.mxu1 %v8021_v62  ;;  %8047 = vmatpush1.bf16.msra.mxu0 %v8046_v29 }
 0x3f6   :  { %8023 = vmatprep.subr.bf16.mxu1 %v10182_v37  ;;  %8049 = vmatprep.subr.bf16.mxu0 %v8048_v30  ;;  %v6736_v30 = vld [vmem:[%s17052_s0 + $0x38] sm:$0xff] }
 0x3f9   :  { %8025 = vmatpush3.bf16.msra.mxu1 %v8024_v0  ;;  %8051 = vmatpush1.bf16.msra.mxu0 %v8050_v35  ;;  %v602_v0 = vld [vmem:[%s17060_s1 + $0x18] sm:$0xff] }
 0x3fa   :  { %8026 = vmatprep.subr.bf16.mxu1 %v10182_v37  ;;  %8053 = vmatprep.subr.bf16.mxu0 %v8052_v36 }
 0x3fd   :  { %8028 = vmatpush3.bf16.msra.mxu1 %v8027_v4  ;;  %8055 = vmatpush1.bf16.msra.mxu0 %v8054_v42 }
 0x3fe   :  { %8029 = vmatprep.subr.bf16.mxu1 %v10182_v37  ;;  %8057 = vmatprep.subr.bf16.mxu0 %v8056_v43 }
 0x401   :  { %8031 = vmatpush3.bf16.msra.mxu1 %v8030_v8  ;;  %8059 = vmatpush1.bf16.msra.mxu0 %v8058_v48 }
 0x402   :  { %8032 = vmatprep.subr.bf16.mxu1 %v10182_v37  ;;  %8061 = vmatprep.subr.bf16.mxu0 %v8060_v49 }
 0x405   :  { %8034 = vmatpush3.bf16.msra.mxu1 %v8033_v11  ;;  %8063 = vmatpush1.bf16.msra.mxu0 %v8062_v52 }
 0x406   :  { %8035 = vmatprep.subr.bf16.mxu1 %v10182_v37 }
 0x409   :  { %8037 = vmatpush3.bf16.msra.mxu1 %v8036_v15 }
 0x40a   :  { %8038 = vmatprep.subr.bf16.mxu1 %v10182_v37 }
 0x40d   :  { %8040 = vmatpush3.bf16.msra.mxu1 %v8039_v18 }
 0x40e   :  { %8041 = vmatprep.subr.bf16.mxu1 %v10182_v37 }
 0x411   :  { %8043 = vmatpush3.bf16.msra.mxu1 %v8042_v21 }
 0x412   :  { %8076 = vmatprep.subr.bf16.mxu1 %v10182_v37 }
 0x4a6   :  { %v797_v57 = vpop.f32.mrb[4].mxu1  ;;  %v868_v58 = vpop.f32.mrb[6].mxu0 }
 0x4a7   :  { %v873_v59 = vadd.f32 %v797_v57, %v599_v54  ;;  %v799_v60 = vpop.f32.mrb[5].mxu1  ;;  %v870_v61 = vpop.f32.mrb[7].mxu0  ;;  %v875_v5 = vadd.f32 %v868_v58, %v601_v2  ;;  %v1249_v58 = vld [vmem:[%s17051_s6 + $0xa0] sm:$0xff]  ;;  %v1260_v2 = vld [vmem:[%s17051_s6 + $0xf8] sm:$0xff] }
 0x4a8   :  { %v874_v62 = vadd.f32 %v799_v60, %v600_v55  ;;  %v876_v1 = vadd.f32 %v870_v61, %v602_v0  ;;  %v1252_v55 = vld [vmem:[%s17051_s6 + $0xb8] sm:$0xff]  ;;  %v1254_v61 = vld [vmem:[%s17051_s6 + $0xc8] sm:$0xff]  ;;  %v1255_v0 = vld [vmem:[%s17051_s6 + $0xd0] sm:$0xff] }
 0x4a9   :  { %v6730_v56 = vmul.f32 -1.442695, %v873_v59  ;;  %v1251_v59 = vld [vmem:[%s17051_s6 + $0xb0] sm:$0xff] }
 0x4aa   :  { %v6731_v63 = vmul.f32 -1.442695, %v874_v62  ;;  %v6732_v4 = vmul.f32 -1.442695, %v876_v1  ;;  %v8066_v60 = vpack.c.bf16 %v1251_v59, %v1249_v58  ;;  %v1256_v62 = vld [vmem:[%s17051_s6 + $0xd8] sm:$0xff]  ;;  %v1258_v1 = vld [vmem:[%s17051_s6 + $0xe8] sm:$0xff] }
 0x4ab   :  { %9885 = vpow2.f32 %v6730_v56  ;;  %v1253_v56 = vld [vmem:[%s17051_s6 + $0xc0] sm:$0xff] }
 0x4ac   :  { %9887 = vpow2.f32 %v6731_v63  ;;  %v8068_v63 = vpack.c.bf16 %v1256_v62, %v1254_v61  ;;  %v1439_v58 = vld [vmem:[%s17056_s10 + $0x40] sm:$0xff]  ;;  %v1448_v61 = vld [vmem:[%s17056_s10 + $0x88] sm:$0xff] }
 0x4ad   :  { %9889 = vpow2.f32 %v6732_v4  ;;  %v8070_v4 = vpack.c.bf16 %v1255_v0, %v1253_v56  ;;  %v1443_v59 = vld [vmem:[%s17056_s10 + $0x60] sm:$0xff]  ;;  %v1452_v62 = vld [vmem:[%s17056_s10 + $0xa8] sm:$0xff] }
 0x4ae   :  { %9891 = vtanh.f32 %v875_v5  ;;  %v8072_v5 = vpack.c.bf16 %v1260_v2, %v1258_v1  ;;  %v8108_v56 = vpack.c.bf16 %v1452_v62, %v1448_v61  ;;  %v1451_v0 = vld [vmem:[%s17056_s10 + $0xa0] sm:$0xff]  ;;  %v1456_v2 = vld [vmem:[%s17056_s10 + $0xc8] sm:$0xff] }
 0x4af   :  { %v1519_v62 = vld [vmem:[%s17056_s10 + $0x2c0] sm:$0xff] }
 0x4b5   :  { %v9886_v7 = vpop.eup %9885 }
 0x4b6   :  { %v9888_v8 = vpop.eup %9887  ;;  %v880_v9 = vadd.f32 1.0, %v9886_v7  ;;  %v1257_v7 = vld [vmem:[%s17051_s6 + $0xe0] sm:$0xff] }
 0x4b7   :  { %v886_v10 = vadd.f32 1.0, %v9888_v8  ;;  %v9890_v11 = vpop.eup %9889  ;;  %v1259_v8 = vld [vmem:[%s17051_s6 + $0xf0] sm:$0xff] }
 0x4b8   :  { %9893 = vrcp.f32 %v880_v9  ;;  %v9892_v12 = vpop.eup %9891  ;;  %v893_v17 = vadd.f32 1.0, %v9890_v11  ;;  %v8074_v9 = vpack.c.bf16 %v1259_v8, %v1257_v7  ;;  %v1340_v11 = vld [vmem:[%s17054_s8 + $0x8] sm:$0xff]  ;;  %v1455_v7 = vld [vmem:[%s17056_s10 + $0xc0] sm:$0xff] }
 0x4b9   :  { %9895 = vrcp.f32 %v886_v10  ;;  %v1339_v10 = vld [vmem:[%s17054_s8] sm:$0xff] }
 0x4ba   :  { %9897 = vrcp.f32 %v893_v17  ;;  %v1459_v8 = vld [vmem:[%s17056_s10 + $0xe0] sm:$0xff] }
 0x4c2   :  { %v9894_v14 = vpop.eup %9893 }
 0x4c3   :  { %v9896_v15 = vpop.eup %9895  ;;  %v897_v16 = vmul.f32 %v9894_v14, %v9892_v12  ;;  %v1341_v12 = vld [vmem:[%s17054_s8 + $0x10] sm:$0xff]  ;;  %v8077_v14 = vpack.c.bf16 %v1340_v11, %v1339_v10  ;;  %v1464_v10 = vld [vmem:[%s17056_s10 + $0x108] sm:$0xff] }
 0x4c4   :  { %v896_v18 = vmul.f32 0.0, %v9896_v15  ;;  %v9898_v33 = vpop.eup %9897  ;;  %v1342_v15 = vld [vmem:[%s17054_s8 + $0x18] sm:$0xff]  ;;  %v1468_v11 = vld [vmem:[%s17056_s10 + $0x128] sm:$0xff] }
 0x4c6   :  { %v11418_v21 = vadd.f32 %v897_v16, %v896_v18  ;;  %v1038_v22 = vpop.f32.mrb[6].mxu1  ;;  %v1109_v23 = vpop.f32.mrb[8].mxu0  ;;  %v8080_v16 = vpack.c.bf16 %v1342_v15, %v1341_v12  ;;  %v10167_v18 = vld [vmem:[%s17055_s5] ss:$0 sm:$0xff]  ;;  %v8116_v12 = vpack.c.bf16 %v1468_v11, %v1464_v10 }
 0x4c7   :  { %v1114_v24 = vadd.f32 %v6733_v19, %v1038_v22  ;;  %v1040_v25 = vpop.f32.mrb[7].mxu1  ;;  %v1111_v26 = vpop.f32.mrb[9].mxu0  ;;  %v1116_v36 = vadd.f32 %v6735_v32, %v1109_v23  ;;  %v1343_v23 = vld [vmem:[%s17054_s8 + $0x20] sm:$0xff]  ;;  %v1349_v32 = vld [vmem:[%s17054_s8 + $0x50] sm:$0xff] }
 0x4c8   :  { %9899 = vtanh.f32 %v11418_v21  ;;  %v1115_v27 = vadd.f32 %v6734_v20, %v1040_v25  ;;  %v1117_v31 = vadd.f32 %v6736_v30, %v1111_v26  ;;  %v1345_v26 = vld [vmem:[%s17054_s8 + $0x30] sm:$0xff]  ;;  %v1348_v30 = vld [vmem:[%s17054_s8 + $0x48] sm:$0xff]  ;;  %v1467_v15 = vld [vmem:[%s17056_s10 + $0x120] sm:$0xff] }
 0x4c9   :  { %v6737_v28 = vmul.f32 -1.442695, %v1114_v24  ;;  %v1344_v24 = vld [vmem:[%s17054_s8 + $0x28] sm:$0xff] }
 0x4ca   :  { %v6738_v29 = vmul.f32 -1.442695, %v1115_v27  ;;  %v6739_v35 = vmul.f32 -1.442695, %v1117_v31  ;;  %v8083_v25 = vpack.c.bf16 %v1344_v24, %v1343_v23  ;;  %v1346_v27 = vld [vmem:[%s17054_s8 + $0x38] sm:$0xff]  ;;  %v1480_v24 = vld [vmem:[%s17056_s10 + $0x188] sm:$0xff] }
 0x4cb   :  { %9901 = vpow2.f32 %v6737_v28  ;;  %v8086_v28 = vpack.c.bf16 %v1346_v27, %v1345_v26  ;;  %v1479_v27 = vld [vmem:[%s17056_s10 + $0x180] sm:$0xff] }
 0x4cc   :  { %9903 = vpow2.f32 %v6738_v29  ;;  %v1347_v29 = vld [vmem:[%s17054_s8 + $0x40] sm:$0xff] }
 0x4cd   :  { %9905 = vpow2.f32 %v6739_v35  ;;  %v8089_v31 = vpack.c.bf16 %v1348_v30, %v1347_v29  ;;  %v1351_v35 = vld [vmem:[%s17054_s8 + $0x60] sm:$0xff]  ;;  %v1488_v30 = vld [vmem:[%s17056_s10 + $0x1c8] sm:$0xff] }
 0x4ce   :  { %9907 = vtanh.f32 %v1116_v36  ;;  %v1352_v36 = vld [vmem:[%s17054_s8 + $0x68] sm:$0xff] }
 0x4d2   :  { %v9900_v34 = vpop.eup %9899 }
 0x4d3   :  { %v11427_v38 = vmul.f32 %v9900_v34, %v9898_v33  ;;  %v1350_v33 = vld [vmem:[%s17054_s8 + $0x58] sm:$0xff] }
 0x4d4   :  { %v8092_v34 = vpack.c.bf16 %v1350_v33, %v1349_v32  ;;  %v1487_v33 = vld [vmem:[%s17056_s10 + $0x1c0] sm:$0xff] }
 0x4d5   :  { %v9902_v39 = vpop.eup %9901  ;;  %902 = vst [vmem:[%s17061_s12] sm:$0xff] %v11427_v38 }
 0x4d6   :  { %v9904_v40 = vpop.eup %9903  ;;  %v1121_v41 = vadd.f32 1.0, %v9902_v39  ;;  %v8095_v39 = vpack.c.bf16 %v1352_v36, %v1351_v35  ;;  %v1496_v36 = vld [vmem:[%s17056_s10 + $0x208] sm:$0xff] }
 0x4d7   :  { %v1127_v42 = vadd.f32 1.0, %v9904_v40  ;;  %v9906_v43 = vpop.eup %9905  ;;  %v1353_v40 = vld [vmem:[%s17054_s8 + $0x70] sm:$0xff] }
 0x4d8   :  { %9909 = vrcp.f32 %v1121_v41  ;;  %v9908_v44 = vpop.eup %9907  ;;  %v1134_v48 = vadd.f32 1.0, %v9906_v43  ;;  %v1354_v41 = vld [vmem:[%s17054_s8 + $0x78] sm:$0xff]  ;;  %v1432_v43 = vld [vmem:[%s17056_s10 + $0x8] sm:$0xff] }
 0x4d9   :  { %9911 = vrcp.f32 %v1127_v42  ;;  %v8098_v42 = vpack.c.bf16 %v1354_v41, %v1353_v40  ;;  %v1495_v41 = vld [vmem:[%s17056_s10 + $0x200] sm:$0xff] }
 0x4da   :  { %9913 = vrcp.f32 %v1134_v48  ;;  %v1431_v48 = vld [vmem:[%s17056_s10] sm:$0xff] }
 0x4e2   :  { %v9910_v45 = vpop.eup %9909 }
 0x4e3   :  { %v9912_v46 = vpop.eup %9911  ;;  %v1138_v47 = vmul.f32 %v9910_v45, %v9908_v44  ;;  %v1436_v44 = vld [vmem:[%s17056_s10 + $0x28] sm:$0xff]  ;;  %v1434_v45 = vld [vmem:[%s17056_s10 + $0x18] sm:$0xff] }
 0x4e4   :  { %v1137_v49 = vmul.f32 %v9912_v46, %v10577_v53  ;;  %v9914_v51 = vpop.eup %9913  ;;  %v1250_v53 = vld [vmem:[%s17051_s6 + $0xa8] sm:$0xff]  ;;  %v8100_v46 = vpack.c.bf16 %v1436_v44, %v1432_v43 }
 0x4e5   :  { %v8064_v57 = vpack.c.bf16 %v1252_v55, %v1250_v53  ;;  %v1440_v53 = vld [vmem:[%s17056_s10 + $0x48] sm:$0xff] }
 0x4e6   :  { %v11434_v50 = vadd.f32 %v1138_v47, %v1137_v49  ;;  %v1438_v47 = vld [vmem:[%s17056_s10 + $0x38] sm:$0xff]  ;;  %v1435_v49 = vld [vmem:[%s17056_s10 + $0x20] sm:$0xff]  ;;  %v1444_v55 = vld [vmem:[%s17056_s10 + $0x68] sm:$0xff] }
 0x4e7   :  { %8065 = vmatprep.subr.bf16.mxu0 %v8064_v57  ;;  %v8104_v57 = vpack.c.bf16 %v1444_v55, %v1440_v53  ;;  %v1504_v44 = vld [vmem:[%s17056_s10 + $0x248] sm:$0xff]  ;;  %v1511_v55 = vld [vmem:[%s17056_s10 + $0x280] sm:$0xff] }
 0x4e8   :  { %9915 = vtanh.f32 %v11434_v50  ;;  %8067 = vmatpush1.bf16.msra.mxu0 %v8066_v60  ;;  %v8106_v60 = vpack.c.bf16 %v1443_v59, %v1439_v58  ;;  %v1520_v59 = vld [vmem:[%s17056_s10 + $0x2c8] sm:$0xff] }
 0x4e9   :  { %8069 = vmatprep.subr.bf16.mxu0 %v8068_v63  ;;  %v1447_v63 = vld [vmem:[%s17056_s10 + $0x80] sm:$0xff] }
 0x4ea   :  { %v8110_v1 = vpack.c.bf16 %v1451_v0, %v1447_v63  ;;  %v1528_v0 = vld [vmem:[%s17056_s10 + $0x308] sm:$0xff] }
 0x4ec   :  { %8071 = vmatpush1.bf16.msra.mxu0 %v8070_v4  ;;  %v1460_v4 = vld [vmem:[%s17056_s10 + $0xe8] sm:$0xff] }
 0x4ed   :  { %8073 = vmatprep.subr.bf16.mxu0 %v8072_v5  ;;  %v8112_v5 = vpack.c.bf16 %v1460_v4, %v1456_v2  ;;  %v1527_v4 = vld [vmem:[%s17056_s10 + $0x300] sm:$0xff] }
 0x4f0   :  { %8075 = vmatpush1.bf16.msra.mxu0 %v8074_v9  ;;  %v8114_v9 = vpack.c.bf16 %v1459_v8, %v1455_v7 }
 0x4f1   :  { %8101 = vmatprep.subr.bf16.mxu0 %v8100_v46 }
 0x4f2   :  { %v9916_v52 = vpop.eup %9915 }
 0x4f3   :  { %v11437_v54 = vmul.f32 %v9916_v52, %v9914_v51  ;;  %v8164_v51 = vpack.c.bf16 %v1438_v47, %v1434_v45  ;;  %v8102_v52 = vpack.c.bf16 %v1435_v49, %v1431_v48  ;;  %v1508_v45 = vld [vmem:[%s17056_s10 + $0x268] sm:$0xff]  ;;  %v1503_v47 = vld [vmem:[%s17056_s10 + $0x240] sm:$0xff] }
 0x4f4   :  { %v8136_v46 = vpack.c.bf16 %v1508_v45, %v1504_v44  ;;  %v1507_v48 = vld [vmem:[%s17056_s10 + $0x260] sm:$0xff]  ;;  %v1465_v45 = vld [vmem:[%s17056_s10 + $0x110] sm:$0xff] }
 0x4f5   :  { %7227 = vmatmul.mubr.f32.vlgmr.msra.gmra.mrb[8].mxu1 %v11437_v54  ;;  %6748 = vst [vmem:[%s17053_s11 + $0x8] sm:$0xff] %v11437_v54  ;;  %v8138_v49 = vpack.c.bf16 %v1507_v48, %v1503_v47  ;;  %v1474_v47 = vld [vmem:[%s17056_s10 + $0x158] sm:$0xff] }
 0x4f6   :  { %7261 = vmatprep.mubr.msk.f32.mxu1 %vm10183_vm0, %v10181_v3  ;;  %8078 = vmatpush3.bf16.msra.mxu1 %v8077_v14  ;;  %v1463_v14 = vld [vmem:[%s17056_s10 + $0x100] sm:$0xff]  ;;  %v1478_v48 = vld [vmem:[%s17056_s10 + $0x178] sm:$0xff] }
 0x4f7   :  { %8079 = vmatprep.subr.bf16.mxu1 %v10182_v37 }
 0x4fa   :  { %8081 = vmatpush3.bf16.msra.mxu1 %v8080_v16  ;;  %v8118_v16 = vpack.c.bf16 %v1467_v15, %v1463_v14  ;;  %v6740_v14 = vld [vmem:[%s17058_s2 + $0x8] sm:$0xff]  ;;  %v1433_v15 = vld [vmem:[%s17056_s10 + $0x10] sm:$0xff] }
 0x4fb   :  { %8082 = vmatprep.subr.bf16.mxu1 %v10182_v37 }
 0x4fe   :  { %8084 = vmatpush3.bf16.msra.mxu1 %v8083_v25  ;;  %v1484_v25 = vld [vmem:[%s17056_s10 + $0x1a8] sm:$0xff] }
 0x4ff   :  { %8085 = vmatprep.subr.bf16.mxu1 %v10182_v37  ;;  %v8124_v26 = vpack.c.bf16 %v1484_v25, %v1480_v24 }
 0x502   :  { %8087 = vmatpush3.bf16.msra.mxu1 %v8086_v28  ;;  %v1483_v28 = vld [vmem:[%s17056_s10 + $0x1a0] sm:$0xff] }
 0x503   :  { %8088 = vmatprep.subr.bf16.mxu1 %v10182_v37  ;;  %v8126_v29 = vpack.c.bf16 %v1483_v28, %v1479_v27  ;;  %v1445_v27 = vld [vmem:[%s17056_s10 + $0x70] sm:$0xff]  ;;  %v1450_v28 = vld [vmem:[%s17056_s10 + $0x98] sm:$0xff] }
 0x506   :  { %8090 = vmatpush3.bf16.msra.mxu1 %v8089_v31  ;;  %v1492_v31 = vld [vmem:[%s17056_s10 + $0x1e8] sm:$0xff] }
 0x507   :  { %8091 = vmatprep.subr.bf16.mxu1 %v10182_v37  ;;  %v8128_v32 = vpack.c.bf16 %v1492_v31, %v1488_v30 }
 0x50a   :  { %8093 = vmatpush3.bf16.msra.mxu1 %v8092_v34  ;;  %v1491_v34 = vld [vmem:[%s17056_s10 + $0x1e0] sm:$0xff] }
 0x50b   :  { %8094 = vmatprep.subr.bf16.mxu1 %v10182_v37  ;;  %v8130_v35 = vpack.c.bf16 %v1491_v34, %v1487_v33  ;;  %v1453_v33 = vld [vmem:[%s17056_s10 + $0xb0] sm:$0xff]  ;;  %v1458_v34 = vld [vmem:[%s17056_s10 + $0xd8] sm:$0xff] }
 0x50e   :  { %8096 = vmatpush3.bf16.msra.mxu1 %v8095_v39  ;;  %v1500_v39 = vld [vmem:[%s17056_s10 + $0x228] sm:$0xff] }
 0x50f   :  { %8097 = vmatprep.subr.bf16.mxu1 %v10182_v37  ;;  %v8132_v40 = vpack.c.bf16 %v1500_v39, %v1496_v36  ;;  %v1457_v39 = vld [vmem:[%s17056_s10 + $0xd0] sm:$0xff] }
 0x512   :  { %8099 = vmatpush3.bf16.msra.mxu1 %v8098_v42  ;;  %v1499_v42 = vld [vmem:[%s17056_s10 + $0x220] sm:$0xff] }
 0x513   :  { %8165 = vmatprep.subr.bf16.mxu1 %v8164_v51  ;;  %v8134_v43 = vpack.c.bf16 %v1499_v42, %v1495_v41  ;;  %v1512_v51 = vld [vmem:[%s17056_s10 + $0x288] sm:$0xff]  ;;  %v1466_v41 = vld [vmem:[%s17056_s10 + $0x118] sm:$0xff] }
 0x514   :  { %v1470_v42 = vld [vmem:[%s17056_s10 + $0x138] sm:$0xff] }
 0x515   :  { %v8180_v44 = vpack.c.bf16 %v1470_v42, %v1466_v41  ;;  %v1538_v41 = vld [vmem:[%s17056_s10 + $0x358] sm:$0xff] }
 0x5c8   :  { %v1224_v17 = vpop.f32.mrb[8].mxu1 }
 0x5c9   :  { %v1225_v19 = vadd.f32 %v10167_v18, %v1224_v17  ;;  %v7228_v20 = vpop.f32.mrb[9].mxu1  ;;  %v1472_v17 = vld [vmem:[%s17056_s10 + $0x148] sm:$0xff] }
 0x5ca   :  { %v1476_v18 = vld [vmem:[%s17056_s10 + $0x168] sm:$0xff]  ;;  %v1471_v20 = vld [vmem:[%s17056_s10 + $0x140] sm:$0xff] }
 0x5cb   :  { %9917 = vtanh.f32 %v1225_v19  ;;  %v8120_v19 = vpack.c.bf16 %v1476_v18, %v1472_v17  ;;  %v1442_v18 = vld [vmem:[%s17056_s10 + $0x58] sm:$0xff] }
 0x5d5   :  { %v9918_v22 = vpop.eup %9917 }
 0x5d6   :  { %1326 = vmatmul.mubr.f32.vlgmr.msra.gmra.mrb[10].mxu0 %v9918_v22  ;;  %v1475_v22 = vld [vmem:[%s17056_s10 + $0x160] sm:$0xff] }
 0x5d7   :  { %1623 = vmatprep.mubr.f32.mxu0 %v11427_v38  ;;  %8103 = vmatpush1.bf16.msra.mxu0 %v8102_v52  ;;  %v8122_v23 = vpack.c.bf16 %v1475_v22, %v1471_v20  ;;  %v1516_v52 = vld [vmem:[%s17056_s10 + $0x2a8] sm:$0xff] }
 0x5d8   :  { %8105 = vmatprep.subr.bf16.mxu0 %v8104_v57  ;;  %v8140_v53 = vpack.c.bf16 %v1516_v52, %v1512_v51  ;;  %v1515_v57 = vld [vmem:[%s17056_s10 + $0x2a0] sm:$0xff]  ;;  %v8184_v51 = vpack.c.bf16 %v1478_v48, %v1474_v47  ;;  %v1473_v52 = vld [vmem:[%s17056_s10 + $0x150] sm:$0xff] }
 0x5d9   :  { %v8142_v58 = vpack.c.bf16 %v1515_v57, %v1511_v55  ;;  %v1482_v55 = vld [vmem:[%s17056_s10 + $0x198] sm:$0xff]  ;;  %v1537_v48 = vld [vmem:[%s17056_s10 + $0x350] sm:$0xff] }
 0x5da   :  { %v1486_v57 = vld [vmem:[%s17056_s10 + $0x1b8] sm:$0xff] }
 0x5db   :  { %8107 = vmatpush1.bf16.msra.mxu0 %v8106_v60  ;;  %v1524_v60 = vld [vmem:[%s17056_s10 + $0x2e8] sm:$0xff] }
 0x5dc   :  { %8109 = vmatprep.subr.bf16.mxu0 %v8108_v56  ;;  %v8144_v61 = vpack.c.bf16 %v1524_v60, %v1520_v59  ;;  %v1523_v56 = vld [vmem:[%s17056_s10 + $0x2e0] sm:$0xff]  ;;  %v8188_v59 = vpack.c.bf16 %v1486_v57, %v1482_v55  ;;  %v1481_v60 = vld [vmem:[%s17056_s10 + $0x190] sm:$0xff]  ;;  %v1546_v55 = vld [vmem:[%s17056_s10 + $0x398] sm:$0xff] }
 0x5dd   :  { %v8146_v63 = vpack.c.bf16 %v1523_v56, %v1519_v62  ;;  %v1490_v62 = vld [vmem:[%s17056_s10 + $0x1d8] sm:$0xff] }
 0x5de   :  { %v1494_v56 = vld [vmem:[%s17056_s10 + $0x1f8] sm:$0xff] }
 0x5df   :  { %8111 = vmatpush1.bf16.msra.mxu0 %v8110_v1  ;;  %v1532_v1 = vld [vmem:[%s17056_s10 + $0x328] sm:$0xff] }
 0x5e0   :  { %8113 = vmatprep.subr.bf16.mxu0 %v8112_v5  ;;  %v8148_v2 = vpack.c.bf16 %v1532_v1, %v1528_v0  ;;  %v1531_v5 = vld [vmem:[%s17056_s10 + $0x320] sm:$0xff]  ;;  %v8192_v0 = vpack.c.bf16 %v1494_v56, %v1490_v62  ;;  %v1489_v1 = vld [vmem:[%s17056_s10 + $0x1d0] sm:$0xff] }
 0x5e1   :  { %v8150_v7 = vpack.c.bf16 %v1531_v5, %v1527_v4  ;;  %v1498_v4 = vld [vmem:[%s17056_s10 + $0x218] sm:$0xff]  ;;  %v1545_v56 = vld [vmem:[%s17056_s10 + $0x390] sm:$0xff] }
 0x5e2   :  { %v1502_v5 = vld [vmem:[%s17056_s10 + $0x238] sm:$0xff] }
 0x5e3   :  { %8115 = vmatpush1.bf16.msra.mxu0 %v8114_v9 }
 0x5e4   :  { %8117 = vmatprep.subr.bf16.mxu0 %v8116_v12 }
 0x5e7   :  { %8119 = vmatpush1.bf16.msra.mxu0 %v8118_v16  ;;  %v1437_v16 = vld [vmem:[%s17056_s10 + $0x30] sm:$0xff] }
 0x5e8   :  { %8121 = vmatprep.subr.bf16.mxu0 %v8120_v19  ;;  %v1446_v19 = vld [vmem:[%s17056_s10 + $0x78] sm:$0xff] }
 0x5e9   :  { %v8168_v25 = vpack.c.bf16 %v1446_v19, %v1442_v18  ;;  %v1514_v18 = vld [vmem:[%s17056_s10 + $0x298] sm:$0xff] }
 0x5ea   :  { %v1518_v19 = vld [vmem:[%s17056_s10 + $0x2b8] sm:$0xff] }
 0x5eb   :  { %8123 = vmatpush1.bf16.msra.mxu0 %v8122_v23  ;;  %v8166_v23 = vpack.c.bf16 %v1437_v16, %v1433_v15  ;;  %v1505_v16 = vld [vmem:[%s17056_s10 + $0x250] sm:$0xff] }
 0x5ec   :  { %8125 = vmatprep.subr.bf16.mxu0 %v8124_v26  ;;  %v1441_v26 = vld [vmem:[%s17056_s10 + $0x50] sm:$0xff] }
 0x5ed   :  { %v8170_v30 = vpack.c.bf16 %v1445_v27, %v1441_v26  ;;  %v1526_v26 = vld [vmem:[%s17056_s10 + $0x2f8] sm:$0xff] }
 0x5ef   :  { %8127 = vmatpush1.bf16.msra.mxu0 %v8126_v29  ;;  %v1454_v29 = vld [vmem:[%s17056_s10 + $0xb8] sm:$0xff] }
 0x5f0   :  { %8129 = vmatprep.subr.bf16.mxu0 %v8128_v32  ;;  %v8172_v31 = vpack.c.bf16 %v1454_v29, %v1450_v28  ;;  %v1449_v32 = vld [vmem:[%s17056_s10 + $0x90] sm:$0xff] }
 0x5f1   :  { %v1521_v29 = vld [vmem:[%s17056_s10 + $0x2d0] sm:$0xff] }
 0x5f3   :  { %8131 = vmatpush1.bf16.msra.mxu0 %v8130_v35  ;;  %v8174_v35 = vpack.c.bf16 %v1453_v33, %v1449_v32  ;;  %v1534_v32 = vld [vmem:[%s17056_s10 + $0x338] sm:$0xff] }
 0x5f4   :  { %8133 = vmatprep.subr.bf16.mxu0 %v8132_v40  ;;  %v1461_v40 = vld [vmem:[%s17056_s10 + $0xf0] sm:$0xff] }
 0x5f7   :  { %8135 = vmatpush1.bf16.msra.mxu0 %v8134_v43  ;;  %v8178_v43 = vpack.c.bf16 %v1461_v40, %v1457_v39  ;;  %v1536_v39 = vld [vmem:[%s17056_s10 + $0x348] sm:$0xff] }
 0x5f8   :  { %8137 = vmatprep.subr.bf16.mxu0 %v8136_v46  ;;  %v1469_v46 = vld [vmem:[%s17056_s10 + $0x130] sm:$0xff]  ;;  %v1540_v40 = vld [vmem:[%s17056_s10 + $0x368] sm:$0xff] }
 0x5f9   :  { %v8152_v42 = vpack.c.bf16 %v1540_v40, %v1536_v39  ;;  %v1750_v39 = vld [vmem:[%s17049_s3 + $0x60] sm:$0xff] }
 0x5fb   :  { %8139 = vmatpush1.bf16.msra.mxu0 %v8138_v49  ;;  %v8182_v49 = vpack.c.bf16 %v1469_v46, %v1465_v45  ;;  %v1539_v45 = vld [vmem:[%s17056_s10 + $0x360] sm:$0xff] }
 0x5fc   :  { %8141 = vmatprep.subr.bf16.mxu0 %v8140_v53  ;;  %v1477_v53 = vld [vmem:[%s17056_s10 + $0x170] sm:$0xff] }
 0x5ff   :  { %8143 = vmatpush1.bf16.msra.mxu0 %v8142_v58  ;;  %v8186_v58 = vpack.c.bf16 %v1477_v53, %v1473_v52  ;;  %v1544_v52 = vld [vmem:[%s17056_s10 + $0x388] sm:$0xff] }
 0x600   :  { %8145 = vmatprep.subr.bf16.mxu0 %v8144_v61  ;;  %v1485_v61 = vld [vmem:[%s17056_s10 + $0x1b0] sm:$0xff]  ;;  %v1548_v53 = vld [vmem:[%s17056_s10 + $0x3a8] sm:$0xff] }
 0x601   :  { %v8156_v57 = vpack.c.bf16 %v1548_v53, %v1544_v52  ;;  %v1754_v52 = vld [vmem:[%s17049_s3 + $0x80] sm:$0xff] }
 0x602   :  { %v1758_v53 = vld [vmem:[%s17049_s3 + $0xa0] sm:$0xff] }
 0x603   :  { %8147 = vmatpush1.bf16.msra.mxu0 %v8146_v63  ;;  %v8190_v63 = vpack.c.bf16 %v1485_v61, %v1481_v60  ;;  %v1547_v60 = vld [vmem:[%s17056_s10 + $0x3a0] sm:$0xff] }
 0x604   :  { %8149 = vmatprep.subr.bf16.mxu0 %v8148_v2  ;;  %v1493_v2 = vld [vmem:[%s17056_s10 + $0x1f0] sm:$0xff] }
 0x607   :  { %8151 = vmatpush1.bf16.msra.mxu0 %v8150_v7  ;;  %v8194_v7 = vpack.c.bf16 %v1493_v2, %v1489_v1  ;;  %v1556_v2 = vld [vmem:[%s17056_s10 + $0x3e8] sm:$0xff] }
 0x608   :  { %8153 = vmatprep.subr.bf16.mxu0 %v8152_v42  ;;  %v1748_v42 = vld [vmem:[%s17049_s3 + $0x50] sm:$0xff] }
 0x6a9   :  { %v1327_v8 = vpop.f32.mrb[10].mxu0 }
 0x6aa   :  { %v1329_v9 = vpop.f32.mrb[11].mxu0  ;;  %v1328_v20 = vadd.f32 %v1327_v8, %v10852_v13  ;;  %v8196_v8 = vpack.c.bf16 %v1502_v5, %v1498_v4  ;;  %v1554_v4 = vld [vmem:[%s17056_s10 + $0x3d8] sm:$0xff] }
 0x6ab   :  { %v1330_v10 = vadd.f32 %v1329_v9, %v10849_v6  ;;  %v1497_v9 = vld [vmem:[%s17056_s10 + $0x210] sm:$0xff]  ;;  %v1558_v5 = vld [vmem:[%s17056_s10 + $0x3f8] sm:$0xff] }
 0x6ad   :  { %v1334_v11 = vmul.f32 0.5, %v1330_v10  ;;  %v1501_v10 = vld [vmem:[%s17056_s10 + $0x230] sm:$0xff] }
 0x6af   :  { %v1335_v12 = vmul.f32 1.442695, %v1334_v11  ;;  %v1506_v11 = vld [vmem:[%s17056_s10 + $0x258] sm:$0xff] }
 0x6b1   :  { %9919 = vpow2.f32 %v1335_v12  ;;  %v1510_v12 = vld [vmem:[%s17056_s10 + $0x278] sm:$0xff] }
 0x6b2   :  { %v8200_v15 = vpack.c.bf16 %v1510_v12, %v1506_v11  ;;  %v1553_v11 = vld [vmem:[%s17056_s10 + $0x3d0] sm:$0xff] }
 0x6bb   :  { %v9920_v17 = vpop.eup %9919 }
 0x6bc   :  { %v1337_v22 = vmul.f32 %v9920_v17, %v6740_v14  ;;  %v8198_v14 = vpack.c.bf16 %v1501_v10, %v1497_v9  ;;  %v1509_v17 = vld [vmem:[%s17056_s10 + $0x270] sm:$0xff]  ;;  %v1551_v9 = vld [vmem:[%s17056_s10 + $0x3c0] sm:$0xff] }
 0x6bd   :  { %v1555_v10 = vld [vmem:[%s17056_s10 + $0x3e0] sm:$0xff] }
 0x6be   :  { %v1338_v24 = vadd.f32 %v1337_v22, %v1328_v20  ;;  %v8202_v20 = vpack.c.bf16 %v1509_v17, %v1505_v16  ;;  %v8204_v22 = vpack.c.bf16 %v1518_v19, %v1514_v18  ;;  %v8162_v12 = vpack.c.bf16 %v1555_v10, %v1551_v9  ;;  %v1743_v16 = vld [vmem:[%s17049_s3 + $0x28] sm:$0xff]  ;;  %v1741_v19 = vld [vmem:[%s17049_s3 + $0x18] sm:$0xff] }
 0x6bf   :  { %v1771_v9 = vld [vmem:[%s17049_s3 + $0x108] sm:$0xff] }
 0x6c0   :  { %7262 = vmatmul.mubr.f32.vlgmr.msra.gmra.mrb[10].mxu1 %v1338_v24  ;;  %v1517_v24 = vld [vmem:[%s17056_s10 + $0x2b0] sm:$0xff]  ;;  %v1775_v10 = vld [vmem:[%s17049_s3 + $0x128] sm:$0xff] }
 0x6c1   :  { %1694 = vmatprep.mubr.f32.mxu1 %v11427_v38  ;;  %8167 = vmatpush1.bf16.msra.mxu1 %v8166_v23  ;;  %v1462_v38 = vld [vmem:[%s17056_s10 + $0xf8] sm:$0xff]  ;;  %v1513_v23 = vld [vmem:[%s17056_s10 + $0x290] sm:$0xff] }
 0x6c2   :  { %8169 = vmatprep.subr.bf16.mxu1 %v8168_v25  ;;  %v8176_v36 = vpack.c.bf16 %v1462_v38, %v1458_v34  ;;  %v1522_v25 = vld [vmem:[%s17056_s10 + $0x2d8] sm:$0xff]  ;;  %v8206_v27 = vpack.c.bf16 %v1517_v24, %v1513_v23  ;;  %v1529_v38 = vld [vmem:[%s17056_s10 + $0x310] sm:$0xff]  ;;  %v10168_v24 = vld [vmem:[%s17059_s9] ss:$0 sm:$0xff] }
 0x6c3   :  { %v8208_v28 = vpack.c.bf16 %v1526_v26, %v1522_v25 }
 0x6c5   :  { %8171 = vmatpush1.bf16.msra.mxu1 %v8170_v30  ;;  %v1525_v30 = vld [vmem:[%s17056_s10 + $0x2f0] sm:$0xff] }
 0x6c6   :  { %8173 = vmatprep.subr.bf16.mxu1 %v8172_v31  ;;  %v1530_v31 = vld [vmem:[%s17056_s10 + $0x318] sm:$0xff]  ;;  %v8210_v33 = vpack.c.bf16 %v1525_v30, %v1521_v29  ;;  %v1740_v29 = vld [vmem:[%s17049_s3 + $0x10] sm:$0xff] }
 0x6c7   :  { %v8212_v34 = vpack.c.bf16 %v1534_v32, %v1530_v31  ;;  %v1744_v30 = vld [vmem:[%s17049_s3 + $0x30] sm:$0xff]  ;;  %v1747_v31 = vld [vmem:[%s17049_s3 + $0x48] sm:$0xff] }
 0x6c8   :  { %v1751_v32 = vld [vmem:[%s17049_s3 + $0x68] sm:$0xff] }
 0x6c9   :  { %8175 = vmatpush1.bf16.msra.mxu1 %v8174_v35  ;;  %v1533_v35 = vld [vmem:[%s17056_s10 + $0x330] sm:$0xff]  ;;  %v8232_v40 = vpack.c.bf16 %v1751_v32, %v1747_v31 }
 0x6ca   :  { %8177 = vmatprep.subr.bf16.mxu1 %v8176_v36  ;;  %v8214_v36 = vpack.c.bf16 %v1533_v35, %v1529_v38  ;;  %v8262_v35 = vpack.c.bf16 %v1744_v30, %v1740_v29  ;;  %v1778_v29 = vld [vmem:[%s17049_s3 + $0x140] sm:$0xff] }
 0x6cb   :  { %v1782_v30 = vld [vmem:[%s17049_s3 + $0x160] sm:$0xff] }
 0x6cd   :  { %8179 = vmatpush1.bf16.msra.mxu1 %v8178_v43  ;;  %v1542_v43 = vld [vmem:[%s17056_s10 + $0x378] sm:$0xff] }
 0x6ce   :  { %8181 = vmatprep.subr.bf16.mxu1 %v8180_v44  ;;  %v1535_v44 = vld [vmem:[%s17056_s10 + $0x340] sm:$0xff]  ;;  %v8216_v46 = vpack.c.bf16 %v1542_v43, %v1538_v41  ;;  %v1752_v43 = vld [vmem:[%s17049_s3 + $0x70] sm:$0xff] }
 0x6cf   :  { %v8154_v47 = vpack.c.bf16 %v1539_v45, %v1535_v44  ;;  %v1755_v44 = vld [vmem:[%s17049_s3 + $0x88] sm:$0xff] }
 0x6d1   :  { %8183 = vmatpush1.bf16.msra.mxu1 %v8182_v49  ;;  %v1541_v49 = vld [vmem:[%s17056_s10 + $0x370] sm:$0xff]  ;;  %8155 = vmatpush1.bf16.msra.mxu0 %v8154_v47  ;;  %v1757_v47 = vld [vmem:[%s17049_s3 + $0x98] sm:$0xff] }
 0x6d2   :  { %8185 = vmatprep.subr.bf16.mxu1 %v8184_v51  ;;  %v8218_v51 = vpack.c.bf16 %v1541_v49, %v1537_v48  ;;  %8157 = vmatprep.subr.bf16.mxu0 %v8156_v57  ;;  %v1761_v48 = vld [vmem:[%s17049_s3 + $0xb8] sm:$0xff] }
 0x6d3   :  { %v8268_v57 = vpack.c.bf16 %v1761_v48, %v1757_v47  ;;  %v1792_v47 = vld [vmem:[%s17049_s3 + $0x1b0] sm:$0xff]  ;;  %v1795_v48 = vld [vmem:[%s17049_s3 + $0x1c8] sm:$0xff] }
 0x6d5   :  { %8187 = vmatpush1.bf16.msra.mxu1 %v8186_v58  ;;  %v1550_v58 = vld [vmem:[%s17056_s10 + $0x3b8] sm:$0xff] }
 0x6d6   :  { %8189 = vmatprep.subr.bf16.mxu1 %v8188_v59  ;;  %v1543_v59 = vld [vmem:[%s17056_s10 + $0x380] sm:$0xff]  ;;  %v8220_v61 = vpack.c.bf16 %v1550_v58, %v1546_v55  ;;  %v1756_v58 = vld [vmem:[%s17049_s3 + $0x90] sm:$0xff] }
 0x6d7   :  { %v8158_v62 = vpack.c.bf16 %v1547_v60, %v1543_v59  ;;  %v1760_v59 = vld [vmem:[%s17049_s3 + $0xb0] sm:$0xff]  ;;  %v1763_v60 = vld [vmem:[%s17049_s3 + $0xc8] sm:$0xff] }
 0x6d9   :  { %8191 = vmatpush1.bf16.msra.mxu1 %v8190_v63  ;;  %v1549_v63 = vld [vmem:[%s17056_s10 + $0x3b0] sm:$0xff]  ;;  %8159 = vmatpush1.bf16.msra.mxu0 %v8158_v62  ;;  %v1765_v62 = vld [vmem:[%s17049_s3 + $0xd8] sm:$0xff] }
 0x6da   :  { %8193 = vmatprep.subr.bf16.mxu1 %v8192_v0  ;;  %v1552_v0 = vld [vmem:[%s17056_s10 + $0x3c8] sm:$0xff]  ;;  %v8222_v1 = vpack.c.bf16 %v1549_v63, %v1545_v56  ;;  %v1769_v56 = vld [vmem:[%s17049_s3 + $0xf8] sm:$0xff]  ;;  %v8238_v63 = vpack.c.bf16 %v1758_v53, %v1754_v52 }
 0x6db   :  { %v1801_v52 = vld [vmem:[%s17049_s3 + $0x1f8] sm:$0xff] }
 0x6dd   :  { %8195 = vmatpush1.bf16.msra.mxu1 %v8194_v7  ;;  %v8160_v7 = vpack.c.bf16 %v1556_v2, %v1552_v0  ;;  %v8270_v0 = vpack.c.bf16 %v1760_v59, %v1756_v58  ;;  %v1766_v2 = vld [vmem:[%s17049_s3 + $0xe0] sm:$0xff] }
 0x6de   :  { %8197 = vmatprep.subr.bf16.mxu1 %v8196_v8  ;;  %v8224_v8 = vpack.c.bf16 %v1558_v5, %v1554_v4  ;;  %v8272_v5 = vpack.c.bf16 %v1769_v56, %v1765_v62  ;;  %v1800_v62 = vld [vmem:[%s17049_s3 + $0x1f0] sm:$0xff] }
 0x6df   :  { %8161 = vmatprep.subr.bf16.mxu0 %v8160_v7  ;;  %v1764_v7 = vld [vmem:[%s17049_s3 + $0xd0] sm:$0xff] }
 0x6e0   :  { %8163 = vmatpush1.bf16.msra.mxu0 %v8162_v12  ;;  %v1777_v12 = vld [vmem:[%s17049_s3 + $0x138] sm:$0xff] }
 0x6e1   :  { %8199 = vmatpush1.bf16.msra.mxu1 %v8198_v14  ;;  %v1557_v14 = vld [vmem:[%s17056_s10 + $0x3f0] sm:$0xff] }
 0x6e2   :  { %8201 = vmatprep.subr.bf16.mxu1 %v8200_v15  ;;  %v1739_v15 = vld [vmem:[%s17049_s3 + $0x8] sm:$0xff]  ;;  %v8226_v17 = vpack.c.bf16 %v1557_v14, %v1553_v11  ;;  %v1773_v11 = vld [vmem:[%s17049_s3 + $0x118] sm:$0xff] }
 0x6e3   :  { %v8228_v18 = vpack.c.bf16 %v1743_v16, %v1739_v15  ;;  %v1770_v16 = vld [vmem:[%s17049_s3 + $0x100] sm:$0xff] }
 0x6e5   :  { %8203 = vmatpush1.bf16.msra.mxu1 %v8202_v20  ;;  %v1745_v20 = vld [vmem:[%s17049_s3 + $0x38] sm:$0xff]  ;;  %8229 = vmatprep.subr.bf16.mxu0 %v8228_v18  ;;  %v8244_v18 = vpack.c.bf16 %v1775_v10, %v1771_v9  ;;  %v1978_v10 = vld [vmem:[%s17050_s4 + $0x30] sm:$0xff] }
 0x6e6   :  { %8205 = vmatprep.subr.bf16.mxu1 %v8204_v22  ;;  %v8260_v22 = vpack.c.bf16 %v1745_v20, %v1741_v19  ;;  %v8276_v19 = vpack.c.bf16 %v1777_v12, %v1773_v11  ;;  %v1772_v20 = vld [vmem:[%s17049_s3 + $0x110] sm:$0xff]  ;;  %v1979_v11 = vld [vmem:[%s17050_s4 + $0x38] sm:$0xff] }
 0x6e7   :  { %v8302_v12 = vpack.c.bf16 %v1979_v11, %v1978_v10 }
 0x6e9   :  { %8207 = vmatpush1.bf16.msra.mxu1 %v8206_v27  ;;  %v1738_v27 = vld [vmem:[%s17049_s3] sm:$0xff] }
 0x6ea   :  { %8209 = vmatprep.subr.bf16.mxu1 %v8208_v28  ;;  %v1742_v28 = vld [vmem:[%s17049_s3 + $0x20] sm:$0xff] }
 0x6eb   :  { %v8230_v38 = vpack.c.bf16 %v1742_v28, %v1738_v27 }
 0x6ed   :  { %8211 = vmatpush1.bf16.msra.mxu1 %v8210_v33  ;;  %v1749_v33 = vld [vmem:[%s17049_s3 + $0x58] sm:$0xff] }
 0x6ee   :  { %8213 = vmatprep.subr.bf16.mxu1 %v8212_v34  ;;  %v1753_v34 = vld [vmem:[%s17049_s3 + $0x78] sm:$0xff] }
 0x6ef   :  { %v8264_v41 = vpack.c.bf16 %v1753_v34, %v1749_v33  ;;  %v1780_v33 = vld [vmem:[%s17049_s3 + $0x150] sm:$0xff] }
 0x6f0   :  { %v1784_v34 = vld [vmem:[%s17049_s3 + $0x170] sm:$0xff] }
 0x6f1   :  { %8215 = vmatpush1.bf16.msra.mxu1 %v8214_v36  ;;  %v1746_v36 = vld [vmem:[%s17049_s3 + $0x40] sm:$0xff] }
 0x6f2   :  { %8217 = vmatprep.subr.bf16.mxu1 %v8216_v46  ;;  %v1759_v46 = vld [vmem:[%s17049_s3 + $0xa8] sm:$0xff]  ;;  %v8234_v49 = vpack.c.bf16 %v1750_v39, %v1746_v36  ;;  %v1789_v36 = vld [vmem:[%s17049_s3 + $0x198] sm:$0xff] }
 0x6f3   :  { %v8236_v55 = vpack.c.bf16 %v1759_v46, %v1755_v44  ;;  %v1793_v39 = vld [vmem:[%s17049_s3 + $0x1b8] sm:$0xff]  ;;  %v1788_v46 = vld [vmem:[%s17049_s3 + $0x190] sm:$0xff] }
 0x6f5   :  { %8219 = vmatpush1.bf16.msra.mxu1 %v8218_v51  ;;  %v8266_v51 = vpack.c.bf16 %v1752_v43, %v1748_v42  ;;  %v1786_v42 = vld [vmem:[%s17049_s3 + $0x180] sm:$0xff] }
 0x6f6   :  { %8221 = vmatprep.subr.bf16.mxu1 %v8220_v61  ;;  %v1767_v61 = vld [vmem:[%s17049_s3 + $0xe8] sm:$0xff]  ;;  %v1790_v43 = vld [vmem:[%s17049_s3 + $0x1a0] sm:$0xff] }
 0x6f7   :  { %v8240_v4 = vpack.c.bf16 %v1767_v61, %v1763_v60  ;;  %v8254_v53 = vpack.c.bf16 %v1790_v43, %v1786_v42  ;;  %v1798_v60 = vld [vmem:[%s17049_s3 + $0x1e0] sm:$0xff]  ;;  %v1796_v61 = vld [vmem:[%s17049_s3 + $0x1d0] sm:$0xff] }
 0x6f8   :  { %v2067_v43 = vld [vmem:[%s17051_s6 + $0x40] sm:$0xff] }
 0x6f9   :  { %8223 = vmatpush1.bf16.msra.mxu1 %v8222_v1  ;;  %v1762_v1 = vld [vmem:[%s17049_s3 + $0xc0] sm:$0xff] }
 0x6fa   :  { %8225 = vmatprep.subr.bf16.mxu1 %v8224_v8  ;;  %v1768_v8 = vld [vmem:[%s17049_s3 + $0xf0] sm:$0xff]  ;;  %v8242_v14 = vpack.c.bf16 %v1766_v2, %v1762_v1  ;;  %v1973_v1 = vld [vmem:[%s17050_s4 + $0x8] sm:$0xff] }
 0x6fb   :  { %v8274_v15 = vpack.c.bf16 %v1768_v8, %v1764_v7  ;;  %v1976_v7 = vld [vmem:[%s17050_s4 + $0x20] sm:$0xff]  ;;  %v1977_v8 = vld [vmem:[%s17050_s4 + $0x28] sm:$0xff] }
 0x6fc   :  { %v8299_v9 = vpack.c.bf16 %v1977_v8, %v1976_v7  ;;  %v6744_v7 = vld [vmem:[%s17060_s1 + $0x38] sm:$0xff] }
 0x6fd   :  { %8227 = vmatpush1.bf16.msra.mxu1 %v8226_v17  ;;  %v1774_v17 = vld [vmem:[%s17049_s3 + $0x120] sm:$0xff] }
 0x6fe   :  { %8261 = vmatprep.subr.bf16.mxu1 %v8260_v22  ;;  %v1776_v22 = vld [vmem:[%s17049_s3 + $0x130] sm:$0xff]  ;;  %v8246_v27 = vpack.c.bf16 %v1774_v17, %v1770_v16 }
 0x6ff   :  { %v8278_v28 = vpack.c.bf16 %v1776_v22, %v1772_v20  ;;  %v1982_v17 = vld [vmem:[%s17050_s4 + $0x50] sm:$0xff]  ;;  %v1984_v20 = vld [vmem:[%s17050_s4 + $0x60] sm:$0xff]  ;;  %v1985_v22 = vld [vmem:[%s17050_s4 + $0x68] sm:$0xff] }
 0x793   :  { %v1421_v23 = vpop.f32.mrb[10].mxu1 }
 0x794   :  { %v1422_v25 = vadd.f32 %v10168_v24, %v1421_v23  ;;  %v7263_v26 = vpop.f32.mrb[11].mxu1  ;;  %v1779_v23 = vld [vmem:[%s17049_s3 + $0x148] sm:$0xff] }
 0x795   :  { %v1783_v24 = vld [vmem:[%s17049_s3 + $0x168] sm:$0xff]  ;;  %v1785_v26 = vld [vmem:[%s17049_s3 + $0x178] sm:$0xff] }
 0x796   :  { %9921 = vtanh.f32 %v1422_v25  ;;  %v1781_v25 = vld [vmem:[%s17049_s3 + $0x158] sm:$0xff]  ;;  %v8248_v31 = vpack.c.bf16 %v1783_v24, %v1779_v23  ;;  %v8311_v23 = vpack.c.bf16 %v1985_v22, %v1984_v20  ;;  %v1986_v24 = vld [vmem:[%s17050_s4 + $0x70] sm:$0xff] }
 0x797   :  { %v8280_v32 = vpack.c.bf16 %v1785_v26, %v1781_v25  ;;  %v1987_v25 = vld [vmem:[%s17050_s4 + $0x78] sm:$0xff] }
 0x798   :  { %v8314_v26 = vpack.c.bf16 %v1987_v25, %v1986_v24  ;;  %v6750_v25 = vld [vmem:[%s17052_s0 + $0x40] sm:$0xff] }
 0x7a0   :  { %v9922_v45 = vpop.eup %9921 }
 0x7a1   :  { %1624 = vmatmul.mubr.f32.vlgmr.msra.gmra.mrb[12].mxu0 %v9922_v45  ;;  %1695 = vmatmul.mubr.f32.vlgmr.msra.gmra.mrb[12].mxu1 %v9922_v45  ;;  %v8284_v45 = vpack.c.bf16 %v1793_v39, %v1789_v36  ;;  %v2065_v36 = vld [vmem:[%s17051_s6 + $0x30] sm:$0xff]  ;;  %v2068_v39 = vld [vmem:[%s17051_s6 + $0x48] sm:$0xff] }
 0x7a2   :  { %8231 = vmatpush1.bf16.msra.mxu0 %v8230_v38  ;;  %8263 = vmatpush1.bf16.msra.mxu1 %v8262_v35  ;;  %v1787_v38 = vld [vmem:[%s17049_s3 + $0x188] sm:$0xff] }
 0x7a3   :  { %8233 = vmatprep.subr.bf16.mxu0 %v8232_v40  ;;  %8265 = vmatprep.subr.bf16.mxu1 %v8264_v41  ;;  %v1791_v35 = vld [vmem:[%s17049_s3 + $0x1a8] sm:$0xff]  ;;  %v8250_v40 = vpack.c.bf16 %v1782_v30, %v1778_v29  ;;  %v8282_v41 = vpack.c.bf16 %v1784_v34, %v1780_v33  ;;  %v2059_v29 = vld [vmem:[%s17051_s6] sm:$0xff]  ;;  %v2066_v33 = vld [vmem:[%s17051_s6 + $0x38] sm:$0xff] }
 0x7a4   :  { %1866 = vmatprep.mubr.f32.mxu0 %v10181_v3  ;;  %1937 = vmatprep.mubr.f32.mxu1 %v10181_v3  ;;  %v8252_v44 = vpack.c.bf16 %v1791_v35, %v1787_v38  ;;  %v2063_v35 = vld [vmem:[%s17051_s6 + $0x20] sm:$0xff] }
 0x7a6   :  { %8235 = vmatpush1.bf16.msra.mxu0 %v8234_v49  ;;  %8267 = vmatpush1.bf16.msra.mxu1 %v8266_v51  ;;  %v1799_v49 = vld [vmem:[%s17049_s3 + $0x1e8] sm:$0xff]  ;;  %v1797_v51 = vld [vmem:[%s17049_s3 + $0x1d8] sm:$0xff] }
 0x7a7   :  { %8237 = vmatprep.subr.bf16.mxu0 %v8236_v55  ;;  %8269 = vmatprep.subr.bf16.mxu1 %v8268_v57  ;;  %v8286_v55 = vpack.c.bf16 %v1792_v47, %v1788_v46  ;;  %v1794_v57 = vld [vmem:[%s17049_s3 + $0x1c0] sm:$0xff]  ;;  %v8256_v58 = vpack.c.bf16 %v1799_v49, %v1795_v48  ;;  %v8288_v59 = vpack.c.bf16 %v1801_v52, %v1797_v51  ;;  %v2074_v46 = vld [vmem:[%s17051_s6 + $0x78] sm:$0xff]  ;;  %v2073_v51 = vld [vmem:[%s17051_s6 + $0x70] sm:$0xff] }
 0x7a8   :  { %v8258_v56 = vpack.c.bf16 %v1798_v60, %v1794_v57  ;;  %v2071_v49 = vld [vmem:[%s17051_s6 + $0x60] sm:$0xff]  ;;  %v2076_v52 = vld [vmem:[%s17051_s6 + $0x88] sm:$0xff] }
 0x7aa   :  { %8239 = vmatpush1.bf16.msra.mxu0 %v8238_v63  ;;  %8271 = vmatpush1.bf16.msra.mxu1 %v8270_v0  ;;  %v8290_v63 = vpack.c.bf16 %v1800_v62, %v1796_v61  ;;  %v1972_v0 = vld [vmem:[%s17050_s4] sm:$0xff]  ;;  %v6742_v62 = vld [vmem:[%s17060_s1 + $0x28] sm:$0xff] }
 0x7ab   :  { %8241 = vmatprep.subr.bf16.mxu0 %v8240_v4  ;;  %8273 = vmatprep.subr.bf16.mxu1 %v8272_v5  ;;  %v8293_v2 = vpack.c.bf16 %v1973_v1, %v1972_v0  ;;  %v1975_v4 = vld [vmem:[%s17050_s4 + $0x18] sm:$0xff]  ;;  %v6741_v61 = vld [vmem:[%s17060_s1 + $0x20] sm:$0xff] }
 0x7ae   :  { %8243 = vmatpush1.bf16.msra.mxu0 %v8242_v14  ;;  %8275 = vmatpush1.bf16.msra.mxu1 %v8274_v15  ;;  %v1980_v14 = vld [vmem:[%s17050_s4 + $0x40] sm:$0xff]  ;;  %v1981_v15 = vld [vmem:[%s17050_s4 + $0x48] sm:$0xff] }
 0x7af   :  { %8245 = vmatprep.subr.bf16.mxu0 %v8244_v18  ;;  %8277 = vmatprep.subr.bf16.mxu1 %v8276_v19  ;;  %v8305_v16 = vpack.c.bf16 %v1981_v15, %v1980_v14  ;;  %v1983_v18 = vld [vmem:[%s17050_s4 + $0x58] sm:$0xff] }
 0x7b0   :  { %v8308_v19 = vpack.c.bf16 %v1983_v18, %v1982_v17 }
 0x7b2   :  { %8247 = vmatpush1.bf16.msra.mxu0 %v8246_v27  ;;  %8279 = vmatpush1.bf16.msra.mxu1 %v8278_v28  ;;  %v2060_v27 = vld [vmem:[%s17051_s6 + $0x8] sm:$0xff]  ;;  %v2062_v28 = vld [vmem:[%s17051_s6 + $0x18] sm:$0xff] }
 0x7b3   :  { %8249 = vmatprep.subr.bf16.mxu0 %v8248_v31  ;;  %8281 = vmatprep.subr.bf16.mxu1 %v8280_v32  ;;  %v8316_v30 = vpack.c.bf16 %v2062_v28, %v2060_v27  ;;  %v2061_v31 = vld [vmem:[%s17051_s6 + $0x10] sm:$0xff]  ;;  %v2064_v32 = vld [vmem:[%s17051_s6 + $0x28] sm:$0xff] }
 0x7b4   :  { %v8318_v34 = vpack.c.bf16 %v2061_v31, %v2059_v29  ;;  %v8320_v38 = vpack.c.bf16 %v2066_v33, %v2064_v32 }
 0x7b6   :  { %8251 = vmatpush1.bf16.msra.mxu0 %v8250_v40  ;;  %8283 = vmatpush1.bf16.msra.mxu1 %v8282_v41  ;;  %v2070_v40 = vld [vmem:[%s17051_s6 + $0x58] sm:$0xff]  ;;  %v8322_v41 = vpack.c.bf16 %v2065_v36, %v2063_v35  ;;  %v6752_v36 = vld [vmem:[%s17052_s0 + $0x50] sm:$0xff] }
 0x7b7   :  { %8253 = vmatprep.subr.bf16.mxu0 %v8252_v44  ;;  %8285 = vmatprep.subr.bf16.mxu1 %v8284_v45  ;;  %v8324_v42 = vpack.c.bf16 %v2070_v40, %v2068_v39  ;;  %v2069_v44 = vld [vmem:[%s17051_s6 + $0x50] sm:$0xff]  ;;  %v2072_v45 = vld [vmem:[%s17051_s6 + $0x68] sm:$0xff] }
 0x7b8   :  { %v8326_v47 = vpack.c.bf16 %v2069_v44, %v2067_v43  ;;  %v8328_v48 = vpack.c.bf16 %v2074_v46, %v2072_v45 }
 0x7ba   :  { %8255 = vmatpush1.bf16.msra.mxu0 %v8254_v53  ;;  %8287 = vmatpush1.bf16.msra.mxu1 %v8286_v55  ;;  %v2078_v53 = vld [vmem:[%s17051_s6 + $0x98] sm:$0xff]  ;;  %v8330_v55 = vpack.c.bf16 %v2073_v51, %v2071_v49 }
 0x7bb   :  { %8257 = vmatprep.subr.bf16.mxu0 %v8256_v58  ;;  %8289 = vmatprep.subr.bf16.mxu1 %v8288_v59  ;;  %v8332_v57 = vpack.c.bf16 %v2078_v53, %v2076_v52  ;;  %v2075_v58 = vld [vmem:[%s17051_s6 + $0x80] sm:$0xff]  ;;  %v2077_v59 = vld [vmem:[%s17051_s6 + $0x90] sm:$0xff] }
 0x7bc   :  { %v8334_v60 = vpack.c.bf16 %v2077_v59, %v2075_v58 }
 0x7be   :  { %8259 = vmatpush1.bf16.msra.mxu0 %v8258_v56  ;;  %8291 = vmatpush1.bf16.msra.mxu1 %v8290_v63 }
 0x7bf   :  { %8292 = vmatprep.subr.bf16.mxu0 %v10182_v37  ;;  %8317 = vmatprep.subr.bf16.mxu1 %v8316_v30 }
 0x7c1   :  { %1867 = vmatmul.mubr.f32.vlgmr.msra.gmra.mrb[14].mxu0 %v11437_v54  ;;  %1938 = vmatmul.mubr.f32.vlgmr.msra.gmra.mrb[14].mxu1 %v11437_v54  ;;  %v1974_v54 = vld [vmem:[%s17050_s4 + $0x10] sm:$0xff] }
 0x7c2   :  { %7296 = vmatprep.mubr.msk.f32.mxu0 %vm10183_vm0, %v10181_v3  ;;  %2155 = vmatprep.mubr.f32.mxu1 %v10181_v3  ;;  %v8296_v5 = vpack.c.bf16 %v1975_v4, %v1974_v54 }
 0x7c3   :  { %8294 = vmatpush3.bf16.msra.mxu0 %v8293_v2  ;;  %8319 = vmatpush1.bf16.msra.mxu1 %v8318_v34 }
 0x7c4   :  { %8295 = vmatprep.subr.bf16.mxu0 %v10182_v37  ;;  %8321 = vmatprep.subr.bf16.mxu1 %v8320_v38  ;;  %v6753_v38 = vld [vmem:[%s17052_s0 + $0x58] sm:$0xff] }
 0x7c7   :  { %8297 = vmatpush3.bf16.msra.mxu0 %v8296_v5  ;;  %8323 = vmatpush1.bf16.msra.mxu1 %v8322_v41 }
 0x7c8   :  { %8298 = vmatprep.subr.bf16.mxu0 %v10182_v37  ;;  %8325 = vmatprep.subr.bf16.mxu1 %v8324_v42 }
 0x7cb   :  { %8300 = vmatpush3.bf16.msra.mxu0 %v8299_v9  ;;  %8327 = vmatpush1.bf16.msra.mxu1 %v8326_v47  ;;  %v6743_v9 = vld [vmem:[%s17060_s1 + $0x30] sm:$0xff] }
 0x7cc   :  { %8301 = vmatprep.subr.bf16.mxu0 %v10182_v37  ;;  %8329 = vmatprep.subr.bf16.mxu1 %v8328_v48 }
 0x7cf   :  { %8303 = vmatpush3.bf16.msra.mxu0 %v8302_v12  ;;  %8331 = vmatpush1.bf16.msra.mxu1 %v8330_v55 }
 0x7d0   :  { %8304 = vmatprep.subr.bf16.mxu0 %v10182_v37  ;;  %8333 = vmatprep.subr.bf16.mxu1 %v8332_v57 }
 0x7d3   :  { %8306 = vmatpush3.bf16.msra.mxu0 %v8305_v16  ;;  %8335 = vmatpush1.bf16.msra.mxu1 %v8334_v60 }
 0x7d4   :  { %8307 = vmatprep.subr.bf16.mxu0 %v10182_v37 }
 0x7d7   :  { %8309 = vmatpush3.bf16.msra.mxu0 %v8308_v19 }
 0x7d8   :  { %8310 = vmatprep.subr.bf16.mxu0 %v10182_v37 }
 0x7db   :  { %8312 = vmatpush3.bf16.msra.mxu0 %v8311_v23 }
 0x7dc   :  { %8313 = vmatprep.subr.bf16.mxu0 %v10182_v37 }
 0x7df   :  { %8315 = vmatpush3.bf16.msra.mxu0 %v8314_v26  ;;  %v6751_v26 = vld [vmem:[%s17052_s0 + $0x48] sm:$0xff] }
 0x7e0   :  { %8348 = vmatprep.subr.bf16.mxu0 %v10182_v37 }
 0x874   :  { %v1625_v56 = vpop.f32.mrb[12].mxu0  ;;  %v1696_v63 = vpop.f32.mrb[12].mxu1 }
 0x875   :  { %v1701_v0 = vadd.f32 %v6741_v61, %v1625_v56  ;;  %v1627_v1 = vpop.f32.mrb[13].mxu0  ;;  %v1698_v2 = vpop.f32.mrb[13].mxu1  ;;  %v1703_v11 = vadd.f32 %v6743_v9, %v1696_v63  ;;  %v2079_v63 = vld [vmem:[%s17051_s6 + $0xa0] sm:$0xff]  ;;  %v2090_v9 = vld [vmem:[%s17051_s6 + $0xf8] sm:$0xff] }
 0x876   :  { %v1702_v54 = vadd.f32 %v6742_v62, %v1627_v1  ;;  %v1704_v8 = vadd.f32 %v6744_v7, %v1698_v2  ;;  %v2082_v62 = vld [vmem:[%s17051_s6 + $0xb8] sm:$0xff]  ;;  %v2084_v2 = vld [vmem:[%s17051_s6 + $0xc8] sm:$0xff]  ;;  %v2085_v7 = vld [vmem:[%s17051_s6 + $0xd0] sm:$0xff] }
 0x877   :  { %v6745_v4 = vmul.f32 -1.442695, %v1701_v0  ;;  %v2081_v0 = vld [vmem:[%s17051_s6 + $0xb0] sm:$0xff] }
 0x878   :  { %v6746_v5 = vmul.f32 -1.442695, %v1702_v54  ;;  %v6747_v10 = vmul.f32 -1.442695, %v1704_v8  ;;  %v8338_v1 = vpack.c.bf16 %v2081_v0, %v2079_v63  ;;  %v2086_v54 = vld [vmem:[%s17051_s6 + $0xd8] sm:$0xff]  ;;  %v2088_v8 = vld [vmem:[%s17051_s6 + $0xe8] sm:$0xff] }
 0x879   :  { %9923 = vpow2.f32 %v6745_v4  ;;  %v2083_v4 = vld [vmem:[%s17051_s6 + $0xc0] sm:$0xff] }
 0x87a   :  { %9925 = vpow2.f32 %v6746_v5  ;;  %v8340_v5 = vpack.c.bf16 %v2086_v54, %v2084_v2  ;;  %v2269_v63 = vld [vmem:[%s17056_s10 + $0x40] sm:$0xff]  ;;  %v2278_v2 = vld [vmem:[%s17056_s10 + $0x88] sm:$0xff] }
 0x87b   :  { %9927 = vpow2.f32 %v6747_v10  ;;  %v8342_v10 = vpack.c.bf16 %v2085_v7, %v2083_v4  ;;  %v2273_v0 = vld [vmem:[%s17056_s10 + $0x60] sm:$0xff]  ;;  %v2282_v54 = vld [vmem:[%s17056_s10 + $0xa8] sm:$0xff] }
 0x87c   :  { %9929 = vtanh.f32 %v1703_v11  ;;  %v8344_v11 = vpack.c.bf16 %v2090_v9, %v2088_v8  ;;  %v8380_v4 = vpack.c.bf16 %v2282_v54, %v2278_v2  ;;  %v2281_v7 = vld [vmem:[%s17056_s10 + $0xa0] sm:$0xff]  ;;  %v2286_v9 = vld [vmem:[%s17056_s10 + $0xc8] sm:$0xff] }
 0x87d   :  { %v2349_v54 = vld [vmem:[%s17056_s10 + $0x2c0] sm:$0xff] }
 0x883   :  { %v9924_v12 = vpop.eup %9923 }
 0x884   :  { %v9926_v14 = vpop.eup %9925  ;;  %v1708_v15 = vadd.f32 1.0, %v9924_v12  ;;  %v2087_v12 = vld [vmem:[%s17051_s6 + $0xe0] sm:$0xff] }
 0x885   :  { %v1714_v16 = vadd.f32 1.0, %v9926_v14  ;;  %v9928_v17 = vpop.eup %9927  ;;  %v2089_v14 = vld [vmem:[%s17051_s6 + $0xf0] sm:$0xff] }
 0x886   :  { %9931 = vrcp.f32 %v1708_v15  ;;  %v9930_v18 = vpop.eup %9929  ;;  %v1721_v23 = vadd.f32 1.0, %v9928_v17  ;;  %v8346_v15 = vpack.c.bf16 %v2089_v14, %v2087_v12  ;;  %v2170_v17 = vld [vmem:[%s17054_s8 + $0x8] sm:$0xff]  ;;  %v2285_v12 = vld [vmem:[%s17056_s10 + $0xc0] sm:$0xff] }
 0x887   :  { %9933 = vrcp.f32 %v1714_v16  ;;  %v2169_v16 = vld [vmem:[%s17054_s8] sm:$0xff] }
 0x888   :  { %9935 = vrcp.f32 %v1721_v23  ;;  %v2289_v14 = vld [vmem:[%s17056_s10 + $0xe0] sm:$0xff] }
 0x890   :  { %v9932_v19 = vpop.eup %9931 }
 0x891   :  { %v9934_v20 = vpop.eup %9933  ;;  %v1725_v22 = vmul.f32 %v9932_v19, %v9930_v18  ;;  %v2171_v18 = vld [vmem:[%s17054_s8 + $0x10] sm:$0xff]  ;;  %v8349_v19 = vpack.c.bf16 %v2170_v17, %v2169_v16  ;;  %v2294_v16 = vld [vmem:[%s17056_s10 + $0x108] sm:$0xff] }
 0x892   :  { %v1724_v24 = vmul.f32 %v9934_v20, %v11418_v21  ;;  %v9936_v39 = vpop.eup %9935  ;;  %v2172_v20 = vld [vmem:[%s17054_s8 + $0x18] sm:$0xff]  ;;  %v2298_v17 = vld [vmem:[%s17056_s10 + $0x128] sm:$0xff] }
 0x894   :  { %v1868_v27 = vpop.f32.mrb[14].mxu0  ;;  %v1939_v28 = vpop.f32.mrb[14].mxu1  ;;  %v12269_v29 = vadd.f32 %v1725_v22, %v1724_v24  ;;  %v8352_v22 = vpack.c.bf16 %v2172_v20, %v2171_v18  ;;  %v10169_v24 = vld [vmem:[%s17055_s5] ss:$0 sm:$0xff]  ;;  %v8388_v18 = vpack.c.bf16 %v2298_v17, %v2294_v16 }
 0x895   :  { %v1944_v30 = vadd.f32 %v6750_v25, %v1868_v27  ;;  %v1870_v31 = vpop.f32.mrb[15].mxu0  ;;  %v1941_v32 = vpop.f32.mrb[15].mxu1  ;;  %v1946_v42 = vadd.f32 %v6752_v36, %v1939_v28  ;;  %v2173_v28 = vld [vmem:[%s17054_s8 + $0x20] sm:$0xff]  ;;  %v2179_v36 = vld [vmem:[%s17054_s8 + $0x50] sm:$0xff] }
 0x896   :  { %v1945_v33 = vadd.f32 %v6751_v26, %v1870_v31  ;;  %9937 = vtanh.f32 %v12269_v29  ;;  %v1947_v35 = vadd.f32 %v6753_v38, %v1941_v32  ;;  %v2175_v32 = vld [vmem:[%s17054_s8 + $0x30] sm:$0xff]  ;;  %v2178_v38 = vld [vmem:[%s17054_s8 + $0x48] sm:$0xff]  ;;  %v2297_v20 = vld [vmem:[%s17056_s10 + $0x120] sm:$0xff] }
 0x897   :  { %v6754_v21 = vmul.f32 -1.442695, %v1944_v30  ;;  %v2174_v30 = vld [vmem:[%s17054_s8 + $0x28] sm:$0xff] }
 0x898   :  { %v6755_v34 = vmul.f32 -1.442695, %v1945_v33  ;;  %v6756_v41 = vmul.f32 -1.442695, %v1947_v35  ;;  %v8355_v31 = vpack.c.bf16 %v2174_v30, %v2173_v28  ;;  %v2176_v33 = vld [vmem:[%s17054_s8 + $0x38] sm:$0xff]  ;;  %v2310_v30 = vld [vmem:[%s17056_s10 + $0x188] sm:$0xff] }
 0x899   :  { %9939 = vpow2.f32 %v6754_v21  ;;  %v8358_v21 = vpack.c.bf16 %v2176_v33, %v2175_v32  ;;  %v2309_v33 = vld [vmem:[%s17056_s10 + $0x180] sm:$0xff] }
 0x89a   :  { %9941 = vpow2.f32 %v6755_v34  ;;  %v2177_v34 = vld [vmem:[%s17054_s8 + $0x40] sm:$0xff] }
 0x89b   :  { %9943 = vpow2.f32 %v6756_v41  ;;  %v8361_v35 = vpack.c.bf16 %v2178_v38, %v2177_v34  ;;  %v2181_v41 = vld [vmem:[%s17054_s8 + $0x60] sm:$0xff]  ;;  %v2318_v38 = vld [vmem:[%s17056_s10 + $0x1c8] sm:$0xff] }
 0x89c   :  { %9945 = vtanh.f32 %v1946_v42  ;;  %v2182_v42 = vld [vmem:[%s17054_s8 + $0x68] sm:$0xff] }
 0x8a0   :  { %v9938_v40 = vpop.eup %9937 }
 0x8a1   :  { %v12278_v43 = vmul.f32 %v9938_v40, %v9936_v39  ;;  %v2180_v39 = vld [vmem:[%s17054_s8 + $0x58] sm:$0xff] }
 0x8a2   :  { %v8364_v40 = vpack.c.bf16 %v2180_v39, %v2179_v36  ;;  %v2317_v39 = vld [vmem:[%s17056_s10 + $0x1c0] sm:$0xff] }
 0x8a3   :  { %v9940_v44 = vpop.eup %9939  ;;  %6749 = vst [vmem:[%s17061_s12 + $0x8] sm:$0xff] %v12278_v43 }
 0x8a4   :  { %v9942_v45 = vpop.eup %9941  ;;  %v1951_v46 = vadd.f32 1.0, %v9940_v44  ;;  %v8367_v44 = vpack.c.bf16 %v2182_v42, %v2181_v41  ;;  %v2326_v42 = vld [vmem:[%s17056_s10 + $0x208] sm:$0xff] }
 0x8a5   :  { %v1957_v47 = vadd.f32 1.0, %v9942_v45  ;;  %v9944_v48 = vpop.eup %9943  ;;  %v2183_v45 = vld [vmem:[%s17054_s8 + $0x70] sm:$0xff] }
 0x8a6   :  { %9947 = vrcp.f32 %v1951_v46  ;;  %v9946_v49 = vpop.eup %9945  ;;  %v1964_v55 = vadd.f32 1.0, %v9944_v48  ;;  %v2184_v46 = vld [vmem:[%s17054_s8 + $0x78] sm:$0xff]  ;;  %v2262_v48 = vld [vmem:[%s17056_s10 + $0x8] sm:$0xff] }
 0x8a7   :  { %9949 = vrcp.f32 %v1957_v47  ;;  %v8370_v47 = vpack.c.bf16 %v2184_v46, %v2183_v45  ;;  %v2325_v46 = vld [vmem:[%s17056_s10 + $0x200] sm:$0xff] }
 0x8a8   :  { %9951 = vrcp.f32 %v1964_v55  ;;  %v2261_v55 = vld [vmem:[%s17056_s10] sm:$0xff] }
 0x8b0   :  { %v9948_v51 = vpop.eup %9947 }
 0x8b1   :  { %v9950_v52 = vpop.eup %9949  ;;  %v1968_v53 = vmul.f32 %v9948_v51, %v9946_v49  ;;  %v2266_v49 = vld [vmem:[%s17056_s10 + $0x28] sm:$0xff]  ;;  %v2264_v51 = vld [vmem:[%s17056_s10 + $0x18] sm:$0xff] }
 0x8b2   :  { %v1967_v57 = vmul.f32 %v9950_v52, %v11434_v50  ;;  %v9952_v59 = vpop.eup %9951  ;;  %v2080_v50 = vld [vmem:[%s17051_s6 + $0xa8] sm:$0xff]  ;;  %v8372_v52 = vpack.c.bf16 %v2266_v49, %v2262_v48 }
 0x8b3   :  { %v8336_v56 = vpack.c.bf16 %v2082_v62, %v2080_v50  ;;  %v2270_v50 = vld [vmem:[%s17056_s10 + $0x48] sm:$0xff] }
 0x8b4   :  { %v12285_v58 = vadd.f32 %v1968_v53, %v1967_v57  ;;  %v2268_v53 = vld [vmem:[%s17056_s10 + $0x38] sm:$0xff]  ;;  %v2265_v57 = vld [vmem:[%s17056_s10 + $0x20] sm:$0xff]  ;;  %v2274_v62 = vld [vmem:[%s17056_s10 + $0x68] sm:$0xff] }
 0x8b5   :  { %8337 = vmatprep.subr.bf16.mxu1 %v8336_v56  ;;  %v8376_v56 = vpack.c.bf16 %v2274_v62, %v2270_v50  ;;  %v2334_v49 = vld [vmem:[%s17056_s10 + $0x248] sm:$0xff]  ;;  %v2341_v62 = vld [vmem:[%s17056_s10 + $0x280] sm:$0xff] }
 0x8b6   :  { %9953 = vtanh.f32 %v12285_v58  ;;  %8339 = vmatpush1.bf16.msra.mxu1 %v8338_v1  ;;  %v8378_v1 = vpack.c.bf16 %v2273_v0, %v2269_v63  ;;  %v2350_v0 = vld [vmem:[%s17056_s10 + $0x2c8] sm:$0xff] }
 0x8b7   :  { %8341 = vmatprep.subr.bf16.mxu1 %v8340_v5  ;;  %v2277_v5 = vld [vmem:[%s17056_s10 + $0x80] sm:$0xff] }
 0x8b8   :  { %v8382_v8 = vpack.c.bf16 %v2281_v7, %v2277_v5  ;;  %v2358_v7 = vld [vmem:[%s17056_s10 + $0x308] sm:$0xff] }
 0x8ba   :  { %8343 = vmatpush1.bf16.msra.mxu1 %v8342_v10  ;;  %v2290_v10 = vld [vmem:[%s17056_s10 + $0xe8] sm:$0xff] }
 0x8bb   :  { %8345 = vmatprep.subr.bf16.mxu1 %v8344_v11  ;;  %v8384_v11 = vpack.c.bf16 %v2290_v10, %v2286_v9  ;;  %v2357_v10 = vld [vmem:[%s17056_s10 + $0x300] sm:$0xff] }
 0x8be   :  { %8347 = vmatpush1.bf16.msra.mxu1 %v8346_v15  ;;  %v8386_v15 = vpack.c.bf16 %v2289_v14, %v2285_v12 }
 0x8bf   :  { %8373 = vmatprep.subr.bf16.mxu1 %v8372_v52 }
 0x8c0   :  { %v9954_v60 = vpop.eup %9953 }
 0x8c1   :  { %v12288_v61 = vmul.f32 %v9954_v60, %v9952_v59  ;;  %v8436_v59 = vpack.c.bf16 %v2268_v53, %v2264_v51  ;;  %v8374_v60 = vpack.c.bf16 %v2265_v57, %v2261_v55  ;;  %v2338_v51 = vld [vmem:[%s17056_s10 + $0x268] sm:$0xff]  ;;  %v2333_v53 = vld [vmem:[%s17056_s10 + $0x240] sm:$0xff] }
 0x8c2   :  { %v8408_v52 = vpack.c.bf16 %v2338_v51, %v2334_v49  ;;  %v2337_v55 = vld [vmem:[%s17056_s10 + $0x260] sm:$0xff]  ;;  %v2295_v51 = vld [vmem:[%s17056_s10 + $0x110] sm:$0xff] }
 0x8c3   :  { %7297 = vmatmul.mubr.f32.vlgmr.msra.gmra.mrb[16].mxu0 %v12288_v61  ;;  %6765 = vst [vmem:[%s17053_s11 + $0x10] sm:$0xff] %v12288_v61  ;;  %v8410_v57 = vpack.c.bf16 %v2337_v55, %v2333_v53  ;;  %v2304_v53 = vld [vmem:[%s17056_s10 + $0x158] sm:$0xff] }
 0x8c4   :  { %7331 = vmatprep.mubr.msk.f32.mxu0 %vm10183_vm0, %v10181_v3  ;;  %8350 = vmatpush3.bf16.msra.mxu0 %v8349_v19  ;;  %v2293_v19 = vld [vmem:[%s17056_s10 + $0x100] sm:$0xff]  ;;  %v2308_v55 = vld [vmem:[%s17056_s10 + $0x178] sm:$0xff] }
 0x8c5   :  { %8351 = vmatprep.subr.bf16.mxu0 %v10182_v37 }
 0x8c8   :  { %8353 = vmatpush3.bf16.msra.mxu0 %v8352_v22  ;;  %v8390_v22 = vpack.c.bf16 %v2297_v20, %v2293_v19  ;;  %v6757_v19 = vld [vmem:[%s17058_s2 + $0x10] sm:$0xff] }
 0x8c9   :  { %8354 = vmatprep.subr.bf16.mxu0 %v10182_v37  ;;  %v2263_v20 = vld [vmem:[%s17056_s10 + $0x10] sm:$0xff] }
 0x8cc   :  { %8356 = vmatpush3.bf16.msra.mxu0 %v8355_v31  ;;  %v2314_v31 = vld [vmem:[%s17056_s10 + $0x1a8] sm:$0xff] }
 0x8cd   :  { %8357 = vmatprep.subr.bf16.mxu0 %v10182_v37  ;;  %v8396_v32 = vpack.c.bf16 %v2314_v31, %v2310_v30 }
 0x8d0   :  { %8359 = vmatpush3.bf16.msra.mxu0 %v8358_v21  ;;  %v2313_v21 = vld [vmem:[%s17056_s10 + $0x1a0] sm:$0xff] }
 0x8d1   :  { %8360 = vmatprep.subr.bf16.mxu0 %v10182_v37  ;;  %v8398_v34 = vpack.c.bf16 %v2313_v21, %v2309_v33  ;;  %v2275_v33 = vld [vmem:[%s17056_s10 + $0x70] sm:$0xff]  ;;  %v2280_v21 = vld [vmem:[%s17056_s10 + $0x98] sm:$0xff] }
 0x8d4   :  { %8362 = vmatpush3.bf16.msra.mxu0 %v8361_v35  ;;  %v2322_v35 = vld [vmem:[%s17056_s10 + $0x1e8] sm:$0xff] }
 0x8d5   :  { %8363 = vmatprep.subr.bf16.mxu0 %v10182_v37  ;;  %v8400_v36 = vpack.c.bf16 %v2322_v35, %v2318_v38 }
 0x8d8   :  { %8365 = vmatpush3.bf16.msra.mxu0 %v8364_v40  ;;  %v2321_v40 = vld [vmem:[%s17056_s10 + $0x1e0] sm:$0xff] }
 0x8d9   :  { %8366 = vmatprep.subr.bf16.mxu0 %v10182_v37  ;;  %v8402_v41 = vpack.c.bf16 %v2321_v40, %v2317_v39  ;;  %v2283_v39 = vld [vmem:[%s17056_s10 + $0xb0] sm:$0xff]  ;;  %v2288_v40 = vld [vmem:[%s17056_s10 + $0xd8] sm:$0xff] }
 0x8dc   :  { %8368 = vmatpush3.bf16.msra.mxu0 %v8367_v44  ;;  %v2330_v44 = vld [vmem:[%s17056_s10 + $0x228] sm:$0xff] }
 0x8dd   :  { %8369 = vmatprep.subr.bf16.mxu0 %v10182_v37  ;;  %v8404_v45 = vpack.c.bf16 %v2330_v44, %v2326_v42  ;;  %v2287_v44 = vld [vmem:[%s17056_s10 + $0xd0] sm:$0xff] }
 0x8e0   :  { %8371 = vmatpush3.bf16.msra.mxu0 %v8370_v47  ;;  %v2329_v47 = vld [vmem:[%s17056_s10 + $0x220] sm:$0xff] }
 0x8e1   :  { %8437 = vmatprep.subr.bf16.mxu0 %v8436_v59  ;;  %v8406_v48 = vpack.c.bf16 %v2329_v47, %v2325_v46  ;;  %v2342_v59 = vld [vmem:[%s17056_s10 + $0x288] sm:$0xff]  ;;  %v2296_v46 = vld [vmem:[%s17056_s10 + $0x118] sm:$0xff] }
 0x8e2   :  { %v2300_v47 = vld [vmem:[%s17056_s10 + $0x138] sm:$0xff] }
 0x8e3   :  { %v8452_v49 = vpack.c.bf16 %v2300_v47, %v2296_v46  ;;  %v2368_v46 = vld [vmem:[%s17056_s10 + $0x358] sm:$0xff] }
 0x996   :  { %v2054_v23 = vpop.f32.mrb[16].mxu0 }
 0x997   :  { %v2055_v25 = vadd.f32 %v10169_v24, %v2054_v23  ;;  %v7298_v26 = vpop.f32.mrb[17].mxu0  ;;  %v2302_v23 = vld [vmem:[%s17056_s10 + $0x148] sm:$0xff] }
 0x998   :  { %v2306_v24 = vld [vmem:[%s17056_s10 + $0x168] sm:$0xff]  ;;  %v2301_v26 = vld [vmem:[%s17056_s10 + $0x140] sm:$0xff] }
 0x999   :  { %9955 = vtanh.f32 %v2055_v25  ;;  %v8392_v25 = vpack.c.bf16 %v2306_v24, %v2302_v23  ;;  %v2272_v24 = vld [vmem:[%s17056_s10 + $0x58] sm:$0xff] }
 0x9a3   :  { %v9956_v27 = vpop.eup %9955 }
 0x9a4   :  { %2156 = vmatmul.mubr.f32.vlgmr.msra.gmra.mrb[16].mxu1 %v9956_v27  ;;  %v2305_v27 = vld [vmem:[%s17056_s10 + $0x160] sm:$0xff] }
 0x9a5   :  { %2453 = vmatprep.mubr.f32.mxu1 %v12278_v43  ;;  %8375 = vmatpush1.bf16.msra.mxu1 %v8374_v60  ;;  %v8394_v28 = vpack.c.bf16 %v2305_v27, %v2301_v26  ;;  %v2346_v60 = vld [vmem:[%s17056_s10 + $0x2a8] sm:$0xff] }
 0x9a6   :  { %8377 = vmatprep.subr.bf16.mxu1 %v8376_v56  ;;  %v8412_v50 = vpack.c.bf16 %v2346_v60, %v2342_v59  ;;  %v2345_v56 = vld [vmem:[%s17056_s10 + $0x2a0] sm:$0xff]  ;;  %v8456_v59 = vpack.c.bf16 %v2308_v55, %v2304_v53  ;;  %v2303_v60 = vld [vmem:[%s17056_s10 + $0x150] sm:$0xff] }
 0x9a7   :  { %v8414_v63 = vpack.c.bf16 %v2345_v56, %v2341_v62  ;;  %v2312_v62 = vld [vmem:[%s17056_s10 + $0x198] sm:$0xff]  ;;  %v2367_v55 = vld [vmem:[%s17056_s10 + $0x350] sm:$0xff] }
 0x9a8   :  { %v2316_v56 = vld [vmem:[%s17056_s10 + $0x1b8] sm:$0xff] }
 0x9a9   :  { %8379 = vmatpush1.bf16.msra.mxu1 %v8378_v1  ;;  %v2354_v1 = vld [vmem:[%s17056_s10 + $0x2e8] sm:$0xff] }
 0x9aa   :  { %8381 = vmatprep.subr.bf16.mxu1 %v8380_v4  ;;  %v8416_v2 = vpack.c.bf16 %v2354_v1, %v2350_v0  ;;  %v2353_v4 = vld [vmem:[%s17056_s10 + $0x2e0] sm:$0xff]  ;;  %v8460_v0 = vpack.c.bf16 %v2316_v56, %v2312_v62  ;;  %v2311_v1 = vld [vmem:[%s17056_s10 + $0x190] sm:$0xff]  ;;  %v2376_v62 = vld [vmem:[%s17056_s10 + $0x398] sm:$0xff] }
 0x9ab   :  { %v8418_v5 = vpack.c.bf16 %v2353_v4, %v2349_v54  ;;  %v2320_v54 = vld [vmem:[%s17056_s10 + $0x1d8] sm:$0xff] }
 0x9ac   :  { %v2324_v4 = vld [vmem:[%s17056_s10 + $0x1f8] sm:$0xff] }
 0x9ad   :  { %8383 = vmatpush1.bf16.msra.mxu1 %v8382_v8  ;;  %v2362_v8 = vld [vmem:[%s17056_s10 + $0x328] sm:$0xff] }
 0x9ae   :  { %8385 = vmatprep.subr.bf16.mxu1 %v8384_v11  ;;  %v8420_v9 = vpack.c.bf16 %v2362_v8, %v2358_v7  ;;  %v2361_v11 = vld [vmem:[%s17056_s10 + $0x320] sm:$0xff]  ;;  %v8464_v7 = vpack.c.bf16 %v2324_v4, %v2320_v54  ;;  %v2319_v8 = vld [vmem:[%s17056_s10 + $0x1d0] sm:$0xff] }
 0x9af   :  { %v8422_v12 = vpack.c.bf16 %v2361_v11, %v2357_v10  ;;  %v2328_v10 = vld [vmem:[%s17056_s10 + $0x218] sm:$0xff]  ;;  %v2375_v4 = vld [vmem:[%s17056_s10 + $0x390] sm:$0xff] }
 0x9b0   :  { %v2332_v11 = vld [vmem:[%s17056_s10 + $0x238] sm:$0xff] }
 0x9b1   :  { %8387 = vmatpush1.bf16.msra.mxu1 %v8386_v15 }
 0x9b2   :  { %8389 = vmatprep.subr.bf16.mxu1 %v8388_v18 }
 0x9b5   :  { %8391 = vmatpush1.bf16.msra.mxu1 %v8390_v22  ;;  %v2267_v22 = vld [vmem:[%s17056_s10 + $0x30] sm:$0xff] }
 0x9b6   :  { %8393 = vmatprep.subr.bf16.mxu1 %v8392_v25  ;;  %v2276_v25 = vld [vmem:[%s17056_s10 + $0x78] sm:$0xff] }
 0x9b7   :  { %v8440_v31 = vpack.c.bf16 %v2276_v25, %v2272_v24  ;;  %v2344_v24 = vld [vmem:[%s17056_s10 + $0x298] sm:$0xff] }
 0x9b8   :  { %v2348_v25 = vld [vmem:[%s17056_s10 + $0x2b8] sm:$0xff] }
 0x9b9   :  { %8395 = vmatpush1.bf16.msra.mxu1 %v8394_v28  ;;  %v8438_v28 = vpack.c.bf16 %v2267_v22, %v2263_v20  ;;  %v2335_v22 = vld [vmem:[%s17056_s10 + $0x250] sm:$0xff] }
 0x9ba   :  { %8397 = vmatprep.subr.bf16.mxu1 %v8396_v32  ;;  %v2271_v32 = vld [vmem:[%s17056_s10 + $0x50] sm:$0xff] }
 0x9bb   :  { %v8442_v38 = vpack.c.bf16 %v2275_v33, %v2271_v32  ;;  %v2356_v32 = vld [vmem:[%s17056_s10 + $0x2f8] sm:$0xff] }
 0x9bd   :  { %8399 = vmatpush1.bf16.msra.mxu1 %v8398_v34  ;;  %v2284_v34 = vld [vmem:[%s17056_s10 + $0xb8] sm:$0xff] }
 0x9be   :  { %8401 = vmatprep.subr.bf16.mxu1 %v8400_v36  ;;  %v8444_v35 = vpack.c.bf16 %v2284_v34, %v2280_v21  ;;  %v2279_v36 = vld [vmem:[%s17056_s10 + $0x90] sm:$0xff] }
 0x9bf   :  { %v2351_v34 = vld [vmem:[%s17056_s10 + $0x2d0] sm:$0xff] }
 0x9c1   :  { %8403 = vmatpush1.bf16.msra.mxu1 %v8402_v41  ;;  %v8446_v41 = vpack.c.bf16 %v2283_v39, %v2279_v36  ;;  %v2364_v36 = vld [vmem:[%s17056_s10 + $0x338] sm:$0xff] }
 0x9c2   :  { %8405 = vmatprep.subr.bf16.mxu1 %v8404_v45  ;;  %v2291_v45 = vld [vmem:[%s17056_s10 + $0xf0] sm:$0xff] }
 0x9c5   :  { %8407 = vmatpush1.bf16.msra.mxu1 %v8406_v48  ;;  %v8450_v48 = vpack.c.bf16 %v2291_v45, %v2287_v44  ;;  %v2366_v44 = vld [vmem:[%s17056_s10 + $0x348] sm:$0xff] }
 0x9c6   :  { %8409 = vmatprep.subr.bf16.mxu1 %v8408_v52  ;;  %v2299_v52 = vld [vmem:[%s17056_s10 + $0x130] sm:$0xff]  ;;  %v2370_v45 = vld [vmem:[%s17056_s10 + $0x368] sm:$0xff] }
 0x9c7   :  { %v8424_v47 = vpack.c.bf16 %v2370_v45, %v2366_v44  ;;  %v2580_v44 = vld [vmem:[%s17049_s3 + $0x60] sm:$0xff] }
 0x9c9   :  { %8411 = vmatpush1.bf16.msra.mxu1 %v8410_v57  ;;  %v8454_v57 = vpack.c.bf16 %v2299_v52, %v2295_v51  ;;  %v2369_v51 = vld [vmem:[%s17056_s10 + $0x360] sm:$0xff] }
 0x9ca   :  { %8413 = vmatprep.subr.bf16.mxu1 %v8412_v50  ;;  %v2307_v50 = vld [vmem:[%s17056_s10 + $0x170] sm:$0xff] }
 0x9cd   :  { %8415 = vmatpush1.bf16.msra.mxu1 %v8414_v63  ;;  %v8458_v63 = vpack.c.bf16 %v2307_v50, %v2303_v60  ;;  %v2374_v60 = vld [vmem:[%s17056_s10 + $0x388] sm:$0xff] }
 0x9ce   :  { %8417 = vmatprep.subr.bf16.mxu1 %v8416_v2  ;;  %v2315_v2 = vld [vmem:[%s17056_s10 + $0x1b0] sm:$0xff]  ;;  %v2378_v50 = vld [vmem:[%s17056_s10 + $0x3a8] sm:$0xff] }
 0x9cf   :  { %v8428_v56 = vpack.c.bf16 %v2378_v50, %v2374_v60  ;;  %v2584_v60 = vld [vmem:[%s17049_s3 + $0x80] sm:$0xff] }
 0x9d0   :  { %v2588_v50 = vld [vmem:[%s17049_s3 + $0xa0] sm:$0xff] }
 0x9d1   :  { %8419 = vmatpush1.bf16.msra.mxu1 %v8418_v5  ;;  %v8462_v5 = vpack.c.bf16 %v2315_v2, %v2311_v1  ;;  %v2377_v1 = vld [vmem:[%s17056_s10 + $0x3a0] sm:$0xff] }
 0x9d2   :  { %8421 = vmatprep.subr.bf16.mxu1 %v8420_v9  ;;  %v2323_v9 = vld [vmem:[%s17056_s10 + $0x1f0] sm:$0xff] }
 0x9d5   :  { %8423 = vmatpush1.bf16.msra.mxu1 %v8422_v12  ;;  %v8466_v12 = vpack.c.bf16 %v2323_v9, %v2319_v8  ;;  %v2386_v9 = vld [vmem:[%s17056_s10 + $0x3e8] sm:$0xff] }
 0x9d6   :  { %8425 = vmatprep.subr.bf16.mxu1 %v8424_v47  ;;  %v2578_v47 = vld [vmem:[%s17049_s3 + $0x50] sm:$0xff] }
 0xa77   :  { %v2157_v14 = vpop.f32.mrb[16].mxu1 }
 0xa78   :  { %v2159_v15 = vpop.f32.mrb[17].mxu1  ;;  %v2158_v26 = vadd.f32 %v2157_v14, %v10852_v13  ;;  %v8468_v14 = vpack.c.bf16 %v2332_v11, %v2328_v10  ;;  %v2384_v10 = vld [vmem:[%s17056_s10 + $0x3d8] sm:$0xff] }
 0xa79   :  { %v2160_v16 = vadd.f32 %v2159_v15, %v10849_v6  ;;  %v2327_v15 = vld [vmem:[%s17056_s10 + $0x210] sm:$0xff]  ;;  %v2388_v11 = vld [vmem:[%s17056_s10 + $0x3f8] sm:$0xff] }
 0xa7b   :  { %v2164_v17 = vmul.f32 0.5, %v2160_v16  ;;  %v2331_v16 = vld [vmem:[%s17056_s10 + $0x230] sm:$0xff] }
 0xa7d   :  { %v2165_v18 = vmul.f32 1.442695, %v2164_v17  ;;  %v2336_v17 = vld [vmem:[%s17056_s10 + $0x258] sm:$0xff] }
 0xa7f   :  { %9957 = vpow2.f32 %v2165_v18  ;;  %v2340_v18 = vld [vmem:[%s17056_s10 + $0x278] sm:$0xff] }
 0xa80   :  { %v8472_v20 = vpack.c.bf16 %v2340_v18, %v2336_v17  ;;  %v2383_v17 = vld [vmem:[%s17056_s10 + $0x3d0] sm:$0xff] }
 0xa89   :  { %v9958_v23 = vpop.eup %9957 }
 0xa8a   :  { %v2167_v27 = vmul.f32 %v9958_v23, %v6757_v19  ;;  %v8470_v19 = vpack.c.bf16 %v2331_v16, %v2327_v15  ;;  %v2339_v23 = vld [vmem:[%s17056_s10 + $0x270] sm:$0xff]  ;;  %v2381_v15 = vld [vmem:[%s17056_s10 + $0x3c0] sm:$0xff] }
 0xa8b   :  { %v2385_v16 = vld [vmem:[%s17056_s10 + $0x3e0] sm:$0xff] }
 0xa8c   :  { %v2168_v30 = vadd.f32 %v2167_v27, %v2158_v26  ;;  %v8474_v26 = vpack.c.bf16 %v2339_v23, %v2335_v22  ;;  %v8476_v27 = vpack.c.bf16 %v2348_v25, %v2344_v24  ;;  %v8434_v18 = vpack.c.bf16 %v2385_v16, %v2381_v15  ;;  %v2573_v22 = vld [vmem:[%s17049_s3 + $0x28] sm:$0xff]  ;;  %v2571_v25 = vld [vmem:[%s17049_s3 + $0x18] sm:$0xff] }
 0xa8d   :  { %v2601_v15 = vld [vmem:[%s17049_s3 + $0x108] sm:$0xff] }
 0xa8e   :  { %7332 = vmatmul.mubr.f32.vlgmr.msra.gmra.mrb[18].mxu0 %v2168_v30  ;;  %v2347_v30 = vld [vmem:[%s17056_s10 + $0x2b0] sm:$0xff]  ;;  %v2605_v16 = vld [vmem:[%s17049_s3 + $0x128] sm:$0xff] }
 0xa8f   :  { %2524 = vmatprep.mubr.f32.mxu0 %v12278_v43  ;;  %8439 = vmatpush1.bf16.msra.mxu0 %v8438_v28  ;;  %v2292_v43 = vld [vmem:[%s17056_s10 + $0xf8] sm:$0xff]  ;;  %v2343_v28 = vld [vmem:[%s17056_s10 + $0x290] sm:$0xff] }
 0xa90   :  { %8441 = vmatprep.subr.bf16.mxu0 %v8440_v31  ;;  %v8448_v42 = vpack.c.bf16 %v2292_v43, %v2288_v40  ;;  %v2352_v31 = vld [vmem:[%s17056_s10 + $0x2d8] sm:$0xff]  ;;  %v8478_v33 = vpack.c.bf16 %v2347_v30, %v2343_v28  ;;  %v2359_v43 = vld [vmem:[%s17056_s10 + $0x310] sm:$0xff]  ;;  %v10170_v30 = vld [vmem:[%s17059_s9] ss:$0 sm:$0xff] }
 0xa91   :  { %v8480_v21 = vpack.c.bf16 %v2356_v32, %v2352_v31 }
 0xa93   :  { %8443 = vmatpush1.bf16.msra.mxu0 %v8442_v38  ;;  %v2355_v38 = vld [vmem:[%s17056_s10 + $0x2f0] sm:$0xff] }
 0xa94   :  { %8445 = vmatprep.subr.bf16.mxu0 %v8444_v35  ;;  %v2360_v35 = vld [vmem:[%s17056_s10 + $0x318] sm:$0xff]  ;;  %v8482_v39 = vpack.c.bf16 %v2355_v38, %v2351_v34  ;;  %v2570_v34 = vld [vmem:[%s17049_s3 + $0x10] sm:$0xff] }
 0xa95   :  { %v8484_v40 = vpack.c.bf16 %v2364_v36, %v2360_v35  ;;  %v2574_v38 = vld [vmem:[%s17049_s3 + $0x30] sm:$0xff]  ;;  %v2577_v35 = vld [vmem:[%s17049_s3 + $0x48] sm:$0xff] }
 0xa96   :  { %v2581_v36 = vld [vmem:[%s17049_s3 + $0x68] sm:$0xff] }
 0xa97   :  { %8447 = vmatpush1.bf16.msra.mxu0 %v8446_v41  ;;  %v2363_v41 = vld [vmem:[%s17056_s10 + $0x330] sm:$0xff]  ;;  %v8504_v45 = vpack.c.bf16 %v2581_v36, %v2577_v35 }
 0xa98   :  { %8449 = vmatprep.subr.bf16.mxu0 %v8448_v42  ;;  %v8486_v42 = vpack.c.bf16 %v2363_v41, %v2359_v43  ;;  %v8534_v41 = vpack.c.bf16 %v2574_v38, %v2570_v34  ;;  %v2608_v34 = vld [vmem:[%s17049_s3 + $0x140] sm:$0xff] }
 0xa99   :  { %v2612_v38 = vld [vmem:[%s17049_s3 + $0x160] sm:$0xff] }
 0xa9b   :  { %8451 = vmatpush1.bf16.msra.mxu0 %v8450_v48  ;;  %v2372_v48 = vld [vmem:[%s17056_s10 + $0x378] sm:$0xff] }
 0xa9c   :  { %8453 = vmatprep.subr.bf16.mxu0 %v8452_v49  ;;  %v2365_v49 = vld [vmem:[%s17056_s10 + $0x340] sm:$0xff]  ;;  %v8488_v52 = vpack.c.bf16 %v2372_v48, %v2368_v46  ;;  %v2582_v48 = vld [vmem:[%s17049_s3 + $0x70] sm:$0xff] }
 0xa9d   :  { %v8426_v53 = vpack.c.bf16 %v2369_v51, %v2365_v49  ;;  %v2585_v49 = vld [vmem:[%s17049_s3 + $0x88] sm:$0xff] }
 0xa9f   :  { %8455 = vmatpush1.bf16.msra.mxu0 %v8454_v57  ;;  %v2371_v57 = vld [vmem:[%s17056_s10 + $0x370] sm:$0xff]  ;;  %8427 = vmatpush1.bf16.msra.mxu1 %v8426_v53  ;;  %v2587_v53 = vld [vmem:[%s17049_s3 + $0x98] sm:$0xff] }
 0xaa0   :  { %8457 = vmatprep.subr.bf16.mxu0 %v8456_v59  ;;  %v8490_v59 = vpack.c.bf16 %v2371_v57, %v2367_v55  ;;  %8429 = vmatprep.subr.bf16.mxu1 %v8428_v56  ;;  %v2591_v55 = vld [vmem:[%s17049_s3 + $0xb8] sm:$0xff] }
 0xaa1   :  { %v8540_v56 = vpack.c.bf16 %v2591_v55, %v2587_v53  ;;  %v2622_v53 = vld [vmem:[%s17049_s3 + $0x1b0] sm:$0xff]  ;;  %v2625_v55 = vld [vmem:[%s17049_s3 + $0x1c8] sm:$0xff] }
 0xaa3   :  { %8459 = vmatpush1.bf16.msra.mxu0 %v8458_v63  ;;  %v2380_v63 = vld [vmem:[%s17056_s10 + $0x3b8] sm:$0xff] }
 0xaa4   :  { %8461 = vmatprep.subr.bf16.mxu0 %v8460_v0  ;;  %v2373_v0 = vld [vmem:[%s17056_s10 + $0x380] sm:$0xff]  ;;  %v8492_v2 = vpack.c.bf16 %v2380_v63, %v2376_v62  ;;  %v2586_v63 = vld [vmem:[%s17049_s3 + $0x90] sm:$0xff] }
 0xaa5   :  { %v8430_v54 = vpack.c.bf16 %v2377_v1, %v2373_v0  ;;  %v2590_v0 = vld [vmem:[%s17049_s3 + $0xb0] sm:$0xff]  ;;  %v2593_v1 = vld [vmem:[%s17049_s3 + $0xc8] sm:$0xff] }
 0xaa7   :  { %8463 = vmatpush1.bf16.msra.mxu0 %v8462_v5  ;;  %v2379_v5 = vld [vmem:[%s17056_s10 + $0x3b0] sm:$0xff]  ;;  %8431 = vmatpush1.bf16.msra.mxu1 %v8430_v54  ;;  %v2595_v54 = vld [vmem:[%s17049_s3 + $0xd8] sm:$0xff] }
 0xaa8   :  { %8465 = vmatprep.subr.bf16.mxu0 %v8464_v7  ;;  %v2382_v7 = vld [vmem:[%s17056_s10 + $0x3c8] sm:$0xff]  ;;  %v8494_v8 = vpack.c.bf16 %v2379_v5, %v2375_v4  ;;  %v2599_v4 = vld [vmem:[%s17049_s3 + $0xf8] sm:$0xff]  ;;  %v8510_v5 = vpack.c.bf16 %v2588_v50, %v2584_v60 }
 0xaa9   :  { %v2631_v60 = vld [vmem:[%s17049_s3 + $0x1f8] sm:$0xff] }
 0xaab   :  { %8467 = vmatpush1.bf16.msra.mxu0 %v8466_v12  ;;  %v8432_v12 = vpack.c.bf16 %v2386_v9, %v2382_v7  ;;  %v8542_v7 = vpack.c.bf16 %v2590_v0, %v2586_v63  ;;  %v2596_v9 = vld [vmem:[%s17049_s3 + $0xe0] sm:$0xff] }
 0xaac   :  { %8469 = vmatprep.subr.bf16.mxu0 %v8468_v14  ;;  %v8496_v14 = vpack.c.bf16 %v2388_v11, %v2384_v10  ;;  %v8544_v11 = vpack.c.bf16 %v2599_v4, %v2595_v54  ;;  %v2630_v54 = vld [vmem:[%s17049_s3 + $0x1f0] sm:$0xff] }
 0xaad   :  { %8433 = vmatprep.subr.bf16.mxu1 %v8432_v12  ;;  %v2594_v12 = vld [vmem:[%s17049_s3 + $0xd0] sm:$0xff] }
 0xaae   :  { %8435 = vmatpush1.bf16.msra.mxu1 %v8434_v18  ;;  %v2607_v18 = vld [vmem:[%s17049_s3 + $0x138] sm:$0xff] }
 0xaaf   :  { %8471 = vmatpush1.bf16.msra.mxu0 %v8470_v19  ;;  %v2387_v19 = vld [vmem:[%s17056_s10 + $0x3f0] sm:$0xff] }
 0xab0   :  { %8473 = vmatprep.subr.bf16.mxu0 %v8472_v20  ;;  %v2569_v20 = vld [vmem:[%s17049_s3 + $0x8] sm:$0xff]  ;;  %v8498_v23 = vpack.c.bf16 %v2387_v19, %v2383_v17  ;;  %v2603_v17 = vld [vmem:[%s17049_s3 + $0x118] sm:$0xff] }
 0xab1   :  { %v8500_v24 = vpack.c.bf16 %v2573_v22, %v2569_v20  ;;  %v2600_v22 = vld [vmem:[%s17049_s3 + $0x100] sm:$0xff] }
 0xab3   :  { %8475 = vmatpush1.bf16.msra.mxu0 %v8474_v26  ;;  %v2575_v26 = vld [vmem:[%s17049_s3 + $0x38] sm:$0xff]  ;;  %8501 = vmatprep.subr.bf16.mxu1 %v8500_v24  ;;  %v8516_v24 = vpack.c.bf16 %v2605_v16, %v2601_v15  ;;  %v2808_v16 = vld [vmem:[%s17050_s4 + $0x30] sm:$0xff] }
 0xab4   :  { %8477 = vmatprep.subr.bf16.mxu0 %v8476_v27  ;;  %v8532_v27 = vpack.c.bf16 %v2575_v26, %v2571_v25  ;;  %v8548_v25 = vpack.c.bf16 %v2607_v18, %v2603_v17  ;;  %v2602_v26 = vld [vmem:[%s17049_s3 + $0x110] sm:$0xff]  ;;  %v2809_v17 = vld [vmem:[%s17050_s4 + $0x38] sm:$0xff] }
 0xab5   :  { %v8574_v18 = vpack.c.bf16 %v2809_v17, %v2808_v16 }
 0xab7   :  { %8479 = vmatpush1.bf16.msra.mxu0 %v8478_v33  ;;  %v2568_v33 = vld [vmem:[%s17049_s3] sm:$0xff] }
 0xab8   :  { %8481 = vmatprep.subr.bf16.mxu0 %v8480_v21  ;;  %v2572_v21 = vld [vmem:[%s17049_s3 + $0x20] sm:$0xff] }
 0xab9   :  { %v8502_v43 = vpack.c.bf16 %v2572_v21, %v2568_v33 }
 0xabb   :  { %8483 = vmatpush1.bf16.msra.mxu0 %v8482_v39  ;;  %v2579_v39 = vld [vmem:[%s17049_s3 + $0x58] sm:$0xff] }
 0xabc   :  { %8485 = vmatprep.subr.bf16.mxu0 %v8484_v40  ;;  %v2583_v40 = vld [vmem:[%s17049_s3 + $0x78] sm:$0xff] }
 0xabd   :  { %v8536_v46 = vpack.c.bf16 %v2583_v40, %v2579_v39  ;;  %v2610_v39 = vld [vmem:[%s17049_s3 + $0x150] sm:$0xff] }
 0xabe   :  { %v2614_v40 = vld [vmem:[%s17049_s3 + $0x170] sm:$0xff] }
 0xabf   :  { %8487 = vmatpush1.bf16.msra.mxu0 %v8486_v42  ;;  %v2576_v42 = vld [vmem:[%s17049_s3 + $0x40] sm:$0xff] }
 0xac0   :  { %8489 = vmatprep.subr.bf16.mxu0 %v8488_v52  ;;  %v2589_v52 = vld [vmem:[%s17049_s3 + $0xa8] sm:$0xff]  ;;  %v8506_v57 = vpack.c.bf16 %v2580_v44, %v2576_v42  ;;  %v2619_v42 = vld [vmem:[%s17049_s3 + $0x198] sm:$0xff] }
 0xac1   :  { %v8508_v62 = vpack.c.bf16 %v2589_v52, %v2585_v49  ;;  %v2623_v44 = vld [vmem:[%s17049_s3 + $0x1b8] sm:$0xff]  ;;  %v2618_v52 = vld [vmem:[%s17049_s3 + $0x190] sm:$0xff] }
 0xac3   :  { %8491 = vmatpush1.bf16.msra.mxu0 %v8490_v59  ;;  %v8538_v59 = vpack.c.bf16 %v2582_v48, %v2578_v47  ;;  %v2616_v47 = vld [vmem:[%s17049_s3 + $0x180] sm:$0xff] }
 0xac4   :  { %8493 = vmatprep.subr.bf16.mxu0 %v8492_v2  ;;  %v2597_v2 = vld [vmem:[%s17049_s3 + $0xe8] sm:$0xff]  ;;  %v2620_v48 = vld [vmem:[%s17049_s3 + $0x1a0] sm:$0xff] }
 0xac5   :  { %v8512_v10 = vpack.c.bf16 %v2597_v2, %v2593_v1  ;;  %v8526_v50 = vpack.c.bf16 %v2620_v48, %v2616_v47  ;;  %v2628_v1 = vld [vmem:[%s17049_s3 + $0x1e0] sm:$0xff]  ;;  %v2626_v2 = vld [vmem:[%s17049_s3 + $0x1d0] sm:$0xff] }
 0xac6   :  { %v2897_v48 = vld [vmem:[%s17051_s6 + $0x40] sm:$0xff] }
 0xac7   :  { %8495 = vmatpush1.bf16.msra.mxu0 %v8494_v8  ;;  %v2592_v8 = vld [vmem:[%s17049_s3 + $0xc0] sm:$0xff] }
 0xac8   :  { %8497 = vmatprep.subr.bf16.mxu0 %v8496_v14  ;;  %v2598_v14 = vld [vmem:[%s17049_s3 + $0xf0] sm:$0xff]  ;;  %v8514_v19 = vpack.c.bf16 %v2596_v9, %v2592_v8  ;;  %v2803_v8 = vld [vmem:[%s17050_s4 + $0x8] sm:$0xff] }
 0xac9   :  { %v8546_v20 = vpack.c.bf16 %v2598_v14, %v2594_v12  ;;  %v2806_v12 = vld [vmem:[%s17050_s4 + $0x20] sm:$0xff]  ;;  %v2807_v14 = vld [vmem:[%s17050_s4 + $0x28] sm:$0xff] }
 0xaca   :  { %v8571_v15 = vpack.c.bf16 %v2807_v14, %v2806_v12  ;;  %v6761_v12 = vld [vmem:[%s17060_s1 + $0x58] sm:$0xff] }
 0xacb   :  { %8499 = vmatpush1.bf16.msra.mxu0 %v8498_v23  ;;  %v2604_v23 = vld [vmem:[%s17049_s3 + $0x120] sm:$0xff] }
 0xacc   :  { %8533 = vmatprep.subr.bf16.mxu0 %v8532_v27  ;;  %v2606_v27 = vld [vmem:[%s17049_s3 + $0x130] sm:$0xff]  ;;  %v8518_v33 = vpack.c.bf16 %v2604_v23, %v2600_v22 }
 0xacd   :  { %v8550_v21 = vpack.c.bf16 %v2606_v27, %v2602_v26  ;;  %v2812_v23 = vld [vmem:[%s17050_s4 + $0x50] sm:$0xff]  ;;  %v2814_v26 = vld [vmem:[%s17050_s4 + $0x60] sm:$0xff]  ;;  %v2815_v27 = vld [vmem:[%s17050_s4 + $0x68] sm:$0xff] }
 0xb61   :  { %v2251_v28 = vpop.f32.mrb[18].mxu0 }
 0xb62   :  { %v2252_v31 = vadd.f32 %v10170_v30, %v2251_v28  ;;  %v7333_v32 = vpop.f32.mrb[19].mxu0  ;;  %v2609_v28 = vld [vmem:[%s17049_s3 + $0x148] sm:$0xff] }
 0xb63   :  { %v2613_v30 = vld [vmem:[%s17049_s3 + $0x168] sm:$0xff]  ;;  %v2615_v32 = vld [vmem:[%s17049_s3 + $0x178] sm:$0xff] }
 0xb64   :  { %9959 = vtanh.f32 %v2252_v31  ;;  %v2611_v31 = vld [vmem:[%s17049_s3 + $0x158] sm:$0xff]  ;;  %v8520_v35 = vpack.c.bf16 %v2613_v30, %v2609_v28  ;;  %v8583_v28 = vpack.c.bf16 %v2815_v27, %v2814_v26  ;;  %v2816_v30 = vld [vmem:[%s17050_s4 + $0x70] sm:$0xff] }
 0xb65   :  { %v8552_v36 = vpack.c.bf16 %v2615_v32, %v2611_v31  ;;  %v2817_v31 = vld [vmem:[%s17050_s4 + $0x78] sm:$0xff] }
 0xb66   :  { %v8586_v32 = vpack.c.bf16 %v2817_v31, %v2816_v30  ;;  %v6767_v31 = vld [vmem:[%s17052_s0 + $0x60] sm:$0xff] }
 0xb6e   :  { %v9960_v51 = vpop.eup %9959 }
 0xb6f   :  { %2454 = vmatmul.mubr.f32.vlgmr.msra.gmra.mrb[18].mxu1 %v9960_v51  ;;  %2525 = vmatmul.mubr.f32.vlgmr.msra.gmra.mrb[20].mxu0 %v9960_v51  ;;  %v8556_v51 = vpack.c.bf16 %v2623_v44, %v2619_v42  ;;  %v2895_v42 = vld [vmem:[%s17051_s6 + $0x30] sm:$0xff]  ;;  %v2898_v44 = vld [vmem:[%s17051_s6 + $0x48] sm:$0xff] }
 0xb70   :  { %8503 = vmatpush1.bf16.msra.mxu1 %v8502_v43  ;;  %8535 = vmatpush1.bf16.msra.mxu0 %v8534_v41  ;;  %v2617_v43 = vld [vmem:[%s17049_s3 + $0x188] sm:$0xff] }
 0xb71   :  { %8505 = vmatprep.subr.bf16.mxu1 %v8504_v45  ;;  %8537 = vmatprep.subr.bf16.mxu0 %v8536_v46  ;;  %v2621_v41 = vld [vmem:[%s17049_s3 + $0x1a8] sm:$0xff]  ;;  %v8522_v45 = vpack.c.bf16 %v2612_v38, %v2608_v34  ;;  %v8554_v46 = vpack.c.bf16 %v2614_v40, %v2610_v39  ;;  %v2889_v34 = vld [vmem:[%s17051_s6] sm:$0xff]  ;;  %v2896_v39 = vld [vmem:[%s17051_s6 + $0x38] sm:$0xff] }
 0xb72   :  { %2696 = vmatprep.mubr.f32.mxu1 %v10181_v3  ;;  %2767 = vmatprep.mubr.f32.mxu0 %v10181_v3  ;;  %v8524_v49 = vpack.c.bf16 %v2621_v41, %v2617_v43  ;;  %v2893_v41 = vld [vmem:[%s17051_s6 + $0x20] sm:$0xff] }
 0xb74   :  { %8507 = vmatpush1.bf16.msra.mxu1 %v8506_v57  ;;  %8539 = vmatpush1.bf16.msra.mxu0 %v8538_v59  ;;  %v2629_v57 = vld [vmem:[%s17049_s3 + $0x1e8] sm:$0xff]  ;;  %v2627_v59 = vld [vmem:[%s17049_s3 + $0x1d8] sm:$0xff] }
 0xb75   :  { %8509 = vmatprep.subr.bf16.mxu1 %v8508_v62  ;;  %8541 = vmatprep.subr.bf16.mxu0 %v8540_v56  ;;  %v8558_v62 = vpack.c.bf16 %v2622_v53, %v2618_v52  ;;  %v2624_v56 = vld [vmem:[%s17049_s3 + $0x1c0] sm:$0xff]  ;;  %v8528_v63 = vpack.c.bf16 %v2629_v57, %v2625_v55  ;;  %v8560_v0 = vpack.c.bf16 %v2631_v60, %v2627_v59  ;;  %v2904_v52 = vld [vmem:[%s17051_s6 + $0x78] sm:$0xff]  ;;  %v2903_v59 = vld [vmem:[%s17051_s6 + $0x70] sm:$0xff] }
 0xb76   :  { %v8530_v4 = vpack.c.bf16 %v2628_v1, %v2624_v56  ;;  %v2901_v57 = vld [vmem:[%s17051_s6 + $0x60] sm:$0xff]  ;;  %v2906_v60 = vld [vmem:[%s17051_s6 + $0x88] sm:$0xff] }
 0xb78   :  { %8511 = vmatpush1.bf16.msra.mxu1 %v8510_v5  ;;  %8543 = vmatpush1.bf16.msra.mxu0 %v8542_v7  ;;  %v8562_v5 = vpack.c.bf16 %v2630_v54, %v2626_v2  ;;  %v2802_v7 = vld [vmem:[%s17050_s4] sm:$0xff]  ;;  %v6759_v54 = vld [vmem:[%s17060_s1 + $0x48] sm:$0xff] }
 0xb79   :  { %8513 = vmatprep.subr.bf16.mxu1 %v8512_v10  ;;  %8545 = vmatprep.subr.bf16.mxu0 %v8544_v11  ;;  %v8565_v9 = vpack.c.bf16 %v2803_v8, %v2802_v7  ;;  %v2805_v10 = vld [vmem:[%s17050_s4 + $0x18] sm:$0xff]  ;;  %v6758_v2 = vld [vmem:[%s17060_s1 + $0x40] sm:$0xff] }
 0xb7c   :  { %8515 = vmatpush1.bf16.msra.mxu1 %v8514_v19  ;;  %8547 = vmatpush1.bf16.msra.mxu0 %v8546_v20  ;;  %v2810_v19 = vld [vmem:[%s17050_s4 + $0x40] sm:$0xff]  ;;  %v2811_v20 = vld [vmem:[%s17050_s4 + $0x48] sm:$0xff] }
 0xb7d   :  { %8517 = vmatprep.subr.bf16.mxu1 %v8516_v24  ;;  %8549 = vmatprep.subr.bf16.mxu0 %v8548_v25  ;;  %v8577_v22 = vpack.c.bf16 %v2811_v20, %v2810_v19  ;;  %v2813_v24 = vld [vmem:[%s17050_s4 + $0x58] sm:$0xff] }
 0xb7e   :  { %v8580_v25 = vpack.c.bf16 %v2813_v24, %v2812_v23 }
 0xb80   :  { %8519 = vmatpush1.bf16.msra.mxu1 %v8518_v33  ;;  %8551 = vmatpush1.bf16.msra.mxu0 %v8550_v21  ;;  %v2890_v33 = vld [vmem:[%s17051_s6 + $0x8] sm:$0xff]  ;;  %v2892_v21 = vld [vmem:[%s17051_s6 + $0x18] sm:$0xff] }
 0xb81   :  { %8521 = vmatprep.subr.bf16.mxu1 %v8520_v35  ;;  %8553 = vmatprep.subr.bf16.mxu0 %v8552_v36  ;;  %v8588_v38 = vpack.c.bf16 %v2892_v21, %v2890_v33  ;;  %v2891_v35 = vld [vmem:[%s17051_s6 + $0x10] sm:$0xff]  ;;  %v2894_v36 = vld [vmem:[%s17051_s6 + $0x28] sm:$0xff] }
 0xb82   :  { %v8590_v40 = vpack.c.bf16 %v2891_v35, %v2889_v34  ;;  %v8592_v43 = vpack.c.bf16 %v2896_v39, %v2894_v36 }
 0xb84   :  { %8523 = vmatpush1.bf16.msra.mxu1 %v8522_v45  ;;  %8555 = vmatpush1.bf16.msra.mxu0 %v8554_v46  ;;  %v2900_v45 = vld [vmem:[%s17051_s6 + $0x58] sm:$0xff]  ;;  %v8594_v46 = vpack.c.bf16 %v2895_v42, %v2893_v41  ;;  %v6769_v42 = vld [vmem:[%s17052_s0 + $0x70] sm:$0xff] }
 0xb85   :  { %8525 = vmatprep.subr.bf16.mxu1 %v8524_v49  ;;  %8557 = vmatprep.subr.bf16.mxu0 %v8556_v51  ;;  %v8596_v47 = vpack.c.bf16 %v2900_v45, %v2898_v44  ;;  %v2899_v49 = vld [vmem:[%s17051_s6 + $0x50] sm:$0xff]  ;;  %v2902_v51 = vld [vmem:[%s17051_s6 + $0x68] sm:$0xff] }
 0xb86   :  { %v8598_v53 = vpack.c.bf16 %v2899_v49, %v2897_v48  ;;  %v8600_v55 = vpack.c.bf16 %v2904_v52, %v2902_v51 }
 0xb88   :  { %8527 = vmatpush1.bf16.msra.mxu1 %v8526_v50  ;;  %8559 = vmatpush1.bf16.msra.mxu0 %v8558_v62  ;;  %v2908_v50 = vld [vmem:[%s17051_s6 + $0x98] sm:$0xff]  ;;  %v8602_v62 = vpack.c.bf16 %v2903_v59, %v2901_v57 }
 0xb89   :  { %8529 = vmatprep.subr.bf16.mxu1 %v8528_v63  ;;  %8561 = vmatprep.subr.bf16.mxu0 %v8560_v0  ;;  %v8604_v56 = vpack.c.bf16 %v2908_v50, %v2906_v60  ;;  %v2905_v63 = vld [vmem:[%s17051_s6 + $0x80] sm:$0xff]  ;;  %v2907_v0 = vld [vmem:[%s17051_s6 + $0x90] sm:$0xff] }
 0xb8a   :  { %v8606_v1 = vpack.c.bf16 %v2907_v0, %v2905_v63 }
 0xb8c   :  { %8531 = vmatpush1.bf16.msra.mxu1 %v8530_v4  ;;  %8563 = vmatpush1.bf16.msra.mxu0 %v8562_v5 }
 0xb8d   :  { %8564 = vmatprep.subr.bf16.mxu1 %v10182_v37  ;;  %8589 = vmatprep.subr.bf16.mxu0 %v8588_v38 }
 0xb8f   :  { %2697 = vmatmul.mubr.f32.vlgmr.msra.gmra.mrb[20].mxu1 %v12288_v61  ;;  %2768 = vmatmul.mubr.f32.vlgmr.msra.gmra.mrb[22].mxu0 %v12288_v61  ;;  %v2804_v61 = vld [vmem:[%s17050_s4 + $0x10] sm:$0xff] }
 0xb90   :  { %7366 = vmatprep.mubr.msk.f32.mxu1 %vm10183_vm0, %v10181_v3  ;;  %2985 = vmatprep.mubr.f32.mxu0 %v10181_v3  ;;  %v8568_v11 = vpack.c.bf16 %v2805_v10, %v2804_v61 }
 0xb91   :  { %8566 = vmatpush3.bf16.msra.mxu1 %v8565_v9  ;;  %8591 = vmatpush1.bf16.msra.mxu0 %v8590_v40 }
 0xb92   :  { %8567 = vmatprep.subr.bf16.mxu1 %v10182_v37  ;;  %8593 = vmatprep.subr.bf16.mxu0 %v8592_v43  ;;  %v6770_v43 = vld [vmem:[%s17052_s0 + $0x78] sm:$0xff] }
 0xb95   :  { %8569 = vmatpush3.bf16.msra.mxu1 %v8568_v11  ;;  %8595 = vmatpush1.bf16.msra.mxu0 %v8594_v46 }
 0xb96   :  { %8570 = vmatprep.subr.bf16.mxu1 %v10182_v37  ;;  %8597 = vmatprep.subr.bf16.mxu0 %v8596_v47 }
 0xb99   :  { %8572 = vmatpush3.bf16.msra.mxu1 %v8571_v15  ;;  %8599 = vmatpush1.bf16.msra.mxu0 %v8598_v53  ;;  %v6760_v15 = vld [vmem:[%s17060_s1 + $0x50] sm:$0xff] }
 0xb9a   :  { %8573 = vmatprep.subr.bf16.mxu1 %v10182_v37  ;;  %8601 = vmatprep.subr.bf16.mxu0 %v8600_v55 }
 0xb9d   :  { %8575 = vmatpush3.bf16.msra.mxu1 %v8574_v18  ;;  %8603 = vmatpush1.bf16.msra.mxu0 %v8602_v62 }
 0xb9e   :  { %8576 = vmatprep.subr.bf16.mxu1 %v10182_v37  ;;  %8605 = vmatprep.subr.bf16.mxu0 %v8604_v56 }
 0xba1   :  { %8578 = vmatpush3.bf16.msra.mxu1 %v8577_v22  ;;  %8607 = vmatpush1.bf16.msra.mxu0 %v8606_v1 }
 0xba2   :  { %8579 = vmatprep.subr.bf16.mxu1 %v10182_v37 }
 0xba5   :  { %8581 = vmatpush3.bf16.msra.mxu1 %v8580_v25 }
 0xba6   :  { %8582 = vmatprep.subr.bf16.mxu1 %v10182_v37 }
 0xba9   :  { %8584 = vmatpush3.bf16.msra.mxu1 %v8583_v28 }
 0xbaa   :  { %8585 = vmatprep.subr.bf16.mxu1 %v10182_v37 }
 0xbad   :  { %8587 = vmatpush3.bf16.msra.mxu1 %v8586_v32  ;;  %v6768_v32 = vld [vmem:[%s17052_s0 + $0x68] sm:$0xff] }
 0xbae   :  { %8620 = vmatprep.subr.bf16.mxu1 %v10182_v37 }
 0xc42   :  { %v2455_v4 = vpop.f32.mrb[18].mxu1  ;;  %v2526_v5 = vpop.f32.mrb[20].mxu0 }
 0xc43   :  { %v2531_v7 = vadd.f32 %v6758_v2, %v2455_v4  ;;  %v2457_v8 = vpop.f32.mrb[19].mxu1  ;;  %v2528_v9 = vpop.f32.mrb[21].mxu0  ;;  %v2533_v17 = vadd.f32 %v6760_v15, %v2526_v5  ;;  %v2909_v5 = vld [vmem:[%s17051_s6 + $0xa0] sm:$0xff]  ;;  %v2920_v15 = vld [vmem:[%s17051_s6 + $0xf8] sm:$0xff] }
 0xc44   :  { %v2532_v61 = vadd.f32 %v6759_v54, %v2457_v8  ;;  %v2534_v14 = vadd.f32 %v6761_v12, %v2528_v9  ;;  %v2912_v54 = vld [vmem:[%s17051_s6 + $0xb8] sm:$0xff]  ;;  %v2914_v9 = vld [vmem:[%s17051_s6 + $0xc8] sm:$0xff]  ;;  %v2915_v12 = vld [vmem:[%s17051_s6 + $0xd0] sm:$0xff] }
 0xc45   :  { %v6762_v10 = vmul.f32 -1.442695, %v2531_v7  ;;  %v2911_v7 = vld [vmem:[%s17051_s6 + $0xb0] sm:$0xff] }
 0xc46   :  { %v6763_v11 = vmul.f32 -1.442695, %v2532_v61  ;;  %v6764_v16 = vmul.f32 -1.442695, %v2534_v14  ;;  %v8610_v8 = vpack.c.bf16 %v2911_v7, %v2909_v5  ;;  %v2916_v61 = vld [vmem:[%s17051_s6 + $0xd8] sm:$0xff]  ;;  %v2918_v14 = vld [vmem:[%s17051_s6 + $0xe8] sm:$0xff] }
 0xc47   :  { %9961 = vpow2.f32 %v6762_v10  ;;  %v2913_v10 = vld [vmem:[%s17051_s6 + $0xc0] sm:$0xff] }
 0xc48   :  { %9963 = vpow2.f32 %v6763_v11  ;;  %v8612_v11 = vpack.c.bf16 %v2916_v61, %v2914_v9  ;;  %v3099_v5 = vld [vmem:[%s17056_s10 + $0x40] sm:$0xff]  ;;  %v3108_v9 = vld [vmem:[%s17056_s10 + $0x88] sm:$0xff] }
 0xc49   :  { %9965 = vpow2.f32 %v6764_v16  ;;  %v8614_v16 = vpack.c.bf16 %v2915_v12, %v2913_v10  ;;  %v3103_v7 = vld [vmem:[%s17056_s10 + $0x60] sm:$0xff]  ;;  %v3112_v61 = vld [vmem:[%s17056_s10 + $0xa8] sm:$0xff] }
 0xc4a   :  { %9967 = vtanh.f32 %v2533_v17  ;;  %v8616_v17 = vpack.c.bf16 %v2920_v15, %v2918_v14  ;;  %v8652_v10 = vpack.c.bf16 %v3112_v61, %v3108_v9  ;;  %v3111_v12 = vld [vmem:[%s17056_s10 + $0xa0] sm:$0xff]  ;;  %v3116_v15 = vld [vmem:[%s17056_s10 + $0xc8] sm:$0xff] }
 0xc4b   :  { %v3179_v61 = vld [vmem:[%s17056_s10 + $0x2c0] sm:$0xff] }
 0xc51   :  { %v9962_v18 = vpop.eup %9961 }
 0xc52   :  { %v9964_v19 = vpop.eup %9963  ;;  %v2538_v20 = vadd.f32 1.0, %v9962_v18  ;;  %v2917_v18 = vld [vmem:[%s17051_s6 + $0xe0] sm:$0xff] }
 0xc53   :  { %v2544_v22 = vadd.f32 1.0, %v9964_v19  ;;  %v9966_v23 = vpop.eup %9965  ;;  %v2919_v19 = vld [vmem:[%s17051_s6 + $0xf0] sm:$0xff] }
 0xc54   :  { %9969 = vrcp.f32 %v2538_v20  ;;  %v9968_v24 = vpop.eup %9967  ;;  %v2551_v28 = vadd.f32 1.0, %v9966_v23  ;;  %v8618_v20 = vpack.c.bf16 %v2919_v19, %v2917_v18  ;;  %v3000_v23 = vld [vmem:[%s17054_s8 + $0x8] sm:$0xff]  ;;  %v3115_v18 = vld [vmem:[%s17056_s10 + $0xc0] sm:$0xff] }
 0xc55   :  { %9971 = vrcp.f32 %v2544_v22  ;;  %v2999_v22 = vld [vmem:[%s17054_s8] sm:$0xff] }
 0xc56   :  { %9973 = vrcp.f32 %v2551_v28  ;;  %v3119_v19 = vld [vmem:[%s17056_s10 + $0xe0] sm:$0xff] }
 0xc5e   :  { %v9970_v25 = vpop.eup %9969 }
 0xc5f   :  { %v9972_v26 = vpop.eup %9971  ;;  %v2555_v27 = vmul.f32 %v9970_v25, %v9968_v24  ;;  %v3001_v24 = vld [vmem:[%s17054_s8 + $0x10] sm:$0xff]  ;;  %v8621_v25 = vpack.c.bf16 %v3000_v23, %v2999_v22  ;;  %v3124_v22 = vld [vmem:[%s17056_s10 + $0x108] sm:$0xff] }
 0xc60   :  { %v2554_v30 = vmul.f32 %v9972_v26, %v12269_v29  ;;  %v9974_v44 = vpop.eup %9973  ;;  %v3002_v26 = vld [vmem:[%s17054_s8 + $0x18] sm:$0xff]  ;;  %v3128_v23 = vld [vmem:[%s17056_s10 + $0x128] sm:$0xff] }
 0xc62   :  { %v2698_v33 = vpop.f32.mrb[20].mxu1  ;;  %v2769_v21 = vpop.f32.mrb[22].mxu0  ;;  %v13120_v34 = vadd.f32 %v2555_v27, %v2554_v30  ;;  %v8624_v27 = vpack.c.bf16 %v3002_v26, %v3001_v24  ;;  %v10171_v30 = vld [vmem:[%s17055_s5] ss:$0 sm:$0xff]  ;;  %v8660_v24 = vpack.c.bf16 %v3128_v23, %v3124_v22 }
 0xc63   :  { %v2774_v38 = vadd.f32 %v6767_v31, %v2698_v33  ;;  %v2700_v35 = vpop.f32.mrb[21].mxu1  ;;  %v2771_v36 = vpop.f32.mrb[23].mxu0  ;;  %v2776_v47 = vadd.f32 %v6769_v42, %v2769_v21  ;;  %v3003_v21 = vld [vmem:[%s17054_s8 + $0x20] sm:$0xff]  ;;  %v3009_v42 = vld [vmem:[%s17054_s8 + $0x50] sm:$0xff] }
 0xc64   :  { %v2775_v39 = vadd.f32 %v6768_v32, %v2700_v35  ;;  %9975 = vtanh.f32 %v13120_v34  ;;  %v2777_v41 = vadd.f32 %v6770_v43, %v2771_v36  ;;  %v3005_v36 = vld [vmem:[%s17054_s8 + $0x30] sm:$0xff]  ;;  %v3008_v43 = vld [vmem:[%s17054_s8 + $0x48] sm:$0xff]  ;;  %v3127_v26 = vld [vmem:[%s17056_s10 + $0x120] sm:$0xff] }
 0xc65   :  { %v6771_v29 = vmul.f32 -1.442695, %v2774_v38  ;;  %v3004_v38 = vld [vmem:[%s17054_s8 + $0x28] sm:$0xff] }
 0xc66   :  { %v6772_v40 = vmul.f32 -1.442695, %v2775_v39  ;;  %v6773_v46 = vmul.f32 -1.442695, %v2777_v41  ;;  %v8627_v35 = vpack.c.bf16 %v3004_v38, %v3003_v21  ;;  %v3006_v39 = vld [vmem:[%s17054_s8 + $0x38] sm:$0xff]  ;;  %v3140_v38 = vld [vmem:[%s17056_s10 + $0x188] sm:$0xff] }
 0xc67   :  { %9977 = vpow2.f32 %v6771_v29  ;;  %v8630_v29 = vpack.c.bf16 %v3006_v39, %v3005_v36  ;;  %v3139_v39 = vld [vmem:[%s17056_s10 + $0x180] sm:$0xff] }
 0xc68   :  { %9979 = vpow2.f32 %v6772_v40  ;;  %v3007_v40 = vld [vmem:[%s17054_s8 + $0x40] sm:$0xff] }
 0xc69   :  { %9981 = vpow2.f32 %v6773_v46  ;;  %v8633_v41 = vpack.c.bf16 %v3008_v43, %v3007_v40  ;;  %v3011_v46 = vld [vmem:[%s17054_s8 + $0x60] sm:$0xff]  ;;  %v3148_v43 = vld [vmem:[%s17056_s10 + $0x1c8] sm:$0xff] }
 0xc6a   :  { %9983 = vtanh.f32 %v2776_v47  ;;  %v3012_v47 = vld [vmem:[%s17054_s8 + $0x68] sm:$0xff] }
 0xc6e   :  { %v9976_v45 = vpop.eup %9975 }
 0xc6f   :  { %v13129_v48 = vmul.f32 %v9976_v45, %v9974_v44  ;;  %v3010_v44 = vld [vmem:[%s17054_s8 + $0x58] sm:$0xff] }
 0xc70   :  { %v8636_v45 = vpack.c.bf16 %v3010_v44, %v3009_v42  ;;  %v3147_v44 = vld [vmem:[%s17056_s10 + $0x1c0] sm:$0xff] }
 0xc71   :  { %v9978_v49 = vpop.eup %9977  ;;  %6766 = vst [vmem:[%s17061_s12 + $0x10] sm:$0xff] %v13129_v48 }
 0xc72   :  { %v9980_v51 = vpop.eup %9979  ;;  %v2781_v52 = vadd.f32 1.0, %v9978_v49  ;;  %v8639_v49 = vpack.c.bf16 %v3012_v47, %v3011_v46  ;;  %v3156_v47 = vld [vmem:[%s17056_s10 + $0x208] sm:$0xff] }
 0xc73   :  { %v2787_v53 = vadd.f32 1.0, %v9980_v51  ;;  %v9982_v55 = vpop.eup %9981  ;;  %v3013_v51 = vld [vmem:[%s17054_s8 + $0x70] sm:$0xff] }
 0xc74   :  { %9985 = vrcp.f32 %v2781_v52  ;;  %v9984_v57 = vpop.eup %9983  ;;  %v2794_v62 = vadd.f32 1.0, %v9982_v55  ;;  %v3014_v52 = vld [vmem:[%s17054_s8 + $0x78] sm:$0xff]  ;;  %v3092_v55 = vld [vmem:[%s17056_s10 + $0x8] sm:$0xff] }
 0xc75   :  { %9987 = vrcp.f32 %v2787_v53  ;;  %v8642_v53 = vpack.c.bf16 %v3014_v52, %v3013_v51  ;;  %v3155_v52 = vld [vmem:[%s17056_s10 + $0x200] sm:$0xff] }
 0xc76   :  { %9989 = vrcp.f32 %v2794_v62  ;;  %v3091_v62 = vld [vmem:[%s17056_s10] sm:$0xff] }
 0xc7e   :  { %v9986_v59 = vpop.eup %9985 }
 0xc7f   :  { %v9988_v60 = vpop.eup %9987  ;;  %v2798_v50 = vmul.f32 %v9986_v59, %v9984_v57  ;;  %v3096_v57 = vld [vmem:[%s17056_s10 + $0x28] sm:$0xff]  ;;  %v3094_v59 = vld [vmem:[%s17056_s10 + $0x18] sm:$0xff] }
 0xc80   :  { %v2797_v56 = vmul.f32 %v9988_v60, %v12285_v58  ;;  %v9990_v0 = vpop.eup %9989  ;;  %v2910_v58 = vld [vmem:[%s17051_s6 + $0xa8] sm:$0xff]  ;;  %v8644_v60 = vpack.c.bf16 %v3096_v57, %v3092_v55 }
 0xc81   :  { %v8608_v4 = vpack.c.bf16 %v2912_v54, %v2910_v58  ;;  %v3100_v58 = vld [vmem:[%s17056_s10 + $0x48] sm:$0xff] }
 0xc82   :  { %v13136_v63 = vadd.f32 %v2798_v50, %v2797_v56  ;;  %v3098_v50 = vld [vmem:[%s17056_s10 + $0x38] sm:$0xff]  ;;  %v3095_v56 = vld [vmem:[%s17056_s10 + $0x20] sm:$0xff]  ;;  %v3104_v54 = vld [vmem:[%s17056_s10 + $0x68] sm:$0xff] }
 0xc83   :  { %8609 = vmatprep.subr.bf16.mxu0 %v8608_v4  ;;  %v8648_v4 = vpack.c.bf16 %v3104_v54, %v3100_v58  ;;  %v3164_v57 = vld [vmem:[%s17056_s10 + $0x248] sm:$0xff]  ;;  %v3171_v54 = vld [vmem:[%s17056_s10 + $0x280] sm:$0xff] }
 0xc84   :  { %9991 = vtanh.f32 %v13136_v63  ;;  %8611 = vmatpush1.bf16.msra.mxu0 %v8610_v8  ;;  %v8650_v8 = vpack.c.bf16 %v3103_v7, %v3099_v5  ;;  %v3180_v7 = vld [vmem:[%s17056_s10 + $0x2c8] sm:$0xff] }
 0xc85   :  { %8613 = vmatprep.subr.bf16.mxu0 %v8612_v11  ;;  %v3107_v11 = vld [vmem:[%s17056_s10 + $0x80] sm:$0xff] }
 0xc86   :  { %v8654_v14 = vpack.c.bf16 %v3111_v12, %v3107_v11  ;;  %v3188_v12 = vld [vmem:[%s17056_s10 + $0x308] sm:$0xff] }
 0xc88   :  { %8615 = vmatpush1.bf16.msra.mxu0 %v8614_v16  ;;  %v3120_v16 = vld [vmem:[%s17056_s10 + $0xe8] sm:$0xff] }
 0xc89   :  { %8617 = vmatprep.subr.bf16.mxu0 %v8616_v17  ;;  %v8656_v17 = vpack.c.bf16 %v3120_v16, %v3116_v15  ;;  %v3187_v16 = vld [vmem:[%s17056_s10 + $0x300] sm:$0xff] }
 0xc8c   :  { %8619 = vmatpush1.bf16.msra.mxu0 %v8618_v20  ;;  %v8658_v20 = vpack.c.bf16 %v3119_v19, %v3115_v18 }
 0xc8d   :  { %8645 = vmatprep.subr.bf16.mxu0 %v8644_v60 }
 0xc8e   :  { %v9992_v1 = vpop.eup %9991 }
 0xc8f   :  { %v13139_v2 = vmul.f32 %v9992_v1, %v9990_v0  ;;  %v8708_v0 = vpack.c.bf16 %v3098_v50, %v3094_v59  ;;  %v8646_v1 = vpack.c.bf16 %v3095_v56, %v3091_v62  ;;  %v3168_v59 = vld [vmem:[%s17056_s10 + $0x268] sm:$0xff]  ;;  %v3163_v50 = vld [vmem:[%s17056_s10 + $0x240] sm:$0xff] }
 0xc90   :  { %v8680_v60 = vpack.c.bf16 %v3168_v59, %v3164_v57  ;;  %v3167_v62 = vld [vmem:[%s17056_s10 + $0x260] sm:$0xff]  ;;  %v3125_v59 = vld [vmem:[%s17056_s10 + $0x110] sm:$0xff] }
 0xc91   :  { %7367 = vmatmul.mubr.f32.vlgmr.msra.gmra.mrb[22].mxu1 %v13139_v2  ;;  %6782 = vst [vmem:[%s17053_s11 + $0x18] sm:$0xff] %v13139_v2  ;;  %v8682_v56 = vpack.c.bf16 %v3167_v62, %v3163_v50  ;;  %v3134_v50 = vld [vmem:[%s17056_s10 + $0x158] sm:$0xff] }
 0xc92   :  { %7401 = vmatprep.mubr.msk.f32.mxu1 %vm10183_vm0, %v10181_v3  ;;  %8622 = vmatpush3.bf16.msra.mxu1 %v8621_v25  ;;  %v3123_v25 = vld [vmem:[%s17056_s10 + $0x100] sm:$0xff]  ;;  %v3138_v62 = vld [vmem:[%s17056_s10 + $0x178] sm:$0xff] }
 0xc93   :  { %8623 = vmatprep.subr.bf16.mxu1 %v10182_v37 }
 0xc96   :  { %8625 = vmatpush3.bf16.msra.mxu1 %v8624_v27  ;;  %v8662_v27 = vpack.c.bf16 %v3127_v26, %v3123_v25  ;;  %v6774_v25 = vld [vmem:[%s17058_s2 + $0x18] sm:$0xff]  ;;  %v3093_v26 = vld [vmem:[%s17056_s10 + $0x10] sm:$0xff] }
 0xc97   :  { %8626 = vmatprep.subr.bf16.mxu1 %v10182_v37 }
 0xc9a   :  { %8628 = vmatpush3.bf16.msra.mxu1 %v8627_v35  ;;  %v3144_v35 = vld [vmem:[%s17056_s10 + $0x1a8] sm:$0xff] }
 0xc9b   :  { %8629 = vmatprep.subr.bf16.mxu1 %v10182_v37  ;;  %v8668_v36 = vpack.c.bf16 %v3144_v35, %v3140_v38 }
 0xc9e   :  { %8631 = vmatpush3.bf16.msra.mxu1 %v8630_v29  ;;  %v3143_v29 = vld [vmem:[%s17056_s10 + $0x1a0] sm:$0xff] }
 0xc9f   :  { %8632 = vmatprep.subr.bf16.mxu1 %v10182_v37  ;;  %v8670_v40 = vpack.c.bf16 %v3143_v29, %v3139_v39  ;;  %v3105_v39 = vld [vmem:[%s17056_s10 + $0x70] sm:$0xff]  ;;  %v3110_v29 = vld [vmem:[%s17056_s10 + $0x98] sm:$0xff] }
 0xca2   :  { %8634 = vmatpush3.bf16.msra.mxu1 %v8633_v41  ;;  %v3152_v41 = vld [vmem:[%s17056_s10 + $0x1e8] sm:$0xff] }
 0xca3   :  { %8635 = vmatprep.subr.bf16.mxu1 %v10182_v37  ;;  %v8672_v42 = vpack.c.bf16 %v3152_v41, %v3148_v43 }
 0xca6   :  { %8637 = vmatpush3.bf16.msra.mxu1 %v8636_v45  ;;  %v3151_v45 = vld [vmem:[%s17056_s10 + $0x1e0] sm:$0xff] }
 0xca7   :  { %8638 = vmatprep.subr.bf16.mxu1 %v10182_v37  ;;  %v8674_v46 = vpack.c.bf16 %v3151_v45, %v3147_v44  ;;  %v3113_v44 = vld [vmem:[%s17056_s10 + $0xb0] sm:$0xff]  ;;  %v3118_v45 = vld [vmem:[%s17056_s10 + $0xd8] sm:$0xff] }
 0xcaa   :  { %8640 = vmatpush3.bf16.msra.mxu1 %v8639_v49  ;;  %v3160_v49 = vld [vmem:[%s17056_s10 + $0x228] sm:$0xff] }
 0xcab   :  { %8641 = vmatprep.subr.bf16.mxu1 %v10182_v37  ;;  %v8676_v51 = vpack.c.bf16 %v3160_v49, %v3156_v47  ;;  %v3117_v49 = vld [vmem:[%s17056_s10 + $0xd0] sm:$0xff] }
 0xcae   :  { %8643 = vmatpush3.bf16.msra.mxu1 %v8642_v53  ;;  %v3159_v53 = vld [vmem:[%s17056_s10 + $0x220] sm:$0xff] }
 0xcaf   :  { %8709 = vmatprep.subr.bf16.mxu1 %v8708_v0  ;;  %v8678_v55 = vpack.c.bf16 %v3159_v53, %v3155_v52  ;;  %v3172_v0 = vld [vmem:[%s17056_s10 + $0x288] sm:$0xff]  ;;  %v3126_v52 = vld [vmem:[%s17056_s10 + $0x118] sm:$0xff] }
 0xcb0   :  { %v3130_v53 = vld [vmem:[%s17056_s10 + $0x138] sm:$0xff] }
 0xcb1   :  { %v8724_v57 = vpack.c.bf16 %v3130_v53, %v3126_v52  ;;  %v3198_v52 = vld [vmem:[%s17056_s10 + $0x358] sm:$0xff] }
 0xd64   :  { %v2884_v28 = vpop.f32.mrb[22].mxu1 }
 0xd65   :  { %v2885_v31 = vadd.f32 %v10171_v30, %v2884_v28  ;;  %v7368_v32 = vpop.f32.mrb[23].mxu1  ;;  %v3132_v28 = vld [vmem:[%s17056_s10 + $0x148] sm:$0xff] }
 0xd66   :  { %v3136_v30 = vld [vmem:[%s17056_s10 + $0x168] sm:$0xff]  ;;  %v3131_v32 = vld [vmem:[%s17056_s10 + $0x140] sm:$0xff] }
 0xd67   :  { %9993 = vtanh.f32 %v2885_v31  ;;  %v8664_v31 = vpack.c.bf16 %v3136_v30, %v3132_v28  ;;  %v3102_v30 = vld [vmem:[%s17056_s10 + $0x58] sm:$0xff] }
 0xd71   :  { %v9994_v33 = vpop.eup %9993 }
 0xd72   :  { %2986 = vmatmul.mubr.f32.vlgmr.msra.gmra.mrb[24].mxu0 %v9994_v33  ;;  %v3135_v33 = vld [vmem:[%s17056_s10 + $0x160] sm:$0xff] }
 0xd73   :  { %3283 = vmatprep.mubr.f32.mxu0 %v13129_v48  ;;  %8647 = vmatpush1.bf16.msra.mxu0 %v8646_v1  ;;  %v8666_v21 = vpack.c.bf16 %v3135_v33, %v3131_v32  ;;  %v3176_v1 = vld [vmem:[%s17056_s10 + $0x2a8] sm:$0xff] }
 0xd74   :  { %8649 = vmatprep.subr.bf16.mxu0 %v8648_v4  ;;  %v8684_v58 = vpack.c.bf16 %v3176_v1, %v3172_v0  ;;  %v3175_v4 = vld [vmem:[%s17056_s10 + $0x2a0] sm:$0xff]  ;;  %v8728_v0 = vpack.c.bf16 %v3138_v62, %v3134_v50  ;;  %v3133_v1 = vld [vmem:[%s17056_s10 + $0x150] sm:$0xff] }
 0xd75   :  { %v8686_v5 = vpack.c.bf16 %v3175_v4, %v3171_v54  ;;  %v3142_v54 = vld [vmem:[%s17056_s10 + $0x198] sm:$0xff]  ;;  %v3197_v62 = vld [vmem:[%s17056_s10 + $0x350] sm:$0xff] }
 0xd76   :  { %v3146_v4 = vld [vmem:[%s17056_s10 + $0x1b8] sm:$0xff] }
 0xd77   :  { %8651 = vmatpush1.bf16.msra.mxu0 %v8650_v8  ;;  %v3184_v8 = vld [vmem:[%s17056_s10 + $0x2e8] sm:$0xff] }
 0xd78   :  { %8653 = vmatprep.subr.bf16.mxu0 %v8652_v10  ;;  %v8688_v9 = vpack.c.bf16 %v3184_v8, %v3180_v7  ;;  %v3183_v10 = vld [vmem:[%s17056_s10 + $0x2e0] sm:$0xff]  ;;  %v8732_v7 = vpack.c.bf16 %v3146_v4, %v3142_v54  ;;  %v3141_v8 = vld [vmem:[%s17056_s10 + $0x190] sm:$0xff]  ;;  %v3206_v54 = vld [vmem:[%s17056_s10 + $0x398] sm:$0xff] }
 0xd79   :  { %v8690_v11 = vpack.c.bf16 %v3183_v10, %v3179_v61  ;;  %v3150_v61 = vld [vmem:[%s17056_s10 + $0x1d8] sm:$0xff] }
 0xd7a   :  { %v3154_v10 = vld [vmem:[%s17056_s10 + $0x1f8] sm:$0xff] }
 0xd7b   :  { %8655 = vmatpush1.bf16.msra.mxu0 %v8654_v14  ;;  %v3192_v14 = vld [vmem:[%s17056_s10 + $0x328] sm:$0xff] }
 0xd7c   :  { %8657 = vmatprep.subr.bf16.mxu0 %v8656_v17  ;;  %v8692_v15 = vpack.c.bf16 %v3192_v14, %v3188_v12  ;;  %v3191_v17 = vld [vmem:[%s17056_s10 + $0x320] sm:$0xff]  ;;  %v8736_v12 = vpack.c.bf16 %v3154_v10, %v3150_v61  ;;  %v3149_v14 = vld [vmem:[%s17056_s10 + $0x1d0] sm:$0xff] }
 0xd7d   :  { %v8694_v18 = vpack.c.bf16 %v3191_v17, %v3187_v16  ;;  %v3158_v16 = vld [vmem:[%s17056_s10 + $0x218] sm:$0xff]  ;;  %v3205_v10 = vld [vmem:[%s17056_s10 + $0x390] sm:$0xff] }
 0xd7e   :  { %v3162_v17 = vld [vmem:[%s17056_s10 + $0x238] sm:$0xff] }
 0xd7f   :  { %8659 = vmatpush1.bf16.msra.mxu0 %v8658_v20 }
 0xd80   :  { %8661 = vmatprep.subr.bf16.mxu0 %v8660_v24 }
 0xd83   :  { %8663 = vmatpush1.bf16.msra.mxu0 %v8662_v27  ;;  %v3097_v27 = vld [vmem:[%s17056_s10 + $0x30] sm:$0xff] }
 0xd84   :  { %8665 = vmatprep.subr.bf16.mxu0 %v8664_v31  ;;  %v3106_v31 = vld [vmem:[%s17056_s10 + $0x78] sm:$0xff] }
 0xd85   :  { %v8712_v35 = vpack.c.bf16 %v3106_v31, %v3102_v30  ;;  %v3174_v30 = vld [vmem:[%s17056_s10 + $0x298] sm:$0xff] }
 0xd86   :  { %v3178_v31 = vld [vmem:[%s17056_s10 + $0x2b8] sm:$0xff] }
 0xd87   :  { %8667 = vmatpush1.bf16.msra.mxu0 %v8666_v21  ;;  %v8710_v21 = vpack.c.bf16 %v3097_v27, %v3093_v26  ;;  %v3165_v27 = vld [vmem:[%s17056_s10 + $0x250] sm:$0xff] }
 0xd88   :  { %8669 = vmatprep.subr.bf16.mxu0 %v8668_v36  ;;  %v3101_v36 = vld [vmem:[%s17056_s10 + $0x50] sm:$0xff] }
 0xd89   :  { %v8714_v43 = vpack.c.bf16 %v3105_v39, %v3101_v36  ;;  %v3186_v36 = vld [vmem:[%s17056_s10 + $0x2f8] sm:$0xff] }
 0xd8b   :  { %8671 = vmatpush1.bf16.msra.mxu0 %v8670_v40  ;;  %v3114_v40 = vld [vmem:[%s17056_s10 + $0xb8] sm:$0xff] }
 0xd8c   :  { %8673 = vmatprep.subr.bf16.mxu0 %v8672_v42  ;;  %v8716_v41 = vpack.c.bf16 %v3114_v40, %v3110_v29  ;;  %v3109_v42 = vld [vmem:[%s17056_s10 + $0x90] sm:$0xff] }
 0xd8d   :  { %v3181_v40 = vld [vmem:[%s17056_s10 + $0x2d0] sm:$0xff] }
 0xd8f   :  { %8675 = vmatpush1.bf16.msra.mxu0 %v8674_v46  ;;  %v8718_v46 = vpack.c.bf16 %v3113_v44, %v3109_v42  ;;  %v3194_v42 = vld [vmem:[%s17056_s10 + $0x338] sm:$0xff] }
 0xd90   :  { %8677 = vmatprep.subr.bf16.mxu0 %v8676_v51  ;;  %v3121_v51 = vld [vmem:[%s17056_s10 + $0xf0] sm:$0xff] }
 0xd93   :  { %8679 = vmatpush1.bf16.msra.mxu0 %v8678_v55  ;;  %v8722_v55 = vpack.c.bf16 %v3121_v51, %v3117_v49  ;;  %v3196_v49 = vld [vmem:[%s17056_s10 + $0x348] sm:$0xff] }
 0xd94   :  { %8681 = vmatprep.subr.bf16.mxu0 %v8680_v60  ;;  %v3129_v60 = vld [vmem:[%s17056_s10 + $0x130] sm:$0xff]  ;;  %v3200_v51 = vld [vmem:[%s17056_s10 + $0x368] sm:$0xff] }
 0xd95   :  { %v8696_v53 = vpack.c.bf16 %v3200_v51, %v3196_v49  ;;  %v3410_v49 = vld [vmem:[%s17049_s3 + $0x60] sm:$0xff] }
 0xd97   :  { %8683 = vmatpush1.bf16.msra.mxu0 %v8682_v56  ;;  %v8726_v56 = vpack.c.bf16 %v3129_v60, %v3125_v59  ;;  %v3199_v59 = vld [vmem:[%s17056_s10 + $0x360] sm:$0xff] }
 0xd98   :  { %8685 = vmatprep.subr.bf16.mxu0 %v8684_v58  ;;  %v3137_v58 = vld [vmem:[%s17056_s10 + $0x170] sm:$0xff] }
 0xd9b   :  { %8687 = vmatpush1.bf16.msra.mxu0 %v8686_v5  ;;  %v8730_v5 = vpack.c.bf16 %v3137_v58, %v3133_v1  ;;  %v3204_v1 = vld [vmem:[%s17056_s10 + $0x388] sm:$0xff] }
 0xd9c   :  { %8689 = vmatprep.subr.bf16.mxu0 %v8688_v9  ;;  %v3145_v9 = vld [vmem:[%s17056_s10 + $0x1b0] sm:$0xff]  ;;  %v3208_v58 = vld [vmem:[%s17056_s10 + $0x3a8] sm:$0xff] }
 0xd9d   :  { %v8700_v4 = vpack.c.bf16 %v3208_v58, %v3204_v1  ;;  %v3414_v1 = vld [vmem:[%s17049_s3 + $0x80] sm:$0xff] }
 0xd9e   :  { %v3418_v58 = vld [vmem:[%s17049_s3 + $0xa0] sm:$0xff] }
 0xd9f   :  { %8691 = vmatpush1.bf16.msra.mxu0 %v8690_v11  ;;  %v8734_v11 = vpack.c.bf16 %v3145_v9, %v3141_v8  ;;  %v3207_v8 = vld [vmem:[%s17056_s10 + $0x3a0] sm:$0xff] }
 0xda0   :  { %8693 = vmatprep.subr.bf16.mxu0 %v8692_v15  ;;  %v3153_v15 = vld [vmem:[%s17056_s10 + $0x1f0] sm:$0xff] }
 0xda3   :  { %8695 = vmatpush1.bf16.msra.mxu0 %v8694_v18  ;;  %v8738_v18 = vpack.c.bf16 %v3153_v15, %v3149_v14  ;;  %v3216_v15 = vld [vmem:[%s17056_s10 + $0x3e8] sm:$0xff] }
 0xda4   :  { %8697 = vmatprep.subr.bf16.mxu0 %v8696_v53  ;;  %v3408_v53 = vld [vmem:[%s17049_s3 + $0x50] sm:$0xff] }
 0xe45   :  { %v2987_v19 = vpop.f32.mrb[24].mxu0 }
 0xe46   :  { %v2989_v20 = vpop.f32.mrb[25].mxu0  ;;  %v2988_v32 = vadd.f32 %v2987_v19, %v10852_v13  ;;  %v8740_v19 = vpack.c.bf16 %v3162_v17, %v3158_v16  ;;  %v3214_v16 = vld [vmem:[%s17056_s10 + $0x3d8] sm:$0xff] }
 0xe47   :  { %v2990_v22 = vadd.f32 %v2989_v20, %v10849_v6  ;;  %v3157_v20 = vld [vmem:[%s17056_s10 + $0x210] sm:$0xff]  ;;  %v3218_v17 = vld [vmem:[%s17056_s10 + $0x3f8] sm:$0xff] }
 0xe49   :  { %v2994_v23 = vmul.f32 0.5, %v2990_v22  ;;  %v3161_v22 = vld [vmem:[%s17056_s10 + $0x230] sm:$0xff] }
 0xe4b   :  { %v2995_v24 = vmul.f32 1.442695, %v2994_v23  ;;  %v3166_v23 = vld [vmem:[%s17056_s10 + $0x258] sm:$0xff] }
 0xe4d   :  { %9995 = vpow2.f32 %v2995_v24  ;;  %v3170_v24 = vld [vmem:[%s17056_s10 + $0x278] sm:$0xff] }
 0xe4e   :  { %v8744_v26 = vpack.c.bf16 %v3170_v24, %v3166_v23  ;;  %v3213_v23 = vld [vmem:[%s17056_s10 + $0x3d0] sm:$0xff] }
 0xe57   :  { %v9996_v28 = vpop.eup %9995 }
 0xe58   :  { %v2997_v33 = vmul.f32 %v9996_v28, %v6774_v25  ;;  %v8742_v25 = vpack.c.bf16 %v3161_v22, %v3157_v20  ;;  %v3169_v28 = vld [vmem:[%s17056_s10 + $0x270] sm:$0xff]  ;;  %v3211_v20 = vld [vmem:[%s17056_s10 + $0x3c0] sm:$0xff] }
 0xe59   :  { %v3215_v22 = vld [vmem:[%s17056_s10 + $0x3e0] sm:$0xff] }
 0xe5a   :  { %v2998_v38 = vadd.f32 %v2997_v33, %v2988_v32  ;;  %v8746_v32 = vpack.c.bf16 %v3169_v28, %v3165_v27  ;;  %v8748_v33 = vpack.c.bf16 %v3178_v31, %v3174_v30  ;;  %v8706_v24 = vpack.c.bf16 %v3215_v22, %v3211_v20  ;;  %v3403_v27 = vld [vmem:[%s17049_s3 + $0x28] sm:$0xff]  ;;  %v3401_v31 = vld [vmem:[%s17049_s3 + $0x18] sm:$0xff] }
 0xe5b   :  { %v3431_v20 = vld [vmem:[%s17049_s3 + $0x108] sm:$0xff] }
 0xe5c   :  { %7402 = vmatmul.mubr.f32.vlgmr.msra.gmra.mrb[24].mxu1 %v2998_v38  ;;  %v3177_v38 = vld [vmem:[%s17056_s10 + $0x2b0] sm:$0xff]  ;;  %v3435_v22 = vld [vmem:[%s17049_s3 + $0x128] sm:$0xff] }
 0xe5d   :  { %3354 = vmatprep.mubr.f32.mxu1 %v13129_v48  ;;  %8711 = vmatpush1.bf16.msra.mxu1 %v8710_v21  ;;  %v3122_v48 = vld [vmem:[%s17056_s10 + $0xf8] sm:$0xff]  ;;  %v3173_v21 = vld [vmem:[%s17056_s10 + $0x290] sm:$0xff] }
 0xe5e   :  { %8713 = vmatprep.subr.bf16.mxu1 %v8712_v35  ;;  %v8720_v47 = vpack.c.bf16 %v3122_v48, %v3118_v45  ;;  %v3182_v35 = vld [vmem:[%s17056_s10 + $0x2d8] sm:$0xff]  ;;  %v8750_v39 = vpack.c.bf16 %v3177_v38, %v3173_v21  ;;  %v3189_v48 = vld [vmem:[%s17056_s10 + $0x310] sm:$0xff]  ;;  %v10172_v38 = vld [vmem:[%s17059_s9] ss:$0 sm:$0xff] }
 0xe5f   :  { %v8752_v29 = vpack.c.bf16 %v3186_v36, %v3182_v35 }
 0xe61   :  { %8715 = vmatpush1.bf16.msra.mxu1 %v8714_v43  ;;  %v3185_v43 = vld [vmem:[%s17056_s10 + $0x2f0] sm:$0xff] }
 0xe62   :  { %8717 = vmatprep.subr.bf16.mxu1 %v8716_v41  ;;  %v3190_v41 = vld [vmem:[%s17056_s10 + $0x318] sm:$0xff]  ;;  %v8754_v44 = vpack.c.bf16 %v3185_v43, %v3181_v40  ;;  %v3400_v40 = vld [vmem:[%s17049_s3 + $0x10] sm:$0xff] }
 0xe63   :  { %v8756_v45 = vpack.c.bf16 %v3194_v42, %v3190_v41  ;;  %v3404_v43 = vld [vmem:[%s17049_s3 + $0x30] sm:$0xff]  ;;  %v3407_v41 = vld [vmem:[%s17049_s3 + $0x48] sm:$0xff] }
 0xe64   :  { %v3411_v42 = vld [vmem:[%s17049_s3 + $0x68] sm:$0xff] }
 0xe65   :  { %8719 = vmatpush1.bf16.msra.mxu1 %v8718_v46  ;;  %v3193_v46 = vld [vmem:[%s17056_s10 + $0x330] sm:$0xff]  ;;  %v8776_v51 = vpack.c.bf16 %v3411_v42, %v3407_v41 }
 0xe66   :  { %8721 = vmatprep.subr.bf16.mxu1 %v8720_v47  ;;  %v8758_v47 = vpack.c.bf16 %v3193_v46, %v3189_v48  ;;  %v8806_v46 = vpack.c.bf16 %v3404_v43, %v3400_v40  ;;  %v3438_v40 = vld [vmem:[%s17049_s3 + $0x140] sm:$0xff] }
 0xe67   :  { %v3442_v43 = vld [vmem:[%s17049_s3 + $0x160] sm:$0xff] }
 0xe69   :  { %8723 = vmatpush1.bf16.msra.mxu1 %v8722_v55  ;;  %v3202_v55 = vld [vmem:[%s17056_s10 + $0x378] sm:$0xff] }
 0xe6a   :  { %8725 = vmatprep.subr.bf16.mxu1 %v8724_v57  ;;  %v3195_v57 = vld [vmem:[%s17056_s10 + $0x340] sm:$0xff]  ;;  %v8760_v60 = vpack.c.bf16 %v3202_v55, %v3198_v52  ;;  %v3412_v55 = vld [vmem:[%s17049_s3 + $0x70] sm:$0xff] }
 0xe6b   :  { %v8698_v50 = vpack.c.bf16 %v3199_v59, %v3195_v57  ;;  %v3415_v57 = vld [vmem:[%s17049_s3 + $0x88] sm:$0xff] }
 0xe6d   :  { %8727 = vmatpush1.bf16.msra.mxu1 %v8726_v56  ;;  %v3201_v56 = vld [vmem:[%s17056_s10 + $0x370] sm:$0xff]  ;;  %8699 = vmatpush1.bf16.msra.mxu0 %v8698_v50  ;;  %v3417_v50 = vld [vmem:[%s17049_s3 + $0x98] sm:$0xff] }
 0xe6e   :  { %8729 = vmatprep.subr.bf16.mxu1 %v8728_v0  ;;  %v8762_v0 = vpack.c.bf16 %v3201_v56, %v3197_v62  ;;  %8701 = vmatprep.subr.bf16.mxu0 %v8700_v4  ;;  %v3421_v62 = vld [vmem:[%s17049_s3 + $0xb8] sm:$0xff] }
 0xe6f   :  { %v8812_v4 = vpack.c.bf16 %v3421_v62, %v3417_v50  ;;  %v3452_v50 = vld [vmem:[%s17049_s3 + $0x1b0] sm:$0xff]  ;;  %v3455_v62 = vld [vmem:[%s17049_s3 + $0x1c8] sm:$0xff] }
 0xe71   :  { %8731 = vmatpush1.bf16.msra.mxu1 %v8730_v5  ;;  %v3210_v5 = vld [vmem:[%s17056_s10 + $0x3b8] sm:$0xff] }
 0xe72   :  { %8733 = vmatprep.subr.bf16.mxu1 %v8732_v7  ;;  %v3203_v7 = vld [vmem:[%s17056_s10 + $0x380] sm:$0xff]  ;;  %v8764_v9 = vpack.c.bf16 %v3210_v5, %v3206_v54  ;;  %v3416_v5 = vld [vmem:[%s17049_s3 + $0x90] sm:$0xff] }
 0xe73   :  { %v8702_v61 = vpack.c.bf16 %v3207_v8, %v3203_v7  ;;  %v3420_v7 = vld [vmem:[%s17049_s3 + $0xb0] sm:$0xff]  ;;  %v3423_v8 = vld [vmem:[%s17049_s3 + $0xc8] sm:$0xff] }
 0xe75   :  { %8735 = vmatpush1.bf16.msra.mxu1 %v8734_v11  ;;  %v3209_v11 = vld [vmem:[%s17056_s10 + $0x3b0] sm:$0xff]  ;;  %8703 = vmatpush1.bf16.msra.mxu0 %v8702_v61  ;;  %v3425_v61 = vld [vmem:[%s17049_s3 + $0xd8] sm:$0xff] }
 0xe76   :  { %8737 = vmatprep.subr.bf16.mxu1 %v8736_v12  ;;  %v3212_v12 = vld [vmem:[%s17056_s10 + $0x3c8] sm:$0xff]  ;;  %v8766_v14 = vpack.c.bf16 %v3209_v11, %v3205_v10  ;;  %v3429_v10 = vld [vmem:[%s17049_s3 + $0xf8] sm:$0xff]  ;;  %v8782_v11 = vpack.c.bf16 %v3418_v58, %v3414_v1 }
 0xe77   :  { %v3461_v1 = vld [vmem:[%s17049_s3 + $0x1f8] sm:$0xff] }
 0xe79   :  { %8739 = vmatpush1.bf16.msra.mxu1 %v8738_v18  ;;  %v8704_v18 = vpack.c.bf16 %v3216_v15, %v3212_v12  ;;  %v8814_v12 = vpack.c.bf16 %v3420_v7, %v3416_v5  ;;  %v3426_v15 = vld [vmem:[%s17049_s3 + $0xe0] sm:$0xff] }
 0xe7a   :  { %8741 = vmatprep.subr.bf16.mxu1 %v8740_v19  ;;  %v8768_v19 = vpack.c.bf16 %v3218_v17, %v3214_v16  ;;  %v8816_v17 = vpack.c.bf16 %v3429_v10, %v3425_v61  ;;  %v3460_v61 = vld [vmem:[%s17049_s3 + $0x1f0] sm:$0xff] }
 0xe7b   :  { %8705 = vmatprep.subr.bf16.mxu0 %v8704_v18  ;;  %v3424_v18 = vld [vmem:[%s17049_s3 + $0xd0] sm:$0xff] }
 0xe7c   :  { %8707 = vmatpush1.bf16.msra.mxu0 %v8706_v24  ;;  %v3437_v24 = vld [vmem:[%s17049_s3 + $0x138] sm:$0xff] }
 0xe7d   :  { %8743 = vmatpush1.bf16.msra.mxu1 %v8742_v25  ;;  %v3217_v25 = vld [vmem:[%s17056_s10 + $0x3f0] sm:$0xff] }
 0xe7e   :  { %8745 = vmatprep.subr.bf16.mxu1 %v8744_v26  ;;  %v3399_v26 = vld [vmem:[%s17049_s3 + $0x8] sm:$0xff]  ;;  %v8770_v28 = vpack.c.bf16 %v3217_v25, %v3213_v23  ;;  %v3433_v23 = vld [vmem:[%s17049_s3 + $0x118] sm:$0xff] }
 0xe7f   :  { %v8772_v30 = vpack.c.bf16 %v3403_v27, %v3399_v26  ;;  %v3430_v27 = vld [vmem:[%s17049_s3 + $0x100] sm:$0xff] }
 0xe81   :  { %8747 = vmatpush1.bf16.msra.mxu1 %v8746_v32  ;;  %v3405_v32 = vld [vmem:[%s17049_s3 + $0x38] sm:$0xff]  ;;  %8773 = vmatprep.subr.bf16.mxu0 %v8772_v30  ;;  %v8788_v30 = vpack.c.bf16 %v3435_v22, %v3431_v20  ;;  %v3638_v22 = vld [vmem:[%s17050_s4 + $0x30] sm:$0xff] }
 0xe82   :  { %8749 = vmatprep.subr.bf16.mxu1 %v8748_v33  ;;  %v8804_v33 = vpack.c.bf16 %v3405_v32, %v3401_v31  ;;  %v8820_v31 = vpack.c.bf16 %v3437_v24, %v3433_v23  ;;  %v3432_v32 = vld [vmem:[%s17049_s3 + $0x110] sm:$0xff]  ;;  %v3639_v23 = vld [vmem:[%s17050_s4 + $0x38] sm:$0xff] }
 0xe83   :  { %v8846_v24 = vpack.c.bf16 %v3639_v23, %v3638_v22 }
 0xe85   :  { %8751 = vmatpush1.bf16.msra.mxu1 %v8750_v39  ;;  %v3398_v39 = vld [vmem:[%s17049_s3] sm:$0xff] }
 0xe86   :  { %8753 = vmatprep.subr.bf16.mxu1 %v8752_v29  ;;  %v3402_v29 = vld [vmem:[%s17049_s3 + $0x20] sm:$0xff] }
 0xe87   :  { %v8774_v48 = vpack.c.bf16 %v3402_v29, %v3398_v39 }
 0xe89   :  { %8755 = vmatpush1.bf16.msra.mxu1 %v8754_v44  ;;  %v3409_v44 = vld [vmem:[%s17049_s3 + $0x58] sm:$0xff] }
 0xe8a   :  { %8757 = vmatprep.subr.bf16.mxu1 %v8756_v45  ;;  %v3413_v45 = vld [vmem:[%s17049_s3 + $0x78] sm:$0xff] }
 0xe8b   :  { %v8808_v52 = vpack.c.bf16 %v3413_v45, %v3409_v44  ;;  %v3440_v44 = vld [vmem:[%s17049_s3 + $0x150] sm:$0xff] }
 0xe8c   :  { %v3444_v45 = vld [vmem:[%s17049_s3 + $0x170] sm:$0xff] }
 0xe8d   :  { %8759 = vmatpush1.bf16.msra.mxu1 %v8758_v47  ;;  %v3406_v47 = vld [vmem:[%s17049_s3 + $0x40] sm:$0xff] }
 0xe8e   :  { %8761 = vmatprep.subr.bf16.mxu1 %v8760_v60  ;;  %v3419_v60 = vld [vmem:[%s17049_s3 + $0xa8] sm:$0xff]  ;;  %v8778_v56 = vpack.c.bf16 %v3410_v49, %v3406_v47  ;;  %v3449_v47 = vld [vmem:[%s17049_s3 + $0x198] sm:$0xff] }
 0xe8f   :  { %v8780_v54 = vpack.c.bf16 %v3419_v60, %v3415_v57  ;;  %v3453_v49 = vld [vmem:[%s17049_s3 + $0x1b8] sm:$0xff]  ;;  %v3448_v60 = vld [vmem:[%s17049_s3 + $0x190] sm:$0xff] }
 0xe91   :  { %8763 = vmatpush1.bf16.msra.mxu1 %v8762_v0  ;;  %v8810_v0 = vpack.c.bf16 %v3412_v55, %v3408_v53  ;;  %v3446_v53 = vld [vmem:[%s17049_s3 + $0x180] sm:$0xff] }
 0xe92   :  { %8765 = vmatprep.subr.bf16.mxu1 %v8764_v9  ;;  %v3427_v9 = vld [vmem:[%s17049_s3 + $0xe8] sm:$0xff]  ;;  %v3450_v55 = vld [vmem:[%s17049_s3 + $0x1a0] sm:$0xff] }
 0xe93   :  { %v8784_v16 = vpack.c.bf16 %v3427_v9, %v3423_v8  ;;  %v8798_v58 = vpack.c.bf16 %v3450_v55, %v3446_v53  ;;  %v3458_v8 = vld [vmem:[%s17049_s3 + $0x1e0] sm:$0xff]  ;;  %v3456_v9 = vld [vmem:[%s17049_s3 + $0x1d0] sm:$0xff] }
 0xe94   :  { %v3727_v55 = vld [vmem:[%s17051_s6 + $0x40] sm:$0xff] }
 0xe95   :  { %8767 = vmatpush1.bf16.msra.mxu1 %v8766_v14  ;;  %v3422_v14 = vld [vmem:[%s17049_s3 + $0xc0] sm:$0xff] }
 0xe96   :  { %8769 = vmatprep.subr.bf16.mxu1 %v8768_v19  ;;  %v3428_v19 = vld [vmem:[%s17049_s3 + $0xf0] sm:$0xff]  ;;  %v8786_v25 = vpack.c.bf16 %v3426_v15, %v3422_v14  ;;  %v3633_v14 = vld [vmem:[%s17050_s4 + $0x8] sm:$0xff] }
 0xe97   :  { %v8818_v26 = vpack.c.bf16 %v3428_v19, %v3424_v18  ;;  %v3636_v18 = vld [vmem:[%s17050_s4 + $0x20] sm:$0xff]  ;;  %v3637_v19 = vld [vmem:[%s17050_s4 + $0x28] sm:$0xff] }
 0xe98   :  { %v8843_v20 = vpack.c.bf16 %v3637_v19, %v3636_v18  ;;  %v6778_v18 = vld [vmem:[%s17060_s1 + $0x78] sm:$0xff] }
 0xe99   :  { %8771 = vmatpush1.bf16.msra.mxu1 %v8770_v28  ;;  %v3434_v28 = vld [vmem:[%s17049_s3 + $0x120] sm:$0xff] }
 0xe9a   :  { %8805 = vmatprep.subr.bf16.mxu1 %v8804_v33  ;;  %v3436_v33 = vld [vmem:[%s17049_s3 + $0x130] sm:$0xff]  ;;  %v8790_v39 = vpack.c.bf16 %v3434_v28, %v3430_v27 }
 0xe9b   :  { %v8822_v29 = vpack.c.bf16 %v3436_v33, %v3432_v32  ;;  %v3642_v28 = vld [vmem:[%s17050_s4 + $0x50] sm:$0xff]  ;;  %v3644_v32 = vld [vmem:[%s17050_s4 + $0x60] sm:$0xff]  ;;  %v3645_v33 = vld [vmem:[%s17050_s4 + $0x68] sm:$0xff] }
 0xf2f   :  { %v3081_v21 = vpop.f32.mrb[24].mxu1 }
 0xf30   :  { %v3082_v35 = vadd.f32 %v10172_v38, %v3081_v21  ;;  %v7403_v36 = vpop.f32.mrb[25].mxu1  ;;  %v3439_v21 = vld [vmem:[%s17049_s3 + $0x148] sm:$0xff] }
 0xf31   :  { %v3443_v38 = vld [vmem:[%s17049_s3 + $0x168] sm:$0xff]  ;;  %v3445_v36 = vld [vmem:[%s17049_s3 + $0x178] sm:$0xff] }
 0xf32   :  { %9997 = vtanh.f32 %v3082_v35  ;;  %v3441_v35 = vld [vmem:[%s17049_s3 + $0x158] sm:$0xff]  ;;  %v8792_v41 = vpack.c.bf16 %v3443_v38, %v3439_v21  ;;  %v8855_v21 = vpack.c.bf16 %v3645_v33, %v3644_v32  ;;  %v3646_v38 = vld [vmem:[%s17050_s4 + $0x70] sm:$0xff] }
 0xf33   :  { %v8824_v42 = vpack.c.bf16 %v3445_v36, %v3441_v35  ;;  %v3647_v35 = vld [vmem:[%s17050_s4 + $0x78] sm:$0xff] }
 0xf34   :  { %v8858_v36 = vpack.c.bf16 %v3647_v35, %v3646_v38  ;;  %v6784_v35 = vld [vmem:[%s17052_s0 + $0x80] sm:$0xff] }
 0xf3c   :  { %v9998_v59 = vpop.eup %9997 }
 0xf3d   :  { %3284 = vmatmul.mubr.f32.vlgmr.msra.gmra.mrb[26].mxu0 %v9998_v59  ;;  %3355 = vmatmul.mubr.f32.vlgmr.msra.gmra.mrb[26].mxu1 %v9998_v59  ;;  %v8828_v59 = vpack.c.bf16 %v3453_v49, %v3449_v47  ;;  %v3725_v47 = vld [vmem:[%s17051_s6 + $0x30] sm:$0xff]  ;;  %v3728_v49 = vld [vmem:[%s17051_s6 + $0x48] sm:$0xff] }
 0xf3e   :  { %8775 = vmatpush1.bf16.msra.mxu0 %v8774_v48  ;;  %8807 = vmatpush1.bf16.msra.mxu1 %v8806_v46  ;;  %v3447_v48 = vld [vmem:[%s17049_s3 + $0x188] sm:$0xff] }
 0xf3f   :  { %8777 = vmatprep.subr.bf16.mxu0 %v8776_v51  ;;  %8809 = vmatprep.subr.bf16.mxu1 %v8808_v52  ;;  %v3451_v46 = vld [vmem:[%s17049_s3 + $0x1a8] sm:$0xff]  ;;  %v8794_v51 = vpack.c.bf16 %v3442_v43, %v3438_v40  ;;  %v8826_v52 = vpack.c.bf16 %v3444_v45, %v3440_v44  ;;  %v3719_v40 = vld [vmem:[%s17051_s6] sm:$0xff]  ;;  %v3726_v44 = vld [vmem:[%s17051_s6 + $0x38] sm:$0xff] }
 0xf40   :  { %3526 = vmatprep.mubr.f32.mxu0 %v10181_v3  ;;  %3597 = vmatprep.mubr.f32.mxu1 %v10181_v3  ;;  %v8796_v57 = vpack.c.bf16 %v3451_v46, %v3447_v48  ;;  %v3723_v46 = vld [vmem:[%s17051_s6 + $0x20] sm:$0xff] }
 0xf42   :  { %8779 = vmatpush1.bf16.msra.mxu0 %v8778_v56  ;;  %8811 = vmatpush1.bf16.msra.mxu1 %v8810_v0  ;;  %v3459_v56 = vld [vmem:[%s17049_s3 + $0x1e8] sm:$0xff]  ;;  %v3457_v0 = vld [vmem:[%s17049_s3 + $0x1d8] sm:$0xff] }
 0xf43   :  { %8781 = vmatprep.subr.bf16.mxu0 %v8780_v54  ;;  %8813 = vmatprep.subr.bf16.mxu1 %v8812_v4  ;;  %v8830_v54 = vpack.c.bf16 %v3452_v50, %v3448_v60  ;;  %v3454_v4 = vld [vmem:[%s17049_s3 + $0x1c0] sm:$0xff]  ;;  %v8800_v5 = vpack.c.bf16 %v3459_v56, %v3455_v62  ;;  %v8832_v7 = vpack.c.bf16 %v3461_v1, %v3457_v0  ;;  %v3734_v60 = vld [vmem:[%s17051_s6 + $0x78] sm:$0xff]  ;;  %v3733_v0 = vld [vmem:[%s17051_s6 + $0x70] sm:$0xff] }
 0xf44   :  { %v8802_v10 = vpack.c.bf16 %v3458_v8, %v3454_v4  ;;  %v3731_v56 = vld [vmem:[%s17051_s6 + $0x60] sm:$0xff]  ;;  %v3736_v1 = vld [vmem:[%s17051_s6 + $0x88] sm:$0xff] }
 0xf46   :  { %8783 = vmatpush1.bf16.msra.mxu0 %v8782_v11  ;;  %8815 = vmatpush1.bf16.msra.mxu1 %v8814_v12  ;;  %v8834_v11 = vpack.c.bf16 %v3460_v61, %v3456_v9  ;;  %v3632_v12 = vld [vmem:[%s17050_s4] sm:$0xff]  ;;  %v6776_v61 = vld [vmem:[%s17060_s1 + $0x68] sm:$0xff] }
 0xf47   :  { %8785 = vmatprep.subr.bf16.mxu0 %v8784_v16  ;;  %8817 = vmatprep.subr.bf16.mxu1 %v8816_v17  ;;  %v8837_v15 = vpack.c.bf16 %v3633_v14, %v3632_v12  ;;  %v3635_v16 = vld [vmem:[%s17050_s4 + $0x18] sm:$0xff]  ;;  %v6775_v9 = vld [vmem:[%s17060_s1 + $0x60] sm:$0xff] }
 0xf4a   :  { %8787 = vmatpush1.bf16.msra.mxu0 %v8786_v25  ;;  %8819 = vmatpush1.bf16.msra.mxu1 %v8818_v26  ;;  %v3640_v25 = vld [vmem:[%s17050_s4 + $0x40] sm:$0xff]  ;;  %v3641_v26 = vld [vmem:[%s17050_s4 + $0x48] sm:$0xff] }
 0xf4b   :  { %8789 = vmatprep.subr.bf16.mxu0 %v8788_v30  ;;  %8821 = vmatprep.subr.bf16.mxu1 %v8820_v31  ;;  %v8849_v27 = vpack.c.bf16 %v3641_v26, %v3640_v25  ;;  %v3643_v30 = vld [vmem:[%s17050_s4 + $0x58] sm:$0xff] }
 0xf4c   :  { %v8852_v31 = vpack.c.bf16 %v3643_v30, %v3642_v28 }
 0xf4e   :  { %8791 = vmatpush1.bf16.msra.mxu0 %v8790_v39  ;;  %8823 = vmatpush1.bf16.msra.mxu1 %v8822_v29  ;;  %v3720_v39 = vld [vmem:[%s17051_s6 + $0x8] sm:$0xff]  ;;  %v3722_v29 = vld [vmem:[%s17051_s6 + $0x18] sm:$0xff] }
 0xf4f   :  { %8793 = vmatprep.subr.bf16.mxu0 %v8792_v41  ;;  %8825 = vmatprep.subr.bf16.mxu1 %v8824_v42  ;;  %v8860_v43 = vpack.c.bf16 %v3722_v29, %v3720_v39  ;;  %v3721_v41 = vld [vmem:[%s17051_s6 + $0x10] sm:$0xff]  ;;  %v3724_v42 = vld [vmem:[%s17051_s6 + $0x28] sm:$0xff] }
 0xf50   :  { %v8862_v45 = vpack.c.bf16 %v3721_v41, %v3719_v40  ;;  %v8864_v48 = vpack.c.bf16 %v3726_v44, %v3724_v42 }
 0xf52   :  { %8795 = vmatpush1.bf16.msra.mxu0 %v8794_v51  ;;  %8827 = vmatpush1.bf16.msra.mxu1 %v8826_v52  ;;  %v3730_v51 = vld [vmem:[%s17051_s6 + $0x58] sm:$0xff]  ;;  %v8866_v52 = vpack.c.bf16 %v3725_v47, %v3723_v46  ;;  %v6786_v47 = vld [vmem:[%s17052_s0 + $0x90] sm:$0xff] }
 0xf53   :  { %8797 = vmatprep.subr.bf16.mxu0 %v8796_v57  ;;  %8829 = vmatprep.subr.bf16.mxu1 %v8828_v59  ;;  %v8868_v53 = vpack.c.bf16 %v3730_v51, %v3728_v49  ;;  %v3729_v57 = vld [vmem:[%s17051_s6 + $0x50] sm:$0xff]  ;;  %v3732_v59 = vld [vmem:[%s17051_s6 + $0x68] sm:$0xff] }
 0xf54   :  { %v8870_v50 = vpack.c.bf16 %v3729_v57, %v3727_v55  ;;  %v8872_v62 = vpack.c.bf16 %v3734_v60, %v3732_v59 }
 0xf56   :  { %8799 = vmatpush1.bf16.msra.mxu0 %v8798_v58  ;;  %8831 = vmatpush1.bf16.msra.mxu1 %v8830_v54  ;;  %v3738_v58 = vld [vmem:[%s17051_s6 + $0x98] sm:$0xff]  ;;  %v8874_v54 = vpack.c.bf16 %v3733_v0, %v3731_v56 }
 0xf57   :  { %8801 = vmatprep.subr.bf16.mxu0 %v8800_v5  ;;  %8833 = vmatprep.subr.bf16.mxu1 %v8832_v7  ;;  %v8876_v4 = vpack.c.bf16 %v3738_v58, %v3736_v1  ;;  %v3735_v5 = vld [vmem:[%s17051_s6 + $0x80] sm:$0xff]  ;;  %v3737_v7 = vld [vmem:[%s17051_s6 + $0x90] sm:$0xff] }
 0xf58   :  { %v8878_v8 = vpack.c.bf16 %v3737_v7, %v3735_v5 }
 0xf5a   :  { %8803 = vmatpush1.bf16.msra.mxu0 %v8802_v10  ;;  %8835 = vmatpush1.bf16.msra.mxu1 %v8834_v11 }
 0xf5b   :  { %8836 = vmatprep.subr.bf16.mxu0 %v10182_v37  ;;  %8861 = vmatprep.subr.bf16.mxu1 %v8860_v43 }
 0xf5d   :  { %3527 = vmatmul.mubr.f32.vlgmr.msra.gmra.mrb[28].mxu0 %v13139_v2  ;;  %3598 = vmatmul.mubr.f32.vlgmr.msra.gmra.mrb[28].mxu1 %v13139_v2  ;;  %v3634_v2 = vld [vmem:[%s17050_s4 + $0x10] sm:$0xff] }
 0xf5e   :  { %7436 = vmatprep.mubr.msk.f32.mxu0 %vm10183_vm0, %v10181_v3  ;;  %3815 = vmatprep.mubr.f32.mxu1 %v10181_v3  ;;  %v8840_v17 = vpack.c.bf16 %v3635_v16, %v3634_v2 }
 0xf5f   :  { %8838 = vmatpush3.bf16.msra.mxu0 %v8837_v15  ;;  %8863 = vmatpush1.bf16.msra.mxu1 %v8862_v45 }
 0xf60   :  { %8839 = vmatprep.subr.bf16.mxu0 %v10182_v37  ;;  %8865 = vmatprep.subr.bf16.mxu1 %v8864_v48  ;;  %v6787_v48 = vld [vmem:[%s17052_s0 + $0x98] sm:$0xff] }
 0xf63   :  { %8841 = vmatpush3.bf16.msra.mxu0 %v8840_v17  ;;  %8867 = vmatpush1.bf16.msra.mxu1 %v8866_v52 }
 0xf64   :  { %8842 = vmatprep.subr.bf16.mxu0 %v10182_v37  ;;  %8869 = vmatprep.subr.bf16.mxu1 %v8868_v53 }
 0xf67   :  { %8844 = vmatpush3.bf16.msra.mxu0 %v8843_v20  ;;  %8871 = vmatpush1.bf16.msra.mxu1 %v8870_v50  ;;  %v6777_v20 = vld [vmem:[%s17060_s1 + $0x70] sm:$0xff] }
 0xf68   :  { %8845 = vmatprep.subr.bf16.mxu0 %v10182_v37  ;;  %8873 = vmatprep.subr.bf16.mxu1 %v8872_v62 }
 0xf6b   :  { %8847 = vmatpush3.bf16.msra.mxu0 %v8846_v24  ;;  %8875 = vmatpush1.bf16.msra.mxu1 %v8874_v54 }
 0xf6c   :  { %8848 = vmatprep.subr.bf16.mxu0 %v10182_v37  ;;  %8877 = vmatprep.subr.bf16.mxu1 %v8876_v4 }
 0xf6f   :  { %8850 = vmatpush3.bf16.msra.mxu0 %v8849_v27  ;;  %8879 = vmatpush1.bf16.msra.mxu1 %v8878_v8 }
 0xf70   :  { %8851 = vmatprep.subr.bf16.mxu0 %v10182_v37 }
 0xf73   :  { %8853 = vmatpush3.bf16.msra.mxu0 %v8852_v31 }
 0xf74   :  { %8854 = vmatprep.subr.bf16.mxu0 %v10182_v37 }
 0xf77   :  { %8856 = vmatpush3.bf16.msra.mxu0 %v8855_v21 }
 0xf78   :  { %8857 = vmatprep.subr.bf16.mxu0 %v10182_v37 }
 0xf7b   :  { %8859 = vmatpush3.bf16.msra.mxu0 %v8858_v36  ;;  %v6785_v36 = vld [vmem:[%s17052_s0 + $0x88] sm:$0xff] }
 0xf7c   :  { %8892 = vmatprep.subr.bf16.mxu0 %v10182_v37 }
0x1010   :  { %v3285_v10 = vpop.f32.mrb[26].mxu0  ;;  %v3356_v11 = vpop.f32.mrb[26].mxu1 }
0x1011   :  { %v3361_v12 = vadd.f32 %v6775_v9, %v3285_v10  ;;  %v3287_v14 = vpop.f32.mrb[27].mxu0  ;;  %v3358_v15 = vpop.f32.mrb[27].mxu1  ;;  %v3363_v23 = vadd.f32 %v6777_v20, %v3356_v11  ;;  %v3739_v11 = vld [vmem:[%s17051_s6 + $0xa0] sm:$0xff]  ;;  %v3750_v20 = vld [vmem:[%s17051_s6 + $0xf8] sm:$0xff] }
0x1012   :  { %v3362_v2 = vadd.f32 %v6776_v61, %v3287_v14  ;;  %v3364_v19 = vadd.f32 %v6778_v18, %v3358_v15  ;;  %v3742_v61 = vld [vmem:[%s17051_s6 + $0xb8] sm:$0xff]  ;;  %v3744_v15 = vld [vmem:[%s17051_s6 + $0xc8] sm:$0xff]  ;;  %v3745_v18 = vld [vmem:[%s17051_s6 + $0xd0] sm:$0xff] }
0x1013   :  { %v6779_v16 = vmul.f32 -1.442695, %v3361_v12  ;;  %v3741_v12 = vld [vmem:[%s17051_s6 + $0xb0] sm:$0xff] }
0x1014   :  { %v6780_v17 = vmul.f32 -1.442695, %v3362_v2  ;;  %v6781_v22 = vmul.f32 -1.442695, %v3364_v19  ;;  %v8882_v14 = vpack.c.bf16 %v3741_v12, %v3739_v11  ;;  %v3746_v2 = vld [vmem:[%s17051_s6 + $0xd8] sm:$0xff]  ;;  %v3748_v19 = vld [vmem:[%s17051_s6 + $0xe8] sm:$0xff] }
0x1015   :  { %9999 = vpow2.f32 %v6779_v16  ;;  %v3743_v16 = vld [vmem:[%s17051_s6 + $0xc0] sm:$0xff] }
0x1016   :  { %10001 = vpow2.f32 %v6780_v17  ;;  %v8884_v17 = vpack.c.bf16 %v3746_v2, %v3744_v15  ;;  %v3929_v11 = vld [vmem:[%s17056_s10 + $0x40] sm:$0xff]  ;;  %v3938_v15 = vld [vmem:[%s17056_s10 + $0x88] sm:$0xff] }
0x1017   :  { %10003 = vpow2.f32 %v6781_v22  ;;  %v8886_v22 = vpack.c.bf16 %v3745_v18, %v3743_v16  ;;  %v3933_v12 = vld [vmem:[%s17056_s10 + $0x60] sm:$0xff]  ;;  %v3942_v2 = vld [vmem:[%s17056_s10 + $0xa8] sm:$0xff] }
0x1018   :  { %10005 = vtanh.f32 %v3363_v23  ;;  %v8888_v23 = vpack.c.bf16 %v3750_v20, %v3748_v19  ;;  %v8924_v16 = vpack.c.bf16 %v3942_v2, %v3938_v15  ;;  %v3941_v18 = vld [vmem:[%s17056_s10 + $0xa0] sm:$0xff]  ;;  %v3946_v20 = vld [vmem:[%s17056_s10 + $0xc8] sm:$0xff] }
0x1019   :  { %v4009_v2 = vld [vmem:[%s17056_s10 + $0x2c0] sm:$0xff] }
0x101f   :  { %v10000_v24 = vpop.eup %9999 }
0x1020   :  { %v10002_v25 = vpop.eup %10001  ;;  %v3368_v26 = vadd.f32 1.0, %v10000_v24  ;;  %v3747_v24 = vld [vmem:[%s17051_s6 + $0xe0] sm:$0xff] }
0x1021   :  { %v3374_v27 = vadd.f32 1.0, %v10002_v25  ;;  %v10004_v28 = vpop.eup %10003  ;;  %v3749_v25 = vld [vmem:[%s17051_s6 + $0xf0] sm:$0xff] }
0x1022   :  { %10007 = vrcp.f32 %v3368_v26  ;;  %v10006_v30 = vpop.eup %10005  ;;  %v3381_v21 = vadd.f32 1.0, %v10004_v28  ;;  %v8890_v26 = vpack.c.bf16 %v3749_v25, %v3747_v24  ;;  %v3830_v28 = vld [vmem:[%s17054_s8 + $0x8] sm:$0xff]  ;;  %v3945_v24 = vld [vmem:[%s17056_s10 + $0xc0] sm:$0xff] }
0x1023   :  { %10009 = vrcp.f32 %v3374_v27  ;;  %v3829_v27 = vld [vmem:[%s17054_s8] sm:$0xff] }
0x1024   :  { %10011 = vrcp.f32 %v3381_v21  ;;  %v3949_v25 = vld [vmem:[%s17056_s10 + $0xe0] sm:$0xff] }
0x102c   :  { %v10008_v31 = vpop.eup %10007 }
0x102d   :  { %v10010_v32 = vpop.eup %10009  ;;  %v3385_v33 = vmul.f32 %v10008_v31, %v10006_v30  ;;  %v3831_v30 = vld [vmem:[%s17054_s8 + $0x10] sm:$0xff]  ;;  %v8893_v31 = vpack.c.bf16 %v3830_v28, %v3829_v27  ;;  %v3954_v27 = vld [vmem:[%s17056_s10 + $0x108] sm:$0xff] }
0x102e   :  { %v3384_v38 = vmul.f32 %v10010_v32, %v13120_v34  ;;  %v10012_v49 = vpop.eup %10011  ;;  %v3832_v32 = vld [vmem:[%s17054_s8 + $0x18] sm:$0xff]  ;;  %v3958_v28 = vld [vmem:[%s17056_s10 + $0x128] sm:$0xff] }
0x1030   :  { %v3528_v39 = vpop.f32.mrb[28].mxu0  ;;  %v3599_v29 = vpop.f32.mrb[28].mxu1  ;;  %v13971_v40 = vadd.f32 %v3385_v33, %v3384_v38  ;;  %v8896_v33 = vpack.c.bf16 %v3832_v32, %v3831_v30  ;;  %v10173_v38 = vld [vmem:[%s17055_s5] ss:$0 sm:$0xff]  ;;  %v8932_v30 = vpack.c.bf16 %v3958_v28, %v3954_v27 }
0x1031   :  { %v3604_v43 = vadd.f32 %v6784_v35, %v3528_v39  ;;  %v3530_v41 = vpop.f32.mrb[29].mxu0  ;;  %v3601_v42 = vpop.f32.mrb[29].mxu1  ;;  %v3606_v53 = vadd.f32 %v6786_v47, %v3599_v29  ;;  %v3833_v29 = vld [vmem:[%s17054_s8 + $0x20] sm:$0xff]  ;;  %v3839_v47 = vld [vmem:[%s17054_s8 + $0x50] sm:$0xff] }
0x1032   :  { %v3605_v44 = vadd.f32 %v6785_v36, %v3530_v41  ;;  %10013 = vtanh.f32 %v13971_v40  ;;  %v3607_v46 = vadd.f32 %v6787_v48, %v3601_v42  ;;  %v3835_v42 = vld [vmem:[%s17054_s8 + $0x30] sm:$0xff]  ;;  %v3838_v48 = vld [vmem:[%s17054_s8 + $0x48] sm:$0xff]  ;;  %v3957_v32 = vld [vmem:[%s17056_s10 + $0x120] sm:$0xff] }
0x1033   :  { %v6788_v34 = vmul.f32 -1.442695, %v3604_v43  ;;  %v3834_v43 = vld [vmem:[%s17054_s8 + $0x28] sm:$0xff] }
0x1034   :  { %v6789_v45 = vmul.f32 -1.442695, %v3605_v44  ;;  %v6790_v52 = vmul.f32 -1.442695, %v3607_v46  ;;  %v8899_v41 = vpack.c.bf16 %v3834_v43, %v3833_v29  ;;  %v3836_v44 = vld [vmem:[%s17054_s8 + $0x38] sm:$0xff]  ;;  %v3970_v43 = vld [vmem:[%s17056_s10 + $0x188] sm:$0xff] }
0x1035   :  { %10015 = vpow2.f32 %v6788_v34  ;;  %v8902_v34 = vpack.c.bf16 %v3836_v44, %v3835_v42  ;;  %v3969_v44 = vld [vmem:[%s17056_s10 + $0x180] sm:$0xff] }
0x1036   :  { %10017 = vpow2.f32 %v6789_v45  ;;  %v3837_v45 = vld [vmem:[%s17054_s8 + $0x40] sm:$0xff] }
0x1037   :  { %10019 = vpow2.f32 %v6790_v52  ;;  %v8905_v46 = vpack.c.bf16 %v3838_v48, %v3837_v45  ;;  %v3841_v52 = vld [vmem:[%s17054_s8 + $0x60] sm:$0xff]  ;;  %v3978_v48 = vld [vmem:[%s17056_s10 + $0x1c8] sm:$0xff] }
0x1038   :  { %10021 = vtanh.f32 %v3606_v53  ;;  %v3842_v53 = vld [vmem:[%s17054_s8 + $0x68] sm:$0xff] }
0x103c   :  { %v10014_v51 = vpop.eup %10013 }
0x103d   :  { %v13980_v55 = vmul.f32 %v10014_v51, %v10012_v49  ;;  %v3840_v49 = vld [vmem:[%s17054_s8 + $0x58] sm:$0xff] }
0x103e   :  { %v8908_v51 = vpack.c.bf16 %v3840_v49, %v3839_v47  ;;  %v3977_v49 = vld [vmem:[%s17056_s10 + $0x1c0] sm:$0xff] }
0x103f   :  { %v10016_v57 = vpop.eup %10015  ;;  %6783 = vst [vmem:[%s17061_s12 + $0x18] sm:$0xff] %v13980_v55 }
0x1040   :  { %v10018_v59 = vpop.eup %10017  ;;  %v3611_v60 = vadd.f32 1.0, %v10016_v57  ;;  %v8911_v57 = vpack.c.bf16 %v3842_v53, %v3841_v52  ;;  %v3986_v53 = vld [vmem:[%s17056_s10 + $0x208] sm:$0xff] }
0x1041   :  { %v3617_v50 = vadd.f32 1.0, %v10018_v59  ;;  %v10020_v62 = vpop.eup %10019  ;;  %v3843_v59 = vld [vmem:[%s17054_s8 + $0x70] sm:$0xff] }
0x1042   :  { %10023 = vrcp.f32 %v3611_v60  ;;  %v10022_v56 = vpop.eup %10021  ;;  %v3624_v54 = vadd.f32 1.0, %v10020_v62  ;;  %v3844_v60 = vld [vmem:[%s17054_s8 + $0x78] sm:$0xff]  ;;  %v3922_v62 = vld [vmem:[%s17056_s10 + $0x8] sm:$0xff] }
0x1043   :  { %10025 = vrcp.f32 %v3617_v50  ;;  %v8914_v50 = vpack.c.bf16 %v3844_v60, %v3843_v59  ;;  %v3985_v60 = vld [vmem:[%s17056_s10 + $0x200] sm:$0xff] }
0x1044   :  { %10027 = vrcp.f32 %v3624_v54  ;;  %v3921_v54 = vld [vmem:[%s17056_s10] sm:$0xff] }
0x104c   :  { %v10024_v0 = vpop.eup %10023 }
0x104d   :  { %v10026_v1 = vpop.eup %10025  ;;  %v3628_v58 = vmul.f32 %v10024_v0, %v10022_v56  ;;  %v3926_v56 = vld [vmem:[%s17056_s10 + $0x28] sm:$0xff]  ;;  %v3924_v0 = vld [vmem:[%s17056_s10 + $0x18] sm:$0xff] }
0x104e   :  { %v3627_v4 = vmul.f32 %v10026_v1, %v13136_v63  ;;  %v10028_v7 = vpop.eup %10027  ;;  %v3740_v63 = vld [vmem:[%s17051_s6 + $0xa8] sm:$0xff]  ;;  %v8916_v1 = vpack.c.bf16 %v3926_v56, %v3922_v62 }
0x104f   :  { %v8880_v10 = vpack.c.bf16 %v3742_v61, %v3740_v63  ;;  %v3930_v63 = vld [vmem:[%s17056_s10 + $0x48] sm:$0xff] }
0x1050   :  { %v13987_v5 = vadd.f32 %v3628_v58, %v3627_v4  ;;  %v3928_v58 = vld [vmem:[%s17056_s10 + $0x38] sm:$0xff]  ;;  %v3925_v4 = vld [vmem:[%s17056_s10 + $0x20] sm:$0xff]  ;;  %v3934_v61 = vld [vmem:[%s17056_s10 + $0x68] sm:$0xff] }
0x1051   :  { %8881 = vmatprep.subr.bf16.mxu1 %v8880_v10  ;;  %v8920_v10 = vpack.c.bf16 %v3934_v61, %v3930_v63  ;;  %v3994_v56 = vld [vmem:[%s17056_s10 + $0x248] sm:$0xff]  ;;  %v4001_v61 = vld [vmem:[%s17056_s10 + $0x280] sm:$0xff] }
0x1052   :  { %10029 = vtanh.f32 %v13987_v5  ;;  %8883 = vmatpush1.bf16.msra.mxu1 %v8882_v14  ;;  %v8922_v14 = vpack.c.bf16 %v3933_v12, %v3929_v11  ;;  %v4010_v12 = vld [vmem:[%s17056_s10 + $0x2c8] sm:$0xff] }
0x1053   :  { %8885 = vmatprep.subr.bf16.mxu1 %v8884_v17  ;;  %v3937_v17 = vld [vmem:[%s17056_s10 + $0x80] sm:$0xff] }
0x1054   :  { %v8926_v19 = vpack.c.bf16 %v3941_v18, %v3937_v17  ;;  %v4018_v18 = vld [vmem:[%s17056_s10 + $0x308] sm:$0xff] }
0x1056   :  { %8887 = vmatpush1.bf16.msra.mxu1 %v8886_v22  ;;  %v3950_v22 = vld [vmem:[%s17056_s10 + $0xe8] sm:$0xff] }
0x1057   :  { %8889 = vmatprep.subr.bf16.mxu1 %v8888_v23  ;;  %v8928_v23 = vpack.c.bf16 %v3950_v22, %v3946_v20  ;;  %v4017_v22 = vld [vmem:[%s17056_s10 + $0x300] sm:$0xff] }
0x105a   :  { %8891 = vmatpush1.bf16.msra.mxu1 %v8890_v26  ;;  %v8930_v26 = vpack.c.bf16 %v3949_v25, %v3945_v24 }
0x105b   :  { %8917 = vmatprep.subr.bf16.mxu1 %v8916_v1 }
0x105c   :  { %v10030_v8 = vpop.eup %10029 }
0x105d   :  { %v13990_v9 = vmul.f32 %v10030_v8, %v10028_v7  ;;  %v8980_v7 = vpack.c.bf16 %v3928_v58, %v3924_v0  ;;  %v8918_v8 = vpack.c.bf16 %v3925_v4, %v3921_v54  ;;  %v3998_v0 = vld [vmem:[%s17056_s10 + $0x268] sm:$0xff]  ;;  %v3993_v58 = vld [vmem:[%s17056_s10 + $0x240] sm:$0xff] }
0x105e   :  { %v8952_v1 = vpack.c.bf16 %v3998_v0, %v3994_v56  ;;  %v3997_v54 = vld [vmem:[%s17056_s10 + $0x260] sm:$0xff]  ;;  %v3955_v0 = vld [vmem:[%s17056_s10 + $0x110] sm:$0xff] }
0x105f   :  { %7437 = vmatmul.mubr.f32.vlgmr.msra.gmra.mrb[30].mxu0 %v13990_v9  ;;  %6799 = vst [vmem:[%s17053_s11 + $0x20] sm:$0xff] %v13990_v9  ;;  %v8954_v4 = vpack.c.bf16 %v3997_v54, %v3993_v58  ;;  %v3964_v58 = vld [vmem:[%s17056_s10 + $0x158] sm:$0xff] }
0x1060   :  { %7471 = vmatprep.mubr.msk.f32.mxu0 %vm10183_vm0, %v10181_v3  ;;  %8894 = vmatpush3.bf16.msra.mxu0 %v8893_v31  ;;  %v3953_v31 = vld [vmem:[%s17056_s10 + $0x100] sm:$0xff]  ;;  %v3968_v54 = vld [vmem:[%s17056_s10 + $0x178] sm:$0xff] }
0x1061   :  { %8895 = vmatprep.subr.bf16.mxu0 %v10182_v37 }
0x1064   :  { %8897 = vmatpush3.bf16.msra.mxu0 %v8896_v33  ;;  %v8934_v33 = vpack.c.bf16 %v3957_v32, %v3953_v31  ;;  %v6791_v31 = vld [vmem:[%s17058_s2 + $0x20] sm:$0xff]  ;;  %v3923_v32 = vld [vmem:[%s17056_s10 + $0x10] sm:$0xff] }
0x1065   :  { %8898 = vmatprep.subr.bf16.mxu0 %v10182_v37 }
0x1068   :  { %8900 = vmatpush3.bf16.msra.mxu0 %v8899_v41  ;;  %v3974_v41 = vld [vmem:[%s17056_s10 + $0x1a8] sm:$0xff] }
0x1069   :  { %8901 = vmatprep.subr.bf16.mxu0 %v10182_v37  ;;  %v8940_v42 = vpack.c.bf16 %v3974_v41, %v3970_v43 }
0x106c   :  { %8903 = vmatpush3.bf16.msra.mxu0 %v8902_v34  ;;  %v3973_v34 = vld [vmem:[%s17056_s10 + $0x1a0] sm:$0xff] }
0x106d   :  { %8904 = vmatprep.subr.bf16.mxu0 %v10182_v37  ;;  %v8942_v45 = vpack.c.bf16 %v3973_v34, %v3969_v44  ;;  %v3935_v44 = vld [vmem:[%s17056_s10 + $0x70] sm:$0xff]  ;;  %v3940_v34 = vld [vmem:[%s17056_s10 + $0x98] sm:$0xff] }
0x1070   :  { %8906 = vmatpush3.bf16.msra.mxu0 %v8905_v46  ;;  %v3982_v46 = vld [vmem:[%s17056_s10 + $0x1e8] sm:$0xff] }
0x1071   :  { %8907 = vmatprep.subr.bf16.mxu0 %v10182_v37  ;;  %v8944_v47 = vpack.c.bf16 %v3982_v46, %v3978_v48 }
0x1074   :  { %8909 = vmatpush3.bf16.msra.mxu0 %v8908_v51  ;;  %v3981_v51 = vld [vmem:[%s17056_s10 + $0x1e0] sm:$0xff] }
0x1075   :  { %8910 = vmatprep.subr.bf16.mxu0 %v10182_v37  ;;  %v8946_v52 = vpack.c.bf16 %v3981_v51, %v3977_v49  ;;  %v3943_v49 = vld [vmem:[%s17056_s10 + $0xb0] sm:$0xff]  ;;  %v3948_v51 = vld [vmem:[%s17056_s10 + $0xd8] sm:$0xff] }
0x1078   :  { %8912 = vmatpush3.bf16.msra.mxu0 %v8911_v57  ;;  %v3990_v57 = vld [vmem:[%s17056_s10 + $0x228] sm:$0xff] }
0x1079   :  { %8913 = vmatprep.subr.bf16.mxu0 %v10182_v37  ;;  %v8948_v59 = vpack.c.bf16 %v3990_v57, %v3986_v53  ;;  %v3947_v57 = vld [vmem:[%s17056_s10 + $0xd0] sm:$0xff] }
0x107c   :  { %8915 = vmatpush3.bf16.msra.mxu0 %v8914_v50  ;;  %v3989_v50 = vld [vmem:[%s17056_s10 + $0x220] sm:$0xff] }
0x107d   :  { %8981 = vmatprep.subr.bf16.mxu0 %v8980_v7  ;;  %v8950_v62 = vpack.c.bf16 %v3989_v50, %v3985_v60  ;;  %v4002_v7 = vld [vmem:[%s17056_s10 + $0x288] sm:$0xff]  ;;  %v3956_v60 = vld [vmem:[%s17056_s10 + $0x118] sm:$0xff] }
0x107e   :  { %v3960_v50 = vld [vmem:[%s17056_s10 + $0x138] sm:$0xff] }
0x107f   :  { %v8996_v56 = vpack.c.bf16 %v3960_v50, %v3956_v60  ;;  %v4028_v60 = vld [vmem:[%s17056_s10 + $0x358] sm:$0xff] }
0x1132   :  { %v3714_v21 = vpop.f32.mrb[30].mxu0 }
0x1133   :  { %v3715_v35 = vadd.f32 %v10173_v38, %v3714_v21  ;;  %v7438_v36 = vpop.f32.mrb[31].mxu0  ;;  %v3962_v21 = vld [vmem:[%s17056_s10 + $0x148] sm:$0xff] }
0x1134   :  { %v3966_v38 = vld [vmem:[%s17056_s10 + $0x168] sm:$0xff]  ;;  %v3961_v36 = vld [vmem:[%s17056_s10 + $0x140] sm:$0xff] }
0x1135   :  { %10031 = vtanh.f32 %v3715_v35  ;;  %v8936_v35 = vpack.c.bf16 %v3966_v38, %v3962_v21  ;;  %v3932_v38 = vld [vmem:[%s17056_s10 + $0x58] sm:$0xff] }
0x113f   :  { %v10032_v39 = vpop.eup %10031 }
0x1140   :  { %3816 = vmatmul.mubr.f32.vlgmr.msra.gmra.mrb[30].mxu1 %v10032_v39  ;;  %v3965_v39 = vld [vmem:[%s17056_s10 + $0x160] sm:$0xff] }
0x1141   :  { %4113 = vmatprep.mubr.f32.mxu1 %v13980_v55  ;;  %8919 = vmatpush1.bf16.msra.mxu1 %v8918_v8  ;;  %v8938_v29 = vpack.c.bf16 %v3965_v39, %v3961_v36  ;;  %v4006_v8 = vld [vmem:[%s17056_s10 + $0x2a8] sm:$0xff] }
0x1142   :  { %8921 = vmatprep.subr.bf16.mxu1 %v8920_v10  ;;  %v8956_v63 = vpack.c.bf16 %v4006_v8, %v4002_v7  ;;  %v4005_v10 = vld [vmem:[%s17056_s10 + $0x2a0] sm:$0xff]  ;;  %v9000_v7 = vpack.c.bf16 %v3968_v54, %v3964_v58  ;;  %v3963_v8 = vld [vmem:[%s17056_s10 + $0x150] sm:$0xff] }
0x1143   :  { %v8958_v11 = vpack.c.bf16 %v4005_v10, %v4001_v61  ;;  %v3972_v61 = vld [vmem:[%s17056_s10 + $0x198] sm:$0xff]  ;;  %v4027_v54 = vld [vmem:[%s17056_s10 + $0x350] sm:$0xff] }
0x1144   :  { %v3976_v10 = vld [vmem:[%s17056_s10 + $0x1b8] sm:$0xff] }
0x1145   :  { %8923 = vmatpush1.bf16.msra.mxu1 %v8922_v14  ;;  %v4014_v14 = vld [vmem:[%s17056_s10 + $0x2e8] sm:$0xff] }
0x1146   :  { %8925 = vmatprep.subr.bf16.mxu1 %v8924_v16  ;;  %v8960_v15 = vpack.c.bf16 %v4014_v14, %v4010_v12  ;;  %v4013_v16 = vld [vmem:[%s17056_s10 + $0x2e0] sm:$0xff]  ;;  %v9004_v12 = vpack.c.bf16 %v3976_v10, %v3972_v61  ;;  %v3971_v14 = vld [vmem:[%s17056_s10 + $0x190] sm:$0xff]  ;;  %v4036_v61 = vld [vmem:[%s17056_s10 + $0x398] sm:$0xff] }
0x1147   :  { %v8962_v17 = vpack.c.bf16 %v4013_v16, %v4009_v2  ;;  %v3980_v2 = vld [vmem:[%s17056_s10 + $0x1d8] sm:$0xff] }
0x1148   :  { %v3984_v16 = vld [vmem:[%s17056_s10 + $0x1f8] sm:$0xff] }
0x1149   :  { %8927 = vmatpush1.bf16.msra.mxu1 %v8926_v19  ;;  %v4022_v19 = vld [vmem:[%s17056_s10 + $0x328] sm:$0xff] }
0x114a   :  { %8929 = vmatprep.subr.bf16.mxu1 %v8928_v23  ;;  %v8964_v20 = vpack.c.bf16 %v4022_v19, %v4018_v18  ;;  %v4021_v23 = vld [vmem:[%s17056_s10 + $0x320] sm:$0xff]  ;;  %v9008_v18 = vpack.c.bf16 %v3984_v16, %v3980_v2  ;;  %v3979_v19 = vld [vmem:[%s17056_s10 + $0x1d0] sm:$0xff] }
0x114b   :  { %v8966_v24 = vpack.c.bf16 %v4021_v23, %v4017_v22  ;;  %v3988_v22 = vld [vmem:[%s17056_s10 + $0x218] sm:$0xff]  ;;  %v4035_v16 = vld [vmem:[%s17056_s10 + $0x390] sm:$0xff] }
0x114c   :  { %v3992_v23 = vld [vmem:[%s17056_s10 + $0x238] sm:$0xff] }
0x114d   :  { %8931 = vmatpush1.bf16.msra.mxu1 %v8930_v26 }
0x114e   :  { %8933 = vmatprep.subr.bf16.mxu1 %v8932_v30 }
0x1151   :  { %8935 = vmatpush1.bf16.msra.mxu1 %v8934_v33  ;;  %v3927_v33 = vld [vmem:[%s17056_s10 + $0x30] sm:$0xff] }
0x1152   :  { %8937 = vmatprep.subr.bf16.mxu1 %v8936_v35  ;;  %v3936_v35 = vld [vmem:[%s17056_s10 + $0x78] sm:$0xff] }
0x1153   :  { %v8984_v41 = vpack.c.bf16 %v3936_v35, %v3932_v38  ;;  %v4004_v38 = vld [vmem:[%s17056_s10 + $0x298] sm:$0xff] }
0x1154   :  { %v4008_v35 = vld [vmem:[%s17056_s10 + $0x2b8] sm:$0xff] }
0x1155   :  { %8939 = vmatpush1.bf16.msra.mxu1 %v8938_v29  ;;  %v8982_v29 = vpack.c.bf16 %v3927_v33, %v3923_v32  ;;  %v3995_v33 = vld [vmem:[%s17056_s10 + $0x250] sm:$0xff] }
0x1156   :  { %8941 = vmatprep.subr.bf16.mxu1 %v8940_v42  ;;  %v3931_v42 = vld [vmem:[%s17056_s10 + $0x50] sm:$0xff] }
0x1157   :  { %v8986_v48 = vpack.c.bf16 %v3935_v44, %v3931_v42  ;;  %v4016_v42 = vld [vmem:[%s17056_s10 + $0x2f8] sm:$0xff] }
0x1159   :  { %8943 = vmatpush1.bf16.msra.mxu1 %v8942_v45  ;;  %v3944_v45 = vld [vmem:[%s17056_s10 + $0xb8] sm:$0xff] }
0x115a   :  { %8945 = vmatprep.subr.bf16.mxu1 %v8944_v47  ;;  %v8988_v46 = vpack.c.bf16 %v3944_v45, %v3940_v34  ;;  %v3939_v47 = vld [vmem:[%s17056_s10 + $0x90] sm:$0xff] }
0x115b   :  { %v4011_v45 = vld [vmem:[%s17056_s10 + $0x2d0] sm:$0xff] }
0x115d   :  { %8947 = vmatpush1.bf16.msra.mxu1 %v8946_v52  ;;  %v8990_v52 = vpack.c.bf16 %v3943_v49, %v3939_v47  ;;  %v4024_v47 = vld [vmem:[%s17056_s10 + $0x338] sm:$0xff] }
0x115e   :  { %8949 = vmatprep.subr.bf16.mxu1 %v8948_v59  ;;  %v3951_v59 = vld [vmem:[%s17056_s10 + $0xf0] sm:$0xff] }
0x1161   :  { %8951 = vmatpush1.bf16.msra.mxu1 %v8950_v62  ;;  %v8994_v62 = vpack.c.bf16 %v3951_v59, %v3947_v57  ;;  %v4026_v57 = vld [vmem:[%s17056_s10 + $0x348] sm:$0xff] }
0x1162   :  { %8953 = vmatprep.subr.bf16.mxu1 %v8952_v1  ;;  %v3959_v1 = vld [vmem:[%s17056_s10 + $0x130] sm:$0xff]  ;;  %v4030_v59 = vld [vmem:[%s17056_s10 + $0x368] sm:$0xff] }
0x1163   :  { %v8968_v50 = vpack.c.bf16 %v4030_v59, %v4026_v57  ;;  %v4240_v57 = vld [vmem:[%s17049_s3 + $0x60] sm:$0xff] }
0x1165   :  { %8955 = vmatpush1.bf16.msra.mxu1 %v8954_v4  ;;  %v8998_v4 = vpack.c.bf16 %v3959_v1, %v3955_v0  ;;  %v4029_v0 = vld [vmem:[%s17056_s10 + $0x360] sm:$0xff] }
0x1166   :  { %8957 = vmatprep.subr.bf16.mxu1 %v8956_v63  ;;  %v3967_v63 = vld [vmem:[%s17056_s10 + $0x170] sm:$0xff] }
0x1169   :  { %8959 = vmatpush1.bf16.msra.mxu1 %v8958_v11  ;;  %v9002_v11 = vpack.c.bf16 %v3967_v63, %v3963_v8  ;;  %v4034_v8 = vld [vmem:[%s17056_s10 + $0x388] sm:$0xff] }
0x116a   :  { %8961 = vmatprep.subr.bf16.mxu1 %v8960_v15  ;;  %v3975_v15 = vld [vmem:[%s17056_s10 + $0x1b0] sm:$0xff]  ;;  %v4038_v63 = vld [vmem:[%s17056_s10 + $0x3a8] sm:$0xff] }
0x116b   :  { %v8972_v10 = vpack.c.bf16 %v4038_v63, %v4034_v8  ;;  %v4244_v8 = vld [vmem:[%s17049_s3 + $0x80] sm:$0xff] }
0x116c   :  { %v4248_v63 = vld [vmem:[%s17049_s3 + $0xa0] sm:$0xff] }
0x116d   :  { %8963 = vmatpush1.bf16.msra.mxu1 %v8962_v17  ;;  %v9006_v17 = vpack.c.bf16 %v3975_v15, %v3971_v14  ;;  %v4037_v14 = vld [vmem:[%s17056_s10 + $0x3a0] sm:$0xff] }
0x116e   :  { %8965 = vmatprep.subr.bf16.mxu1 %v8964_v20  ;;  %v3983_v20 = vld [vmem:[%s17056_s10 + $0x1f0] sm:$0xff] }
0x1171   :  { %8967 = vmatpush1.bf16.msra.mxu1 %v8966_v24  ;;  %v9010_v24 = vpack.c.bf16 %v3983_v20, %v3979_v19  ;;  %v4046_v20 = vld [vmem:[%s17056_s10 + $0x3e8] sm:$0xff] }
0x1172   :  { %8969 = vmatprep.subr.bf16.mxu1 %v8968_v50  ;;  %v4238_v50 = vld [vmem:[%s17049_s3 + $0x50] sm:$0xff] }
0x1213   :  { %v3817_v25 = vpop.f32.mrb[30].mxu1 }
0x1214   :  { %v3819_v26 = vpop.f32.mrb[31].mxu1  ;;  %v3818_v36 = vadd.f32 %v3817_v25, %v10852_v13  ;;  %v9012_v25 = vpack.c.bf16 %v3992_v23, %v3988_v22  ;;  %v4044_v22 = vld [vmem:[%s17056_s10 + $0x3d8] sm:$0xff] }
0x1215   :  { %v3820_v27 = vadd.f32 %v3819_v26, %v10849_v6  ;;  %v3987_v26 = vld [vmem:[%s17056_s10 + $0x210] sm:$0xff]  ;;  %v4048_v23 = vld [vmem:[%s17056_s10 + $0x3f8] sm:$0xff] }
0x1217   :  { %v3824_v28 = vmul.f32 0.5, %v3820_v27  ;;  %v3991_v27 = vld [vmem:[%s17056_s10 + $0x230] sm:$0xff] }
0x1219   :  { %v3825_v30 = vmul.f32 1.442695, %v3824_v28  ;;  %v3996_v28 = vld [vmem:[%s17056_s10 + $0x258] sm:$0xff] }
0x121b   :  { %10033 = vpow2.f32 %v3825_v30  ;;  %v4000_v30 = vld [vmem:[%s17056_s10 + $0x278] sm:$0xff] }
0x121c   :  { %v9016_v32 = vpack.c.bf16 %v4000_v30, %v3996_v28  ;;  %v4043_v28 = vld [vmem:[%s17056_s10 + $0x3d0] sm:$0xff] }
0x1225   :  { %v10034_v21 = vpop.eup %10033 }
0x1226   :  { %v3827_v39 = vmul.f32 %v10034_v21, %v6791_v31  ;;  %v9014_v31 = vpack.c.bf16 %v3991_v27, %v3987_v26  ;;  %v3999_v21 = vld [vmem:[%s17056_s10 + $0x270] sm:$0xff]  ;;  %v4041_v26 = vld [vmem:[%s17056_s10 + $0x3c0] sm:$0xff] }
0x1227   :  { %v4045_v27 = vld [vmem:[%s17056_s10 + $0x3e0] sm:$0xff] }
0x1228   :  { %v3828_v43 = vadd.f32 %v3827_v39, %v3818_v36  ;;  %v9018_v36 = vpack.c.bf16 %v3999_v21, %v3995_v33  ;;  %v9020_v39 = vpack.c.bf16 %v4008_v35, %v4004_v38  ;;  %v8978_v30 = vpack.c.bf16 %v4045_v27, %v4041_v26  ;;  %v4233_v33 = vld [vmem:[%s17049_s3 + $0x28] sm:$0xff]  ;;  %v4231_v35 = vld [vmem:[%s17049_s3 + $0x18] sm:$0xff] }
0x1229   :  { %v4261_v26 = vld [vmem:[%s17049_s3 + $0x108] sm:$0xff] }
0x122a   :  { %7472 = vmatmul.mubr.f32.vlgmr.msra.gmra.mrb[32].mxu0 %v3828_v43  ;;  %v4007_v43 = vld [vmem:[%s17056_s10 + $0x2b0] sm:$0xff]  ;;  %v4265_v27 = vld [vmem:[%s17049_s3 + $0x128] sm:$0xff] }
0x122b   :  { %4184 = vmatprep.mubr.f32.mxu0 %v13980_v55  ;;  %8983 = vmatpush1.bf16.msra.mxu0 %v8982_v29  ;;  %v3952_v55 = vld [vmem:[%s17056_s10 + $0xf8] sm:$0xff]  ;;  %v4003_v29 = vld [vmem:[%s17056_s10 + $0x290] sm:$0xff] }
0x122c   :  { %8985 = vmatprep.subr.bf16.mxu0 %v8984_v41  ;;  %v8992_v53 = vpack.c.bf16 %v3952_v55, %v3948_v51  ;;  %v4012_v41 = vld [vmem:[%s17056_s10 + $0x2d8] sm:$0xff]  ;;  %v9022_v44 = vpack.c.bf16 %v4007_v43, %v4003_v29  ;;  %v4019_v55 = vld [vmem:[%s17056_s10 + $0x310] sm:$0xff]  ;;  %v10174_v43 = vld [vmem:[%s17059_s9] ss:$0 sm:$0xff] }
0x122d   :  { %v9024_v34 = vpack.c.bf16 %v4016_v42, %v4012_v41 }
0x122f   :  { %8987 = vmatpush1.bf16.msra.mxu0 %v8986_v48  ;;  %v4015_v48 = vld [vmem:[%s17056_s10 + $0x2f0] sm:$0xff] }
0x1230   :  { %8989 = vmatprep.subr.bf16.mxu0 %v8988_v46  ;;  %v4020_v46 = vld [vmem:[%s17056_s10 + $0x318] sm:$0xff]  ;;  %v9026_v49 = vpack.c.bf16 %v4015_v48, %v4011_v45  ;;  %v4230_v45 = vld [vmem:[%s17049_s3 + $0x10] sm:$0xff] }
0x1231   :  { %v9028_v51 = vpack.c.bf16 %v4024_v47, %v4020_v46  ;;  %v4234_v48 = vld [vmem:[%s17049_s3 + $0x30] sm:$0xff]  ;;  %v4237_v46 = vld [vmem:[%s17049_s3 + $0x48] sm:$0xff] }
0x1232   :  { %v4241_v47 = vld [vmem:[%s17049_s3 + $0x68] sm:$0xff] }
0x1233   :  { %8991 = vmatpush1.bf16.msra.mxu0 %v8990_v52  ;;  %v4023_v52 = vld [vmem:[%s17056_s10 + $0x330] sm:$0xff]  ;;  %v9048_v59 = vpack.c.bf16 %v4241_v47, %v4237_v46 }
0x1234   :  { %8993 = vmatprep.subr.bf16.mxu0 %v8992_v53  ;;  %v9030_v53 = vpack.c.bf16 %v4023_v52, %v4019_v55  ;;  %v9078_v52 = vpack.c.bf16 %v4234_v48, %v4230_v45  ;;  %v4268_v45 = vld [vmem:[%s17049_s3 + $0x140] sm:$0xff] }
0x1235   :  { %v4272_v48 = vld [vmem:[%s17049_s3 + $0x160] sm:$0xff] }
0x1237   :  { %8995 = vmatpush1.bf16.msra.mxu0 %v8994_v62  ;;  %v4032_v62 = vld [vmem:[%s17056_s10 + $0x378] sm:$0xff] }
0x1238   :  { %8997 = vmatprep.subr.bf16.mxu0 %v8996_v56  ;;  %v4025_v56 = vld [vmem:[%s17056_s10 + $0x340] sm:$0xff]  ;;  %v9032_v1 = vpack.c.bf16 %v4032_v62, %v4028_v60  ;;  %v4242_v62 = vld [vmem:[%s17049_s3 + $0x70] sm:$0xff] }
0x1239   :  { %v8970_v58 = vpack.c.bf16 %v4029_v0, %v4025_v56  ;;  %v4245_v56 = vld [vmem:[%s17049_s3 + $0x88] sm:$0xff] }
0x123b   :  { %8999 = vmatpush1.bf16.msra.mxu0 %v8998_v4  ;;  %v4031_v4 = vld [vmem:[%s17056_s10 + $0x370] sm:$0xff]  ;;  %8971 = vmatpush1.bf16.msra.mxu1 %v8970_v58  ;;  %v4247_v58 = vld [vmem:[%s17049_s3 + $0x98] sm:$0xff] }
0x123c   :  { %9001 = vmatprep.subr.bf16.mxu0 %v9000_v7  ;;  %v9034_v7 = vpack.c.bf16 %v4031_v4, %v4027_v54  ;;  %8973 = vmatprep.subr.bf16.mxu1 %v8972_v10  ;;  %v4251_v54 = vld [vmem:[%s17049_s3 + $0xb8] sm:$0xff] }
0x123d   :  { %v9084_v10 = vpack.c.bf16 %v4251_v54, %v4247_v58  ;;  %v4282_v58 = vld [vmem:[%s17049_s3 + $0x1b0] sm:$0xff]  ;;  %v4285_v54 = vld [vmem:[%s17049_s3 + $0x1c8] sm:$0xff] }
0x123f   :  { %9003 = vmatpush1.bf16.msra.mxu0 %v9002_v11  ;;  %v4040_v11 = vld [vmem:[%s17056_s10 + $0x3b8] sm:$0xff] }
0x1240   :  { %9005 = vmatprep.subr.bf16.mxu0 %v9004_v12  ;;  %v4033_v12 = vld [vmem:[%s17056_s10 + $0x380] sm:$0xff]  ;;  %v9036_v15 = vpack.c.bf16 %v4040_v11, %v4036_v61  ;;  %v4246_v11 = vld [vmem:[%s17049_s3 + $0x90] sm:$0xff] }
0x1241   :  { %v8974_v2 = vpack.c.bf16 %v4037_v14, %v4033_v12  ;;  %v4250_v12 = vld [vmem:[%s17049_s3 + $0xb0] sm:$0xff]  ;;  %v4253_v14 = vld [vmem:[%s17049_s3 + $0xc8] sm:$0xff] }
0x1243   :  { %9007 = vmatpush1.bf16.msra.mxu0 %v9006_v17  ;;  %v4039_v17 = vld [vmem:[%s17056_s10 + $0x3b0] sm:$0xff]  ;;  %8975 = vmatpush1.bf16.msra.mxu1 %v8974_v2  ;;  %v4255_v2 = vld [vmem:[%s17049_s3 + $0xd8] sm:$0xff] }
0x1244   :  { %9009 = vmatprep.subr.bf16.mxu0 %v9008_v18  ;;  %v4042_v18 = vld [vmem:[%s17056_s10 + $0x3c8] sm:$0xff]  ;;  %v9038_v19 = vpack.c.bf16 %v4039_v17, %v4035_v16  ;;  %v4259_v16 = vld [vmem:[%s17049_s3 + $0xf8] sm:$0xff]  ;;  %v9054_v17 = vpack.c.bf16 %v4248_v63, %v4244_v8 }
0x1245   :  { %v4291_v8 = vld [vmem:[%s17049_s3 + $0x1f8] sm:$0xff] }
0x1247   :  { %9011 = vmatpush1.bf16.msra.mxu0 %v9010_v24  ;;  %v8976_v24 = vpack.c.bf16 %v4046_v20, %v4042_v18  ;;  %v9086_v18 = vpack.c.bf16 %v4250_v12, %v4246_v11  ;;  %v4256_v20 = vld [vmem:[%s17049_s3 + $0xe0] sm:$0xff] }
0x1248   :  { %9013 = vmatprep.subr.bf16.mxu0 %v9012_v25  ;;  %v9040_v25 = vpack.c.bf16 %v4048_v23, %v4044_v22  ;;  %v9088_v23 = vpack.c.bf16 %v4259_v16, %v4255_v2  ;;  %v4290_v2 = vld [vmem:[%s17049_s3 + $0x1f0] sm:$0xff] }
0x1249   :  { %8977 = vmatprep.subr.bf16.mxu1 %v8976_v24  ;;  %v4254_v24 = vld [vmem:[%s17049_s3 + $0xd0] sm:$0xff] }
0x124a   :  { %8979 = vmatpush1.bf16.msra.mxu1 %v8978_v30  ;;  %v4267_v30 = vld [vmem:[%s17049_s3 + $0x138] sm:$0xff] }
0x124b   :  { %9015 = vmatpush1.bf16.msra.mxu0 %v9014_v31  ;;  %v4047_v31 = vld [vmem:[%s17056_s10 + $0x3f0] sm:$0xff] }
0x124c   :  { %9017 = vmatprep.subr.bf16.mxu0 %v9016_v32  ;;  %v4229_v32 = vld [vmem:[%s17049_s3 + $0x8] sm:$0xff]  ;;  %v9042_v21 = vpack.c.bf16 %v4047_v31, %v4043_v28  ;;  %v4263_v28 = vld [vmem:[%s17049_s3 + $0x118] sm:$0xff] }
0x124d   :  { %v9044_v38 = vpack.c.bf16 %v4233_v33, %v4229_v32  ;;  %v4260_v33 = vld [vmem:[%s17049_s3 + $0x100] sm:$0xff] }
0x124f   :  { %9019 = vmatpush1.bf16.msra.mxu0 %v9018_v36  ;;  %v4235_v36 = vld [vmem:[%s17049_s3 + $0x38] sm:$0xff]  ;;  %9045 = vmatprep.subr.bf16.mxu1 %v9044_v38  ;;  %v9060_v38 = vpack.c.bf16 %v4265_v27, %v4261_v26  ;;  %v4468_v27 = vld [vmem:[%s17050_s4 + $0x30] sm:$0xff] }
0x1250   :  { %9021 = vmatprep.subr.bf16.mxu0 %v9020_v39  ;;  %v9076_v39 = vpack.c.bf16 %v4235_v36, %v4231_v35  ;;  %v9092_v35 = vpack.c.bf16 %v4267_v30, %v4263_v28  ;;  %v4262_v36 = vld [vmem:[%s17049_s3 + $0x110] sm:$0xff]  ;;  %v4469_v28 = vld [vmem:[%s17050_s4 + $0x38] sm:$0xff] }
0x1251   :  { %v9118_v30 = vpack.c.bf16 %v4469_v28, %v4468_v27 }
0x1253   :  { %9023 = vmatpush1.bf16.msra.mxu0 %v9022_v44  ;;  %v4228_v44 = vld [vmem:[%s17049_s3] sm:$0xff] }
0x1254   :  { %9025 = vmatprep.subr.bf16.mxu0 %v9024_v34  ;;  %v4232_v34 = vld [vmem:[%s17049_s3 + $0x20] sm:$0xff] }
0x1255   :  { %v9046_v55 = vpack.c.bf16 %v4232_v34, %v4228_v44 }
0x1257   :  { %9027 = vmatpush1.bf16.msra.mxu0 %v9026_v49  ;;  %v4239_v49 = vld [vmem:[%s17049_s3 + $0x58] sm:$0xff] }
0x1258   :  { %9029 = vmatprep.subr.bf16.mxu0 %v9028_v51  ;;  %v4243_v51 = vld [vmem:[%s17049_s3 + $0x78] sm:$0xff] }
0x1259   :  { %v9080_v60 = vpack.c.bf16 %v4243_v51, %v4239_v49  ;;  %v4270_v49 = vld [vmem:[%s17049_s3 + $0x150] sm:$0xff] }
0x125a   :  { %v4274_v51 = vld [vmem:[%s17049_s3 + $0x170] sm:$0xff] }
0x125b   :  { %9031 = vmatpush1.bf16.msra.mxu0 %v9030_v53  ;;  %v4236_v53 = vld [vmem:[%s17049_s3 + $0x40] sm:$0xff] }
0x125c   :  { %9033 = vmatprep.subr.bf16.mxu0 %v9032_v1  ;;  %v4249_v1 = vld [vmem:[%s17049_s3 + $0xa8] sm:$0xff]  ;;  %v9050_v4 = vpack.c.bf16 %v4240_v57, %v4236_v53  ;;  %v4279_v53 = vld [vmem:[%s17049_s3 + $0x198] sm:$0xff] }
0x125d   :  { %v9052_v61 = vpack.c.bf16 %v4249_v1, %v4245_v56  ;;  %v4283_v57 = vld [vmem:[%s17049_s3 + $0x1b8] sm:$0xff]  ;;  %v4278_v1 = vld [vmem:[%s17049_s3 + $0x190] sm:$0xff] }
0x125f   :  { %9035 = vmatpush1.bf16.msra.mxu0 %v9034_v7  ;;  %v9082_v7 = vpack.c.bf16 %v4242_v62, %v4238_v50  ;;  %v4276_v50 = vld [vmem:[%s17049_s3 + $0x180] sm:$0xff] }
0x1260   :  { %9037 = vmatprep.subr.bf16.mxu0 %v9036_v15  ;;  %v4257_v15 = vld [vmem:[%s17049_s3 + $0xe8] sm:$0xff]  ;;  %v4280_v62 = vld [vmem:[%s17049_s3 + $0x1a0] sm:$0xff] }
0x1261   :  { %v9056_v22 = vpack.c.bf16 %v4257_v15, %v4253_v14  ;;  %v9070_v63 = vpack.c.bf16 %v4280_v62, %v4276_v50  ;;  %v4288_v14 = vld [vmem:[%s17049_s3 + $0x1e0] sm:$0xff]  ;;  %v4286_v15 = vld [vmem:[%s17049_s3 + $0x1d0] sm:$0xff] }
0x1262   :  { %v4557_v62 = vld [vmem:[%s17051_s6 + $0x40] sm:$0xff] }
0x1263   :  { %9039 = vmatpush1.bf16.msra.mxu0 %v9038_v19  ;;  %v4252_v19 = vld [vmem:[%s17049_s3 + $0xc0] sm:$0xff] }
0x1264   :  { %9041 = vmatprep.subr.bf16.mxu0 %v9040_v25  ;;  %v4258_v25 = vld [vmem:[%s17049_s3 + $0xf0] sm:$0xff]  ;;  %v9058_v31 = vpack.c.bf16 %v4256_v20, %v4252_v19  ;;  %v4463_v19 = vld [vmem:[%s17050_s4 + $0x8] sm:$0xff] }
0x1265   :  { %v9090_v32 = vpack.c.bf16 %v4258_v25, %v4254_v24  ;;  %v4466_v24 = vld [vmem:[%s17050_s4 + $0x20] sm:$0xff]  ;;  %v4467_v25 = vld [vmem:[%s17050_s4 + $0x28] sm:$0xff] }
0x1266   :  { %v9115_v26 = vpack.c.bf16 %v4467_v25, %v4466_v24  ;;  %v6795_v24 = vld [vmem:[%s17060_s1 + $0x98] sm:$0xff] }
0x1267   :  { %9043 = vmatpush1.bf16.msra.mxu0 %v9042_v21  ;;  %v4264_v21 = vld [vmem:[%s17049_s3 + $0x120] sm:$0xff] }
0x1268   :  { %9077 = vmatprep.subr.bf16.mxu0 %v9076_v39  ;;  %v4266_v39 = vld [vmem:[%s17049_s3 + $0x130] sm:$0xff]  ;;  %v9062_v44 = vpack.c.bf16 %v4264_v21, %v4260_v33 }
0x1269   :  { %v9094_v34 = vpack.c.bf16 %v4266_v39, %v4262_v36  ;;  %v4472_v21 = vld [vmem:[%s17050_s4 + $0x50] sm:$0xff]  ;;  %v4474_v36 = vld [vmem:[%s17050_s4 + $0x60] sm:$0xff]  ;;  %v4475_v39 = vld [vmem:[%s17050_s4 + $0x68] sm:$0xff] }
0x12fd   :  { %v3911_v29 = vpop.f32.mrb[32].mxu0 }
0x12fe   :  { %v3912_v41 = vadd.f32 %v10174_v43, %v3911_v29  ;;  %v7473_v42 = vpop.f32.mrb[33].mxu0  ;;  %v4269_v29 = vld [vmem:[%s17049_s3 + $0x148] sm:$0xff] }
0x12ff   :  { %v4273_v43 = vld [vmem:[%s17049_s3 + $0x168] sm:$0xff]  ;;  %v4275_v42 = vld [vmem:[%s17049_s3 + $0x178] sm:$0xff] }
0x1300   :  { %10035 = vtanh.f32 %v3912_v41  ;;  %v4271_v41 = vld [vmem:[%s17049_s3 + $0x158] sm:$0xff]  ;;  %v9064_v46 = vpack.c.bf16 %v4273_v43, %v4269_v29  ;;  %v9127_v29 = vpack.c.bf16 %v4475_v39, %v4474_v36  ;;  %v4476_v43 = vld [vmem:[%s17050_s4 + $0x70] sm:$0xff] }
0x1301   :  { %v9096_v47 = vpack.c.bf16 %v4275_v42, %v4271_v41  ;;  %v4477_v41 = vld [vmem:[%s17050_s4 + $0x78] sm:$0xff] }
0x1302   :  { %v9130_v42 = vpack.c.bf16 %v4477_v41, %v4476_v43  ;;  %v6801_v41 = vld [vmem:[%s17052_s0 + $0xa0] sm:$0xff] }
0x130a   :  { %v10036_v0 = vpop.eup %10035 }
0x130b   :  { %4114 = vmatmul.mubr.f32.vlgmr.msra.gmra.mrb[32].mxu1 %v10036_v0  ;;  %4185 = vmatmul.mubr.f32.vlgmr.msra.gmra.mrb[34].mxu0 %v10036_v0  ;;  %v9100_v0 = vpack.c.bf16 %v4283_v57, %v4279_v53  ;;  %v4555_v53 = vld [vmem:[%s17051_s6 + $0x30] sm:$0xff]  ;;  %v4558_v57 = vld [vmem:[%s17051_s6 + $0x48] sm:$0xff] }
0x130c   :  { %9047 = vmatpush1.bf16.msra.mxu1 %v9046_v55  ;;  %9079 = vmatpush1.bf16.msra.mxu0 %v9078_v52  ;;  %v4277_v55 = vld [vmem:[%s17049_s3 + $0x188] sm:$0xff] }
0x130d   :  { %9049 = vmatprep.subr.bf16.mxu1 %v9048_v59  ;;  %9081 = vmatprep.subr.bf16.mxu0 %v9080_v60  ;;  %v4281_v52 = vld [vmem:[%s17049_s3 + $0x1a8] sm:$0xff]  ;;  %v9066_v59 = vpack.c.bf16 %v4272_v48, %v4268_v45  ;;  %v9098_v60 = vpack.c.bf16 %v4274_v51, %v4270_v49  ;;  %v4549_v45 = vld [vmem:[%s17051_s6] sm:$0xff]  ;;  %v4556_v49 = vld [vmem:[%s17051_s6 + $0x38] sm:$0xff] }
0x130e   :  { %4356 = vmatprep.mubr.f32.mxu1 %v10181_v3  ;;  %4427 = vmatprep.mubr.f32.mxu0 %v10181_v3  ;;  %v9068_v56 = vpack.c.bf16 %v4281_v52, %v4277_v55  ;;  %v4553_v52 = vld [vmem:[%s17051_s6 + $0x20] sm:$0xff] }
0x1310   :  { %9051 = vmatpush1.bf16.msra.mxu1 %v9050_v4  ;;  %9083 = vmatpush1.bf16.msra.mxu0 %v9082_v7  ;;  %v4289_v4 = vld [vmem:[%s17049_s3 + $0x1e8] sm:$0xff]  ;;  %v4287_v7 = vld [vmem:[%s17049_s3 + $0x1d8] sm:$0xff] }
0x1311   :  { %9053 = vmatprep.subr.bf16.mxu1 %v9052_v61  ;;  %9085 = vmatprep.subr.bf16.mxu0 %v9084_v10  ;;  %v9102_v61 = vpack.c.bf16 %v4282_v58, %v4278_v1  ;;  %v4284_v10 = vld [vmem:[%s17049_s3 + $0x1c0] sm:$0xff]  ;;  %v9072_v11 = vpack.c.bf16 %v4289_v4, %v4285_v54  ;;  %v9104_v12 = vpack.c.bf16 %v4291_v8, %v4287_v7  ;;  %v4564_v1 = vld [vmem:[%s17051_s6 + $0x78] sm:$0xff]  ;;  %v4563_v7 = vld [vmem:[%s17051_s6 + $0x70] sm:$0xff] }
0x1312   :  { %v9074_v16 = vpack.c.bf16 %v4288_v14, %v4284_v10  ;;  %v4561_v4 = vld [vmem:[%s17051_s6 + $0x60] sm:$0xff]  ;;  %v4566_v8 = vld [vmem:[%s17051_s6 + $0x88] sm:$0xff] }
0x1314   :  { %9055 = vmatpush1.bf16.msra.mxu1 %v9054_v17  ;;  %9087 = vmatpush1.bf16.msra.mxu0 %v9086_v18  ;;  %v9106_v17 = vpack.c.bf16 %v4290_v2, %v4286_v15  ;;  %v4462_v18 = vld [vmem:[%s17050_s4] sm:$0xff]  ;;  %v6793_v2 = vld [vmem:[%s17060_s1 + $0x88] sm:$0xff] }
0x1315   :  { %9057 = vmatprep.subr.bf16.mxu1 %v9056_v22  ;;  %9089 = vmatprep.subr.bf16.mxu0 %v9088_v23  ;;  %v9109_v20 = vpack.c.bf16 %v4463_v19, %v4462_v18  ;;  %v4465_v22 = vld [vmem:[%s17050_s4 + $0x18] sm:$0xff]  ;;  %v6792_v15 = vld [vmem:[%s17060_s1 + $0x80] sm:$0xff] }
0x1318   :  { %9059 = vmatpush1.bf16.msra.mxu1 %v9058_v31  ;;  %9091 = vmatpush1.bf16.msra.mxu0 %v9090_v32  ;;  %v4470_v31 = vld [vmem:[%s17050_s4 + $0x40] sm:$0xff]  ;;  %v4471_v32 = vld [vmem:[%s17050_s4 + $0x48] sm:$0xff] }
0x1319   :  { %9061 = vmatprep.subr.bf16.mxu1 %v9060_v38  ;;  %9093 = vmatprep.subr.bf16.mxu0 %v9092_v35  ;;  %v9121_v33 = vpack.c.bf16 %v4471_v32, %v4470_v31  ;;  %v4473_v38 = vld [vmem:[%s17050_s4 + $0x58] sm:$0xff] }
0x131a   :  { %v9124_v35 = vpack.c.bf16 %v4473_v38, %v4472_v21 }
0x131c   :  { %9063 = vmatpush1.bf16.msra.mxu1 %v9062_v44  ;;  %9095 = vmatpush1.bf16.msra.mxu0 %v9094_v34  ;;  %v4550_v44 = vld [vmem:[%s17051_s6 + $0x8] sm:$0xff]  ;;  %v4552_v34 = vld [vmem:[%s17051_s6 + $0x18] sm:$0xff] }
0x131d   :  { %9065 = vmatprep.subr.bf16.mxu1 %v9064_v46  ;;  %9097 = vmatprep.subr.bf16.mxu0 %v9096_v47  ;;  %v9132_v48 = vpack.c.bf16 %v4552_v34, %v4550_v44  ;;  %v4551_v46 = vld [vmem:[%s17051_s6 + $0x10] sm:$0xff]  ;;  %v4554_v47 = vld [vmem:[%s17051_s6 + $0x28] sm:$0xff] }
0x131e   :  { %v9134_v51 = vpack.c.bf16 %v4551_v46, %v4549_v45  ;;  %v9136_v55 = vpack.c.bf16 %v4556_v49, %v4554_v47 }
0x1320   :  { %9067 = vmatpush1.bf16.msra.mxu1 %v9066_v59  ;;  %9099 = vmatpush1.bf16.msra.mxu0 %v9098_v60  ;;  %v4560_v59 = vld [vmem:[%s17051_s6 + $0x58] sm:$0xff]  ;;  %v9138_v60 = vpack.c.bf16 %v4555_v53, %v4553_v52  ;;  %v6803_v53 = vld [vmem:[%s17052_s0 + $0xb0] sm:$0xff] }
0x1321   :  { %9069 = vmatprep.subr.bf16.mxu1 %v9068_v56  ;;  %9101 = vmatprep.subr.bf16.mxu0 %v9100_v0  ;;  %v9140_v50 = vpack.c.bf16 %v4560_v59, %v4558_v57  ;;  %v4559_v56 = vld [vmem:[%s17051_s6 + $0x50] sm:$0xff]  ;;  %v4562_v0 = vld [vmem:[%s17051_s6 + $0x68] sm:$0xff] }
0x1322   :  { %v9142_v58 = vpack.c.bf16 %v4559_v56, %v4557_v62  ;;  %v9144_v54 = vpack.c.bf16 %v4564_v1, %v4562_v0 }
0x1324   :  { %9071 = vmatpush1.bf16.msra.mxu1 %v9070_v63  ;;  %9103 = vmatpush1.bf16.msra.mxu0 %v9102_v61  ;;  %v4568_v63 = vld [vmem:[%s17051_s6 + $0x98] sm:$0xff]  ;;  %v9146_v61 = vpack.c.bf16 %v4563_v7, %v4561_v4 }
0x1325   :  { %9073 = vmatprep.subr.bf16.mxu1 %v9072_v11  ;;  %9105 = vmatprep.subr.bf16.mxu0 %v9104_v12  ;;  %v9148_v10 = vpack.c.bf16 %v4568_v63, %v4566_v8  ;;  %v4565_v11 = vld [vmem:[%s17051_s6 + $0x80] sm:$0xff]  ;;  %v4567_v12 = vld [vmem:[%s17051_s6 + $0x90] sm:$0xff] }
0x1326   :  { %v9150_v14 = vpack.c.bf16 %v4567_v12, %v4565_v11 }
0x1328   :  { %9075 = vmatpush1.bf16.msra.mxu1 %v9074_v16  ;;  %9107 = vmatpush1.bf16.msra.mxu0 %v9106_v17 }
0x1329   :  { %9108 = vmatprep.subr.bf16.mxu1 %v10182_v37  ;;  %9133 = vmatprep.subr.bf16.mxu0 %v9132_v48 }
0x132b   :  { %4357 = vmatmul.mubr.f32.vlgmr.msra.gmra.mrb[34].mxu1 %v13990_v9  ;;  %4428 = vmatmul.mubr.f32.vlgmr.msra.gmra.mrb[36].mxu0 %v13990_v9  ;;  %v4464_v9 = vld [vmem:[%s17050_s4 + $0x10] sm:$0xff] }
0x132c   :  { %7506 = vmatprep.mubr.msk.f32.mxu1 %vm10183_vm0, %v10181_v3  ;;  %4645 = vmatprep.mubr.f32.mxu0 %v10181_v3  ;;  %v9112_v23 = vpack.c.bf16 %v4465_v22, %v4464_v9 }
0x132d   :  { %9110 = vmatpush3.bf16.msra.mxu1 %v9109_v20  ;;  %9135 = vmatpush1.bf16.msra.mxu0 %v9134_v51 }
0x132e   :  { %9111 = vmatprep.subr.bf16.mxu1 %v10182_v37  ;;  %9137 = vmatprep.subr.bf16.mxu0 %v9136_v55  ;;  %v6804_v55 = vld [vmem:[%s17052_s0 + $0xb8] sm:$0xff] }
0x1331   :  { %9113 = vmatpush3.bf16.msra.mxu1 %v9112_v23  ;;  %9139 = vmatpush1.bf16.msra.mxu0 %v9138_v60 }
0x1332   :  { %9114 = vmatprep.subr.bf16.mxu1 %v10182_v37  ;;  %9141 = vmatprep.subr.bf16.mxu0 %v9140_v50 }
0x1335   :  { %9116 = vmatpush3.bf16.msra.mxu1 %v9115_v26  ;;  %9143 = vmatpush1.bf16.msra.mxu0 %v9142_v58  ;;  %v6794_v26 = vld [vmem:[%s17060_s1 + $0x90] sm:$0xff] }
0x1336   :  { %9117 = vmatprep.subr.bf16.mxu1 %v10182_v37  ;;  %9145 = vmatprep.subr.bf16.mxu0 %v9144_v54 }
0x1339   :  { %9119 = vmatpush3.bf16.msra.mxu1 %v9118_v30  ;;  %9147 = vmatpush1.bf16.msra.mxu0 %v9146_v61 }
0x133a   :  { %9120 = vmatprep.subr.bf16.mxu1 %v10182_v37  ;;  %9149 = vmatprep.subr.bf16.mxu0 %v9148_v10 }
0x133d   :  { %9122 = vmatpush3.bf16.msra.mxu1 %v9121_v33  ;;  %9151 = vmatpush1.bf16.msra.mxu0 %v9150_v14 }
0x133e   :  { %9123 = vmatprep.subr.bf16.mxu1 %v10182_v37 }
0x1341   :  { %9125 = vmatpush3.bf16.msra.mxu1 %v9124_v35 }
0x1342   :  { %9126 = vmatprep.subr.bf16.mxu1 %v10182_v37 }
0x1345   :  { %9128 = vmatpush3.bf16.msra.mxu1 %v9127_v29 }
0x1346   :  { %9129 = vmatprep.subr.bf16.mxu1 %v10182_v37 }
0x1349   :  { %9131 = vmatpush3.bf16.msra.mxu1 %v9130_v42  ;;  %v6802_v42 = vld [vmem:[%s17052_s0 + $0xa8] sm:$0xff] }
0x134a   :  { %9164 = vmatprep.subr.bf16.mxu1 %v10182_v37 }
0x13de   :  { %v4115_v16 = vpop.f32.mrb[32].mxu1  ;;  %v4186_v17 = vpop.f32.mrb[34].mxu0 }
0x13df   :  { %v4191_v18 = vadd.f32 %v6792_v15, %v4115_v16  ;;  %v4117_v19 = vpop.f32.mrb[33].mxu1  ;;  %v4188_v20 = vpop.f32.mrb[35].mxu0  ;;  %v4193_v28 = vadd.f32 %v6794_v26, %v4186_v17  ;;  %v4569_v17 = vld [vmem:[%s17051_s6 + $0xa0] sm:$0xff]  ;;  %v4580_v26 = vld [vmem:[%s17051_s6 + $0xf8] sm:$0xff] }
0x13e0   :  { %v4192_v9 = vadd.f32 %v6793_v2, %v4117_v19  ;;  %v4194_v25 = vadd.f32 %v6795_v24, %v4188_v20  ;;  %v4572_v2 = vld [vmem:[%s17051_s6 + $0xb8] sm:$0xff]  ;;  %v4574_v20 = vld [vmem:[%s17051_s6 + $0xc8] sm:$0xff]  ;;  %v4575_v24 = vld [vmem:[%s17051_s6 + $0xd0] sm:$0xff] }
0x13e1   :  { %v6796_v22 = vmul.f32 -1.442695, %v4191_v18  ;;  %v4571_v18 = vld [vmem:[%s17051_s6 + $0xb0] sm:$0xff] }
0x13e2   :  { %v6797_v23 = vmul.f32 -1.442695, %v4192_v9  ;;  %v6798_v27 = vmul.f32 -1.442695, %v4194_v25  ;;  %v9154_v19 = vpack.c.bf16 %v4571_v18, %v4569_v17  ;;  %v4576_v9 = vld [vmem:[%s17051_s6 + $0xd8] sm:$0xff]  ;;  %v4578_v25 = vld [vmem:[%s17051_s6 + $0xe8] sm:$0xff] }
0x13e3   :  { %10037 = vpow2.f32 %v6796_v22  ;;  %v4573_v22 = vld [vmem:[%s17051_s6 + $0xc0] sm:$0xff] }
0x13e4   :  { %10039 = vpow2.f32 %v6797_v23  ;;  %v9156_v23 = vpack.c.bf16 %v4576_v9, %v4574_v20  ;;  %v4759_v17 = vld [vmem:[%s17056_s10 + $0x40] sm:$0xff]  ;;  %v4768_v20 = vld [vmem:[%s17056_s10 + $0x88] sm:$0xff] }
0x13e5   :  { %10041 = vpow2.f32 %v6798_v27  ;;  %v9158_v27 = vpack.c.bf16 %v4575_v24, %v4573_v22  ;;  %v4763_v18 = vld [vmem:[%s17056_s10 + $0x60] sm:$0xff]  ;;  %v4772_v9 = vld [vmem:[%s17056_s10 + $0xa8] sm:$0xff] }
0x13e6   :  { %10043 = vtanh.f32 %v4193_v28  ;;  %v9160_v28 = vpack.c.bf16 %v4580_v26, %v4578_v25  ;;  %v9196_v22 = vpack.c.bf16 %v4772_v9, %v4768_v20  ;;  %v4771_v24 = vld [vmem:[%s17056_s10 + $0xa0] sm:$0xff]  ;;  %v4776_v26 = vld [vmem:[%s17056_s10 + $0xc8] sm:$0xff] }
0x13e7   :  { %v4839_v9 = vld [vmem:[%s17056_s10 + $0x2c0] sm:$0xff] }
0x13ed   :  { %v10038_v30 = vpop.eup %10037 }
0x13ee   :  { %v10040_v31 = vpop.eup %10039  ;;  %v4198_v32 = vadd.f32 1.0, %v10038_v30  ;;  %v4577_v30 = vld [vmem:[%s17051_s6 + $0xe0] sm:$0xff] }
0x13ef   :  { %v4204_v33 = vadd.f32 1.0, %v10040_v31  ;;  %v10042_v21 = vpop.eup %10041  ;;  %v4579_v31 = vld [vmem:[%s17051_s6 + $0xf0] sm:$0xff] }
0x13f0   :  { %10045 = vrcp.f32 %v4198_v32  ;;  %v10044_v38 = vpop.eup %10043  ;;  %v4211_v29 = vadd.f32 1.0, %v10042_v21  ;;  %v9162_v32 = vpack.c.bf16 %v4579_v31, %v4577_v30  ;;  %v4660_v21 = vld [vmem:[%s17054_s8 + $0x8] sm:$0xff]  ;;  %v4775_v30 = vld [vmem:[%s17056_s10 + $0xc0] sm:$0xff] }
0x13f1   :  { %10047 = vrcp.f32 %v4204_v33  ;;  %v4659_v33 = vld [vmem:[%s17054_s8] sm:$0xff] }
0x13f2   :  { %10049 = vrcp.f32 %v4211_v29  ;;  %v4779_v31 = vld [vmem:[%s17056_s10 + $0xe0] sm:$0xff] }
0x13fa   :  { %v10046_v35 = vpop.eup %10045 }
0x13fb   :  { %v10048_v36 = vpop.eup %10047  ;;  %v4215_v39 = vmul.f32 %v10046_v35, %v10044_v38  ;;  %v4661_v38 = vld [vmem:[%s17054_s8 + $0x10] sm:$0xff]  ;;  %v9165_v35 = vpack.c.bf16 %v4660_v21, %v4659_v33  ;;  %v4784_v33 = vld [vmem:[%s17056_s10 + $0x108] sm:$0xff] }
0x13fc   :  { %v4214_v43 = vmul.f32 %v10048_v36, %v13971_v40  ;;  %v10050_v57 = vpop.eup %10049  ;;  %v4662_v36 = vld [vmem:[%s17054_s8 + $0x18] sm:$0xff]  ;;  %v4788_v21 = vld [vmem:[%s17056_s10 + $0x128] sm:$0xff] }
0x13fe   :  { %v4358_v44 = vpop.f32.mrb[34].mxu1  ;;  %v4429_v34 = vpop.f32.mrb[36].mxu0  ;;  %v14822_v45 = vadd.f32 %v4215_v39, %v4214_v43  ;;  %v9168_v39 = vpack.c.bf16 %v4662_v36, %v4661_v38  ;;  %v10175_v43 = vld [vmem:[%s17055_s5] ss:$0 sm:$0xff]  ;;  %v9204_v38 = vpack.c.bf16 %v4788_v21, %v4784_v33 }
0x13ff   :  { %v4434_v48 = vadd.f32 %v6801_v41, %v4358_v44  ;;  %v4360_v46 = vpop.f32.mrb[35].mxu1  ;;  %v4431_v47 = vpop.f32.mrb[37].mxu0  ;;  %v4436_v50 = vadd.f32 %v6803_v53, %v4429_v34  ;;  %v4663_v34 = vld [vmem:[%s17054_s8 + $0x20] sm:$0xff]  ;;  %v4669_v53 = vld [vmem:[%s17054_s8 + $0x50] sm:$0xff] }
0x1400   :  { %v4435_v49 = vadd.f32 %v6802_v42, %v4360_v46  ;;  %10051 = vtanh.f32 %v14822_v45  ;;  %v4437_v52 = vadd.f32 %v6804_v55, %v4431_v47  ;;  %v4665_v47 = vld [vmem:[%s17054_s8 + $0x30] sm:$0xff]  ;;  %v4668_v55 = vld [vmem:[%s17054_s8 + $0x48] sm:$0xff]  ;;  %v4787_v36 = vld [vmem:[%s17056_s10 + $0x120] sm:$0xff] }
0x1401   :  { %v6805_v40 = vmul.f32 -1.442695, %v4434_v48  ;;  %v4664_v48 = vld [vmem:[%s17054_s8 + $0x28] sm:$0xff] }
0x1402   :  { %v6806_v51 = vmul.f32 -1.442695, %v4435_v49  ;;  %v6807_v60 = vmul.f32 -1.442695, %v4437_v52  ;;  %v9171_v46 = vpack.c.bf16 %v4664_v48, %v4663_v34  ;;  %v4666_v49 = vld [vmem:[%s17054_s8 + $0x38] sm:$0xff]  ;;  %v4800_v48 = vld [vmem:[%s17056_s10 + $0x188] sm:$0xff] }
0x1403   :  { %10053 = vpow2.f32 %v6805_v40  ;;  %v9174_v40 = vpack.c.bf16 %v4666_v49, %v4665_v47  ;;  %v4799_v49 = vld [vmem:[%s17056_s10 + $0x180] sm:$0xff] }
0x1404   :  { %10055 = vpow2.f32 %v6806_v51  ;;  %v4667_v51 = vld [vmem:[%s17054_s8 + $0x40] sm:$0xff] }
0x1405   :  { %10057 = vpow2.f32 %v6807_v60  ;;  %v9177_v52 = vpack.c.bf16 %v4668_v55, %v4667_v51  ;;  %v4671_v60 = vld [vmem:[%s17054_s8 + $0x60] sm:$0xff]  ;;  %v4808_v55 = vld [vmem:[%s17056_s10 + $0x1c8] sm:$0xff] }
0x1406   :  { %10059 = vtanh.f32 %v4436_v50  ;;  %v4672_v50 = vld [vmem:[%s17054_s8 + $0x68] sm:$0xff] }
0x140a   :  { %v10052_v59 = vpop.eup %10051 }
0x140b   :  { %v14831_v62 = vmul.f32 %v10052_v59, %v10050_v57  ;;  %v4670_v57 = vld [vmem:[%s17054_s8 + $0x58] sm:$0xff] }
0x140c   :  { %v9180_v59 = vpack.c.bf16 %v4670_v57, %v4669_v53  ;;  %v4807_v57 = vld [vmem:[%s17056_s10 + $0x1c0] sm:$0xff] }
0x140d   :  { %v10054_v56 = vpop.eup %10053  ;;  %6800 = vst [vmem:[%s17061_s12 + $0x20] sm:$0xff] %v14831_v62 }
0x140e   :  { %v10056_v0 = vpop.eup %10055  ;;  %v4441_v1 = vadd.f32 1.0, %v10054_v56  ;;  %v9183_v56 = vpack.c.bf16 %v4672_v50, %v4671_v60  ;;  %v4816_v50 = vld [vmem:[%s17056_s10 + $0x208] sm:$0xff] }
0x140f   :  { %v4447_v58 = vadd.f32 1.0, %v10056_v0  ;;  %v10058_v54 = vpop.eup %10057  ;;  %v4673_v0 = vld [vmem:[%s17054_s8 + $0x70] sm:$0xff] }
0x1410   :  { %10061 = vrcp.f32 %v4441_v1  ;;  %v10060_v4 = vpop.eup %10059  ;;  %v4454_v61 = vadd.f32 1.0, %v10058_v54  ;;  %v4674_v1 = vld [vmem:[%s17054_s8 + $0x78] sm:$0xff]  ;;  %v4752_v54 = vld [vmem:[%s17056_s10 + $0x8] sm:$0xff] }
0x1411   :  { %10063 = vrcp.f32 %v4447_v58  ;;  %v9186_v58 = vpack.c.bf16 %v4674_v1, %v4673_v0  ;;  %v4815_v1 = vld [vmem:[%s17056_s10 + $0x200] sm:$0xff] }
0x1412   :  { %10065 = vrcp.f32 %v4454_v61  ;;  %v4751_v61 = vld [vmem:[%s17056_s10] sm:$0xff] }
0x141a   :  { %v10062_v7 = vpop.eup %10061 }
0x141b   :  { %v10064_v8 = vpop.eup %10063  ;;  %v4458_v63 = vmul.f32 %v10062_v7, %v10060_v4  ;;  %v4756_v4 = vld [vmem:[%s17056_s10 + $0x28] sm:$0xff]  ;;  %v4754_v7 = vld [vmem:[%s17056_s10 + $0x18] sm:$0xff] }
0x141c   :  { %v4457_v10 = vmul.f32 %v10064_v8, %v13987_v5  ;;  %v10066_v12 = vpop.eup %10065  ;;  %v4570_v5 = vld [vmem:[%s17051_s6 + $0xa8] sm:$0xff]  ;;  %v9188_v8 = vpack.c.bf16 %v4756_v4, %v4752_v54 }
0x141d   :  { %v9152_v16 = vpack.c.bf16 %v4572_v2, %v4570_v5  ;;  %v4760_v5 = vld [vmem:[%s17056_s10 + $0x48] sm:$0xff] }
0x141e   :  { %v14838_v11 = vadd.f32 %v4458_v63, %v4457_v10  ;;  %v4758_v63 = vld [vmem:[%s17056_s10 + $0x38] sm:$0xff]  ;;  %v4755_v10 = vld [vmem:[%s17056_s10 + $0x20] sm:$0xff]  ;;  %v4764_v2 = vld [vmem:[%s17056_s10 + $0x68] sm:$0xff] }
0x141f   :  { %9153 = vmatprep.subr.bf16.mxu0 %v9152_v16  ;;  %v9192_v16 = vpack.c.bf16 %v4764_v2, %v4760_v5  ;;  %v4824_v4 = vld [vmem:[%s17056_s10 + $0x248] sm:$0xff]  ;;  %v4831_v2 = vld [vmem:[%s17056_s10 + $0x280] sm:$0xff] }
0x1420   :  { %10067 = vtanh.f32 %v14838_v11  ;;  %9155 = vmatpush1.bf16.msra.mxu0 %v9154_v19  ;;  %v9194_v19 = vpack.c.bf16 %v4763_v18, %v4759_v17  ;;  %v4840_v18 = vld [vmem:[%s17056_s10 + $0x2c8] sm:$0xff] }
0x1421   :  { %9157 = vmatprep.subr.bf16.mxu0 %v9156_v23  ;;  %v4767_v23 = vld [vmem:[%s17056_s10 + $0x80] sm:$0xff] }
0x1422   :  { %v9198_v25 = vpack.c.bf16 %v4771_v24, %v4767_v23  ;;  %v4848_v24 = vld [vmem:[%s17056_s10 + $0x308] sm:$0xff] }
0x1424   :  { %9159 = vmatpush1.bf16.msra.mxu0 %v9158_v27  ;;  %v4780_v27 = vld [vmem:[%s17056_s10 + $0xe8] sm:$0xff] }
0x1425   :  { %9161 = vmatprep.subr.bf16.mxu0 %v9160_v28  ;;  %v9200_v28 = vpack.c.bf16 %v4780_v27, %v4776_v26  ;;  %v4847_v27 = vld [vmem:[%s17056_s10 + $0x300] sm:$0xff] }
0x1428   :  { %9163 = vmatpush1.bf16.msra.mxu0 %v9162_v32  ;;  %v9202_v32 = vpack.c.bf16 %v4779_v31, %v4775_v30 }
0x1429   :  { %9189 = vmatprep.subr.bf16.mxu0 %v9188_v8 }
0x142a   :  { %v10068_v14 = vpop.eup %10067 }
0x142b   :  { %v14841_v15 = vmul.f32 %v10068_v14, %v10066_v12  ;;  %v9252_v12 = vpack.c.bf16 %v4758_v63, %v4754_v7  ;;  %v9190_v14 = vpack.c.bf16 %v4755_v10, %v4751_v61  ;;  %v4828_v7 = vld [vmem:[%s17056_s10 + $0x268] sm:$0xff]  ;;  %v4823_v63 = vld [vmem:[%s17056_s10 + $0x240] sm:$0xff] }
0x142c   :  { %v9224_v8 = vpack.c.bf16 %v4828_v7, %v4824_v4  ;;  %v4827_v61 = vld [vmem:[%s17056_s10 + $0x260] sm:$0xff]  ;;  %v4785_v7 = vld [vmem:[%s17056_s10 + $0x110] sm:$0xff] }
0x142d   :  { %7507 = vmatmul.mubr.f32.vlgmr.msra.gmra.mrb[36].mxu1 %v14841_v15  ;;  %6816 = vst [vmem:[%s17053_s11 + $0x28] sm:$0xff] %v14841_v15  ;;  %v9226_v10 = vpack.c.bf16 %v4827_v61, %v4823_v63  ;;  %v4794_v63 = vld [vmem:[%s17056_s10 + $0x158] sm:$0xff] }
0x142e   :  { %7541 = vmatprep.mubr.msk.f32.mxu1 %vm10183_vm0, %v10181_v3  ;;  %9166 = vmatpush3.bf16.msra.mxu1 %v9165_v35  ;;  %v4783_v35 = vld [vmem:[%s17056_s10 + $0x100] sm:$0xff]  ;;  %v4798_v61 = vld [vmem:[%s17056_s10 + $0x178] sm:$0xff] }
0x142f   :  { %9167 = vmatprep.subr.bf16.mxu1 %v10182_v37 }
0x1432   :  { %9169 = vmatpush3.bf16.msra.mxu1 %v9168_v39  ;;  %v9206_v39 = vpack.c.bf16 %v4787_v36, %v4783_v35  ;;  %v6808_v35 = vld [vmem:[%s17058_s2 + $0x28] sm:$0xff]  ;;  %v4753_v36 = vld [vmem:[%s17056_s10 + $0x10] sm:$0xff] }
0x1433   :  { %9170 = vmatprep.subr.bf16.mxu1 %v10182_v37 }
0x1436   :  { %9172 = vmatpush3.bf16.msra.mxu1 %v9171_v46  ;;  %v4804_v46 = vld [vmem:[%s17056_s10 + $0x1a8] sm:$0xff] }
0x1437   :  { %9173 = vmatprep.subr.bf16.mxu1 %v10182_v37  ;;  %v9212_v47 = vpack.c.bf16 %v4804_v46, %v4800_v48 }
0x143a   :  { %9175 = vmatpush3.bf16.msra.mxu1 %v9174_v40  ;;  %v4803_v40 = vld [vmem:[%s17056_s10 + $0x1a0] sm:$0xff] }
0x143b   :  { %9176 = vmatprep.subr.bf16.mxu1 %v10182_v37  ;;  %v9214_v51 = vpack.c.bf16 %v4803_v40, %v4799_v49  ;;  %v4765_v49 = vld [vmem:[%s17056_s10 + $0x70] sm:$0xff]  ;;  %v4770_v40 = vld [vmem:[%s17056_s10 + $0x98] sm:$0xff] }
0x143e   :  { %9178 = vmatpush3.bf16.msra.mxu1 %v9177_v52  ;;  %v4812_v52 = vld [vmem:[%s17056_s10 + $0x1e8] sm:$0xff] }
0x143f   :  { %9179 = vmatprep.subr.bf16.mxu1 %v10182_v37  ;;  %v9216_v53 = vpack.c.bf16 %v4812_v52, %v4808_v55 }
0x1442   :  { %9181 = vmatpush3.bf16.msra.mxu1 %v9180_v59  ;;  %v4811_v59 = vld [vmem:[%s17056_s10 + $0x1e0] sm:$0xff] }
0x1443   :  { %9182 = vmatprep.subr.bf16.mxu1 %v10182_v37  ;;  %v9218_v60 = vpack.c.bf16 %v4811_v59, %v4807_v57  ;;  %v4773_v57 = vld [vmem:[%s17056_s10 + $0xb0] sm:$0xff]  ;;  %v4778_v59 = vld [vmem:[%s17056_s10 + $0xd8] sm:$0xff] }
0x1446   :  { %9184 = vmatpush3.bf16.msra.mxu1 %v9183_v56  ;;  %v4820_v56 = vld [vmem:[%s17056_s10 + $0x228] sm:$0xff] }
0x1447   :  { %9185 = vmatprep.subr.bf16.mxu1 %v10182_v37  ;;  %v9220_v0 = vpack.c.bf16 %v4820_v56, %v4816_v50  ;;  %v4777_v56 = vld [vmem:[%s17056_s10 + $0xd0] sm:$0xff] }
0x144a   :  { %9187 = vmatpush3.bf16.msra.mxu1 %v9186_v58  ;;  %v4819_v58 = vld [vmem:[%s17056_s10 + $0x220] sm:$0xff] }
0x144b   :  { %9253 = vmatprep.subr.bf16.mxu1 %v9252_v12  ;;  %v9222_v54 = vpack.c.bf16 %v4819_v58, %v4815_v1  ;;  %v4832_v12 = vld [vmem:[%s17056_s10 + $0x288] sm:$0xff]  ;;  %v4786_v1 = vld [vmem:[%s17056_s10 + $0x118] sm:$0xff] }
0x144c   :  { %v4790_v58 = vld [vmem:[%s17056_s10 + $0x138] sm:$0xff] }
0x144d   :  { %v9268_v4 = vpack.c.bf16 %v4790_v58, %v4786_v1  ;;  %v4858_v1 = vld [vmem:[%s17056_s10 + $0x358] sm:$0xff] }
0x1500   :  { %v4544_v29 = vpop.f32.mrb[36].mxu1 }
0x1501   :  { %v4545_v41 = vadd.f32 %v10175_v43, %v4544_v29  ;;  %v7508_v42 = vpop.f32.mrb[37].mxu1  ;;  %v4792_v29 = vld [vmem:[%s17056_s10 + $0x148] sm:$0xff] }
0x1502   :  { %v4796_v43 = vld [vmem:[%s17056_s10 + $0x168] sm:$0xff]  ;;  %v4791_v42 = vld [vmem:[%s17056_s10 + $0x140] sm:$0xff] }
0x1503   :  { %10069 = vtanh.f32 %v4545_v41  ;;  %v9208_v41 = vpack.c.bf16 %v4796_v43, %v4792_v29  ;;  %v4762_v43 = vld [vmem:[%s17056_s10 + $0x58] sm:$0xff] }
0x150d   :  { %v10070_v44 = vpop.eup %10069 }
0x150e   :  { %4646 = vmatmul.mubr.f32.vlgmr.msra.gmra.mrb[38].mxu0 %v10070_v44  ;;  %v4795_v44 = vld [vmem:[%s17056_s10 + $0x160] sm:$0xff] }
0x150f   :  { %4943 = vmatprep.mubr.f32.mxu0 %v14831_v62  ;;  %9191 = vmatpush1.bf16.msra.mxu0 %v9190_v14  ;;  %v9210_v34 = vpack.c.bf16 %v4795_v44, %v4791_v42  ;;  %v4836_v14 = vld [vmem:[%s17056_s10 + $0x2a8] sm:$0xff] }
0x1510   :  { %9193 = vmatprep.subr.bf16.mxu0 %v9192_v16  ;;  %v9228_v5 = vpack.c.bf16 %v4836_v14, %v4832_v12  ;;  %v4835_v16 = vld [vmem:[%s17056_s10 + $0x2a0] sm:$0xff]  ;;  %v9272_v12 = vpack.c.bf16 %v4798_v61, %v4794_v63  ;;  %v4793_v14 = vld [vmem:[%s17056_s10 + $0x150] sm:$0xff] }
0x1511   :  { %v9230_v17 = vpack.c.bf16 %v4835_v16, %v4831_v2  ;;  %v4802_v2 = vld [vmem:[%s17056_s10 + $0x198] sm:$0xff]  ;;  %v4857_v61 = vld [vmem:[%s17056_s10 + $0x350] sm:$0xff] }
0x1512   :  { %v4806_v16 = vld [vmem:[%s17056_s10 + $0x1b8] sm:$0xff] }
0x1513   :  { %9195 = vmatpush1.bf16.msra.mxu0 %v9194_v19  ;;  %v4844_v19 = vld [vmem:[%s17056_s10 + $0x2e8] sm:$0xff] }
0x1514   :  { %9197 = vmatprep.subr.bf16.mxu0 %v9196_v22  ;;  %v9232_v20 = vpack.c.bf16 %v4844_v19, %v4840_v18  ;;  %v4843_v22 = vld [vmem:[%s17056_s10 + $0x2e0] sm:$0xff]  ;;  %v9276_v18 = vpack.c.bf16 %v4806_v16, %v4802_v2  ;;  %v4801_v19 = vld [vmem:[%s17056_s10 + $0x190] sm:$0xff]  ;;  %v4866_v2 = vld [vmem:[%s17056_s10 + $0x398] sm:$0xff] }
0x1515   :  { %v9234_v23 = vpack.c.bf16 %v4843_v22, %v4839_v9  ;;  %v4810_v9 = vld [vmem:[%s17056_s10 + $0x1d8] sm:$0xff] }
0x1516   :  { %v4814_v22 = vld [vmem:[%s17056_s10 + $0x1f8] sm:$0xff] }
0x1517   :  { %9199 = vmatpush1.bf16.msra.mxu0 %v9198_v25  ;;  %v4852_v25 = vld [vmem:[%s17056_s10 + $0x328] sm:$0xff] }
0x1518   :  { %9201 = vmatprep.subr.bf16.mxu0 %v9200_v28  ;;  %v9236_v26 = vpack.c.bf16 %v4852_v25, %v4848_v24  ;;  %v4851_v28 = vld [vmem:[%s17056_s10 + $0x320] sm:$0xff]  ;;  %v9280_v24 = vpack.c.bf16 %v4814_v22, %v4810_v9  ;;  %v4809_v25 = vld [vmem:[%s17056_s10 + $0x1d0] sm:$0xff] }
0x1519   :  { %v9238_v30 = vpack.c.bf16 %v4851_v28, %v4847_v27  ;;  %v4818_v27 = vld [vmem:[%s17056_s10 + $0x218] sm:$0xff]  ;;  %v4865_v22 = vld [vmem:[%s17056_s10 + $0x390] sm:$0xff] }
0x151a   :  { %v4822_v28 = vld [vmem:[%s17056_s10 + $0x238] sm:$0xff] }
0x151b   :  { %9203 = vmatpush1.bf16.msra.mxu0 %v9202_v32 }
0x151c   :  { %9205 = vmatprep.subr.bf16.mxu0 %v9204_v38 }
0x151f   :  { %9207 = vmatpush1.bf16.msra.mxu0 %v9206_v39  ;;  %v4757_v39 = vld [vmem:[%s17056_s10 + $0x30] sm:$0xff] }
0x1520   :  { %9209 = vmatprep.subr.bf16.mxu0 %v9208_v41  ;;  %v4766_v41 = vld [vmem:[%s17056_s10 + $0x78] sm:$0xff] }
0x1521   :  { %v9256_v46 = vpack.c.bf16 %v4766_v41, %v4762_v43  ;;  %v4834_v43 = vld [vmem:[%s17056_s10 + $0x298] sm:$0xff] }
0x1522   :  { %v4838_v41 = vld [vmem:[%s17056_s10 + $0x2b8] sm:$0xff] }
0x1523   :  { %9211 = vmatpush1.bf16.msra.mxu0 %v9210_v34  ;;  %v9254_v34 = vpack.c.bf16 %v4757_v39, %v4753_v36  ;;  %v4825_v39 = vld [vmem:[%s17056_s10 + $0x250] sm:$0xff] }
0x1524   :  { %9213 = vmatprep.subr.bf16.mxu0 %v9212_v47  ;;  %v4761_v47 = vld [vmem:[%s17056_s10 + $0x50] sm:$0xff] }
0x1525   :  { %v9258_v55 = vpack.c.bf16 %v4765_v49, %v4761_v47  ;;  %v4846_v47 = vld [vmem:[%s17056_s10 + $0x2f8] sm:$0xff] }
0x1527   :  { %9215 = vmatpush1.bf16.msra.mxu0 %v9214_v51  ;;  %v4774_v51 = vld [vmem:[%s17056_s10 + $0xb8] sm:$0xff] }
0x1528   :  { %9217 = vmatprep.subr.bf16.mxu0 %v9216_v53  ;;  %v9260_v52 = vpack.c.bf16 %v4774_v51, %v4770_v40  ;;  %v4769_v53 = vld [vmem:[%s17056_s10 + $0x90] sm:$0xff] }
0x1529   :  { %v4841_v51 = vld [vmem:[%s17056_s10 + $0x2d0] sm:$0xff] }
0x152b   :  { %9219 = vmatpush1.bf16.msra.mxu0 %v9218_v60  ;;  %v9262_v60 = vpack.c.bf16 %v4773_v57, %v4769_v53  ;;  %v4854_v53 = vld [vmem:[%s17056_s10 + $0x338] sm:$0xff] }
0x152c   :  { %9221 = vmatprep.subr.bf16.mxu0 %v9220_v0  ;;  %v4781_v0 = vld [vmem:[%s17056_s10 + $0xf0] sm:$0xff] }
0x152f   :  { %9223 = vmatpush1.bf16.msra.mxu0 %v9222_v54  ;;  %v9266_v54 = vpack.c.bf16 %v4781_v0, %v4777_v56  ;;  %v4856_v56 = vld [vmem:[%s17056_s10 + $0x348] sm:$0xff] }
0x1530   :  { %9225 = vmatprep.subr.bf16.mxu0 %v9224_v8  ;;  %v4789_v8 = vld [vmem:[%s17056_s10 + $0x130] sm:$0xff]  ;;  %v4860_v0 = vld [vmem:[%s17056_s10 + $0x368] sm:$0xff] }
0x1531   :  { %v9240_v58 = vpack.c.bf16 %v4860_v0, %v4856_v56  ;;  %v5070_v56 = vld [vmem:[%s17049_s3 + $0x60] sm:$0xff] }
0x1533   :  { %9227 = vmatpush1.bf16.msra.mxu0 %v9226_v10  ;;  %v9270_v10 = vpack.c.bf16 %v4789_v8, %v4785_v7  ;;  %v4859_v7 = vld [vmem:[%s17056_s10 + $0x360] sm:$0xff] }
0x1534   :  { %9229 = vmatprep.subr.bf16.mxu0 %v9228_v5  ;;  %v4797_v5 = vld [vmem:[%s17056_s10 + $0x170] sm:$0xff] }
0x1537   :  { %9231 = vmatpush1.bf16.msra.mxu0 %v9230_v17  ;;  %v9274_v17 = vpack.c.bf16 %v4797_v5, %v4793_v14  ;;  %v4864_v14 = vld [vmem:[%s17056_s10 + $0x388] sm:$0xff] }
0x1538   :  { %9233 = vmatprep.subr.bf16.mxu0 %v9232_v20  ;;  %v4805_v20 = vld [vmem:[%s17056_s10 + $0x1b0] sm:$0xff]  ;;  %v4868_v5 = vld [vmem:[%s17056_s10 + $0x3a8] sm:$0xff] }
0x1539   :  { %v9244_v16 = vpack.c.bf16 %v4868_v5, %v4864_v14  ;;  %v5074_v14 = vld [vmem:[%s17049_s3 + $0x80] sm:$0xff] }
0x153a   :  { %v5078_v5 = vld [vmem:[%s17049_s3 + $0xa0] sm:$0xff] }
0x153b   :  { %9235 = vmatpush1.bf16.msra.mxu0 %v9234_v23  ;;  %v9278_v23 = vpack.c.bf16 %v4805_v20, %v4801_v19  ;;  %v4867_v19 = vld [vmem:[%s17056_s10 + $0x3a0] sm:$0xff] }
0x153c   :  { %9237 = vmatprep.subr.bf16.mxu0 %v9236_v26  ;;  %v4813_v26 = vld [vmem:[%s17056_s10 + $0x1f0] sm:$0xff] }
0x153f   :  { %9239 = vmatpush1.bf16.msra.mxu0 %v9238_v30  ;;  %v9282_v30 = vpack.c.bf16 %v4813_v26, %v4809_v25  ;;  %v4876_v26 = vld [vmem:[%s17056_s10 + $0x3e8] sm:$0xff] }
0x1540   :  { %9241 = vmatprep.subr.bf16.mxu0 %v9240_v58  ;;  %v5068_v58 = vld [vmem:[%s17049_s3 + $0x50] sm:$0xff] }
0x15e1   :  { %v4647_v31 = vpop.f32.mrb[38].mxu0 }
0x15e2   :  { %v4649_v32 = vpop.f32.mrb[39].mxu0  ;;  %v4648_v42 = vadd.f32 %v4647_v31, %v10852_v13  ;;  %v9284_v31 = vpack.c.bf16 %v4822_v28, %v4818_v27  ;;  %v4874_v27 = vld [vmem:[%s17056_s10 + $0x3d8] sm:$0xff] }
0x15e3   :  { %v4650_v33 = vadd.f32 %v4649_v32, %v10849_v6  ;;  %v4817_v32 = vld [vmem:[%s17056_s10 + $0x210] sm:$0xff]  ;;  %v4878_v28 = vld [vmem:[%s17056_s10 + $0x3f8] sm:$0xff] }
0x15e5   :  { %v4654_v21 = vmul.f32 0.5, %v4650_v33  ;;  %v4821_v33 = vld [vmem:[%s17056_s10 + $0x230] sm:$0xff] }
0x15e7   :  { %v4655_v38 = vmul.f32 1.442695, %v4654_v21  ;;  %v4826_v21 = vld [vmem:[%s17056_s10 + $0x258] sm:$0xff] }
0x15e9   :  { %10071 = vpow2.f32 %v4655_v38  ;;  %v4830_v38 = vld [vmem:[%s17056_s10 + $0x278] sm:$0xff] }
0x15ea   :  { %v9288_v36 = vpack.c.bf16 %v4830_v38, %v4826_v21  ;;  %v4873_v21 = vld [vmem:[%s17056_s10 + $0x3d0] sm:$0xff] }
0x15f3   :  { %v10072_v29 = vpop.eup %10071 }
0x15f4   :  { %v4657_v44 = vmul.f32 %v10072_v29, %v6808_v35  ;;  %v9286_v35 = vpack.c.bf16 %v4821_v33, %v4817_v32  ;;  %v4829_v29 = vld [vmem:[%s17056_s10 + $0x270] sm:$0xff]  ;;  %v4871_v32 = vld [vmem:[%s17056_s10 + $0x3c0] sm:$0xff] }
0x15f5   :  { %v4875_v33 = vld [vmem:[%s17056_s10 + $0x3e0] sm:$0xff] }
0x15f6   :  { %v4658_v48 = vadd.f32 %v4657_v44, %v4648_v42  ;;  %v9290_v42 = vpack.c.bf16 %v4829_v29, %v4825_v39  ;;  %v9292_v44 = vpack.c.bf16 %v4838_v41, %v4834_v43  ;;  %v9250_v38 = vpack.c.bf16 %v4875_v33, %v4871_v32  ;;  %v5063_v39 = vld [vmem:[%s17049_s3 + $0x28] sm:$0xff]  ;;  %v5061_v41 = vld [vmem:[%s17049_s3 + $0x18] sm:$0xff] }
0x15f7   :  { %v5091_v32 = vld [vmem:[%s17049_s3 + $0x108] sm:$0xff] }
0x15f8   :  { %7542 = vmatmul.mubr.f32.vlgmr.msra.gmra.mrb[38].mxu1 %v4658_v48  ;;  %v4837_v48 = vld [vmem:[%s17056_s10 + $0x2b0] sm:$0xff]  ;;  %v5095_v33 = vld [vmem:[%s17049_s3 + $0x128] sm:$0xff] }
0x15f9   :  { %5014 = vmatprep.mubr.f32.mxu1 %v14831_v62  ;;  %9255 = vmatpush1.bf16.msra.mxu1 %v9254_v34  ;;  %v4782_v62 = vld [vmem:[%s17056_s10 + $0xf8] sm:$0xff]  ;;  %v4833_v34 = vld [vmem:[%s17056_s10 + $0x290] sm:$0xff] }
0x15fa   :  { %9257 = vmatprep.subr.bf16.mxu1 %v9256_v46  ;;  %v9264_v50 = vpack.c.bf16 %v4782_v62, %v4778_v59  ;;  %v4842_v46 = vld [vmem:[%s17056_s10 + $0x2d8] sm:$0xff]  ;;  %v9294_v49 = vpack.c.bf16 %v4837_v48, %v4833_v34  ;;  %v4849_v62 = vld [vmem:[%s17056_s10 + $0x310] sm:$0xff]  ;;  %v10176_v48 = vld [vmem:[%s17059_s9] ss:$0 sm:$0xff] }
0x15fb   :  { %v9296_v40 = vpack.c.bf16 %v4846_v47, %v4842_v46 }
0x15fd   :  { %9259 = vmatpush1.bf16.msra.mxu1 %v9258_v55  ;;  %v4845_v55 = vld [vmem:[%s17056_s10 + $0x2f0] sm:$0xff] }
0x15fe   :  { %9261 = vmatprep.subr.bf16.mxu1 %v9260_v52  ;;  %v4850_v52 = vld [vmem:[%s17056_s10 + $0x318] sm:$0xff]  ;;  %v9298_v57 = vpack.c.bf16 %v4845_v55, %v4841_v51  ;;  %v5060_v51 = vld [vmem:[%s17049_s3 + $0x10] sm:$0xff] }
0x15ff   :  { %v9300_v59 = vpack.c.bf16 %v4854_v53, %v4850_v52  ;;  %v5064_v55 = vld [vmem:[%s17049_s3 + $0x30] sm:$0xff]  ;;  %v5067_v52 = vld [vmem:[%s17049_s3 + $0x48] sm:$0xff] }
0x1600   :  { %v5071_v53 = vld [vmem:[%s17049_s3 + $0x68] sm:$0xff] }
0x1601   :  { %9263 = vmatpush1.bf16.msra.mxu1 %v9262_v60  ;;  %v4853_v60 = vld [vmem:[%s17056_s10 + $0x330] sm:$0xff]  ;;  %v9320_v0 = vpack.c.bf16 %v5071_v53, %v5067_v52 }
0x1602   :  { %9265 = vmatprep.subr.bf16.mxu1 %v9264_v50  ;;  %v9302_v50 = vpack.c.bf16 %v4853_v60, %v4849_v62  ;;  %v9350_v60 = vpack.c.bf16 %v5064_v55, %v5060_v51  ;;  %v5098_v51 = vld [vmem:[%s17049_s3 + $0x140] sm:$0xff] }
0x1603   :  { %v5102_v55 = vld [vmem:[%s17049_s3 + $0x160] sm:$0xff] }
0x1605   :  { %9267 = vmatpush1.bf16.msra.mxu1 %v9266_v54  ;;  %v4862_v54 = vld [vmem:[%s17056_s10 + $0x378] sm:$0xff] }
0x1606   :  { %9269 = vmatprep.subr.bf16.mxu1 %v9268_v4  ;;  %v4855_v4 = vld [vmem:[%s17056_s10 + $0x340] sm:$0xff]  ;;  %v9304_v8 = vpack.c.bf16 %v4862_v54, %v4858_v1  ;;  %v5072_v54 = vld [vmem:[%s17049_s3 + $0x70] sm:$0xff] }
0x1607   :  { %v9242_v63 = vpack.c.bf16 %v4859_v7, %v4855_v4  ;;  %v5075_v4 = vld [vmem:[%s17049_s3 + $0x88] sm:$0xff] }
0x1609   :  { %9271 = vmatpush1.bf16.msra.mxu1 %v9270_v10  ;;  %v4861_v10 = vld [vmem:[%s17056_s10 + $0x370] sm:$0xff]  ;;  %9243 = vmatpush1.bf16.msra.mxu0 %v9242_v63  ;;  %v5077_v63 = vld [vmem:[%s17049_s3 + $0x98] sm:$0xff] }
0x160a   :  { %9273 = vmatprep.subr.bf16.mxu1 %v9272_v12  ;;  %v9306_v12 = vpack.c.bf16 %v4861_v10, %v4857_v61  ;;  %9245 = vmatprep.subr.bf16.mxu0 %v9244_v16  ;;  %v5081_v61 = vld [vmem:[%s17049_s3 + $0xb8] sm:$0xff] }
0x160b   :  { %v9356_v16 = vpack.c.bf16 %v5081_v61, %v5077_v63  ;;  %v5112_v63 = vld [vmem:[%s17049_s3 + $0x1b0] sm:$0xff]  ;;  %v5115_v61 = vld [vmem:[%s17049_s3 + $0x1c8] sm:$0xff] }
0x160d   :  { %9275 = vmatpush1.bf16.msra.mxu1 %v9274_v17  ;;  %v4870_v17 = vld [vmem:[%s17056_s10 + $0x3b8] sm:$0xff] }
0x160e   :  { %9277 = vmatprep.subr.bf16.mxu1 %v9276_v18  ;;  %v4863_v18 = vld [vmem:[%s17056_s10 + $0x380] sm:$0xff]  ;;  %v9308_v20 = vpack.c.bf16 %v4870_v17, %v4866_v2  ;;  %v5076_v17 = vld [vmem:[%s17049_s3 + $0x90] sm:$0xff] }
0x160f   :  { %v9246_v9 = vpack.c.bf16 %v4867_v19, %v4863_v18  ;;  %v5080_v18 = vld [vmem:[%s17049_s3 + $0xb0] sm:$0xff]  ;;  %v5083_v19 = vld [vmem:[%s17049_s3 + $0xc8] sm:$0xff] }
0x1611   :  { %9279 = vmatpush1.bf16.msra.mxu1 %v9278_v23  ;;  %v4869_v23 = vld [vmem:[%s17056_s10 + $0x3b0] sm:$0xff]  ;;  %9247 = vmatpush1.bf16.msra.mxu0 %v9246_v9  ;;  %v5085_v9 = vld [vmem:[%s17049_s3 + $0xd8] sm:$0xff] }
0x1612   :  { %9281 = vmatprep.subr.bf16.mxu1 %v9280_v24  ;;  %v4872_v24 = vld [vmem:[%s17056_s10 + $0x3c8] sm:$0xff]  ;;  %v9310_v25 = vpack.c.bf16 %v4869_v23, %v4865_v22  ;;  %v5089_v22 = vld [vmem:[%s17049_s3 + $0xf8] sm:$0xff]  ;;  %v9326_v23 = vpack.c.bf16 %v5078_v5, %v5074_v14 }
0x1613   :  { %v5121_v14 = vld [vmem:[%s17049_s3 + $0x1f8] sm:$0xff] }
0x1615   :  { %9283 = vmatpush1.bf16.msra.mxu1 %v9282_v30  ;;  %v9248_v30 = vpack.c.bf16 %v4876_v26, %v4872_v24  ;;  %v9358_v24 = vpack.c.bf16 %v5080_v18, %v5076_v17  ;;  %v5086_v26 = vld [vmem:[%s17049_s3 + $0xe0] sm:$0xff] }
0x1616   :  { %9285 = vmatprep.subr.bf16.mxu1 %v9284_v31  ;;  %v9312_v31 = vpack.c.bf16 %v4878_v28, %v4874_v27  ;;  %v9360_v28 = vpack.c.bf16 %v5089_v22, %v5085_v9  ;;  %v5120_v9 = vld [vmem:[%s17049_s3 + $0x1f0] sm:$0xff] }
0x1617   :  { %9249 = vmatprep.subr.bf16.mxu0 %v9248_v30  ;;  %v5084_v30 = vld [vmem:[%s17049_s3 + $0xd0] sm:$0xff] }
0x1618   :  { %9251 = vmatpush1.bf16.msra.mxu0 %v9250_v38  ;;  %v5097_v38 = vld [vmem:[%s17049_s3 + $0x138] sm:$0xff] }
0x1619   :  { %9287 = vmatpush1.bf16.msra.mxu1 %v9286_v35  ;;  %v4877_v35 = vld [vmem:[%s17056_s10 + $0x3f0] sm:$0xff] }
0x161a   :  { %9289 = vmatprep.subr.bf16.mxu1 %v9288_v36  ;;  %v5059_v36 = vld [vmem:[%s17049_s3 + $0x8] sm:$0xff]  ;;  %v9314_v29 = vpack.c.bf16 %v4877_v35, %v4873_v21  ;;  %v5093_v21 = vld [vmem:[%s17049_s3 + $0x118] sm:$0xff] }
0x161b   :  { %v9316_v43 = vpack.c.bf16 %v5063_v39, %v5059_v36  ;;  %v5090_v39 = vld [vmem:[%s17049_s3 + $0x100] sm:$0xff] }
0x161d   :  { %9291 = vmatpush1.bf16.msra.mxu1 %v9290_v42  ;;  %v5065_v42 = vld [vmem:[%s17049_s3 + $0x38] sm:$0xff]  ;;  %9317 = vmatprep.subr.bf16.mxu0 %v9316_v43  ;;  %v9332_v43 = vpack.c.bf16 %v5095_v33, %v5091_v32  ;;  %v5298_v33 = vld [vmem:[%s17050_s4 + $0x30] sm:$0xff] }
0x161e   :  { %9293 = vmatprep.subr.bf16.mxu1 %v9292_v44  ;;  %v9348_v44 = vpack.c.bf16 %v5065_v42, %v5061_v41  ;;  %v9364_v41 = vpack.c.bf16 %v5097_v38, %v5093_v21  ;;  %v5092_v42 = vld [vmem:[%s17049_s3 + $0x110] sm:$0xff]  ;;  %v5299_v21 = vld [vmem:[%s17050_s4 + $0x38] sm:$0xff] }
0x161f   :  { %v9390_v38 = vpack.c.bf16 %v5299_v21, %v5298_v33 }
0x1621   :  { %9295 = vmatpush1.bf16.msra.mxu1 %v9294_v49  ;;  %v5058_v49 = vld [vmem:[%s17049_s3] sm:$0xff] }
0x1622   :  { %9297 = vmatprep.subr.bf16.mxu1 %v9296_v40  ;;  %v5062_v40 = vld [vmem:[%s17049_s3 + $0x20] sm:$0xff] }
0x1623   :  { %v9318_v62 = vpack.c.bf16 %v5062_v40, %v5058_v49 }
0x1625   :  { %9299 = vmatpush1.bf16.msra.mxu1 %v9298_v57  ;;  %v5069_v57 = vld [vmem:[%s17049_s3 + $0x58] sm:$0xff] }
0x1626   :  { %9301 = vmatprep.subr.bf16.mxu1 %v9300_v59  ;;  %v5073_v59 = vld [vmem:[%s17049_s3 + $0x78] sm:$0xff] }
0x1627   :  { %v9352_v1 = vpack.c.bf16 %v5073_v59, %v5069_v57  ;;  %v5100_v57 = vld [vmem:[%s17049_s3 + $0x150] sm:$0xff] }
0x1628   :  { %v5104_v59 = vld [vmem:[%s17049_s3 + $0x170] sm:$0xff] }
0x1629   :  { %9303 = vmatpush1.bf16.msra.mxu1 %v9302_v50  ;;  %v5066_v50 = vld [vmem:[%s17049_s3 + $0x40] sm:$0xff] }
0x162a   :  { %9305 = vmatprep.subr.bf16.mxu1 %v9304_v8  ;;  %v5079_v8 = vld [vmem:[%s17049_s3 + $0xa8] sm:$0xff]  ;;  %v9322_v10 = vpack.c.bf16 %v5070_v56, %v5066_v50  ;;  %v5109_v50 = vld [vmem:[%s17049_s3 + $0x198] sm:$0xff] }
0x162b   :  { %v9324_v2 = vpack.c.bf16 %v5079_v8, %v5075_v4  ;;  %v5113_v56 = vld [vmem:[%s17049_s3 + $0x1b8] sm:$0xff]  ;;  %v5108_v8 = vld [vmem:[%s17049_s3 + $0x190] sm:$0xff] }
0x162d   :  { %9307 = vmatpush1.bf16.msra.mxu1 %v9306_v12  ;;  %v9354_v12 = vpack.c.bf16 %v5072_v54, %v5068_v58  ;;  %v5106_v58 = vld [vmem:[%s17049_s3 + $0x180] sm:$0xff] }
0x162e   :  { %9309 = vmatprep.subr.bf16.mxu1 %v9308_v20  ;;  %v5087_v20 = vld [vmem:[%s17049_s3 + $0xe8] sm:$0xff]  ;;  %v5110_v54 = vld [vmem:[%s17049_s3 + $0x1a0] sm:$0xff] }
0x162f   :  { %v9328_v27 = vpack.c.bf16 %v5087_v20, %v5083_v19  ;;  %v9342_v5 = vpack.c.bf16 %v5110_v54, %v5106_v58  ;;  %v5118_v19 = vld [vmem:[%s17049_s3 + $0x1e0] sm:$0xff]  ;;  %v5116_v20 = vld [vmem:[%s17049_s3 + $0x1d0] sm:$0xff] }
0x1630   :  { %v5387_v54 = vld [vmem:[%s17051_s6 + $0x40] sm:$0xff] }
0x1631   :  { %9311 = vmatpush1.bf16.msra.mxu1 %v9310_v25  ;;  %v5082_v25 = vld [vmem:[%s17049_s3 + $0xc0] sm:$0xff] }
0x1632   :  { %9313 = vmatprep.subr.bf16.mxu1 %v9312_v31  ;;  %v5088_v31 = vld [vmem:[%s17049_s3 + $0xf0] sm:$0xff]  ;;  %v9330_v35 = vpack.c.bf16 %v5086_v26, %v5082_v25  ;;  %v5293_v25 = vld [vmem:[%s17050_s4 + $0x8] sm:$0xff] }
0x1633   :  { %v9362_v36 = vpack.c.bf16 %v5088_v31, %v5084_v30  ;;  %v5296_v30 = vld [vmem:[%s17050_s4 + $0x20] sm:$0xff]  ;;  %v5297_v31 = vld [vmem:[%s17050_s4 + $0x28] sm:$0xff] }
0x1634   :  { %v9387_v32 = vpack.c.bf16 %v5297_v31, %v5296_v30  ;;  %v6812_v30 = vld [vmem:[%s17060_s1 + $0xb8] sm:$0xff] }
0x1635   :  { %9315 = vmatpush1.bf16.msra.mxu1 %v9314_v29  ;;  %v5094_v29 = vld [vmem:[%s17049_s3 + $0x120] sm:$0xff] }
0x1636   :  { %9349 = vmatprep.subr.bf16.mxu1 %v9348_v44  ;;  %v5096_v44 = vld [vmem:[%s17049_s3 + $0x130] sm:$0xff]  ;;  %v9334_v49 = vpack.c.bf16 %v5094_v29, %v5090_v39 }
0x1637   :  { %v9366_v40 = vpack.c.bf16 %v5096_v44, %v5092_v42  ;;  %v5302_v29 = vld [vmem:[%s17050_s4 + $0x50] sm:$0xff]  ;;  %v5304_v42 = vld [vmem:[%s17050_s4 + $0x60] sm:$0xff]  ;;  %v5305_v44 = vld [vmem:[%s17050_s4 + $0x68] sm:$0xff] }
0x16cb   :  { %v4741_v34 = vpop.f32.mrb[38].mxu1 }
0x16cc   :  { %v4742_v46 = vadd.f32 %v10176_v48, %v4741_v34  ;;  %v7543_v47 = vpop.f32.mrb[39].mxu1  ;;  %v5099_v34 = vld [vmem:[%s17049_s3 + $0x148] sm:$0xff] }
0x16cd   :  { %v5103_v48 = vld [vmem:[%s17049_s3 + $0x168] sm:$0xff]  ;;  %v5105_v47 = vld [vmem:[%s17049_s3 + $0x178] sm:$0xff] }
0x16ce   :  { %10073 = vtanh.f32 %v4742_v46  ;;  %v5101_v46 = vld [vmem:[%s17049_s3 + $0x158] sm:$0xff]  ;;  %v9336_v52 = vpack.c.bf16 %v5103_v48, %v5099_v34  ;;  %v9399_v34 = vpack.c.bf16 %v5305_v44, %v5304_v42  ;;  %v5306_v48 = vld [vmem:[%s17050_s4 + $0x70] sm:$0xff] }
0x16cf   :  { %v9368_v53 = vpack.c.bf16 %v5105_v47, %v5101_v46  ;;  %v5307_v46 = vld [vmem:[%s17050_s4 + $0x78] sm:$0xff] }
0x16d0   :  { %v9402_v47 = vpack.c.bf16 %v5307_v46, %v5306_v48  ;;  %v6818_v46 = vld [vmem:[%s17052_s0 + $0xc0] sm:$0xff] }
0x16d8   :  { %v10074_v7 = vpop.eup %10073 }
0x16d9   :  { %4944 = vmatmul.mubr.f32.vlgmr.msra.gmra.mrb[40].mxu0 %v10074_v7  ;;  %5015 = vmatmul.mubr.f32.vlgmr.msra.gmra.mrb[40].mxu1 %v10074_v7  ;;  %v9372_v7 = vpack.c.bf16 %v5113_v56, %v5109_v50  ;;  %v5385_v50 = vld [vmem:[%s17051_s6 + $0x30] sm:$0xff]  ;;  %v5388_v56 = vld [vmem:[%s17051_s6 + $0x48] sm:$0xff] }
0x16da   :  { %9319 = vmatpush1.bf16.msra.mxu0 %v9318_v62  ;;  %9351 = vmatpush1.bf16.msra.mxu1 %v9350_v60  ;;  %v5107_v62 = vld [vmem:[%s17049_s3 + $0x188] sm:$0xff] }
0x16db   :  { %9321 = vmatprep.subr.bf16.mxu0 %v9320_v0  ;;  %9353 = vmatprep.subr.bf16.mxu1 %v9352_v1  ;;  %v5111_v60 = vld [vmem:[%s17049_s3 + $0x1a8] sm:$0xff]  ;;  %v9338_v0 = vpack.c.bf16 %v5102_v55, %v5098_v51  ;;  %v9370_v1 = vpack.c.bf16 %v5104_v59, %v5100_v57  ;;  %v5379_v51 = vld [vmem:[%s17051_s6] sm:$0xff]  ;;  %v5386_v57 = vld [vmem:[%s17051_s6 + $0x38] sm:$0xff] }
0x16dc   :  { %5186 = vmatprep.mubr.f32.mxu0 %v10181_v3  ;;  %5257 = vmatprep.mubr.f32.mxu1 %v10181_v3  ;;  %v9340_v4 = vpack.c.bf16 %v5111_v60, %v5107_v62  ;;  %v5383_v60 = vld [vmem:[%s17051_s6 + $0x20] sm:$0xff] }
0x16de   :  { %9323 = vmatpush1.bf16.msra.mxu0 %v9322_v10  ;;  %9355 = vmatpush1.bf16.msra.mxu1 %v9354_v12  ;;  %v5119_v10 = vld [vmem:[%s17049_s3 + $0x1e8] sm:$0xff]  ;;  %v5117_v12 = vld [vmem:[%s17049_s3 + $0x1d8] sm:$0xff] }
0x16df   :  { %9325 = vmatprep.subr.bf16.mxu0 %v9324_v2  ;;  %9357 = vmatprep.subr.bf16.mxu1 %v9356_v16  ;;  %v9374_v2 = vpack.c.bf16 %v5112_v63, %v5108_v8  ;;  %v5114_v16 = vld [vmem:[%s17049_s3 + $0x1c0] sm:$0xff]  ;;  %v9344_v17 = vpack.c.bf16 %v5119_v10, %v5115_v61  ;;  %v9376_v18 = vpack.c.bf16 %v5121_v14, %v5117_v12  ;;  %v5394_v8 = vld [vmem:[%s17051_s6 + $0x78] sm:$0xff]  ;;  %v5393_v12 = vld [vmem:[%s17051_s6 + $0x70] sm:$0xff] }
0x16e0   :  { %v9346_v22 = vpack.c.bf16 %v5118_v19, %v5114_v16  ;;  %v5391_v10 = vld [vmem:[%s17051_s6 + $0x60] sm:$0xff]  ;;  %v5396_v14 = vld [vmem:[%s17051_s6 + $0x88] sm:$0xff] }
0x16e2   :  { %9327 = vmatpush1.bf16.msra.mxu0 %v9326_v23  ;;  %9359 = vmatpush1.bf16.msra.mxu1 %v9358_v24  ;;  %v9378_v23 = vpack.c.bf16 %v5120_v9, %v5116_v20  ;;  %v5292_v24 = vld [vmem:[%s17050_s4] sm:$0xff]  ;;  %v6810_v9 = vld [vmem:[%s17060_s1 + $0xa8] sm:$0xff] }
0x16e3   :  { %9329 = vmatprep.subr.bf16.mxu0 %v9328_v27  ;;  %9361 = vmatprep.subr.bf16.mxu1 %v9360_v28  ;;  %v9381_v26 = vpack.c.bf16 %v5293_v25, %v5292_v24  ;;  %v5295_v27 = vld [vmem:[%s17050_s4 + $0x18] sm:$0xff]  ;;  %v6809_v20 = vld [vmem:[%s17060_s1 + $0xa0] sm:$0xff] }
0x16e6   :  { %9331 = vmatpush1.bf16.msra.mxu0 %v9330_v35  ;;  %9363 = vmatpush1.bf16.msra.mxu1 %v9362_v36  ;;  %v5300_v35 = vld [vmem:[%s17050_s4 + $0x40] sm:$0xff]  ;;  %v5301_v36 = vld [vmem:[%s17050_s4 + $0x48] sm:$0xff] }
0x16e7   :  { %9333 = vmatprep.subr.bf16.mxu0 %v9332_v43  ;;  %9365 = vmatprep.subr.bf16.mxu1 %v9364_v41  ;;  %v9393_v39 = vpack.c.bf16 %v5301_v36, %v5300_v35  ;;  %v5303_v43 = vld [vmem:[%s17050_s4 + $0x58] sm:$0xff] }
0x16e8   :  { %v9396_v41 = vpack.c.bf16 %v5303_v43, %v5302_v29 }
0x16ea   :  { %9335 = vmatpush1.bf16.msra.mxu0 %v9334_v49  ;;  %9367 = vmatpush1.bf16.msra.mxu1 %v9366_v40  ;;  %v5380_v49 = vld [vmem:[%s17051_s6 + $0x8] sm:$0xff]  ;;  %v5382_v40 = vld [vmem:[%s17051_s6 + $0x18] sm:$0xff] }
0x16eb   :  { %9337 = vmatprep.subr.bf16.mxu0 %v9336_v52  ;;  %9369 = vmatprep.subr.bf16.mxu1 %v9368_v53  ;;  %v9404_v55 = vpack.c.bf16 %v5382_v40, %v5380_v49  ;;  %v5381_v52 = vld [vmem:[%s17051_s6 + $0x10] sm:$0xff]  ;;  %v5384_v53 = vld [vmem:[%s17051_s6 + $0x28] sm:$0xff] }
0x16ec   :  { %v9406_v59 = vpack.c.bf16 %v5381_v52, %v5379_v51  ;;  %v9408_v62 = vpack.c.bf16 %v5386_v57, %v5384_v53 }
0x16ee   :  { %9339 = vmatpush1.bf16.msra.mxu0 %v9338_v0  ;;  %9371 = vmatpush1.bf16.msra.mxu1 %v9370_v1  ;;  %v5390_v0 = vld [vmem:[%s17051_s6 + $0x58] sm:$0xff]  ;;  %v9410_v1 = vpack.c.bf16 %v5385_v50, %v5383_v60  ;;  %v6820_v50 = vld [vmem:[%s17052_s0 + $0xd0] sm:$0xff] }
0x16ef   :  { %9341 = vmatprep.subr.bf16.mxu0 %v9340_v4  ;;  %9373 = vmatprep.subr.bf16.mxu1 %v9372_v7  ;;  %v9412_v58 = vpack.c.bf16 %v5390_v0, %v5388_v56  ;;  %v5389_v4 = vld [vmem:[%s17051_s6 + $0x50] sm:$0xff]  ;;  %v5392_v7 = vld [vmem:[%s17051_s6 + $0x68] sm:$0xff] }
0x16f0   :  { %v9414_v63 = vpack.c.bf16 %v5389_v4, %v5387_v54  ;;  %v9416_v61 = vpack.c.bf16 %v5394_v8, %v5392_v7 }
0x16f2   :  { %9343 = vmatpush1.bf16.msra.mxu0 %v9342_v5  ;;  %9375 = vmatpush1.bf16.msra.mxu1 %v9374_v2  ;;  %v5398_v5 = vld [vmem:[%s17051_s6 + $0x98] sm:$0xff]  ;;  %v9418_v2 = vpack.c.bf16 %v5393_v12, %v5391_v10 }
0x16f3   :  { %9345 = vmatprep.subr.bf16.mxu0 %v9344_v17  ;;  %9377 = vmatprep.subr.bf16.mxu1 %v9376_v18  ;;  %v9420_v16 = vpack.c.bf16 %v5398_v5, %v5396_v14  ;;  %v5395_v17 = vld [vmem:[%s17051_s6 + $0x80] sm:$0xff]  ;;  %v5397_v18 = vld [vmem:[%s17051_s6 + $0x90] sm:$0xff] }
0x16f4   :  { %v9422_v19 = vpack.c.bf16 %v5397_v18, %v5395_v17 }
0x16f6   :  { %9347 = vmatpush1.bf16.msra.mxu0 %v9346_v22  ;;  %9379 = vmatpush1.bf16.msra.mxu1 %v9378_v23 }
0x16f7   :  { %9380 = vmatprep.subr.bf16.mxu0 %v10182_v37  ;;  %9405 = vmatprep.subr.bf16.mxu1 %v9404_v55 }
0x16f9   :  { %5187 = vmatmul.mubr.f32.vlgmr.msra.gmra.mrb[42].mxu0 %v14841_v15  ;;  %5258 = vmatmul.mubr.f32.vlgmr.msra.gmra.mrb[42].mxu1 %v14841_v15  ;;  %v5294_v15 = vld [vmem:[%s17050_s4 + $0x10] sm:$0xff] }
0x16fa   :  { %7576 = vmatprep.mubr.msk.f32.mxu0 %vm10183_vm0, %v10181_v3  ;;  %5475 = vmatprep.mubr.f32.mxu1 %v10181_v3  ;;  %v9384_v28 = vpack.c.bf16 %v5295_v27, %v5294_v15 }
0x16fb   :  { %9382 = vmatpush3.bf16.msra.mxu0 %v9381_v26  ;;  %9407 = vmatpush1.bf16.msra.mxu1 %v9406_v59 }
0x16fc   :  { %9383 = vmatprep.subr.bf16.mxu0 %v10182_v37  ;;  %9409 = vmatprep.subr.bf16.mxu1 %v9408_v62  ;;  %v6821_v62 = vld [vmem:[%s17052_s0 + $0xd8] sm:$0xff] }
0x16ff   :  { %9385 = vmatpush3.bf16.msra.mxu0 %v9384_v28  ;;  %9411 = vmatpush1.bf16.msra.mxu1 %v9410_v1 }
0x1700   :  { %9386 = vmatprep.subr.bf16.mxu0 %v10182_v37  ;;  %9413 = vmatprep.subr.bf16.mxu1 %v9412_v58 }
0x1703   :  { %9388 = vmatpush3.bf16.msra.mxu0 %v9387_v32  ;;  %9415 = vmatpush1.bf16.msra.mxu1 %v9414_v63  ;;  %v6811_v32 = vld [vmem:[%s17060_s1 + $0xb0] sm:$0xff] }
0x1704   :  { %9389 = vmatprep.subr.bf16.mxu0 %v10182_v37  ;;  %9417 = vmatprep.subr.bf16.mxu1 %v9416_v61 }
0x1707   :  { %9391 = vmatpush3.bf16.msra.mxu0 %v9390_v38  ;;  %9419 = vmatpush1.bf16.msra.mxu1 %v9418_v2 }
0x1708   :  { %9392 = vmatprep.subr.bf16.mxu0 %v10182_v37  ;;  %9421 = vmatprep.subr.bf16.mxu1 %v9420_v16 }
0x170b   :  { %9394 = vmatpush3.bf16.msra.mxu0 %v9393_v39  ;;  %9423 = vmatpush1.bf16.msra.mxu1 %v9422_v19 }
0x170c   :  { %9395 = vmatprep.subr.bf16.mxu0 %v10182_v37 }
0x170f   :  { %9397 = vmatpush3.bf16.msra.mxu0 %v9396_v41 }
0x1710   :  { %9398 = vmatprep.subr.bf16.mxu0 %v10182_v37 }
0x1713   :  { %9400 = vmatpush3.bf16.msra.mxu0 %v9399_v34 }
0x1714   :  { %9401 = vmatprep.subr.bf16.mxu0 %v10182_v37 }
0x1717   :  { %9403 = vmatpush3.bf16.msra.mxu0 %v9402_v47  ;;  %v6819_v47 = vld [vmem:[%s17052_s0 + $0xc8] sm:$0xff] }
0x1718   :  { %9436 = vmatprep.subr.bf16.mxu0 %v10182_v37 }
0x17ac   :  { %v4945_v22 = vpop.f32.mrb[40].mxu0  ;;  %v5016_v23 = vpop.f32.mrb[40].mxu1 }
0x17ad   :  { %v5021_v24 = vadd.f32 %v6809_v20, %v4945_v22  ;;  %v4947_v25 = vpop.f32.mrb[41].mxu0  ;;  %v5018_v26 = vpop.f32.mrb[41].mxu1  ;;  %v5023_v21 = vadd.f32 %v6811_v32, %v5016_v23  ;;  %v5399_v23 = vld [vmem:[%s17051_s6 + $0xa0] sm:$0xff]  ;;  %v5410_v32 = vld [vmem:[%s17051_s6 + $0xf8] sm:$0xff] }
0x17ae   :  { %v5022_v15 = vadd.f32 %v6810_v9, %v4947_v25  ;;  %v5024_v31 = vadd.f32 %v6812_v30, %v5018_v26  ;;  %v5402_v9 = vld [vmem:[%s17051_s6 + $0xb8] sm:$0xff]  ;;  %v5404_v26 = vld [vmem:[%s17051_s6 + $0xc8] sm:$0xff]  ;;  %v5405_v30 = vld [vmem:[%s17051_s6 + $0xd0] sm:$0xff] }
0x17af   :  { %v6813_v27 = vmul.f32 -1.442695, %v5021_v24  ;;  %v5401_v24 = vld [vmem:[%s17051_s6 + $0xb0] sm:$0xff] }
0x17b0   :  { %v6814_v28 = vmul.f32 -1.442695, %v5022_v15  ;;  %v6815_v33 = vmul.f32 -1.442695, %v5024_v31  ;;  %v9426_v25 = vpack.c.bf16 %v5401_v24, %v5399_v23  ;;  %v5406_v15 = vld [vmem:[%s17051_s6 + $0xd8] sm:$0xff]  ;;  %v5408_v31 = vld [vmem:[%s17051_s6 + $0xe8] sm:$0xff] }
0x17b1   :  { %10075 = vpow2.f32 %v6813_v27  ;;  %v5403_v27 = vld [vmem:[%s17051_s6 + $0xc0] sm:$0xff] }
0x17b2   :  { %10077 = vpow2.f32 %v6814_v28  ;;  %v9428_v28 = vpack.c.bf16 %v5406_v15, %v5404_v26  ;;  %v5589_v23 = vld [vmem:[%s17056_s10 + $0x40] sm:$0xff]  ;;  %v5598_v26 = vld [vmem:[%s17056_s10 + $0x88] sm:$0xff] }
0x17b3   :  { %10079 = vpow2.f32 %v6815_v33  ;;  %v9430_v33 = vpack.c.bf16 %v5405_v30, %v5403_v27  ;;  %v5593_v24 = vld [vmem:[%s17056_s10 + $0x60] sm:$0xff]  ;;  %v5602_v15 = vld [vmem:[%s17056_s10 + $0xa8] sm:$0xff] }
0x17b4   :  { %10081 = vtanh.f32 %v5023_v21  ;;  %v9432_v21 = vpack.c.bf16 %v5410_v32, %v5408_v31  ;;  %v9468_v27 = vpack.c.bf16 %v5602_v15, %v5598_v26  ;;  %v5601_v30 = vld [vmem:[%s17056_s10 + $0xa0] sm:$0xff]  ;;  %v5606_v32 = vld [vmem:[%s17056_s10 + $0xc8] sm:$0xff] }
0x17b5   :  { %v5669_v15 = vld [vmem:[%s17056_s10 + $0x2c0] sm:$0xff] }
0x17bb   :  { %v10076_v38 = vpop.eup %10075 }
0x17bc   :  { %v10078_v35 = vpop.eup %10077  ;;  %v5028_v36 = vadd.f32 1.0, %v10076_v38  ;;  %v5407_v38 = vld [vmem:[%s17051_s6 + $0xe0] sm:$0xff] }
0x17bd   :  { %v5034_v39 = vadd.f32 1.0, %v10078_v35  ;;  %v10080_v29 = vpop.eup %10079  ;;  %v5409_v35 = vld [vmem:[%s17051_s6 + $0xf0] sm:$0xff] }
0x17be   :  { %10083 = vrcp.f32 %v5028_v36  ;;  %v10082_v43 = vpop.eup %10081  ;;  %v5041_v34 = vadd.f32 1.0, %v10080_v29  ;;  %v9434_v36 = vpack.c.bf16 %v5409_v35, %v5407_v38  ;;  %v5490_v29 = vld [vmem:[%s17054_s8 + $0x8] sm:$0xff]  ;;  %v5605_v38 = vld [vmem:[%s17056_s10 + $0xc0] sm:$0xff] }
0x17bf   :  { %10085 = vrcp.f32 %v5034_v39  ;;  %v5489_v39 = vld [vmem:[%s17054_s8] sm:$0xff] }
0x17c0   :  { %10087 = vrcp.f32 %v5041_v34  ;;  %v5609_v35 = vld [vmem:[%s17056_s10 + $0xe0] sm:$0xff] }
0x17c8   :  { %v10084_v41 = vpop.eup %10083 }
0x17c9   :  { %v10086_v42 = vpop.eup %10085  ;;  %v5045_v44 = vmul.f32 %v10084_v41, %v10082_v43  ;;  %v5491_v43 = vld [vmem:[%s17054_s8 + $0x10] sm:$0xff]  ;;  %v9437_v41 = vpack.c.bf16 %v5490_v29, %v5489_v39  ;;  %v5614_v39 = vld [vmem:[%s17056_s10 + $0x108] sm:$0xff] }
0x17ca   :  { %v5044_v48 = vmul.f32 %v10086_v42, %v14822_v45  ;;  %v10088_v56 = vpop.eup %10087  ;;  %v5492_v42 = vld [vmem:[%s17054_s8 + $0x18] sm:$0xff]  ;;  %v5618_v29 = vld [vmem:[%s17056_s10 + $0x128] sm:$0xff] }
0x17cc   :  { %v5188_v49 = vpop.f32.mrb[42].mxu0  ;;  %v5259_v40 = vpop.f32.mrb[42].mxu1  ;;  %v15673_v51 = vadd.f32 %v5045_v44, %v5044_v48  ;;  %v9440_v44 = vpack.c.bf16 %v5492_v42, %v5491_v43  ;;  %v10177_v48 = vld [vmem:[%s17055_s5] ss:$0 sm:$0xff]  ;;  %v9476_v43 = vpack.c.bf16 %v5618_v29, %v5614_v39 }
0x17cd   :  { %v5264_v55 = vadd.f32 %v6818_v46, %v5188_v49  ;;  %v5190_v52 = vpop.f32.mrb[43].mxu0  ;;  %v5261_v53 = vpop.f32.mrb[43].mxu1  ;;  %v5266_v58 = vadd.f32 %v6820_v50, %v5259_v40  ;;  %v5493_v40 = vld [vmem:[%s17054_s8 + $0x20] sm:$0xff]  ;;  %v5499_v50 = vld [vmem:[%s17054_s8 + $0x50] sm:$0xff] }
0x17ce   :  { %v5265_v57 = vadd.f32 %v6819_v47, %v5190_v52  ;;  %10089 = vtanh.f32 %v15673_v51  ;;  %v5267_v60 = vadd.f32 %v6821_v62, %v5261_v53  ;;  %v5495_v53 = vld [vmem:[%s17054_s8 + $0x30] sm:$0xff]  ;;  %v5498_v62 = vld [vmem:[%s17054_s8 + $0x48] sm:$0xff]  ;;  %v5617_v42 = vld [vmem:[%s17056_s10 + $0x120] sm:$0xff] }
0x17cf   :  { %v6822_v45 = vmul.f32 -1.442695, %v5264_v55  ;;  %v5494_v55 = vld [vmem:[%s17054_s8 + $0x28] sm:$0xff] }
0x17d0   :  { %v6823_v59 = vmul.f32 -1.442695, %v5265_v57  ;;  %v6824_v1 = vmul.f32 -1.442695, %v5267_v60  ;;  %v9443_v52 = vpack.c.bf16 %v5494_v55, %v5493_v40  ;;  %v5496_v57 = vld [vmem:[%s17054_s8 + $0x38] sm:$0xff]  ;;  %v5630_v55 = vld [vmem:[%s17056_s10 + $0x188] sm:$0xff] }
0x17d1   :  { %10091 = vpow2.f32 %v6822_v45  ;;  %v9446_v45 = vpack.c.bf16 %v5496_v57, %v5495_v53  ;;  %v5629_v57 = vld [vmem:[%s17056_s10 + $0x180] sm:$0xff] }
0x17d2   :  { %10093 = vpow2.f32 %v6823_v59  ;;  %v5497_v59 = vld [vmem:[%s17054_s8 + $0x40] sm:$0xff] }
0x17d3   :  { %10095 = vpow2.f32 %v6824_v1  ;;  %v9449_v60 = vpack.c.bf16 %v5498_v62, %v5497_v59  ;;  %v5501_v1 = vld [vmem:[%s17054_s8 + $0x60] sm:$0xff]  ;;  %v5638_v62 = vld [vmem:[%s17056_s10 + $0x1c8] sm:$0xff] }
0x17d4   :  { %10097 = vtanh.f32 %v5266_v58  ;;  %v5502_v58 = vld [vmem:[%s17054_s8 + $0x68] sm:$0xff] }
0x17d8   :  { %v10090_v0 = vpop.eup %10089 }
0x17d9   :  { %v15682_v54 = vmul.f32 %v10090_v0, %v10088_v56  ;;  %v5500_v56 = vld [vmem:[%s17054_s8 + $0x58] sm:$0xff] }
0x17da   :  { %v9452_v0 = vpack.c.bf16 %v5500_v56, %v5499_v50  ;;  %v5637_v56 = vld [vmem:[%s17056_s10 + $0x1c0] sm:$0xff] }
0x17db   :  { %v10092_v4 = vpop.eup %10091  ;;  %6817 = vst [vmem:[%s17061_s12 + $0x28] sm:$0xff] %v15682_v54 }
0x17dc   :  { %v10094_v7 = vpop.eup %10093  ;;  %v5271_v8 = vadd.f32 1.0, %v10092_v4  ;;  %v9455_v4 = vpack.c.bf16 %v5502_v58, %v5501_v1  ;;  %v5646_v58 = vld [vmem:[%s17056_s10 + $0x208] sm:$0xff] }
0x17dd   :  { %v5277_v63 = vadd.f32 1.0, %v10094_v7  ;;  %v10096_v61 = vpop.eup %10095  ;;  %v5503_v7 = vld [vmem:[%s17054_s8 + $0x70] sm:$0xff] }
0x17de   :  { %10099 = vrcp.f32 %v5271_v8  ;;  %v10098_v10 = vpop.eup %10097  ;;  %v5284_v2 = vadd.f32 1.0, %v10096_v61  ;;  %v5504_v8 = vld [vmem:[%s17054_s8 + $0x78] sm:$0xff]  ;;  %v5582_v61 = vld [vmem:[%s17056_s10 + $0x8] sm:$0xff] }
0x17df   :  { %10101 = vrcp.f32 %v5277_v63  ;;  %v9458_v63 = vpack.c.bf16 %v5504_v8, %v5503_v7  ;;  %v5645_v8 = vld [vmem:[%s17056_s10 + $0x200] sm:$0xff] }
0x17e0   :  { %10103 = vrcp.f32 %v5284_v2  ;;  %v5581_v2 = vld [vmem:[%s17056_s10] sm:$0xff] }
0x17e8   :  { %v10100_v12 = vpop.eup %10099 }
0x17e9   :  { %v10102_v14 = vpop.eup %10101  ;;  %v5288_v5 = vmul.f32 %v10100_v12, %v10098_v10  ;;  %v5586_v10 = vld [vmem:[%s17056_s10 + $0x28] sm:$0xff]  ;;  %v5584_v12 = vld [vmem:[%s17056_s10 + $0x18] sm:$0xff] }
0x17ea   :  { %v5287_v16 = vmul.f32 %v10102_v14, %v14838_v11  ;;  %v10104_v18 = vpop.eup %10103  ;;  %v5400_v11 = vld [vmem:[%s17051_s6 + $0xa8] sm:$0xff]  ;;  %v9460_v14 = vpack.c.bf16 %v5586_v10, %v5582_v61 }
0x17eb   :  { %v9424_v22 = vpack.c.bf16 %v5402_v9, %v5400_v11  ;;  %v5590_v11 = vld [vmem:[%s17056_s10 + $0x48] sm:$0xff] }
0x17ec   :  { %v15689_v17 = vadd.f32 %v5288_v5, %v5287_v16  ;;  %v5588_v5 = vld [vmem:[%s17056_s10 + $0x38] sm:$0xff]  ;;  %v5585_v16 = vld [vmem:[%s17056_s10 + $0x20] sm:$0xff]  ;;  %v5594_v9 = vld [vmem:[%s17056_s10 + $0x68] sm:$0xff] }
0x17ed   :  { %9425 = vmatprep.subr.bf16.mxu1 %v9424_v22  ;;  %v9464_v22 = vpack.c.bf16 %v5594_v9, %v5590_v11  ;;  %v5654_v10 = vld [vmem:[%s17056_s10 + $0x248] sm:$0xff]  ;;  %v5661_v9 = vld [vmem:[%s17056_s10 + $0x280] sm:$0xff] }
0x17ee   :  { %10105 = vtanh.f32 %v15689_v17  ;;  %9427 = vmatpush1.bf16.msra.mxu1 %v9426_v25  ;;  %v9466_v25 = vpack.c.bf16 %v5593_v24, %v5589_v23  ;;  %v5670_v24 = vld [vmem:[%s17056_s10 + $0x2c8] sm:$0xff] }
0x17ef   :  { %9429 = vmatprep.subr.bf16.mxu1 %v9428_v28  ;;  %v5597_v28 = vld [vmem:[%s17056_s10 + $0x80] sm:$0xff] }
0x17f0   :  { %v9470_v31 = vpack.c.bf16 %v5601_v30, %v5597_v28  ;;  %v5678_v30 = vld [vmem:[%s17056_s10 + $0x308] sm:$0xff] }
0x17f2   :  { %9431 = vmatpush1.bf16.msra.mxu1 %v9430_v33  ;;  %v5610_v33 = vld [vmem:[%s17056_s10 + $0xe8] sm:$0xff] }
0x17f3   :  { %9433 = vmatprep.subr.bf16.mxu1 %v9432_v21  ;;  %v9472_v21 = vpack.c.bf16 %v5610_v33, %v5606_v32  ;;  %v5677_v33 = vld [vmem:[%s17056_s10 + $0x300] sm:$0xff] }
0x17f6   :  { %9435 = vmatpush1.bf16.msra.mxu1 %v9434_v36  ;;  %v9474_v36 = vpack.c.bf16 %v5609_v35, %v5605_v38 }
0x17f7   :  { %9461 = vmatprep.subr.bf16.mxu1 %v9460_v14 }
0x17f8   :  { %v10106_v19 = vpop.eup %10105 }
0x17f9   :  { %v15692_v20 = vmul.f32 %v10106_v19, %v10104_v18  ;;  %v9524_v18 = vpack.c.bf16 %v5588_v5, %v5584_v12  ;;  %v9462_v19 = vpack.c.bf16 %v5585_v16, %v5581_v2  ;;  %v5658_v12 = vld [vmem:[%s17056_s10 + $0x268] sm:$0xff]  ;;  %v5653_v5 = vld [vmem:[%s17056_s10 + $0x240] sm:$0xff] }
0x17fa   :  { %v9496_v14 = vpack.c.bf16 %v5658_v12, %v5654_v10  ;;  %v5657_v2 = vld [vmem:[%s17056_s10 + $0x260] sm:$0xff]  ;;  %v5615_v12 = vld [vmem:[%s17056_s10 + $0x110] sm:$0xff] }
0x17fb   :  { %7577 = vmatmul.mubr.f32.vlgmr.msra.gmra.mrb[44].mxu0 %v15692_v20  ;;  %6833 = vst [vmem:[%s17053_s11 + $0x30] sm:$0xff] %v15692_v20  ;;  %v9498_v16 = vpack.c.bf16 %v5657_v2, %v5653_v5  ;;  %v5624_v5 = vld [vmem:[%s17056_s10 + $0x158] sm:$0xff] }
0x17fc   :  { %7611 = vmatprep.mubr.msk.f32.mxu0 %vm10183_vm0, %v10181_v3  ;;  %9438 = vmatpush3.bf16.msra.mxu0 %v9437_v41  ;;  %v5613_v41 = vld [vmem:[%s17056_s10 + $0x100] sm:$0xff]  ;;  %v5628_v2 = vld [vmem:[%s17056_s10 + $0x178] sm:$0xff] }
0x17fd   :  { %9439 = vmatprep.subr.bf16.mxu0 %v10182_v37 }
0x1800   :  { %9441 = vmatpush3.bf16.msra.mxu0 %v9440_v44  ;;  %v9478_v44 = vpack.c.bf16 %v5617_v42, %v5613_v41  ;;  %v6825_v41 = vld [vmem:[%s17058_s2 + $0x30] sm:$0xff] }
0x1801   :  { %9442 = vmatprep.subr.bf16.mxu0 %v10182_v37  ;;  %v5583_v42 = vld [vmem:[%s17056_s10 + $0x10] sm:$0xff] }
0x1804   :  { %9444 = vmatpush3.bf16.msra.mxu0 %v9443_v52  ;;  %v5634_v52 = vld [vmem:[%s17056_s10 + $0x1a8] sm:$0xff] }
0x1805   :  { %9445 = vmatprep.subr.bf16.mxu0 %v10182_v37  ;;  %v9484_v53 = vpack.c.bf16 %v5634_v52, %v5630_v55 }
0x1808   :  { %9447 = vmatpush3.bf16.msra.mxu0 %v9446_v45  ;;  %v5633_v45 = vld [vmem:[%s17056_s10 + $0x1a0] sm:$0xff] }
0x1809   :  { %9448 = vmatprep.subr.bf16.mxu0 %v10182_v37  ;;  %v9486_v59 = vpack.c.bf16 %v5633_v45, %v5629_v57  ;;  %v5595_v57 = vld [vmem:[%s17056_s10 + $0x70] sm:$0xff]  ;;  %v5600_v45 = vld [vmem:[%s17056_s10 + $0x98] sm:$0xff] }
0x180c   :  { %9450 = vmatpush3.bf16.msra.mxu0 %v9449_v60  ;;  %v5642_v60 = vld [vmem:[%s17056_s10 + $0x1e8] sm:$0xff] }
0x180d   :  { %9451 = vmatprep.subr.bf16.mxu0 %v10182_v37  ;;  %v9488_v50 = vpack.c.bf16 %v5642_v60, %v5638_v62 }
0x1810   :  { %9453 = vmatpush3.bf16.msra.mxu0 %v9452_v0  ;;  %v5641_v0 = vld [vmem:[%s17056_s10 + $0x1e0] sm:$0xff] }
0x1811   :  { %9454 = vmatprep.subr.bf16.mxu0 %v10182_v37  ;;  %v9490_v1 = vpack.c.bf16 %v5641_v0, %v5637_v56  ;;  %v5603_v56 = vld [vmem:[%s17056_s10 + $0xb0] sm:$0xff]  ;;  %v5608_v0 = vld [vmem:[%s17056_s10 + $0xd8] sm:$0xff] }
0x1814   :  { %9456 = vmatpush3.bf16.msra.mxu0 %v9455_v4  ;;  %v5650_v4 = vld [vmem:[%s17056_s10 + $0x228] sm:$0xff] }
0x1815   :  { %9457 = vmatprep.subr.bf16.mxu0 %v10182_v37  ;;  %v9492_v7 = vpack.c.bf16 %v5650_v4, %v5646_v58  ;;  %v5607_v4 = vld [vmem:[%s17056_s10 + $0xd0] sm:$0xff] }
0x1818   :  { %9459 = vmatpush3.bf16.msra.mxu0 %v9458_v63  ;;  %v5649_v63 = vld [vmem:[%s17056_s10 + $0x220] sm:$0xff] }
0x1819   :  { %9525 = vmatprep.subr.bf16.mxu0 %v9524_v18  ;;  %v9494_v61 = vpack.c.bf16 %v5649_v63, %v5645_v8  ;;  %v5662_v18 = vld [vmem:[%s17056_s10 + $0x288] sm:$0xff]  ;;  %v5616_v8 = vld [vmem:[%s17056_s10 + $0x118] sm:$0xff] }
0x181a   :  { %v5620_v63 = vld [vmem:[%s17056_s10 + $0x138] sm:$0xff] }
0x181b   :  { %v9540_v10 = vpack.c.bf16 %v5620_v63, %v5616_v8  ;;  %v5688_v8 = vld [vmem:[%s17056_s10 + $0x358] sm:$0xff] }
0x18ce   :  { %v5374_v34 = vpop.f32.mrb[44].mxu0 }
0x18cf   :  { %v5375_v46 = vadd.f32 %v10177_v48, %v5374_v34  ;;  %v7578_v47 = vpop.f32.mrb[45].mxu0  ;;  %v5622_v34 = vld [vmem:[%s17056_s10 + $0x148] sm:$0xff] }
0x18d0   :  { %v5626_v48 = vld [vmem:[%s17056_s10 + $0x168] sm:$0xff]  ;;  %v5621_v47 = vld [vmem:[%s17056_s10 + $0x140] sm:$0xff] }
0x18d1   :  { %10107 = vtanh.f32 %v5375_v46  ;;  %v9480_v46 = vpack.c.bf16 %v5626_v48, %v5622_v34  ;;  %v5592_v48 = vld [vmem:[%s17056_s10 + $0x58] sm:$0xff] }
0x18db   :  { %v10108_v49 = vpop.eup %10107 }
0x18dc   :  { %5476 = vmatmul.mubr.f32.vlgmr.msra.gmra.mrb[44].mxu1 %v10108_v49  ;;  %v5625_v49 = vld [vmem:[%s17056_s10 + $0x160] sm:$0xff] }
0x18dd   :  { %5773 = vmatprep.mubr.f32.mxu1 %v15682_v54  ;;  %9463 = vmatpush1.bf16.msra.mxu1 %v9462_v19  ;;  %v9482_v40 = vpack.c.bf16 %v5625_v49, %v5621_v47  ;;  %v5666_v19 = vld [vmem:[%s17056_s10 + $0x2a8] sm:$0xff] }
0x18de   :  { %9465 = vmatprep.subr.bf16.mxu1 %v9464_v22  ;;  %v9500_v11 = vpack.c.bf16 %v5666_v19, %v5662_v18  ;;  %v5665_v22 = vld [vmem:[%s17056_s10 + $0x2a0] sm:$0xff]  ;;  %v9544_v18 = vpack.c.bf16 %v5628_v2, %v5624_v5  ;;  %v5623_v19 = vld [vmem:[%s17056_s10 + $0x150] sm:$0xff] }
0x18df   :  { %v9502_v23 = vpack.c.bf16 %v5665_v22, %v5661_v9  ;;  %v5632_v9 = vld [vmem:[%s17056_s10 + $0x198] sm:$0xff]  ;;  %v5687_v2 = vld [vmem:[%s17056_s10 + $0x350] sm:$0xff] }
0x18e0   :  { %v5636_v22 = vld [vmem:[%s17056_s10 + $0x1b8] sm:$0xff] }
0x18e1   :  { %9467 = vmatpush1.bf16.msra.mxu1 %v9466_v25  ;;  %v5674_v25 = vld [vmem:[%s17056_s10 + $0x2e8] sm:$0xff] }
0x18e2   :  { %9469 = vmatprep.subr.bf16.mxu1 %v9468_v27  ;;  %v9504_v26 = vpack.c.bf16 %v5674_v25, %v5670_v24  ;;  %v5673_v27 = vld [vmem:[%s17056_s10 + $0x2e0] sm:$0xff]  ;;  %v9548_v24 = vpack.c.bf16 %v5636_v22, %v5632_v9  ;;  %v5631_v25 = vld [vmem:[%s17056_s10 + $0x190] sm:$0xff]  ;;  %v5696_v9 = vld [vmem:[%s17056_s10 + $0x398] sm:$0xff] }
0x18e3   :  { %v9506_v28 = vpack.c.bf16 %v5673_v27, %v5669_v15  ;;  %v5640_v15 = vld [vmem:[%s17056_s10 + $0x1d8] sm:$0xff] }
0x18e4   :  { %v5644_v27 = vld [vmem:[%s17056_s10 + $0x1f8] sm:$0xff] }
0x18e5   :  { %9471 = vmatpush1.bf16.msra.mxu1 %v9470_v31  ;;  %v5682_v31 = vld [vmem:[%s17056_s10 + $0x328] sm:$0xff] }
0x18e6   :  { %9473 = vmatprep.subr.bf16.mxu1 %v9472_v21  ;;  %v9508_v32 = vpack.c.bf16 %v5682_v31, %v5678_v30  ;;  %v5681_v21 = vld [vmem:[%s17056_s10 + $0x320] sm:$0xff]  ;;  %v9552_v30 = vpack.c.bf16 %v5644_v27, %v5640_v15  ;;  %v5639_v31 = vld [vmem:[%s17056_s10 + $0x1d0] sm:$0xff] }
0x18e7   :  { %v9510_v38 = vpack.c.bf16 %v5681_v21, %v5677_v33  ;;  %v5648_v33 = vld [vmem:[%s17056_s10 + $0x218] sm:$0xff]  ;;  %v5695_v27 = vld [vmem:[%s17056_s10 + $0x390] sm:$0xff] }
0x18e8   :  { %v5652_v21 = vld [vmem:[%s17056_s10 + $0x238] sm:$0xff] }
0x18e9   :  { %9475 = vmatpush1.bf16.msra.mxu1 %v9474_v36 }
0x18ea   :  { %9477 = vmatprep.subr.bf16.mxu1 %v9476_v43 }
0x18ed   :  { %9479 = vmatpush1.bf16.msra.mxu1 %v9478_v44  ;;  %v5587_v44 = vld [vmem:[%s17056_s10 + $0x30] sm:$0xff] }
0x18ee   :  { %9481 = vmatprep.subr.bf16.mxu1 %v9480_v46  ;;  %v5596_v46 = vld [vmem:[%s17056_s10 + $0x78] sm:$0xff] }
0x18ef   :  { %v9528_v52 = vpack.c.bf16 %v5596_v46, %v5592_v48  ;;  %v5664_v48 = vld [vmem:[%s17056_s10 + $0x298] sm:$0xff] }
0x18f0   :  { %v5668_v46 = vld [vmem:[%s17056_s10 + $0x2b8] sm:$0xff] }
0x18f1   :  { %9483 = vmatpush1.bf16.msra.mxu1 %v9482_v40  ;;  %v9526_v40 = vpack.c.bf16 %v5587_v44, %v5583_v42  ;;  %v5655_v44 = vld [vmem:[%s17056_s10 + $0x250] sm:$0xff] }
0x18f2   :  { %9485 = vmatprep.subr.bf16.mxu1 %v9484_v53  ;;  %v5591_v53 = vld [vmem:[%s17056_s10 + $0x50] sm:$0xff] }
0x18f3   :  { %v9530_v62 = vpack.c.bf16 %v5595_v57, %v5591_v53  ;;  %v5676_v53 = vld [vmem:[%s17056_s10 + $0x2f8] sm:$0xff] }
0x18f5   :  { %9487 = vmatpush1.bf16.msra.mxu1 %v9486_v59  ;;  %v5604_v59 = vld [vmem:[%s17056_s10 + $0xb8] sm:$0xff] }
0x18f6   :  { %9489 = vmatprep.subr.bf16.mxu1 %v9488_v50  ;;  %v9532_v60 = vpack.c.bf16 %v5604_v59, %v5600_v45  ;;  %v5599_v50 = vld [vmem:[%s17056_s10 + $0x90] sm:$0xff] }
0x18f7   :  { %v5671_v59 = vld [vmem:[%s17056_s10 + $0x2d0] sm:$0xff] }
0x18f9   :  { %9491 = vmatpush1.bf16.msra.mxu1 %v9490_v1  ;;  %v9534_v1 = vpack.c.bf16 %v5603_v56, %v5599_v50  ;;  %v5684_v50 = vld [vmem:[%s17056_s10 + $0x338] sm:$0xff] }
0x18fa   :  { %9493 = vmatprep.subr.bf16.mxu1 %v9492_v7  ;;  %v5611_v7 = vld [vmem:[%s17056_s10 + $0xf0] sm:$0xff] }
0x18fd   :  { %9495 = vmatpush1.bf16.msra.mxu1 %v9494_v61  ;;  %v9538_v61 = vpack.c.bf16 %v5611_v7, %v5607_v4  ;;  %v5686_v4 = vld [vmem:[%s17056_s10 + $0x348] sm:$0xff] }
0x18fe   :  { %9497 = vmatprep.subr.bf16.mxu1 %v9496_v14  ;;  %v5619_v14 = vld [vmem:[%s17056_s10 + $0x130] sm:$0xff]  ;;  %v5690_v7 = vld [vmem:[%s17056_s10 + $0x368] sm:$0xff] }
0x18ff   :  { %v9512_v63 = vpack.c.bf16 %v5690_v7, %v5686_v4  ;;  %v5900_v4 = vld [vmem:[%s17049_s3 + $0x60] sm:$0xff] }
0x1901   :  { %9499 = vmatpush1.bf16.msra.mxu1 %v9498_v16  ;;  %v9542_v16 = vpack.c.bf16 %v5619_v14, %v5615_v12  ;;  %v5689_v12 = vld [vmem:[%s17056_s10 + $0x360] sm:$0xff] }
0x1902   :  { %9501 = vmatprep.subr.bf16.mxu1 %v9500_v11  ;;  %v5627_v11 = vld [vmem:[%s17056_s10 + $0x170] sm:$0xff] }
0x1905   :  { %9503 = vmatpush1.bf16.msra.mxu1 %v9502_v23  ;;  %v9546_v23 = vpack.c.bf16 %v5627_v11, %v5623_v19  ;;  %v5694_v19 = vld [vmem:[%s17056_s10 + $0x388] sm:$0xff] }
0x1906   :  { %9505 = vmatprep.subr.bf16.mxu1 %v9504_v26  ;;  %v5635_v26 = vld [vmem:[%s17056_s10 + $0x1b0] sm:$0xff]  ;;  %v5698_v11 = vld [vmem:[%s17056_s10 + $0x3a8] sm:$0xff] }
0x1907   :  { %v9516_v22 = vpack.c.bf16 %v5698_v11, %v5694_v19  ;;  %v5904_v19 = vld [vmem:[%s17049_s3 + $0x80] sm:$0xff] }
0x1908   :  { %v5908_v11 = vld [vmem:[%s17049_s3 + $0xa0] sm:$0xff] }
0x1909   :  { %9507 = vmatpush1.bf16.msra.mxu1 %v9506_v28  ;;  %v9550_v28 = vpack.c.bf16 %v5635_v26, %v5631_v25  ;;  %v5697_v25 = vld [vmem:[%s17056_s10 + $0x3a0] sm:$0xff] }
0x190a   :  { %9509 = vmatprep.subr.bf16.mxu1 %v9508_v32  ;;  %v5643_v32 = vld [vmem:[%s17056_s10 + $0x1f0] sm:$0xff] }
0x190d   :  { %9511 = vmatpush1.bf16.msra.mxu1 %v9510_v38  ;;  %v9554_v38 = vpack.c.bf16 %v5643_v32, %v5639_v31  ;;  %v5706_v32 = vld [vmem:[%s17056_s10 + $0x3e8] sm:$0xff] }
0x190e   :  { %9513 = vmatprep.subr.bf16.mxu1 %v9512_v63  ;;  %v5898_v63 = vld [vmem:[%s17049_s3 + $0x50] sm:$0xff] }
0x19af   :  { %v5477_v35 = vpop.f32.mrb[44].mxu1 }
0x19b0   :  { %v5479_v36 = vpop.f32.mrb[45].mxu1  ;;  %v5478_v47 = vadd.f32 %v5477_v35, %v10852_v13  ;;  %v9556_v35 = vpack.c.bf16 %v5652_v21, %v5648_v33  ;;  %v5704_v33 = vld [vmem:[%s17056_s10 + $0x3d8] sm:$0xff] }
0x19b1   :  { %v5480_v39 = vadd.f32 %v5479_v36, %v10849_v6  ;;  %v5647_v36 = vld [vmem:[%s17056_s10 + $0x210] sm:$0xff]  ;;  %v5708_v21 = vld [vmem:[%s17056_s10 + $0x3f8] sm:$0xff] }
0x19b3   :  { %v5484_v29 = vmul.f32 0.5, %v5480_v39  ;;  %v5651_v39 = vld [vmem:[%s17056_s10 + $0x230] sm:$0xff] }
0x19b5   :  { %v5485_v43 = vmul.f32 1.442695, %v5484_v29  ;;  %v5656_v29 = vld [vmem:[%s17056_s10 + $0x258] sm:$0xff] }
0x19b7   :  { %10109 = vpow2.f32 %v5485_v43  ;;  %v5660_v43 = vld [vmem:[%s17056_s10 + $0x278] sm:$0xff] }
0x19b8   :  { %v9560_v42 = vpack.c.bf16 %v5660_v43, %v5656_v29  ;;  %v5703_v29 = vld [vmem:[%s17056_s10 + $0x3d0] sm:$0xff] }
0x19c1   :  { %v10110_v34 = vpop.eup %10109 }
0x19c2   :  { %v5487_v49 = vmul.f32 %v10110_v34, %v6825_v41  ;;  %v9558_v41 = vpack.c.bf16 %v5651_v39, %v5647_v36  ;;  %v5659_v34 = vld [vmem:[%s17056_s10 + $0x270] sm:$0xff]  ;;  %v5701_v36 = vld [vmem:[%s17056_s10 + $0x3c0] sm:$0xff] }
0x19c3   :  { %v5705_v39 = vld [vmem:[%s17056_s10 + $0x3e0] sm:$0xff] }
0x19c4   :  { %v5488_v55 = vadd.f32 %v5487_v49, %v5478_v47  ;;  %v9562_v47 = vpack.c.bf16 %v5659_v34, %v5655_v44  ;;  %v9564_v49 = vpack.c.bf16 %v5668_v46, %v5664_v48  ;;  %v9522_v43 = vpack.c.bf16 %v5705_v39, %v5701_v36  ;;  %v5893_v44 = vld [vmem:[%s17049_s3 + $0x28] sm:$0xff]  ;;  %v5891_v46 = vld [vmem:[%s17049_s3 + $0x18] sm:$0xff] }
0x19c5   :  { %v5921_v36 = vld [vmem:[%s17049_s3 + $0x108] sm:$0xff] }
0x19c6   :  { %7612 = vmatmul.mubr.f32.vlgmr.msra.gmra.mrb[46].mxu0 %v5488_v55  ;;  %v5667_v55 = vld [vmem:[%s17056_s10 + $0x2b0] sm:$0xff]  ;;  %v5925_v39 = vld [vmem:[%s17049_s3 + $0x128] sm:$0xff] }
0x19c7   :  { %5844 = vmatprep.mubr.f32.mxu0 %v15682_v54  ;;  %9527 = vmatpush1.bf16.msra.mxu0 %v9526_v40  ;;  %v5612_v54 = vld [vmem:[%s17056_s10 + $0xf8] sm:$0xff]  ;;  %v5663_v40 = vld [vmem:[%s17056_s10 + $0x290] sm:$0xff] }
0x19c8   :  { %9529 = vmatprep.subr.bf16.mxu0 %v9528_v52  ;;  %v9536_v58 = vpack.c.bf16 %v5612_v54, %v5608_v0  ;;  %v5672_v52 = vld [vmem:[%s17056_s10 + $0x2d8] sm:$0xff]  ;;  %v9566_v57 = vpack.c.bf16 %v5667_v55, %v5663_v40  ;;  %v5679_v54 = vld [vmem:[%s17056_s10 + $0x310] sm:$0xff]  ;;  %v10178_v55 = vld [vmem:[%s17059_s9] ss:$0 sm:$0xff] }
0x19c9   :  { %v9568_v45 = vpack.c.bf16 %v5676_v53, %v5672_v52 }
0x19cb   :  { %9531 = vmatpush1.bf16.msra.mxu0 %v9530_v62  ;;  %v5675_v62 = vld [vmem:[%s17056_s10 + $0x2f0] sm:$0xff] }
0x19cc   :  { %9533 = vmatprep.subr.bf16.mxu0 %v9532_v60  ;;  %v5680_v60 = vld [vmem:[%s17056_s10 + $0x318] sm:$0xff]  ;;  %v9570_v56 = vpack.c.bf16 %v5675_v62, %v5671_v59  ;;  %v5890_v59 = vld [vmem:[%s17049_s3 + $0x10] sm:$0xff] }
0x19cd   :  { %v9572_v0 = vpack.c.bf16 %v5684_v50, %v5680_v60  ;;  %v5894_v62 = vld [vmem:[%s17049_s3 + $0x30] sm:$0xff]  ;;  %v5897_v60 = vld [vmem:[%s17049_s3 + $0x48] sm:$0xff] }
0x19ce   :  { %v5901_v50 = vld [vmem:[%s17049_s3 + $0x68] sm:$0xff] }
0x19cf   :  { %9535 = vmatpush1.bf16.msra.mxu0 %v9534_v1  ;;  %v5683_v1 = vld [vmem:[%s17056_s10 + $0x330] sm:$0xff]  ;;  %v9592_v7 = vpack.c.bf16 %v5901_v50, %v5897_v60 }
0x19d0   :  { %9537 = vmatprep.subr.bf16.mxu0 %v9536_v58  ;;  %v9574_v58 = vpack.c.bf16 %v5683_v1, %v5679_v54  ;;  %v9622_v1 = vpack.c.bf16 %v5894_v62, %v5890_v59  ;;  %v5928_v59 = vld [vmem:[%s17049_s3 + $0x140] sm:$0xff] }
0x19d1   :  { %v5932_v62 = vld [vmem:[%s17049_s3 + $0x160] sm:$0xff] }
0x19d3   :  { %9539 = vmatpush1.bf16.msra.mxu0 %v9538_v61  ;;  %v5692_v61 = vld [vmem:[%s17056_s10 + $0x378] sm:$0xff] }
0x19d4   :  { %9541 = vmatprep.subr.bf16.mxu0 %v9540_v10  ;;  %v5685_v10 = vld [vmem:[%s17056_s10 + $0x340] sm:$0xff]  ;;  %v9576_v14 = vpack.c.bf16 %v5692_v61, %v5688_v8  ;;  %v5902_v61 = vld [vmem:[%s17049_s3 + $0x70] sm:$0xff] }
0x19d5   :  { %v9514_v5 = vpack.c.bf16 %v5689_v12, %v5685_v10  ;;  %v5905_v10 = vld [vmem:[%s17049_s3 + $0x88] sm:$0xff] }
0x19d7   :  { %9543 = vmatpush1.bf16.msra.mxu0 %v9542_v16  ;;  %v5691_v16 = vld [vmem:[%s17056_s10 + $0x370] sm:$0xff]  ;;  %9515 = vmatpush1.bf16.msra.mxu1 %v9514_v5  ;;  %v5907_v5 = vld [vmem:[%s17049_s3 + $0x98] sm:$0xff] }
0x19d8   :  { %9545 = vmatprep.subr.bf16.mxu0 %v9544_v18  ;;  %v9578_v18 = vpack.c.bf16 %v5691_v16, %v5687_v2  ;;  %9517 = vmatprep.subr.bf16.mxu1 %v9516_v22  ;;  %v5911_v2 = vld [vmem:[%s17049_s3 + $0xb8] sm:$0xff] }
0x19d9   :  { %v9628_v22 = vpack.c.bf16 %v5911_v2, %v5907_v5  ;;  %v5942_v5 = vld [vmem:[%s17049_s3 + $0x1b0] sm:$0xff]  ;;  %v5945_v2 = vld [vmem:[%s17049_s3 + $0x1c8] sm:$0xff] }
0x19db   :  { %9547 = vmatpush1.bf16.msra.mxu0 %v9546_v23  ;;  %v5700_v23 = vld [vmem:[%s17056_s10 + $0x3b8] sm:$0xff] }
0x19dc   :  { %9549 = vmatprep.subr.bf16.mxu0 %v9548_v24  ;;  %v5693_v24 = vld [vmem:[%s17056_s10 + $0x380] sm:$0xff]  ;;  %v9580_v26 = vpack.c.bf16 %v5700_v23, %v5696_v9  ;;  %v5906_v23 = vld [vmem:[%s17049_s3 + $0x90] sm:$0xff] }
0x19dd   :  { %v9518_v15 = vpack.c.bf16 %v5697_v25, %v5693_v24  ;;  %v5910_v24 = vld [vmem:[%s17049_s3 + $0xb0] sm:$0xff]  ;;  %v5913_v25 = vld [vmem:[%s17049_s3 + $0xc8] sm:$0xff] }
0x19df   :  { %9551 = vmatpush1.bf16.msra.mxu0 %v9550_v28  ;;  %v5699_v28 = vld [vmem:[%s17056_s10 + $0x3b0] sm:$0xff]  ;;  %9519 = vmatpush1.bf16.msra.mxu1 %v9518_v15  ;;  %v5915_v15 = vld [vmem:[%s17049_s3 + $0xd8] sm:$0xff] }
0x19e0   :  { %9553 = vmatprep.subr.bf16.mxu0 %v9552_v30  ;;  %v5702_v30 = vld [vmem:[%s17056_s10 + $0x3c8] sm:$0xff]  ;;  %v9582_v31 = vpack.c.bf16 %v5699_v28, %v5695_v27  ;;  %v5919_v27 = vld [vmem:[%s17049_s3 + $0xf8] sm:$0xff]  ;;  %v9598_v28 = vpack.c.bf16 %v5908_v11, %v5904_v19 }
0x19e1   :  { %v5951_v19 = vld [vmem:[%s17049_s3 + $0x1f8] sm:$0xff] }
0x19e3   :  { %9555 = vmatpush1.bf16.msra.mxu0 %v9554_v38  ;;  %v9520_v38 = vpack.c.bf16 %v5706_v32, %v5702_v30  ;;  %v9630_v30 = vpack.c.bf16 %v5910_v24, %v5906_v23  ;;  %v5916_v32 = vld [vmem:[%s17049_s3 + $0xe0] sm:$0xff] }
0x19e4   :  { %9557 = vmatprep.subr.bf16.mxu0 %v9556_v35  ;;  %v9584_v35 = vpack.c.bf16 %v5708_v21, %v5704_v33  ;;  %v9632_v21 = vpack.c.bf16 %v5919_v27, %v5915_v15  ;;  %v5950_v15 = vld [vmem:[%s17049_s3 + $0x1f0] sm:$0xff] }
0x19e5   :  { %9521 = vmatprep.subr.bf16.mxu1 %v9520_v38  ;;  %v5914_v38 = vld [vmem:[%s17049_s3 + $0xd0] sm:$0xff] }
0x19e6   :  { %9523 = vmatpush1.bf16.msra.mxu1 %v9522_v43  ;;  %v5927_v43 = vld [vmem:[%s17049_s3 + $0x138] sm:$0xff] }
0x19e7   :  { %9559 = vmatpush1.bf16.msra.mxu0 %v9558_v41  ;;  %v5707_v41 = vld [vmem:[%s17056_s10 + $0x3f0] sm:$0xff] }
0x19e8   :  { %9561 = vmatprep.subr.bf16.mxu0 %v9560_v42  ;;  %v5889_v42 = vld [vmem:[%s17049_s3 + $0x8] sm:$0xff]  ;;  %v9586_v34 = vpack.c.bf16 %v5707_v41, %v5703_v29  ;;  %v5923_v29 = vld [vmem:[%s17049_s3 + $0x118] sm:$0xff] }
0x19e9   :  { %v9588_v48 = vpack.c.bf16 %v5893_v44, %v5889_v42  ;;  %v5920_v44 = vld [vmem:[%s17049_s3 + $0x100] sm:$0xff] }
0x19eb   :  { %9563 = vmatpush1.bf16.msra.mxu0 %v9562_v47  ;;  %v5895_v47 = vld [vmem:[%s17049_s3 + $0x38] sm:$0xff]  ;;  %9589 = vmatprep.subr.bf16.mxu1 %v9588_v48  ;;  %v9604_v48 = vpack.c.bf16 %v5925_v39, %v5921_v36  ;;  %v6128_v39 = vld [vmem:[%s17050_s4 + $0x30] sm:$0xff] }
0x19ec   :  { %9565 = vmatprep.subr.bf16.mxu0 %v9564_v49  ;;  %v9620_v49 = vpack.c.bf16 %v5895_v47, %v5891_v46  ;;  %v9636_v46 = vpack.c.bf16 %v5927_v43, %v5923_v29  ;;  %v5922_v47 = vld [vmem:[%s17049_s3 + $0x110] sm:$0xff]  ;;  %v6129_v29 = vld [vmem:[%s17050_s4 + $0x38] sm:$0xff] }
0x19ed   :  { %v9662_v43 = vpack.c.bf16 %v6129_v29, %v6128_v39 }
0x19ef   :  { %9567 = vmatpush1.bf16.msra.mxu0 %v9566_v57  ;;  %v5888_v57 = vld [vmem:[%s17049_s3] sm:$0xff] }
0x19f0   :  { %9569 = vmatprep.subr.bf16.mxu0 %v9568_v45  ;;  %v5892_v45 = vld [vmem:[%s17049_s3 + $0x20] sm:$0xff] }
0x19f1   :  { %v9590_v54 = vpack.c.bf16 %v5892_v45, %v5888_v57 }
0x19f3   :  { %9571 = vmatpush1.bf16.msra.mxu0 %v9570_v56  ;;  %v5899_v56 = vld [vmem:[%s17049_s3 + $0x58] sm:$0xff] }
0x19f4   :  { %9573 = vmatprep.subr.bf16.mxu0 %v9572_v0  ;;  %v5903_v0 = vld [vmem:[%s17049_s3 + $0x78] sm:$0xff] }
0x19f5   :  { %v9624_v8 = vpack.c.bf16 %v5903_v0, %v5899_v56  ;;  %v5930_v56 = vld [vmem:[%s17049_s3 + $0x150] sm:$0xff] }
0x19f6   :  { %v5934_v0 = vld [vmem:[%s17049_s3 + $0x170] sm:$0xff] }
0x19f7   :  { %9575 = vmatpush1.bf16.msra.mxu0 %v9574_v58  ;;  %v5896_v58 = vld [vmem:[%s17049_s3 + $0x40] sm:$0xff] }
0x19f8   :  { %9577 = vmatprep.subr.bf16.mxu0 %v9576_v14  ;;  %v5909_v14 = vld [vmem:[%s17049_s3 + $0xa8] sm:$0xff]  ;;  %v9594_v16 = vpack.c.bf16 %v5900_v4, %v5896_v58  ;;  %v5939_v58 = vld [vmem:[%s17049_s3 + $0x198] sm:$0xff] }
0x19f9   :  { %v9596_v9 = vpack.c.bf16 %v5909_v14, %v5905_v10  ;;  %v5943_v4 = vld [vmem:[%s17049_s3 + $0x1b8] sm:$0xff]  ;;  %v5938_v14 = vld [vmem:[%s17049_s3 + $0x190] sm:$0xff] }
0x19fb   :  { %9579 = vmatpush1.bf16.msra.mxu0 %v9578_v18  ;;  %v9626_v18 = vpack.c.bf16 %v5902_v61, %v5898_v63  ;;  %v5936_v63 = vld [vmem:[%s17049_s3 + $0x180] sm:$0xff] }
0x19fc   :  { %9581 = vmatprep.subr.bf16.mxu0 %v9580_v26  ;;  %v5917_v26 = vld [vmem:[%s17049_s3 + $0xe8] sm:$0xff]  ;;  %v5940_v61 = vld [vmem:[%s17049_s3 + $0x1a0] sm:$0xff] }
0x19fd   :  { %v9600_v33 = vpack.c.bf16 %v5917_v26, %v5913_v25  ;;  %v9614_v11 = vpack.c.bf16 %v5940_v61, %v5936_v63  ;;  %v5948_v25 = vld [vmem:[%s17049_s3 + $0x1e0] sm:$0xff]  ;;  %v5946_v26 = vld [vmem:[%s17049_s3 + $0x1d0] sm:$0xff] }
0x19fe   :  { %v6217_v61 = vld [vmem:[%s17051_s6 + $0x40] sm:$0xff] }
0x19ff   :  { %9583 = vmatpush1.bf16.msra.mxu0 %v9582_v31  ;;  %v5912_v31 = vld [vmem:[%s17049_s3 + $0xc0] sm:$0xff] }
0x1a00   :  { %9585 = vmatprep.subr.bf16.mxu0 %v9584_v35  ;;  %v5918_v35 = vld [vmem:[%s17049_s3 + $0xf0] sm:$0xff]  ;;  %v9602_v41 = vpack.c.bf16 %v5916_v32, %v5912_v31  ;;  %v6123_v31 = vld [vmem:[%s17050_s4 + $0x8] sm:$0xff] }
0x1a01   :  { %v9634_v42 = vpack.c.bf16 %v5918_v35, %v5914_v38  ;;  %v6126_v38 = vld [vmem:[%s17050_s4 + $0x20] sm:$0xff]  ;;  %v6127_v35 = vld [vmem:[%s17050_s4 + $0x28] sm:$0xff] }
0x1a02   :  { %v9659_v36 = vpack.c.bf16 %v6127_v35, %v6126_v38  ;;  %v6829_v38 = vld [vmem:[%s17060_s1 + $0xd8] sm:$0xff] }
0x1a03   :  { %9587 = vmatpush1.bf16.msra.mxu0 %v9586_v34  ;;  %v5924_v34 = vld [vmem:[%s17049_s3 + $0x120] sm:$0xff] }
0x1a04   :  { %9621 = vmatprep.subr.bf16.mxu0 %v9620_v49  ;;  %v5926_v49 = vld [vmem:[%s17049_s3 + $0x130] sm:$0xff]  ;;  %v9606_v57 = vpack.c.bf16 %v5924_v34, %v5920_v44 }
0x1a05   :  { %v9638_v45 = vpack.c.bf16 %v5926_v49, %v5922_v47  ;;  %v6132_v34 = vld [vmem:[%s17050_s4 + $0x50] sm:$0xff]  ;;  %v6135_v49 = vld [vmem:[%s17050_s4 + $0x68] sm:$0xff] }
0x1a99   :  { %v5571_v40 = vpop.f32.mrb[46].mxu0 }
0x1a9a   :  { %v5572_v52 = vadd.f32 %v10178_v55, %v5571_v40  ;;  %v7613_v53 = vpop.f32.mrb[47].mxu0  ;;  %v5929_v40 = vld [vmem:[%s17049_s3 + $0x148] sm:$0xff] }
0x1a9b   :  { %v5933_v55 = vld [vmem:[%s17049_s3 + $0x168] sm:$0xff]  ;;  %v5935_v53 = vld [vmem:[%s17049_s3 + $0x178] sm:$0xff] }
0x1a9c   :  { %10111 = vtanh.f32 %v5572_v52  ;;  %v5931_v52 = vld [vmem:[%s17049_s3 + $0x158] sm:$0xff]  ;;  %v9608_v60 = vpack.c.bf16 %v5933_v55, %v5929_v40  ;;  %v6136_v55 = vld [vmem:[%s17050_s4 + $0x70] sm:$0xff] }
0x1a9d   :  { %v9640_v50 = vpack.c.bf16 %v5935_v53, %v5931_v52  ;;  %v6137_v52 = vld [vmem:[%s17050_s4 + $0x78] sm:$0xff] }
0x1a9e   :  { %v9674_v53 = vpack.c.bf16 %v6137_v52, %v6136_v55  ;;  %v6835_v52 = vld [vmem:[%s17052_s0 + $0xe0] sm:$0xff] }
0x1aa6   :  { %v10112_v12 = vpop.eup %10111 }
0x1aa7   :  { %5774 = vmatmul.mubr.f32.vlgmr.msra.gmra.mrb[46].mxu1 %v10112_v12  ;;  %5845 = vmatmul.mubr.f32.vlgmr.msra.gmra.mrb[48].mxu0 %v10112_v12  ;;  %v9644_v12 = vpack.c.bf16 %v5943_v4, %v5939_v58  ;;  %v6215_v58 = vld [vmem:[%s17051_s6 + $0x30] sm:$0xff]  ;;  %v6218_v4 = vld [vmem:[%s17051_s6 + $0x48] sm:$0xff] }
0x1aa8   :  { %9591 = vmatpush1.bf16.msra.mxu1 %v9590_v54  ;;  %9623 = vmatpush1.bf16.msra.mxu0 %v9622_v1  ;;  %v5937_v54 = vld [vmem:[%s17049_s3 + $0x188] sm:$0xff] }
0x1aa9   :  { %9593 = vmatprep.subr.bf16.mxu1 %v9592_v7  ;;  %9625 = vmatprep.subr.bf16.mxu0 %v9624_v8  ;;  %v5941_v1 = vld [vmem:[%s17049_s3 + $0x1a8] sm:$0xff]  ;;  %v9610_v7 = vpack.c.bf16 %v5932_v62, %v5928_v59  ;;  %v9642_v8 = vpack.c.bf16 %v5934_v0, %v5930_v56  ;;  %v6209_v59 = vld [vmem:[%s17051_s6] sm:$0xff]  ;;  %v6216_v56 = vld [vmem:[%s17051_s6 + $0x38] sm:$0xff] }
0x1aaa   :  { %6016 = vmatprep.mubr.f32.mxu1 %v10181_v3  ;;  %6087 = vmatprep.mubr.f32.mxu0 %v10181_v3  ;;  %v9612_v10 = vpack.c.bf16 %v5941_v1, %v5937_v54  ;;  %v6213_v1 = vld [vmem:[%s17051_s6 + $0x20] sm:$0xff] }
0x1aac   :  { %9595 = vmatpush1.bf16.msra.mxu1 %v9594_v16  ;;  %9627 = vmatpush1.bf16.msra.mxu0 %v9626_v18  ;;  %v5949_v16 = vld [vmem:[%s17049_s3 + $0x1e8] sm:$0xff]  ;;  %v5947_v18 = vld [vmem:[%s17049_s3 + $0x1d8] sm:$0xff] }
0x1aad   :  { %9597 = vmatprep.subr.bf16.mxu1 %v9596_v9  ;;  %9629 = vmatprep.subr.bf16.mxu0 %v9628_v22  ;;  %v9646_v9 = vpack.c.bf16 %v5942_v5, %v5938_v14  ;;  %v5944_v22 = vld [vmem:[%s17049_s3 + $0x1c0] sm:$0xff]  ;;  %v9616_v23 = vpack.c.bf16 %v5949_v16, %v5945_v2  ;;  %v9648_v24 = vpack.c.bf16 %v5951_v19, %v5947_v18  ;;  %v6224_v14 = vld [vmem:[%s17051_s6 + $0x78] sm:$0xff]  ;;  %v6223_v18 = vld [vmem:[%s17051_s6 + $0x70] sm:$0xff] }
0x1aae   :  { %v9618_v27 = vpack.c.bf16 %v5948_v25, %v5944_v22  ;;  %v6221_v16 = vld [vmem:[%s17051_s6 + $0x60] sm:$0xff]  ;;  %v6226_v19 = vld [vmem:[%s17051_s6 + $0x88] sm:$0xff] }
0x1ab0   :  { %9599 = vmatpush1.bf16.msra.mxu1 %v9598_v28  ;;  %9631 = vmatpush1.bf16.msra.mxu0 %v9630_v30  ;;  %v9650_v28 = vpack.c.bf16 %v5950_v15, %v5946_v26  ;;  %v6122_v30 = vld [vmem:[%s17050_s4] sm:$0xff]  ;;  %v6827_v15 = vld [vmem:[%s17060_s1 + $0xc8] sm:$0xff] }
0x1ab1   :  { %9601 = vmatprep.subr.bf16.mxu1 %v9600_v33  ;;  %9633 = vmatprep.subr.bf16.mxu0 %v9632_v21  ;;  %v9653_v32 = vpack.c.bf16 %v6123_v31, %v6122_v30  ;;  %v6125_v33 = vld [vmem:[%s17050_s4 + $0x18] sm:$0xff]  ;;  %v6826_v26 = vld [vmem:[%s17060_s1 + $0xc0] sm:$0xff] }
0x1ab4   :  { %9603 = vmatpush1.bf16.msra.mxu1 %v9602_v41  ;;  %9635 = vmatpush1.bf16.msra.mxu0 %v9634_v42  ;;  %v6130_v41 = vld [vmem:[%s17050_s4 + $0x40] sm:$0xff]  ;;  %v6131_v42 = vld [vmem:[%s17050_s4 + $0x48] sm:$0xff] }
0x1ab5   :  { %9605 = vmatprep.subr.bf16.mxu1 %v9604_v48  ;;  %9637 = vmatprep.subr.bf16.mxu0 %v9636_v46  ;;  %v9665_v44 = vpack.c.bf16 %v6131_v42, %v6130_v41  ;;  %v6133_v48 = vld [vmem:[%s17050_s4 + $0x58] sm:$0xff]  ;;  %v6134_v46 = vld [vmem:[%s17050_s4 + $0x60] sm:$0xff] }
0x1ab6   :  { %v9668_v47 = vpack.c.bf16 %v6133_v48, %v6132_v34  ;;  %v9671_v40 = vpack.c.bf16 %v6135_v49, %v6134_v46 }
0x1ab8   :  { %9607 = vmatpush1.bf16.msra.mxu1 %v9606_v57  ;;  %9639 = vmatpush1.bf16.msra.mxu0 %v9638_v45  ;;  %v6210_v57 = vld [vmem:[%s17051_s6 + $0x8] sm:$0xff]  ;;  %v6212_v45 = vld [vmem:[%s17051_s6 + $0x18] sm:$0xff] }
0x1ab9   :  { %9609 = vmatprep.subr.bf16.mxu1 %v9608_v60  ;;  %9641 = vmatprep.subr.bf16.mxu0 %v9640_v50  ;;  %v9676_v62 = vpack.c.bf16 %v6212_v45, %v6210_v57  ;;  %v6211_v60 = vld [vmem:[%s17051_s6 + $0x10] sm:$0xff]  ;;  %v6214_v50 = vld [vmem:[%s17051_s6 + $0x28] sm:$0xff] }
0x1aba   :  { %v9678_v0 = vpack.c.bf16 %v6211_v60, %v6209_v59  ;;  %v9680_v54 = vpack.c.bf16 %v6216_v56, %v6214_v50 }
0x1abc   :  { %9611 = vmatpush1.bf16.msra.mxu1 %v9610_v7  ;;  %9643 = vmatpush1.bf16.msra.mxu0 %v9642_v8  ;;  %v6220_v7 = vld [vmem:[%s17051_s6 + $0x58] sm:$0xff]  ;;  %v9682_v8 = vpack.c.bf16 %v6215_v58, %v6213_v1  ;;  %v6837_v58 = vld [vmem:[%s17052_s0 + $0xf0] sm:$0xff] }
0x1abd   :  { %9613 = vmatprep.subr.bf16.mxu1 %v9612_v10  ;;  %9645 = vmatprep.subr.bf16.mxu0 %v9644_v12  ;;  %v9684_v63 = vpack.c.bf16 %v6220_v7, %v6218_v4  ;;  %v6219_v10 = vld [vmem:[%s17051_s6 + $0x50] sm:$0xff]  ;;  %v6222_v12 = vld [vmem:[%s17051_s6 + $0x68] sm:$0xff] }
0x1abe   :  { %v9686_v5 = vpack.c.bf16 %v6219_v10, %v6217_v61  ;;  %v9688_v2 = vpack.c.bf16 %v6224_v14, %v6222_v12 }
0x1ac0   :  { %9615 = vmatpush1.bf16.msra.mxu1 %v9614_v11  ;;  %9647 = vmatpush1.bf16.msra.mxu0 %v9646_v9  ;;  %v6228_v11 = vld [vmem:[%s17051_s6 + $0x98] sm:$0xff]  ;;  %v9690_v9 = vpack.c.bf16 %v6223_v18, %v6221_v16 }
0x1ac1   :  { %9617 = vmatprep.subr.bf16.mxu1 %v9616_v23  ;;  %9649 = vmatprep.subr.bf16.mxu0 %v9648_v24  ;;  %v9692_v22 = vpack.c.bf16 %v6228_v11, %v6226_v19  ;;  %v6225_v23 = vld [vmem:[%s17051_s6 + $0x80] sm:$0xff]  ;;  %v6227_v24 = vld [vmem:[%s17051_s6 + $0x90] sm:$0xff] }
0x1ac2   :  { %v9694_v25 = vpack.c.bf16 %v6227_v24, %v6225_v23 }
0x1ac4   :  { %9619 = vmatpush1.bf16.msra.mxu1 %v9618_v27  ;;  %9651 = vmatpush1.bf16.msra.mxu0 %v9650_v28 }
0x1ac5   :  { %9652 = vmatprep.subr.bf16.mxu1 %v10182_v37  ;;  %9677 = vmatprep.subr.bf16.mxu0 %v9676_v62 }
0x1ac7   :  { %6017 = vmatmul.mubr.f32.vlgmr.msra.gmra.mrb[48].mxu1 %v15692_v20  ;;  %6088 = vmatmul.mubr.f32.vlgmr.msra.gmra.mrb[50].mxu0 %v15692_v20  ;;  %v6124_v20 = vld [vmem:[%s17050_s4 + $0x10] sm:$0xff] }
0x1ac8   :  { %7646 = vmatprep.mubr.msk.f32.mxu1 %vm10183_vm0, %v10181_v3  ;;  %6305 = vmatprep.mubr.f32.mxu0 %v10181_v3  ;;  %v9656_v21 = vpack.c.bf16 %v6125_v33, %v6124_v20 }
0x1ac9   :  { %9654 = vmatpush3.bf16.msra.mxu1 %v9653_v32  ;;  %9679 = vmatpush1.bf16.msra.mxu0 %v9678_v0 }
0x1aca   :  { %9655 = vmatprep.subr.bf16.mxu1 %v10182_v37  ;;  %9681 = vmatprep.subr.bf16.mxu0 %v9680_v54  ;;  %v6838_v54 = vld [vmem:[%s17052_s0 + $0xf8] sm:$0xff] }
0x1acd   :  { %9657 = vmatpush3.bf16.msra.mxu1 %v9656_v21  ;;  %9683 = vmatpush1.bf16.msra.mxu0 %v9682_v8 }
0x1ace   :  { %9658 = vmatprep.subr.bf16.mxu1 %v10182_v37  ;;  %9685 = vmatprep.subr.bf16.mxu0 %v9684_v63 }
0x1ad1   :  { %9660 = vmatpush3.bf16.msra.mxu1 %v9659_v36  ;;  %9687 = vmatpush1.bf16.msra.mxu0 %v9686_v5  ;;  %v6828_v36 = vld [vmem:[%s17060_s1 + $0xd0] sm:$0xff] }
0x1ad2   :  { %9661 = vmatprep.subr.bf16.mxu1 %v10182_v37  ;;  %9689 = vmatprep.subr.bf16.mxu0 %v9688_v2 }
0x1ad5   :  { %9663 = vmatpush3.bf16.msra.mxu1 %v9662_v43  ;;  %9691 = vmatpush1.bf16.msra.mxu0 %v9690_v9 }
0x1ad6   :  { %9664 = vmatprep.subr.bf16.mxu1 %v10182_v37  ;;  %9693 = vmatprep.subr.bf16.mxu0 %v9692_v22 }
0x1ad9   :  { %9666 = vmatpush3.bf16.msra.mxu1 %v9665_v44  ;;  %9695 = vmatpush1.bf16.msra.mxu0 %v9694_v25 }
0x1ada   :  { %9667 = vmatprep.subr.bf16.mxu1 %v10182_v37 }
0x1add   :  { %9669 = vmatpush3.bf16.msra.mxu1 %v9668_v47 }
0x1ade   :  { %9670 = vmatprep.subr.bf16.mxu1 %v10182_v37 }
0x1ae1   :  { %9672 = vmatpush3.bf16.msra.mxu1 %v9671_v40 }
0x1ae2   :  { %9673 = vmatprep.subr.bf16.mxu1 %v10182_v37 }
0x1ae5   :  { %9675 = vmatpush3.bf16.msra.mxu1 %v9674_v53  ;;  %v6836_v53 = vld [vmem:[%s17052_s0 + $0xe8] sm:$0xff] }
0x1ae6   :  { %9708 = vmatprep.subr.bf16.mxu1 %v10182_v37 }
0x1b7a   :  { %v5775_v27 = vpop.f32.mrb[46].mxu1  ;;  %v5846_v28 = vpop.f32.mrb[48].mxu0 }
0x1b7b   :  { %v5851_v30 = vadd.f32 %v6826_v26, %v5775_v27  ;;  %v5777_v31 = vpop.f32.mrb[47].mxu1  ;;  %v5848_v32 = vpop.f32.mrb[49].mxu0  ;;  %v5853_v29 = vadd.f32 %v6828_v36, %v5846_v28  ;;  %v6229_v28 = vld [vmem:[%s17051_s6 + $0xa0] sm:$0xff] }
0x1b7c   :  { %v5852_v20 = vadd.f32 %v6827_v15, %v5777_v31  ;;  %v5854_v35 = vadd.f32 %v6829_v38, %v5848_v32  ;;  %v6230_v15 = vld [vmem:[%s17051_s6 + $0xa8] sm:$0xff]  ;;  %v6236_v32 = vld [vmem:[%s17051_s6 + $0xd8] sm:$0xff] }
0x1b7d   :  { %v6830_v33 = vmul.f32 -1.442695, %v5851_v30  ;;  %v6231_v30 = vld [vmem:[%s17051_s6 + $0xb0] sm:$0xff]  ;;  %v6238_v38 = vld [vmem:[%s17051_s6 + $0xe8] sm:$0xff] }
0x1b7e   :  { %v6831_v21 = vmul.f32 -1.442695, %v5852_v20  ;;  %v6832_v39 = vmul.f32 -1.442695, %v5854_v35  ;;  %v9698_v31 = vpack.c.bf16 %v6231_v30, %v6229_v28  ;;  %v6233_v20 = vld [vmem:[%s17051_s6 + $0xc0] sm:$0xff]  ;;  %v6240_v35 = vld [vmem:[%s17051_s6 + $0xf8] sm:$0xff] }
0x1b7f   :  { %10113 = vpow2.f32 %v6830_v33  ;;  %v6432_v28 = vld [vmem:[%s17056_s10 + $0xa8] sm:$0xff] }
0x1b80   :  { %10115 = vpow2.f32 %v6831_v21  ;;  %v6235_v21 = vld [vmem:[%s17051_s6 + $0xd0] sm:$0xff] }
0x1b81   :  { %10117 = vpow2.f32 %v6832_v39  ;;  %v9702_v36 = vpack.c.bf16 %v6235_v21, %v6233_v20  ;;  %v9704_v39 = vpack.c.bf16 %v6240_v35, %v6238_v38  ;;  %v6436_v20 = vld [vmem:[%s17056_s10 + $0xc8] sm:$0xff]  ;;  %v6435_v38 = vld [vmem:[%s17056_s10 + $0xc0] sm:$0xff] }
0x1b82   :  { %10119 = vtanh.f32 %v5853_v29  ;;  %v6237_v29 = vld [vmem:[%s17051_s6 + $0xe0] sm:$0xff] }
0x1b83   :  { %v6439_v35 = vld [vmem:[%s17056_s10 + $0xe0] sm:$0xff] }
0x1b89   :  { %v10114_v43 = vpop.eup %10113 }
0x1b8a   :  { %v10116_v41 = vpop.eup %10115  ;;  %v5858_v42 = vadd.f32 1.0, %v10114_v43  ;;  %v6239_v43 = vld [vmem:[%s17051_s6 + $0xf0] sm:$0xff] }
0x1b8b   :  { %v5864_v44 = vadd.f32 1.0, %v10116_v41  ;;  %v10118_v34 = vpop.eup %10117  ;;  %v9706_v41 = vpack.c.bf16 %v6239_v43, %v6237_v29  ;;  %v6448_v29 = vld [vmem:[%s17056_s10 + $0x128] sm:$0xff] }
0x1b8c   :  { %10121 = vrcp.f32 %v5858_v42  ;;  %v10120_v48 = vpop.eup %10119  ;;  %v5871_v40 = vadd.f32 1.0, %v10118_v34  ;;  %v6319_v42 = vld [vmem:[%s17054_s8] sm:$0xff]  ;;  %v6321_v34 = vld [vmem:[%s17054_s8 + $0x10] sm:$0xff] }
0x1b8d   :  { %10123 = vrcp.f32 %v5864_v44  ;;  %v6320_v44 = vld [vmem:[%s17054_s8 + $0x8] sm:$0xff] }
0x1b8e   :  { %10125 = vrcp.f32 %v5871_v40  ;;  %v10179_v40 = vld [vmem:[%s17055_s5] ss:$0 sm:$0xff] }
0x1b96   :  { %v10122_v46 = vpop.eup %10121 }
0x1b97   :  { %v10124_v47 = vpop.eup %10123  ;;  %v5875_v49 = vmul.f32 %v10122_v46, %v10120_v48  ;;  %v9709_v48 = vpack.c.bf16 %v6320_v44, %v6319_v42  ;;  %v6322_v46 = vld [vmem:[%s17054_s8 + $0x18] sm:$0xff]  ;;  %v6447_v42 = vld [vmem:[%s17056_s10 + $0x120] sm:$0xff] }
0x1b98   :  { %v5874_v55 = vmul.f32 %v10124_v47, %v15673_v51  ;;  %v10126_v4 = vpop.eup %10125  ;;  %v9712_v47 = vpack.c.bf16 %v6322_v46, %v6321_v34  ;;  %v6452_v34 = vld [vmem:[%s17056_s10 + $0x148] sm:$0xff] }
0x1b9a   :  { %v6018_v57 = vpop.f32.mrb[48].mxu1  ;;  %v6089_v45 = vpop.f32.mrb[50].mxu0  ;;  %v16524_v59 = vadd.f32 %v5875_v49, %v5874_v55 }
0x1b9b   :  { %v6094_v62 = vadd.f32 %v6835_v52, %v6018_v57  ;;  %v6020_v60 = vpop.f32.mrb[49].mxu1  ;;  %v6091_v50 = vpop.f32.mrb[51].mxu0  ;;  %v6096_v63 = vadd.f32 %v6837_v58, %v6089_v45  ;;  %v6323_v57 = vld [vmem:[%s17054_s8 + $0x20] sm:$0xff]  ;;  %v6324_v45 = vld [vmem:[%s17054_s8 + $0x28] sm:$0xff]  ;;  %v6330_v58 = vld [vmem:[%s17054_s8 + $0x58] sm:$0xff] }
0x1b9c   :  { %v6095_v56 = vadd.f32 %v6836_v53, %v6020_v60  ;;  %10127 = vtanh.f32 %v16524_v59  ;;  %v6097_v1 = vadd.f32 %v6838_v54, %v6091_v50  ;;  %v6325_v60 = vld [vmem:[%s17054_s8 + $0x30] sm:$0xff]  ;;  %v6326_v50 = vld [vmem:[%s17054_s8 + $0x38] sm:$0xff] }
0x1b9d   :  { %v6839_v51 = vmul.f32 -1.442695, %v6094_v62  ;;  %v9715_v62 = vpack.c.bf16 %v6324_v45, %v6323_v57  ;;  %v6459_v57 = vld [vmem:[%s17056_s10 + $0x180] sm:$0xff] }
0x1b9e   :  { %v6840_v0 = vmul.f32 -1.442695, %v6095_v56  ;;  %v6841_v8 = vmul.f32 -1.442695, %v6097_v1  ;;  %v9718_v56 = vpack.c.bf16 %v6326_v50, %v6325_v60  ;;  %v6329_v1 = vld [vmem:[%s17054_s8 + $0x50] sm:$0xff]  ;;  %v6463_v45 = vld [vmem:[%s17056_s10 + $0x1a0] sm:$0xff] }
0x1b9f   :  { %10129 = vpow2.f32 %v6839_v51  ;;  %v6327_v51 = vld [vmem:[%s17054_s8 + $0x40] sm:$0xff]  ;;  %v6468_v60 = vld [vmem:[%s17056_s10 + $0x1c8] sm:$0xff] }
0x1ba0   :  { %10131 = vpow2.f32 %v6840_v0  ;;  %v6328_v0 = vld [vmem:[%s17054_s8 + $0x48] sm:$0xff] }
0x1ba1   :  { %10133 = vpow2.f32 %v6841_v8  ;;  %v9721_v54 = vpack.c.bf16 %v6328_v0, %v6327_v51  ;;  %v6332_v8 = vld [vmem:[%s17054_s8 + $0x68] sm:$0xff]  ;;  %v6467_v51 = vld [vmem:[%s17056_s10 + $0x1c0] sm:$0xff] }
0x1ba2   :  { %10135 = vtanh.f32 %v6096_v63  ;;  %v6472_v50 = vld [vmem:[%s17056_s10 + $0x1e8] sm:$0xff]  ;;  %v6471_v0 = vld [vmem:[%s17056_s10 + $0x1e0] sm:$0xff] }
0x1ba6   :  { %v10128_v7 = vpop.eup %10127 }
0x1ba7   :  { %v16533_v61 = vmul.f32 %v10128_v7, %v10126_v4  ;;  %v9724_v4 = vpack.c.bf16 %v6330_v58, %v6329_v1  ;;  %v6331_v7 = vld [vmem:[%s17054_s8 + $0x60] sm:$0xff]  ;;  %v6476_v1 = vld [vmem:[%s17056_s10 + $0x208] sm:$0xff] }
0x1ba8   :  { %v9727_v63 = vpack.c.bf16 %v6332_v8, %v6331_v7  ;;  %v6480_v58 = vld [vmem:[%s17056_s10 + $0x228] sm:$0xff]  ;;  %v6475_v7 = vld [vmem:[%s17056_s10 + $0x200] sm:$0xff] }
0x1ba9   :  { %v10130_v10 = vpop.eup %10129  ;;  %6834 = vst [vmem:[%s17061_s12 + $0x30] sm:$0xff] %v16533_v61  ;;  %v6479_v8 = vld [vmem:[%s17056_s10 + $0x220] sm:$0xff] }
0x1baa   :  { %v10132_v12 = vpop.eup %10131  ;;  %v6101_v14 = vadd.f32 1.0, %v10130_v10  ;;  %v6333_v10 = vld [vmem:[%s17054_s8 + $0x70] sm:$0xff] }
0x1bab   :  { %v6107_v5 = vadd.f32 1.0, %v10132_v12  ;;  %v10134_v2 = vpop.eup %10133  ;;  %v6334_v12 = vld [vmem:[%s17054_s8 + $0x78] sm:$0xff] }
0x1bac   :  { %10137 = vrcp.f32 %v6101_v14  ;;  %v10136_v16 = vpop.eup %10135  ;;  %v6114_v9 = vadd.f32 1.0, %v10134_v2  ;;  %v9730_v14 = vpack.c.bf16 %v6334_v12, %v6333_v10  ;;  %v6416_v2 = vld [vmem:[%s17056_s10 + $0x28] sm:$0xff] }
0x1bad   :  { %10139 = vrcp.f32 %v6107_v5  ;;  %v6412_v5 = vld [vmem:[%s17056_s10 + $0x8] sm:$0xff] }
0x1bae   :  { %10141 = vrcp.f32 %v6114_v9  ;;  %v6484_v10 = vld [vmem:[%s17056_s10 + $0x248] sm:$0xff] }
0x1baf   :  { %v6488_v12 = vld [vmem:[%s17056_s10 + $0x268] sm:$0xff] }
0x1bb6   :  { %v10138_v18 = vpop.eup %10137 }
0x1bb7   :  { %v10140_v19 = vpop.eup %10139  ;;  %v6118_v11 = vmul.f32 %v10138_v18, %v10136_v16  ;;  %v6414_v16 = vld [vmem:[%s17056_s10 + $0x18] sm:$0xff]  ;;  %v9732_v18 = vpack.c.bf16 %v6416_v2, %v6412_v5  ;;  %v6483_v5 = vld [vmem:[%s17056_s10 + $0x240] sm:$0xff] }
0x1bb8   :  { %v6117_v22 = vmul.f32 %v10140_v19, %v15689_v17  ;;  %v10142_v24 = vpop.eup %10141  ;;  %v6232_v17 = vld [vmem:[%s17051_s6 + $0xb8] sm:$0xff]  ;;  %v6487_v2 = vld [vmem:[%s17056_s10 + $0x260] sm:$0xff] }
0x1bb9   :  { %v9696_v27 = vpack.c.bf16 %v6232_v17, %v6230_v15  ;;  %v6418_v19 = vld [vmem:[%s17056_s10 + $0x38] sm:$0xff]  ;;  %v6423_v15 = vld [vmem:[%s17056_s10 + $0x60] sm:$0xff] }
0x1bba   :  { %v6119_v23 = vadd.f32 %v6118_v11, %v6117_v22  ;;  %v6415_v11 = vld [vmem:[%s17056_s10 + $0x20] sm:$0xff]  ;;  %v9796_v9 = vpack.c.bf16 %v6418_v19, %v6414_v16  ;;  %v9770_v16 = vpack.c.bf16 %v6487_v2, %v6483_v5  ;;  %v6496_v19 = vld [vmem:[%s17056_s10 + $0x2a8] sm:$0xff]  ;;  %v6462_v5 = vld [vmem:[%s17056_s10 + $0x198] sm:$0xff] }
0x1bbb   :  { %9697 = vmatprep.subr.bf16.mxu0 %v9696_v27  ;;  %v6428_v27 = vld [vmem:[%s17056_s10 + $0x88] sm:$0xff]  ;;  %v6466_v2 = vld [vmem:[%s17056_s10 + $0x1b8] sm:$0xff] }
0x1bbc   :  { %10143 = vtanh.f32 %v6119_v23  ;;  %9699 = vmatpush1.bf16.msra.mxu0 %v9698_v31  ;;  %v6420_v23 = vld [vmem:[%s17056_s10 + $0x48] sm:$0xff]  ;;  %v9740_v30 = vpack.c.bf16 %v6432_v28, %v6428_v27  ;;  %v6427_v31 = vld [vmem:[%s17056_s10 + $0x80] sm:$0xff] }
0x1bbd   :  { %v6508_v27 = vld [vmem:[%s17056_s10 + $0x308] sm:$0xff] }
0x1bbe   :  { %v6512_v28 = vld [vmem:[%s17056_s10 + $0x328] sm:$0xff] }
0x1bc6   :  { %v10144_v25 = vpop.eup %10143 }
0x1bc7   :  { %v6121_v26 = vmul.f32 %v10144_v25, %v10142_v24  ;;  %v6424_v24 = vld [vmem:[%s17056_s10 + $0x68] sm:$0xff] }
0x1bc8   :  { %v9736_v25 = vpack.c.bf16 %v6424_v24, %v6420_v23  ;;  %v6500_v23 = vld [vmem:[%s17056_s10 + $0x2c8] sm:$0xff] }
0x1bc9   :  { %7647 = vmatmul.mubr.f32.vlgmr.msra.gmra.mrb[50].mxu1 %v6121_v26  ;;  %6850 = vst [vmem:[%s17053_s11 + $0x38] sm:$0xff] %v6121_v26  ;;  %v6419_v26 = vld [vmem:[%s17056_s10 + $0x40] sm:$0xff]  ;;  %v6504_v24 = vld [vmem:[%s17056_s10 + $0x2e8] sm:$0xff] }
0x1bca   :  { %7681 = vmatprep.mubr.msk.f32.mxu1 %vm10183_vm0, %v10181_v3  ;;  %v6234_v3 = vld [vmem:[%s17051_s6 + $0xc8] sm:$0xff]  ;;  %9710 = vmatpush3.bf16.msra.mxu1 %v9709_v48  ;;  %v9738_v17 = vpack.c.bf16 %v6423_v15, %v6419_v26  ;;  %v6499_v26 = vld [vmem:[%s17056_s10 + $0x2c0] sm:$0xff] }
0x1bcb   :  { %v9700_v33 = vpack.c.bf16 %v6236_v32, %v6234_v3  ;;  %9711 = vmatprep.subr.bf16.mxu1 %v10182_v37  ;;  %v6431_v3 = vld [vmem:[%s17056_s10 + $0xa0] sm:$0xff]  ;;  %v6456_v48 = vld [vmem:[%s17056_s10 + $0x168] sm:$0xff] }
0x1bcc   :  { %v9742_v32 = vpack.c.bf16 %v6431_v3, %v6427_v31  ;;  %v9752_v46 = vpack.c.bf16 %v6456_v48, %v6452_v34  ;;  %v6503_v15 = vld [vmem:[%s17056_s10 + $0x2e0] sm:$0xff] }
0x1bcd   :  { %9701 = vmatprep.subr.bf16.mxu0 %v9700_v33  ;;  %v6440_v33 = vld [vmem:[%s17056_s10 + $0xe8] sm:$0xff]  ;;  %v6507_v31 = vld [vmem:[%s17056_s10 + $0x300] sm:$0xff] }
0x1bce   :  { %9703 = vmatpush1.bf16.msra.mxu0 %v9702_v36  ;;  %9713 = vmatpush3.bf16.msra.mxu1 %v9712_v47  ;;  %v9744_v21 = vpack.c.bf16 %v6440_v33, %v6436_v20  ;;  %v9746_v36 = vpack.c.bf16 %v6439_v35, %v6435_v38  ;;  %v6451_v47 = vld [vmem:[%s17056_s10 + $0x140] sm:$0xff] }
0x1bcf   :  { %9705 = vmatprep.subr.bf16.mxu0 %v9704_v39  ;;  %9714 = vmatprep.subr.bf16.mxu1 %v10182_v37  ;;  %v6444_v39 = vld [vmem:[%s17056_s10 + $0x108] sm:$0xff]  ;;  %v6511_v3 = vld [vmem:[%s17056_s10 + $0x320] sm:$0xff] }
0x1bd0   :  { %v9748_v43 = vpack.c.bf16 %v6448_v29, %v6444_v39  ;;  %v6413_v39 = vld [vmem:[%s17056_s10 + $0x10] sm:$0xff] }
0x1bd1   :  { %v6417_v29 = vld [vmem:[%s17056_s10 + $0x30] sm:$0xff] }
0x1bd2   :  { %9707 = vmatpush1.bf16.msra.mxu0 %v9706_v41  ;;  %9716 = vmatpush3.bf16.msra.mxu1 %v9715_v62  ;;  %v6443_v41 = vld [vmem:[%s17056_s10 + $0x100] sm:$0xff]  ;;  %v9758_v62 = vpack.c.bf16 %v6463_v45, %v6459_v57  ;;  %v9798_v34 = vpack.c.bf16 %v6417_v29, %v6413_v39  ;;  %v6433_v57 = vld [vmem:[%s17056_s10 + $0xb0] sm:$0xff]  ;;  %v6438_v45 = vld [vmem:[%s17056_s10 + $0xd8] sm:$0xff] }
0x1bd3   :  { %9717 = vmatprep.subr.bf16.mxu1 %v10182_v37  ;;  %9733 = vmatprep.subr.bf16.mxu0 %v9732_v18  ;;  %v9750_v44 = vpack.c.bf16 %v6447_v42, %v6443_v41  ;;  %v6492_v18 = vld [vmem:[%s17056_s10 + $0x288] sm:$0xff]  ;;  %v6426_v41 = vld [vmem:[%s17056_s10 + $0x78] sm:$0xff]  ;;  %v6493_v29 = vld [vmem:[%s17056_s10 + $0x290] sm:$0xff] }
0x1bd6   :  { %9719 = vmatpush3.bf16.msra.mxu1 %v9718_v56  ;;  %v9760_v56 = vpack.c.bf16 %v6472_v50, %v6468_v60  ;;  %v6437_v50 = vld [vmem:[%s17056_s10 + $0xd0] sm:$0xff] }
0x1bd7   :  { %9720 = vmatprep.subr.bf16.mxu1 %v10182_v37 }
0x1bda   :  { %9722 = vmatpush3.bf16.msra.mxu1 %v9721_v54  ;;  %v9762_v54 = vpack.c.bf16 %v6471_v0, %v6467_v51  ;;  %v6446_v51 = vld [vmem:[%s17056_s10 + $0x118] sm:$0xff] }
0x1bdb   :  { %9723 = vmatprep.subr.bf16.mxu1 %v10182_v37  ;;  %v6450_v0 = vld [vmem:[%s17056_s10 + $0x138] sm:$0xff] }
0x1bde   :  { %9725 = vmatpush3.bf16.msra.mxu1 %v9724_v4  ;;  %v9764_v4 = vpack.c.bf16 %v6480_v58, %v6476_v1  ;;  %v9812_v1 = vpack.c.bf16 %v6450_v0, %v6446_v51  ;;  %v6445_v58 = vld [vmem:[%s17056_s10 + $0x110] sm:$0xff] }
0x1bdf   :  { %9726 = vmatprep.subr.bf16.mxu1 %v10182_v37  ;;  %v6517_v0 = vld [vmem:[%s17056_s10 + $0x350] sm:$0xff] }
0x1be2   :  { %9728 = vmatpush3.bf16.msra.mxu1 %v9727_v63  ;;  %v9766_v63 = vpack.c.bf16 %v6479_v8, %v6475_v7  ;;  %v6454_v7 = vld [vmem:[%s17056_s10 + $0x158] sm:$0xff] }
0x1be3   :  { %9729 = vmatprep.subr.bf16.mxu1 %v10182_v37  ;;  %v6411_v37 = vld [vmem:[%s17056_s10] sm:$0xff]  ;;  %v6458_v8 = vld [vmem:[%s17056_s10 + $0x178] sm:$0xff] }
0x1be4   :  { %v9734_v22 = vpack.c.bf16 %v6415_v11, %v6411_v37  ;;  %v9772_v37 = vpack.c.bf16 %v6496_v19, %v6492_v18  ;;  %v6491_v11 = vld [vmem:[%s17056_s10 + $0x280] sm:$0xff]  ;;  %v9820_v18 = vpack.c.bf16 %v6466_v2, %v6462_v5  ;;  %v6461_v19 = vld [vmem:[%s17056_s10 + $0x190] sm:$0xff] }
0x1be5   :  { %v6525_v2 = vld [vmem:[%s17056_s10 + $0x390] sm:$0xff] }
0x1be6   :  { %9731 = vmatpush3.bf16.msra.mxu1 %v9730_v14  ;;  %v9768_v14 = vpack.c.bf16 %v6488_v12, %v6484_v10  ;;  %v9816_v10 = vpack.c.bf16 %v6458_v8, %v6454_v7  ;;  %v6453_v12 = vld [vmem:[%s17056_s10 + $0x150] sm:$0xff]  ;;  %v6526_v7 = vld [vmem:[%s17056_s10 + $0x398] sm:$0xff] }
0x1be7   :  { %9797 = vmatprep.subr.bf16.mxu1 %v9796_v9  ;;  %v6495_v9 = vld [vmem:[%s17056_s10 + $0x2a0] sm:$0xff] }
0x1c9c   :  { %v6204_v49 = vpop.f32.mrb[50].mxu1 }
0x1c9d   :  { %v6205_v55 = vadd.f32 %v10179_v40, %v6204_v49  ;;  %v7648_v52 = vpop.f32.mrb[51].mxu1  ;;  %v6455_v49 = vld [vmem:[%s17056_s10 + $0x160] sm:$0xff] }
0x1c9e   :  { %v9754_v40 = vpack.c.bf16 %v6455_v49, %v6451_v47  ;;  %v6464_v52 = vld [vmem:[%s17056_s10 + $0x1a8] sm:$0xff]  ;;  %v6421_v47 = vld [vmem:[%s17056_s10 + $0x50] sm:$0xff] }
0x1c9f   :  { %10145 = vtanh.f32 %v6205_v55  ;;  %v6460_v55 = vld [vmem:[%s17056_s10 + $0x188] sm:$0xff]  ;;  %v6425_v49 = vld [vmem:[%s17056_s10 + $0x70] sm:$0xff] }
0x1ca9   :  { %v10146_v53 = vpop.eup %10145 }
0x1caa   :  { %6306 = vmatmul.mubr.f32.vlgmr.msra.gmra.mrb[52].mxu0 %v10146_v53  ;;  %v9756_v53 = vpack.c.bf16 %v6464_v52, %v6460_v55  ;;  %v9802_v55 = vpack.c.bf16 %v6425_v49, %v6421_v47  ;;  %v6514_v47 = vld [vmem:[%s17056_s10 + $0x338] sm:$0xff] }
0x1cab   :  { %6603 = vmatprep.mubr.f32.mxu0 %v16533_v61  ;;  %9735 = vmatpush1.bf16.msra.mxu0 %v9734_v22  ;;  %v9774_v22 = vpack.c.bf16 %v6495_v9, %v6491_v11  ;;  %v6470_v11 = vld [vmem:[%s17056_s10 + $0x1d8] sm:$0xff] }
0x1cac   :  { %9737 = vmatprep.subr.bf16.mxu0 %v9736_v25  ;;  %v9776_v25 = vpack.c.bf16 %v6504_v24, %v6500_v23  ;;  %v6474_v9 = vld [vmem:[%s17056_s10 + $0x1f8] sm:$0xff]  ;;  %v6469_v24 = vld [vmem:[%s17056_s10 + $0x1d0] sm:$0xff] }
0x1cad   :  { %v9824_v23 = vpack.c.bf16 %v6474_v9, %v6470_v11  ;;  %v6534_v11 = vld [vmem:[%s17056_s10 + $0x3d8] sm:$0xff] }
0x1cae   :  { %v6538_v9 = vld [vmem:[%s17056_s10 + $0x3f8] sm:$0xff] }
0x1caf   :  { %9739 = vmatpush1.bf16.msra.mxu0 %v9738_v17  ;;  %v9778_v17 = vpack.c.bf16 %v6503_v15, %v6499_v26  ;;  %v6478_v26 = vld [vmem:[%s17056_s10 + $0x218] sm:$0xff] }
0x1cb0   :  { %9741 = vmatprep.subr.bf16.mxu0 %v9740_v30  ;;  %v9780_v30 = vpack.c.bf16 %v6512_v28, %v6508_v27  ;;  %v6482_v15 = vld [vmem:[%s17056_s10 + $0x238] sm:$0xff]  ;;  %v6477_v28 = vld [vmem:[%s17056_s10 + $0x210] sm:$0xff] }
0x1cb1   :  { %v9828_v27 = vpack.c.bf16 %v6482_v15, %v6478_v26  ;;  %v6533_v26 = vld [vmem:[%s17056_s10 + $0x3d0] sm:$0xff] }
0x1cb3   :  { %9743 = vmatpush1.bf16.msra.mxu0 %v9742_v32  ;;  %v9782_v32 = vpack.c.bf16 %v6511_v3, %v6507_v31  ;;  %v6486_v31 = vld [vmem:[%s17056_s10 + $0x258] sm:$0xff] }
0x1cb4   :  { %9745 = vmatprep.subr.bf16.mxu0 %v9744_v21  ;;  %v6490_v3 = vld [vmem:[%s17056_s10 + $0x278] sm:$0xff] }
0x1cb7   :  { %9747 = vmatpush1.bf16.msra.mxu0 %v9746_v36  ;;  %v6842_v36 = vld [vmem:[%s17058_s2 + $0x38] sm:$0xff] }
0x1cb8   :  { %9749 = vmatprep.subr.bf16.mxu0 %v9748_v43 }
0x1cbb   :  { %9751 = vmatpush1.bf16.msra.mxu0 %v9750_v44 }
0x1cbc   :  { %9753 = vmatprep.subr.bf16.mxu0 %v9752_v46 }
0x1cbf   :  { %9755 = vmatpush1.bf16.msra.mxu0 %v9754_v40  ;;  %v6430_v40 = vld [vmem:[%s17056_s10 + $0x98] sm:$0xff] }
0x1cc0   :  { %9757 = vmatprep.subr.bf16.mxu0 %v9756_v53  ;;  %v6429_v53 = vld [vmem:[%s17056_s10 + $0x90] sm:$0xff] }
0x1cc3   :  { %9759 = vmatpush1.bf16.msra.mxu0 %v9758_v62  ;;  %v9806_v62 = vpack.c.bf16 %v6433_v57, %v6429_v53  ;;  %v6516_v53 = vld [vmem:[%s17056_s10 + $0x348] sm:$0xff] }
0x1cc4   :  { %9761 = vmatprep.subr.bf16.mxu0 %v9760_v56  ;;  %v6441_v56 = vld [vmem:[%s17056_s10 + $0xf0] sm:$0xff]  ;;  %v6520_v57 = vld [vmem:[%s17056_s10 + $0x368] sm:$0xff] }
0x1cc7   :  { %9763 = vmatpush1.bf16.msra.mxu0 %v9762_v54  ;;  %v9810_v54 = vpack.c.bf16 %v6441_v56, %v6437_v50  ;;  %v6519_v50 = vld [vmem:[%s17056_s10 + $0x360] sm:$0xff] }
0x1cc8   :  { %9765 = vmatprep.subr.bf16.mxu0 %v9764_v4  ;;  %v6449_v4 = vld [vmem:[%s17056_s10 + $0x130] sm:$0xff] }
0x1ccb   :  { %9767 = vmatpush1.bf16.msra.mxu0 %v9766_v63  ;;  %v9814_v63 = vpack.c.bf16 %v6449_v4, %v6445_v58  ;;  %v6524_v58 = vld [vmem:[%s17056_s10 + $0x388] sm:$0xff] }
0x1ccc   :  { %9769 = vmatprep.subr.bf16.mxu0 %v9768_v14  ;;  %v6457_v14 = vld [vmem:[%s17056_s10 + $0x170] sm:$0xff]  ;;  %v6528_v4 = vld [vmem:[%s17056_s10 + $0x3a8] sm:$0xff] }
0x1ccd   :  { %v9788_v8 = vpack.c.bf16 %v6528_v4, %v6524_v58 }
0x1ccf   :  { %9771 = vmatpush1.bf16.msra.mxu0 %v9770_v16  ;;  %v9818_v16 = vpack.c.bf16 %v6457_v14, %v6453_v12  ;;  %v6527_v12 = vld [vmem:[%s17056_s10 + $0x3a0] sm:$0xff] }
0x1cd0   :  { %9773 = vmatprep.subr.bf16.mxu0 %v9772_v37  ;;  %v6465_v37 = vld [vmem:[%s17056_s10 + $0x1b0] sm:$0xff] }
0x1cd3   :  { %9775 = vmatpush1.bf16.msra.mxu0 %v9774_v22  ;;  %v9822_v22 = vpack.c.bf16 %v6465_v37, %v6461_v19  ;;  %v6536_v37 = vld [vmem:[%s17056_s10 + $0x3e8] sm:$0xff] }
0x1cd4   :  { %9777 = vmatprep.subr.bf16.mxu0 %v9776_v25  ;;  %v6473_v25 = vld [vmem:[%s17056_s10 + $0x1f0] sm:$0xff] }
0x1cd7   :  { %9779 = vmatpush1.bf16.msra.mxu0 %v9778_v17  ;;  %v9826_v17 = vpack.c.bf16 %v6473_v25, %v6469_v24  ;;  %v6531_v24 = vld [vmem:[%s17056_s10 + $0x3c0] sm:$0xff] }
0x1cd8   :  { %9781 = vmatprep.subr.bf16.mxu0 %v9780_v30  ;;  %v6481_v30 = vld [vmem:[%s17056_s10 + $0x230] sm:$0xff]  ;;  %v6535_v25 = vld [vmem:[%s17056_s10 + $0x3e0] sm:$0xff] }
0x1cd9   :  { %v9794_v15 = vpack.c.bf16 %v6535_v25, %v6531_v24 }
0x1cdb   :  { %9783 = vmatpush1.bf16.msra.mxu0 %v9782_v32  ;;  %v9830_v32 = vpack.c.bf16 %v6481_v30, %v6477_v28  ;;  %v10180_v30 = vld [vmem:[%s17059_s9] ss:$0 sm:$0xff] }
0x1d7d   :  { %v6307_v20 = vpop.f32.mrb[52].mxu0 }
0x1d7e   :  { %v6309_v33 = vpop.f32.mrb[53].mxu0  ;;  %v6308_v42 = vadd.f32 %v6307_v20, %v10852_v13  ;;  %v6434_v13 = vld [vmem:[%s17056_s10 + $0xb8] sm:$0xff]  ;;  %v9832_v20 = vpack.c.bf16 %v6490_v3, %v6486_v31 }
0x1d7f   :  { %v6310_v21 = vadd.f32 %v6309_v33, %v10849_v6  ;;  %v6422_v6 = vld [vmem:[%s17056_s10 + $0x58] sm:$0xff]  ;;  %v9804_v52 = vpack.c.bf16 %v6434_v13, %v6430_v40  ;;  %v6485_v33 = vld [vmem:[%s17056_s10 + $0x250] sm:$0xff] }
0x1d80   :  { %v9800_v46 = vpack.c.bf16 %v6426_v41, %v6422_v6  ;;  %v6502_v6 = vld [vmem:[%s17056_s10 + $0x2d8] sm:$0xff]  ;;  %v6509_v13 = vld [vmem:[%s17056_s10 + $0x310] sm:$0xff] }
0x1d81   :  { %v6314_v38 = vmul.f32 0.5, %v6310_v21  ;;  %v6489_v21 = vld [vmem:[%s17056_s10 + $0x270] sm:$0xff]  ;;  %v6506_v41 = vld [vmem:[%s17056_s10 + $0x2f8] sm:$0xff] }
0x1d83   :  { %v6315_v35 = vmul.f32 1.442695, %v6314_v38  ;;  %v6494_v38 = vld [vmem:[%s17056_s10 + $0x298] sm:$0xff] }
0x1d85   :  { %10147 = vpow2.f32 %v6315_v35  ;;  %v6498_v35 = vld [vmem:[%s17056_s10 + $0x2b8] sm:$0xff] }
0x1d86   :  { %v9836_v39 = vpack.c.bf16 %v6498_v35, %v6494_v38 }
0x1d8f   :  { %v10148_v43 = vpop.eup %10147 }
0x1d90   :  { %v6317_v44 = vmul.f32 %v10148_v43, %v6842_v36  ;;  %v9834_v36 = vpack.c.bf16 %v6489_v21, %v6485_v33  ;;  %v6497_v43 = vld [vmem:[%s17056_s10 + $0x2b0] sm:$0xff]  ;;  %v6844_v33 = vld [vmem:[%s17060_s1 + $0xe8] sm:$0xff] }
0x1d92   :  { %v6318_v48 = vadd.f32 %v6317_v44, %v6308_v42  ;;  %v9838_v42 = vpack.c.bf16 %v6497_v43, %v6493_v29  ;;  %v9840_v44 = vpack.c.bf16 %v6506_v41, %v6502_v6  ;;  %v6846_v41 = vld [vmem:[%s17060_s1 + $0xf8] sm:$0xff] }
0x1d94   :  { %7682 = vmatmul.mubr.f32.vlgmr.msra.gmra.mrb[52].mxu1 %v6318_v48  ;;  %v6505_v48 = vld [vmem:[%s17056_s10 + $0x2f0] sm:$0xff] }
0x1d95   :  { %6674 = vmatprep.mubr.f32.mxu1 %v16533_v61  ;;  %9799 = vmatpush1.bf16.msra.mxu1 %v9798_v34  ;;  %v6442_v61 = vld [vmem:[%s17056_s10 + $0xf8] sm:$0xff]  ;;  %v6501_v34 = vld [vmem:[%s17056_s10 + $0x2d0] sm:$0xff] }
0x1d96   :  { %9801 = vmatprep.subr.bf16.mxu1 %v9800_v46  ;;  %v9808_v60 = vpack.c.bf16 %v6442_v61, %v6438_v45  ;;  %v6510_v46 = vld [vmem:[%s17056_s10 + $0x318] sm:$0xff]  ;;  %v9842_v49 = vpack.c.bf16 %v6505_v48, %v6501_v34  ;;  %v9784_v61 = vpack.c.bf16 %v6520_v57, %v6516_v53 }
0x1d97   :  { %v9844_v40 = vpack.c.bf16 %v6514_v47, %v6510_v46  ;;  %v6518_v45 = vld [vmem:[%s17056_s10 + $0x358] sm:$0xff] }
0x1d98   :  { %9785 = vmatprep.subr.bf16.mxu0 %v9784_v61 }
0x1d99   :  { %9803 = vmatpush1.bf16.msra.mxu1 %v9802_v55  ;;  %v6513_v55 = vld [vmem:[%s17056_s10 + $0x330] sm:$0xff] }
0x1d9a   :  { %9805 = vmatprep.subr.bf16.mxu1 %v9804_v52  ;;  %v9846_v52 = vpack.c.bf16 %v6513_v55, %v6509_v13 }
0x1d9d   :  { %9807 = vmatpush1.bf16.msra.mxu1 %v9806_v62  ;;  %v6522_v62 = vld [vmem:[%s17056_s10 + $0x378] sm:$0xff] }
0x1d9e   :  { %9809 = vmatprep.subr.bf16.mxu1 %v9808_v60  ;;  %v6515_v60 = vld [vmem:[%s17056_s10 + $0x340] sm:$0xff]  ;;  %v9848_v56 = vpack.c.bf16 %v6522_v62, %v6518_v45 }
0x1d9f   :  { %v9786_v51 = vpack.c.bf16 %v6519_v50, %v6515_v60 }
0x1da1   :  { %9811 = vmatpush1.bf16.msra.mxu1 %v9810_v54  ;;  %v6521_v54 = vld [vmem:[%s17056_s10 + $0x370] sm:$0xff]  ;;  %9787 = vmatpush1.bf16.msra.mxu0 %v9786_v51 }
0x1da2   :  { %9813 = vmatprep.subr.bf16.mxu1 %v9812_v1  ;;  %v9850_v1 = vpack.c.bf16 %v6521_v54, %v6517_v0  ;;  %9789 = vmatprep.subr.bf16.mxu0 %v9788_v8 }
0x1da5   :  { %9815 = vmatpush1.bf16.msra.mxu1 %v9814_v63  ;;  %v6530_v63 = vld [vmem:[%s17056_s10 + $0x3b8] sm:$0xff] }
0x1da6   :  { %9817 = vmatprep.subr.bf16.mxu1 %v9816_v10  ;;  %v6523_v10 = vld [vmem:[%s17056_s10 + $0x380] sm:$0xff]  ;;  %v9852_v14 = vpack.c.bf16 %v6530_v63, %v6526_v7 }
0x1da7   :  { %v9790_v5 = vpack.c.bf16 %v6527_v12, %v6523_v10 }
0x1da9   :  { %9819 = vmatpush1.bf16.msra.mxu1 %v9818_v16  ;;  %v6529_v16 = vld [vmem:[%s17056_s10 + $0x3b0] sm:$0xff]  ;;  %9791 = vmatpush1.bf16.msra.mxu0 %v9790_v5 }
0x1daa   :  { %9821 = vmatprep.subr.bf16.mxu1 %v9820_v18  ;;  %v6532_v18 = vld [vmem:[%s17056_s10 + $0x3c8] sm:$0xff]  ;;  %v9854_v19 = vpack.c.bf16 %v6529_v16, %v6525_v2 }
0x1dad   :  { %9823 = vmatpush1.bf16.msra.mxu1 %v9822_v22  ;;  %v9792_v22 = vpack.c.bf16 %v6536_v37, %v6532_v18 }
0x1dae   :  { %9825 = vmatprep.subr.bf16.mxu1 %v9824_v23  ;;  %v9856_v23 = vpack.c.bf16 %v6538_v9, %v6534_v11 }
0x1daf   :  { %9793 = vmatprep.subr.bf16.mxu0 %v9792_v22 }
0x1db0   :  { %9795 = vmatpush1.bf16.msra.mxu0 %v9794_v15 }
0x1db1   :  { %9827 = vmatpush1.bf16.msra.mxu1 %v9826_v17  ;;  %v6537_v17 = vld [vmem:[%s17056_s10 + $0x3f0] sm:$0xff] }
0x1db2   :  { %9829 = vmatprep.subr.bf16.mxu1 %v9828_v27  ;;  %v9858_v27 = vpack.c.bf16 %v6537_v17, %v6533_v26 }
0x1db5   :  { %9831 = vmatpush1.bf16.msra.mxu1 %v9830_v32 }
0x1db6   :  { %9833 = vmatprep.subr.bf16.mxu1 %v9832_v20  ;;  %v6843_v20 = vld [vmem:[%s17060_s1 + $0xe0] sm:$0xff] }
0x1db9   :  { %9835 = vmatpush1.bf16.msra.mxu1 %v9834_v36 }
0x1dba   :  { %9837 = vmatprep.subr.bf16.mxu1 %v9836_v39 }
0x1dbd   :  { %9839 = vmatpush1.bf16.msra.mxu1 %v9838_v42 }
0x1dbe   :  { %9841 = vmatprep.subr.bf16.mxu1 %v9840_v44  ;;  %v6845_v44 = vld [vmem:[%s17060_s1 + $0xf0] sm:$0xff] }
0x1dc1   :  { %9843 = vmatpush1.bf16.msra.mxu1 %v9842_v49 }
0x1dc2   :  { %9845 = vmatprep.subr.bf16.mxu1 %v9844_v40 }
0x1dc5   :  { %9847 = vmatpush1.bf16.msra.mxu1 %v9846_v52 }
0x1dc6   :  { %9849 = vmatprep.subr.bf16.mxu1 %v9848_v56 }
0x1dc9   :  { %9851 = vmatpush1.bf16.msra.mxu1 %v9850_v1 }
0x1dca   :  { %9853 = vmatprep.subr.bf16.mxu1 %v9852_v14 }
0x1dcd   :  { %9855 = vmatpush1.bf16.msra.mxu1 %v9854_v19 }
0x1dce   :  { %9857 = vmatprep.subr.bf16.mxu1 %v9856_v23 }
0x1dd1   :  { %9859 = vmatpush1.bf16.msra.mxu1 %v9858_v27 }
0x1e67   :  { %v6401_v28 = vpop.f32.mrb[52].mxu1 }
0x1e68   :  { %v6402_v31 = vadd.f32 %v10180_v30, %v6401_v28  ;;  %v7683_v3 = vpop.f32.mrb[53].mxu1 }
0x1e6a   :  { %10149 = vtanh.f32 %v6402_v31 }
0x1e74   :  { %v10150_v32 = vpop.eup %10149 }
0x1e75   :  { %6604 = vmatmul.mubr.f32.vlgmr.msra.gmra.mrb[54].mxu0 %v10150_v32  ;;  %6675 = vmatmul.mubr.f32.vlgmr.msra.gmra.mrb[54].mxu1 %v10150_v32 }
0x1f48   :  { %v6605_v21 = vpop.f32.mrb[54].mxu0  ;;  %v6676_v38 = vpop.f32.mrb[54].mxu1 }
0x1f49   :  { %v6681_v35 = vadd.f32 %v6843_v20, %v6605_v21  ;;  %v6607_v36 = vpop.f32.mrb[55].mxu0  ;;  %v6678_v39 = vpop.f32.mrb[55].mxu1  ;;  %v6683_v48 = vadd.f32 %v6845_v44, %v6676_v38 }
0x1f4a   :  { %v6682_v29 = vadd.f32 %v6844_v33, %v6607_v36  ;;  %v6684_v42 = vadd.f32 %v6846_v41, %v6678_v39 }
0x1f4b   :  { %v6847_v43 = vmul.f32 -1.442695, %v6681_v35 }
0x1f4c   :  { %v6848_v6 = vmul.f32 -1.442695, %v6682_v29  ;;  %v6849_v34 = vmul.f32 -1.442695, %v6684_v42 }
0x1f4d   :  { %10151 = vpow2.f32 %v6847_v43 }
0x1f4e   :  { %10153 = vpow2.f32 %v6848_v6 }
0x1f4f   :  { %10155 = vpow2.f32 %v6849_v34 }
0x1f50   :  { %10157 = vtanh.f32 %v6683_v48 }
0x1f57   :  { %v10152_v46 = vpop.eup %10151 }
0x1f58   :  { %v10154_v47 = vpop.eup %10153  ;;  %v6688_v49 = vadd.f32 1.0, %v10152_v46 }
0x1f59   :  { %v6694_v40 = vadd.f32 1.0, %v10154_v47  ;;  %v10156_v13 = vpop.eup %10155 }
0x1f5a   :  { %10159 = vrcp.f32 %v6688_v49  ;;  %v10158_v55 = vpop.eup %10157  ;;  %v6701_v45 = vadd.f32 1.0, %v10156_v13 }
0x1f5b   :  { %10161 = vrcp.f32 %v6694_v40 }
0x1f5c   :  { %10163 = vrcp.f32 %v6701_v45 }
0x1f64   :  { %v10160_v52 = vpop.eup %10159 }
0x1f65   :  { %v10162_v53 = vpop.eup %10161  ;;  %v6705_v57 = vmul.f32 %v10160_v52, %v10158_v55 }
0x1f66   :  { %v6704_v61 = vmul.f32 %v10162_v53, %v16524_v59  ;;  %v10164_v60 = vpop.eup %10163 }
0x1f68   :  { %v6706_v62 = vadd.f32 %v6705_v57, %v6704_v61 }
0x1f6a   :  { %10165 = vtanh.f32 %v6706_v62 }
0x1f74   :  { %v10166_v50 = vpop.eup %10165 }
0x1f75   :  { %v6708_v56 = vmul.f32 %v10166_v50, %v10164_v60 }
0x1f77   :  { %6851 = vst [vmem:[%s17061_s12 + $0x38] sm:$0xff] %v6708_v56 }

</bundles_post_ra>
